<compile_context>
chip_gen: v7x
topology: tpu7x:2x2x1
jax: 0.10.0
libtpu: 0.0.40
codegen_flags: <defaults>
</compile_context>

<pallas_src>
import functools

import jax
import jax.numpy as jnp
from jax import lax
from jax.experimental import pallas as pl
from jax.experimental.pallas import tpu as pltpu

NHID = 32          # args.nhid
NFEAT = 16         # args.num_features
TAU = 1.0          # args.tau (unused in the default forward path)

CP = 256           # padded Set2Set channel width (6H=192 -> 256)


# ----------------------------------------------------------------------------
# BlockSpec helpers
# ----------------------------------------------------------------------------
def pair_spec(block_dims):
    """Per-pair input: leading pair axis on the grid, squeezed inside kernel."""
    nd = len(block_dims)
    return pl.BlockSpec((None,) + tuple(block_dims),
                        lambda p, _nd=nd: (p,) + (0,) * _nd)


def weight_spec(dims):
    """Weights: constant block index -> DMA'd once, resident across the grid."""
    nd = len(dims)
    return pl.BlockSpec(tuple(dims), lambda p, _nd=nd: (0,) * _nd)


# ----------------------------------------------------------------------------
# single fused Pallas kernel (one grid step == one full forward for one pair)
# ----------------------------------------------------------------------------
def _fused_forward_kernel(n1, nb,
                          a_ref, x_ref, im0_ref, im1_ref, s_ref,
                          w0_ref, b0_ref, w1_ref, b1_ref, w2_ref, b2_ref,
                          wih_ref, whh_ref, bg_ref,
                          wp1_ref, bp1_ref, wp2_ref, bp2_ref, wp3_ref, bp3_ref,
                          o_ref):
    f32 = jnp.float32
    bf16 = jnp.bfloat16
    a = a_ref[...]                                      # (N, N) bf16 A_hat

    def gcn(x_in, w_ref, b_ref):
        xw = jnp.dot(x_in.astype(bf16), w_ref[...], preferred_element_type=f32)
        y = jnp.dot(a, xw.astype(bf16), preferred_element_type=f32) + b_ref[...]
        return jnp.maximum(y, 0.2 * y)                  # leaky_relu(slope=0.2)

    # GCN weights are zero-placed so each layer writes a disjoint 32-lane band
    # of a 128-lane tile; feat = sum builds cat([c0, c1, c2]) with no shuffles.
    f0 = gcn(x_ref[...], w0_ref, b0_ref)                # c0 in lanes [0,32)
    f1 = gcn(f0, w1_ref, b1_ref)                        # c1 in lanes [32,64)
    f2 = gcn(f1, w2_ref, b2_ref)                        # c2 in lanes [64,96)
    feat = f0 + f1 + f2                                 # (N, 128) = [c0|c1|c2|0]

    # F.normalize(dim=1): x / max(||x||, eps) == x * rsqrt(max(||x||^2, eps^2))
    eps = 1e-12
    ss = jnp.sum(feat * feat, axis=1, keepdims=True)
    fn = feat * lax.rsqrt(jnp.maximum(ss, eps * eps))

    f1n = fn[:n1, :]                                    # (N1, 128)
    f2n = fn[n1:, :]                                    # (N2, 128)
    f1nb = f1n.astype(bf16)
    f2nb = f2n.astype(bf16)

    # len_map = int_map0^T @ int_map1  (contract shared leading axis)
    len_map = lax.dot_general(im0_ref[...], im1_ref[...],
                              (((0,), (0,)), ((), ())),
                              preferred_element_type=f32)          # (N1, N2)
    inter = lax.dot_general(f1nb, f2nb, (((1,), (1,)), ((), ())),
                            preferred_element_type=f32) * len_map  # (N1, N2)
    interb = inter.astype(bf16)
    f1p = jnp.dot(interb, f2nb, preferred_element_type=f32)        # (N1, 128)
    f2p = lax.dot_general(interb, f1nb, (((0,), (0,)), ((), ())),
                          preferred_element_type=f32)              # (N2, 128)

    # (N, 256) node features for both sides; concat boundary is 128-aligned.
    xfeat = jnp.concatenate(
        [fn, jnp.concatenate([f1p, f2p], axis=0)], axis=1)
    xfeat_b = xfeat.astype(bf16)

    # ---- Set2Set: both graph sides processed together (2B LSTM rows) ----
    s = s_ref[...]                                      # (2B, N) block-diag 1-hot
    rows = 2 * nb
    neg_big = f32(-3.0e38)

    h = jnp.zeros((rows, CP), f32)
    cc = jnp.zeros((rows, CP), f32)
    q_star = jnp.zeros((rows, 2 * CP), f32)

    for _ in range(2):                                  # num_step_set2set = 2
        # all 4 LSTM gates in 2 matmuls (256-lane gate stride)
        pre = (jnp.dot(q_star.astype(bf16), wih_ref[...],
                       preferred_element_type=f32)
               + jnp.dot(h.astype(bf16), whh_ref[...],
                         preferred_element_type=f32)
               + bg_ref[...])                           # (2B, 1024)
        i_g = jax.nn.sigmoid(pre[:, 0 * CP:1 * CP])
        f_g = jax.nn.sigmoid(pre[:, 1 * CP:2 * CP])
        g_g = jnp.tanh(pre[:, 2 * CP:3 * CP])
        o_g = jax.nn.sigmoid(pre[:, 3 * CP:4 * CP])
        cc = f_g * cc + i_g * g_g
        h = o_g * jnp.tanh(cc)
        q = h                                           # (2B, 256)

        # segment softmax + segment sum as dense masked math + matmuls
        logit = lax.dot_general(q.astype(bf16), xfeat_b,
                                (((1,), (1,)), ((), ())),
                                preferred_element_type=f32)        # (2B, N)
        in_seg = s > 0.0
        masked = jnp.where(in_seg, logit, neg_big)
        mx = jnp.max(masked, axis=1, keepdims=True)
        aexp = jnp.where(in_seg, jnp.exp(masked - mx), 0.0)
        asum = jnp.sum(aexp, axis=1, keepdims=True)
        # deferred normalization: divide the (2B, 256) result, not the (2B, N)
        # attention tile; reciprocal goes to the otherwise-idle EUP slot.
        r = (jnp.dot(aexp.astype(bf16), xfeat_b, preferred_element_type=f32)
             * pl.reciprocal(asum + 1e-16, approx=True))           # (2B, 256)
        q_star = jnp.concatenate([q, r], axis=1)                   # (2B, 512)

    # final_features = cat(graph1, graph2) -> (B, 1024)
    final = jnp.concatenate([q_star[:nb, :], q_star[nb:, :]], axis=1)

    # predictor MLP + sigmoid; output is a lane-dense (nb, 128) slab (col 0 valid)
    h1 = jnp.maximum(jnp.dot(final.astype(bf16), wp1_ref[...],
                             preferred_element_type=f32) + bp1_ref[...], 0.0)
    h2 = jnp.maximum(jnp.dot(h1.astype(bf16), wp2_ref[...],
                             preferred_element_type=f32) + bp2_ref[...], 0.0)
    z = jnp.dot(h2.astype(bf16), wp3_ref[...],
                preferred_element_type=f32) + bp3_ref[...]
    o_ref[...] = jax.nn.sigmoid(z)


# ----------------------------------------------------------------------------
# plain-JAX glue (no scatter ops — one-hot matmuls only)
# ----------------------------------------------------------------------------
def build_gcn_adj(edge_index, edge_weight, num_nodes):
    """Dense D^{-1/2}(A_w + I)D^{-1/2} matching torch_geometric GCNConv gcn_norm."""
    src, dst = edge_index[0], edge_index[1]
    src_oh = jax.nn.one_hot(src, num_nodes, dtype=jnp.float32)   # (E, N)
    dst_oh = jax.nn.one_hot(dst, num_nodes, dtype=jnp.float32)   # (E, N)
    a = (dst_oh * edge_weight[:, None]).T @ src_oh               # A[dst, src] += w
    a = a + jnp.eye(num_nodes, dtype=jnp.float32)                # self loops (1.0)
    deg = jnp.sum(a, axis=1)
    dinv = jnp.where(deg > 0.0, lax.rsqrt(deg), 0.0)
    return dinv[:, None] * a * dinv[None, :]


def block_diag_2(m1, m2):
    r1, c1 = m1.shape
    r2, c2 = m2.shape
    top = jnp.concatenate([m1, jnp.zeros((r1, c2), m1.dtype)], axis=1)
    bot = jnp.concatenate([jnp.zeros((r2, c1), m2.dtype), m2], axis=1)
    return jnp.concatenate([top, bot], axis=0)


def _pad_ch(x, axis):
    """Map a 192-channel axis to 256 lanes: [0:96)->[0:96), [96:192)->[128:224)."""
    a, b = jnp.split(x, 2, axis=axis)
    pads = [(0, 0)] * x.ndim
    pads[axis] = (0, 32)
    return jnp.concatenate([jnp.pad(a, pads), jnp.pad(b, pads)], axis=axis)


def _pad_axis_192(x, axis):
    """Apply _pad_ch to every consecutive 192-chunk along `axis`."""
    chunks = jnp.split(x, x.shape[axis] // 192, axis=axis)
    return jnp.concatenate([_pad_ch(c, axis) for c in chunks], axis=axis)


def _prepare_weights(params):
    """128-aligned, bf16, gate-fused weight layout (built once per forward)."""
    bf16 = jnp.bfloat16

    # GCN weights zero-placed at 32-lane offsets inside a 128-lane tile.
    w0p = jnp.pad(params["w_conv0"], ((0, 0), (0, 96))).astype(bf16)     # (F,128)
    b0p = jnp.pad(params["b_conv0"], (0, 96)).reshape(1, 128)
    w1p = jnp.pad(params["w_conv1"], ((0, 96), (32, 64))).astype(bf16)   # (128,128)
    b1p = jnp.pad(params["b_conv1"], (32, 64)).reshape(1, 128)
    w2p = jnp.pad(params["w_conv2"], ((32, 64), (64, 32))).astype(bf16)  # (128,128)
    b2p = jnp.pad(params["b_conv2"], (64, 32)).reshape(1, 128)

    # LSTM (gate order i, f, g, o): fuse all 4 gates into single (in, 4*256)
    # matrices with a 256-lane gate stride; padded columns/rows are zero so the
    # pad lanes of h / c stay exactly zero.
    w_ih, w_hh, b_ih, b_hh = params["lstm"]
    wih_g = [_pad_axis_192(_pad_ch(g.T, 1), 0) for g in jnp.split(w_ih, 4, axis=0)]
    whh_g = [_pad_ch(_pad_ch(g.T, 1), 0) for g in jnp.split(w_hh, 4, axis=0)]
    bg_g = [_pad_ch(g, 0) for g in jnp.split(b_ih + b_hh, 4, axis=0)]
    wih_f = jnp.concatenate(wih_g, axis=1).astype(bf16)         # (512, 1024)
    whh_f = jnp.concatenate(whh_g, axis=1).astype(bf16)         # (256, 1024)
    bg_f = jnp.concatenate(bg_g, axis=0).reshape(1, 4 * CP)     # (1, 1024) f32

    wp1p = _pad_axis_192(params["w_p1"], 0).astype(bf16)        # (1024, 256)
    bp1 = params["b_p1"].reshape(1, -1)
    wp2 = params["w_p2"].astype(bf16)                           # (256, 128)
    bp2 = params["b_p2"].reshape(1, -1)
    wp3p = jnp.pad(params["w_p3"], ((0, 0), (0, 127))).astype(bf16)  # (128,128)
    bp3p = jnp.pad(params["b_p3"], (0, 127)).reshape(1, 128)
    return (w0p, b0p, w1p, b1p, w2p, b2p, wih_f, whh_f, bg_f,
            wp1p, bp1, wp2, bp2, wp3p, bp3p)


def _prepare_pair(data, int_map, nb):
    g1, g2 = data["g1"], data["g2"]
    n1 = g1["x"].shape[0]
    n2 = g2["x"].shape[0]
    a1 = build_gcn_adj(g1["edge_index"], g1["edge_attr"], n1)
    a2 = build_gcn_adj(g2["edge_index"], g2["edge_attr"], n2)
    a_comb = block_diag_2(a1, a2).astype(jnp.bfloat16)          # (N, N)
    x_comb = jnp.concatenate([g1["x"], g2["x"]], axis=0)        # (N, F)
    s1 = jax.nn.one_hot(g1["batch"], nb, dtype=jnp.float32).T   # (B, N1)
    s2 = jax.nn.one_hot(g2["batch"], nb, dtype=jnp.float32).T   # (B, N2)
    s_all = block_diag_2(s1, s2)                                # (2B, N)
    im0 = int_map[0].astype(jnp.bfloat16)
    im1 = int_map[1].astype(jnp.bfloat16)
    return a_comb, x_comb, im0, im1, s_all, n1


def cgib_cont_forward_batched(params, pairs, num_graphs):
    """Run P independent (data, int_map) forward passes in one pallas_call.

    All pairs must share node / int_map shapes (pad externally if ragged).
    Returns (P, num_graphs) sigmoid scores.
    """
    nb = int(num_graphs)                    # static — never a traced value
    prepped = [_prepare_pair(d, m, nb) for (d, m) in pairs]
    n1 = prepped[0][5]

    a_all = jnp.stack([p[0] for p in prepped])        # (P, N, N) bf16
    x_all = jnp.stack([p[1] for p in prepped])        # (P, N, F) f32
    im0_all = jnp.stack([p[2] for p in prepped])      # (P, M, N1) bf16
    im1_all = jnp.stack([p[3] for p in prepped])      # (P, M, N2) bf16
    s_all = jnp.stack([p[4] for p in prepped])        # (P, 2B, N) f32

    weights = _prepare_weights(params)
    pair_inputs = (a_all, x_all, im0_all, im1_all, s_all)
    inputs = pair_inputs + weights
    num_pairs = a_all.shape[0]

    in_specs = ([pair_spec(t.shape[1:]) for t in pair_inputs]
                + [weight_spec(t.shape) for t in weights])

    kernel = functools.partial(_fused_forward_kernel, n1, nb)
    out = pl.pallas_call(
        kernel,
        grid=(num_pairs,),
        in_specs=in_specs,
        out_specs=pl.BlockSpec((None, nb, 128), lambda p: (p, 0, 0)),
        out_shape=jax.ShapeDtypeStruct((num_pairs, nb, 128), jnp.float32),
        compiler_params=pltpu.CompilerParams(
            dimension_semantics=("parallel",),          # shard pairs across TCs
            vmem_limit_bytes=32 * 1024 * 1024),
    )(*inputs)
    return out[:, :, 0]                                 # lane-dense slab, col 0


def cgib_cont_forward(params, data, int_map, num_graphs):
    """Single-pair forward (matches torch .view(-1) output of shape (B,))."""
    return cgib_cont_forward_batched(params, [(data, int_map)], num_graphs)[0]


# ----------------------------------------------------------------------------
# deterministic parameter init (xavier_uniform for linears, zero biases)
# ----------------------------------------------------------------------------
def xavier(key, fan_in, fan_out):
    bound = jnp.sqrt(6.0 / (fan_in + fan_out))
    return jax.random.uniform(key, (fan_in, fan_out), jnp.float32, -bound, bound)


def make_params(key):
    ks = jax.random.split(key, 10)
    H = NHID
    in6 = 6 * H                      # Set2Set in_channels (192)
    params = {
        "w_conv0": xavier(ks[0], NFEAT, H), "b_conv0": jnp.zeros((H,), jnp.float32),
        "w_conv1": xavier(ks[1], H, H),     "b_conv1": jnp.zeros((H,), jnp.float32),
        "w_conv2": xavier(ks[2], H, H),     "b_conv2": jnp.zeros((H,), jnp.float32),
        "w_p1": xavier(ks[3], 24 * H, 256), "b_p1": jnp.zeros((256,), jnp.float32),
        "w_p2": xavier(ks[4], 256, 128),    "b_p2": jnp.zeros((128,), jnp.float32),
        "w_p3": xavier(ks[5], 128, 1),      "b_p3": jnp.zeros((1,), jnp.float32),
    }
    s = 1.0 / jnp.sqrt(in6)
    params["lstm"] = (
        jax.random.uniform(ks[6], (4 * in6, 2 * in6), jnp.float32, -s, s),  # W_ih
        jax.random.uniform(ks[7], (4 * in6, in6), jnp.float32, -s, s),      # W_hh
        jax.random.uniform(ks[8], (4 * in6,), jnp.float32, -s, s),          # b_ih
        jax.random.uniform(ks[9], (4 * in6,), jnp.float32, -s, s),          # b_hh
    )
    return params


def ring_edges(offset, n):
    src, dst = [], []
    for i in range(n):
        j = (i + 1) % n
        src += [offset + i, offset + j]
        dst += [offset + j, offset + i]
    return src, dst


if __name__ == "__main__":
    key = jax.random.PRNGKey(0)
    k_param, k_data = jax.random.split(key)
    params = make_params(k_param)

    # P independent pairs; each pair side holds B=2 graphs of 8 nodes (ring).
    N1, N2, M, B, P = 16, 16, 8, 2, 4
    s1a, d1a = ring_edges(0, 8)
    s1b, d1b = ring_edges(8, 8)
    ei = jnp.array([s1a + s1b, d1a + d1b], jnp.int32)
    batch = jnp.array([0] * 8 + [1] * 8, jnp.int32)

    pairs = []
    for p in range(P):
        kp = jax.random.fold_in(k_data, p)
        k_x1, k_x2, k_w1, k_w2, k_m0, k_m1 = jax.random.split(kp, 6)
        data = {
            "g1": {"x": jax.random.normal(k_x1, (N1, NFEAT), jnp.float32),
                   "edge_index": ei,
                   "edge_attr": jax.random.uniform(k_w1, (ei.shape[1],),
                                                   jnp.float32, 0.5, 1.5),
                   "batch": batch},
            "g2": {"x": jax.random.normal(k_x2, (N2, NFEAT), jnp.float32),
                   "edge_index": ei,
                   "edge_attr": jax.random.uniform(k_w2, (ei.shape[1],),
                                                   jnp.float32, 0.5, 1.5),
                   "batch": batch},
        }
        int_map = (jax.random.bernoulli(k_m0, 0.3, (M, N1)).astype(jnp.float32),
                   jax.random.bernoulli(k_m1, 0.3, (M, N2)).astype(jnp.float32))
        pairs.append((data, int_map))

    scores = cgib_cont_forward_batched(params, pairs, num_graphs=B)
    scores = jax.block_until_ready(scores)
    assert scores.shape == (P, B)
    assert bool(jnp.all(jnp.isfinite(scores)))
    assert bool(jnp.all((scores >= 0.0) & (scores <= 1.0)))

    # single-pair convenience path (same math as batched row 0)
    s0 = jax.block_until_ready(cgib_cont_forward(params, *pairs[0], num_graphs=B))
    assert s0.shape == (B,)
    assert bool(jnp.allclose(s0, scores[0], atol=1e-4, rtol=1e-4))

    print("KERNEL_OK")
</pallas_src>

<mosaic_0001>
module attributes {stable_mosaic.version = 11 : i64} {
  func.func @_fused_forward_kernel(%arg0: i32, %arg1: memref<1x32x32xbf16, #tpu.memory_space<vmem>>, %arg2: memref<1x32x16xf32, #tpu.memory_space<vmem>>, %arg3: memref<1x8x16xbf16, #tpu.memory_space<vmem>>, %arg4: memref<1x8x16xbf16, #tpu.memory_space<vmem>>, %arg5: memref<1x4x32xf32, #tpu.memory_space<vmem>>, %arg6: memref<16x128xbf16, #tpu.memory_space<vmem>>, %arg7: memref<1x128xf32, #tpu.memory_space<vmem>>, %arg8: memref<128x128xbf16, #tpu.memory_space<vmem>>, %arg9: memref<1x128xf32, #tpu.memory_space<vmem>>, %arg10: memref<128x128xbf16, #tpu.memory_space<vmem>>, %arg11: memref<1x128xf32, #tpu.memory_space<vmem>>, %arg12: memref<512x1024xbf16, #tpu.memory_space<vmem>>, %arg13: memref<256x1024xbf16, #tpu.memory_space<vmem>>, %arg14: memref<1x1024xf32, #tpu.memory_space<vmem>>, %arg15: memref<1024x256xbf16, #tpu.memory_space<vmem>>, %arg16: memref<1x256xf32, #tpu.memory_space<vmem>>, %arg17: memref<256x128xbf16, #tpu.memory_space<vmem>>, %arg18: memref<1x128xf32, #tpu.memory_space<vmem>>, %arg19: memref<128x128xbf16, #tpu.memory_space<vmem>>, %arg20: memref<1x128xf32, #tpu.memory_space<vmem>>, %arg21: memref<1x2x128xf32, #tpu.memory_space<vmem>>) attributes {dimension_semantics = [#tpu.dimension_semantics<parallel>], iteration_bounds = array<i64: 4>, scalar_prefetch = 0 : i64, scratch_operands = 0 : i64, tpu.core_type = #tpu.core_type<tc>, window_params = [{transform_indices = @transform_0, window_bounds = array<i64: 1, 32, 32>}, {transform_indices = @transform_1, window_bounds = array<i64: 1, 32, 16>}, {transform_indices = @transform_2, window_bounds = array<i64: 1, 8, 16>}, {transform_indices = @transform_3, window_bounds = array<i64: 1, 8, 16>}, {transform_indices = @transform_4, window_bounds = array<i64: 1, 4, 32>}, {pipeline_mode = #tpu.pipeline_mode<synchronous>, transform_indices = @transform_5, window_bounds = array<i64: 16, 128>}, {pipeline_mode = #tpu.pipeline_mode<synchronous>, transform_indices = @transform_6, window_bounds = array<i64: 1, 128>}, {pipeline_mode = #tpu.pipeline_mode<synchronous>, transform_indices = @transform_7, window_bounds = array<i64: 128, 128>}, {pipeline_mode = #tpu.pipeline_mode<synchronous>, transform_indices = @transform_8, window_bounds = array<i64: 1, 128>}, {pipeline_mode = #tpu.pipeline_mode<synchronous>, transform_indices = @transform_9, window_bounds = array<i64: 128, 128>}, {pipeline_mode = #tpu.pipeline_mode<synchronous>, transform_indices = @transform_10, window_bounds = array<i64: 1, 128>}, {pipeline_mode = #tpu.pipeline_mode<synchronous>, transform_indices = @transform_11, window_bounds = array<i64: 512, 1024>}, {pipeline_mode = #tpu.pipeline_mode<synchronous>, transform_indices = @transform_12, window_bounds = array<i64: 256, 1024>}, {pipeline_mode = #tpu.pipeline_mode<synchronous>, transform_indices = @transform_13, window_bounds = array<i64: 1, 1024>}, {pipeline_mode = #tpu.pipeline_mode<synchronous>, transform_indices = @transform_14, window_bounds = array<i64: 1024, 256>}, {pipeline_mode = #tpu.pipeline_mode<synchronous>, transform_indices = @transform_15, window_bounds = array<i64: 1, 256>}, {pipeline_mode = #tpu.pipeline_mode<synchronous>, transform_indices = @transform_16, window_bounds = array<i64: 256, 128>}, {pipeline_mode = #tpu.pipeline_mode<synchronous>, transform_indices = @transform_17, window_bounds = array<i64: 1, 128>}, {pipeline_mode = #tpu.pipeline_mode<synchronous>, transform_indices = @transform_18, window_bounds = array<i64: 128, 128>}, {pipeline_mode = #tpu.pipeline_mode<synchronous>, transform_indices = @transform_19, window_bounds = array<i64: 1, 128>}, {transform_indices = @transform_20, window_bounds = array<i64: 1, 2, 128>}]} {
    %c0 = arith.constant 0 : index
    %c0_0 = arith.constant 0 : index
    %c0_1 = arith.constant 0 : index
    %0 = vector.load %arg1[%c0, %c0_0, %c0_1] : memref<1x32x32xbf16, #tpu.memory_space<vmem>>, vector<1x32x32xbf16>
    %1 = vector.shape_cast %0 : vector<1x32x32xbf16> to vector<32x32xbf16>
    %c0_2 = arith.constant 0 : index
    %c0_3 = arith.constant 0 : index
    %c0_4 = arith.constant 0 : index
    %2 = vector.load %arg2[%c0_2, %c0_3, %c0_4] : memref<1x32x16xf32, #tpu.memory_space<vmem>>, vector<1x32x16xf32>
    %3 = vector.shape_cast %2 : vector<1x32x16xf32> to vector<32x16xf32>
    %4 = arith.truncf %3 : vector<32x16xf32> to vector<32x16xbf16>
    %c0_5 = arith.constant 0 : index
    %c0_6 = arith.constant 0 : index
    %5 = vector.load %arg6[%c0_5, %c0_6] : memref<16x128xbf16, #tpu.memory_space<vmem>>, vector<16x128xbf16>
    %cst = arith.constant dense<0.000000e+00> : vector<32x128xf32>
    %6 = tpu.matmul %4, %5, %cst {dimension_numbers = #tpu.dot_dimension_numbers<[1], [0], [0], [1], [0, 0, 1, 1], [], []>} : vector<32x16xbf16>, vector<16x128xbf16>, vector<32x128xf32> -> vector<32x128xf32>
    %7 = arith.truncf %6 : vector<32x128xf32> to vector<32x128xbf16>
    %cst_7 = arith.constant dense<0.000000e+00> : vector<32x128xf32>
    %8 = tpu.matmul %1, %7, %cst_7 {dimension_numbers = #tpu.dot_dimension_numbers<[1], [0], [0], [1], [0, 0, 1, 1], [], []>} : vector<32x32xbf16>, vector<32x128xbf16>, vector<32x128xf32> -> vector<32x128xf32>
    %c0_8 = arith.constant 0 : index
    %c0_9 = arith.constant 0 : index
    %9 = vector.load %arg7[%c0_8, %c0_9] : memref<1x128xf32, #tpu.memory_space<vmem>>, vector<1x128xf32>
    %10 = vector.broadcast %9 : vector<1x128xf32> to vector<32x128xf32>
    %11 = arith.addf %8, %10 : vector<32x128xf32>
    %cst_10 = arith.constant 2.000000e-01 : f32
    %12 = vector.broadcast %cst_10 : f32 to vector<32x128xf32>
    %13 = arith.mulf %12, %11 : vector<32x128xf32>
    %14 = arith.maximumf %11, %13 : vector<32x128xf32>
    %15 = arith.truncf %14 : vector<32x128xf32> to vector<32x128xbf16>
    %c0_11 = arith.constant 0 : index
    %c0_12 = arith.constant 0 : index
    %16 = vector.load %arg8[%c0_11, %c0_12] : memref<128x128xbf16, #tpu.memory_space<vmem>>, vector<128x128xbf16>
    %cst_13 = arith.constant dense<0.000000e+00> : vector<32x128xf32>
    %17 = tpu.matmul %15, %16, %cst_13 {dimension_numbers = #tpu.dot_dimension_numbers<[1], [0], [0], [1], [0, 0, 1, 1], [], []>} : vector<32x128xbf16>, vector<128x128xbf16>, vector<32x128xf32> -> vector<32x128xf32>
    %18 = arith.truncf %17 : vector<32x128xf32> to vector<32x128xbf16>
    %cst_14 = arith.constant dense<0.000000e+00> : vector<32x128xf32>
    %19 = tpu.matmul %1, %18, %cst_14 {dimension_numbers = #tpu.dot_dimension_numbers<[1], [0], [0], [1], [0, 0, 1, 1], [], []>} : vector<32x32xbf16>, vector<32x128xbf16>, vector<32x128xf32> -> vector<32x128xf32>
    %c0_15 = arith.constant 0 : index
    %c0_16 = arith.constant 0 : index
    %20 = vector.load %arg9[%c0_15, %c0_16] : memref<1x128xf32, #tpu.memory_space<vmem>>, vector<1x128xf32>
    %21 = vector.broadcast %20 : vector<1x128xf32> to vector<32x128xf32>
    %22 = arith.addf %19, %21 : vector<32x128xf32>
    %cst_17 = arith.constant 2.000000e-01 : f32
    %23 = vector.broadcast %cst_17 : f32 to vector<32x128xf32>
    %24 = arith.mulf %23, %22 : vector<32x128xf32>
    %25 = arith.maximumf %22, %24 : vector<32x128xf32>
    %26 = arith.truncf %25 : vector<32x128xf32> to vector<32x128xbf16>
    %c0_18 = arith.constant 0 : index
    %c0_19 = arith.constant 0 : index
    %27 = vector.load %arg10[%c0_18, %c0_19] : memref<128x128xbf16, #tpu.memory_space<vmem>>, vector<128x128xbf16>
    %cst_20 = arith.constant dense<0.000000e+00> : vector<32x128xf32>
    %28 = tpu.matmul %26, %27, %cst_20 {dimension_numbers = #tpu.dot_dimension_numbers<[1], [0], [0], [1], [0, 0, 1, 1], [], []>} : vector<32x128xbf16>, vector<128x128xbf16>, vector<32x128xf32> -> vector<32x128xf32>
    %29 = arith.truncf %28 : vector<32x128xf32> to vector<32x128xbf16>
    %cst_21 = arith.constant dense<0.000000e+00> : vector<32x128xf32>
    %30 = tpu.matmul %1, %29, %cst_21 {dimension_numbers = #tpu.dot_dimension_numbers<[1], [0], [0], [1], [0, 0, 1, 1], [], []>} : vector<32x32xbf16>, vector<32x128xbf16>, vector<32x128xf32> -> vector<32x128xf32>
    %c0_22 = arith.constant 0 : index
    %c0_23 = arith.constant 0 : index
    %31 = vector.load %arg11[%c0_22, %c0_23] : memref<1x128xf32, #tpu.memory_space<vmem>>, vector<1x128xf32>
    %32 = vector.broadcast %31 : vector<1x128xf32> to vector<32x128xf32>
    %33 = arith.addf %30, %32 : vector<32x128xf32>
    %cst_24 = arith.constant 2.000000e-01 : f32
    %34 = vector.broadcast %cst_24 : f32 to vector<32x128xf32>
    %35 = arith.mulf %34, %33 : vector<32x128xf32>
    %36 = arith.maximumf %33, %35 : vector<32x128xf32>
    %37 = arith.addf %14, %25 : vector<32x128xf32>
    %38 = arith.addf %37, %36 : vector<32x128xf32>
    %39 = arith.mulf %38, %38 : vector<32x128xf32>
    %cst_25 = arith.constant dense<0.000000e+00> : vector<32xf32>
    %40 = vector.multi_reduction <add>, %39, %cst_25 [1] : vector<32x128xf32> to vector<32xf32>
    %41 = vector.shape_cast %40 : vector<32xf32> to vector<32x1xf32>
    %cst_26 = arith.constant 1.000000e-24 : f32
    %42 = vector.broadcast %cst_26 : f32 to vector<32x1xf32>
    %43 = arith.maximumf %41, %42 : vector<32x1xf32>
    %44 = math.rsqrt %43 : vector<32x1xf32>
    %45 = vector.broadcast %44 : vector<32x1xf32> to vector<32x128xf32>
    %46 = arith.mulf %38, %45 : vector<32x128xf32>
    %47 = vector.extract_strided_slice %46 {offsets = [0, 0], sizes = [16, 128], strides = [1, 1]} : vector<32x128xf32> to vector<16x128xf32>
    %48 = vector.extract_strided_slice %46 {offsets = [16, 0], sizes = [16, 128], strides = [1, 1]} : vector<32x128xf32> to vector<16x128xf32>
    %49 = arith.truncf %47 : vector<16x128xf32> to vector<16x128xbf16>
    %50 = arith.truncf %48 : vector<16x128xf32> to vector<16x128xbf16>
    %c0_27 = arith.constant 0 : index
    %c0_28 = arith.constant 0 : index
    %c0_29 = arith.constant 0 : index
    %51 = vector.load %arg3[%c0_27, %c0_28, %c0_29] : memref<1x8x16xbf16, #tpu.memory_space<vmem>>, vector<1x8x16xbf16>
    %52 = vector.shape_cast %51 : vector<1x8x16xbf16> to vector<8x16xbf16>
    %c0_30 = arith.constant 0 : index
    %c0_31 = arith.constant 0 : index
    %c0_32 = arith.constant 0 : index
    %53 = vector.load %arg4[%c0_30, %c0_31, %c0_32] : memref<1x8x16xbf16, #tpu.memory_space<vmem>>, vector<1x8x16xbf16>
    %54 = vector.shape_cast %53 : vector<1x8x16xbf16> to vector<8x16xbf16>
    %cst_33 = arith.constant dense<0.000000e+00> : vector<16x16xf32>
    %55 = tpu.matmul %52, %54, %cst_33 {dimension_numbers = #tpu.dot_dimension_numbers<[0], [0], [1], [1], [0, 1, 1, 1], [], []>} : vector<8x16xbf16>, vector<8x16xbf16>, vector<16x16xf32> -> vector<16x16xf32>
    %cst_34 = arith.constant dense<0.000000e+00> : vector<16x16xf32>
    %56 = tpu.matmul %49, %50, %cst_34 {dimension_numbers = #tpu.dot_dimension_numbers<[1], [1], [0], [0], [0, 0, 1, 0], [], []>} : vector<16x128xbf16>, vector<16x128xbf16>, vector<16x16xf32> -> vector<16x16xf32>
    %57 = arith.mulf %56, %55 : vector<16x16xf32>
    %58 = arith.truncf %57 : vector<16x16xf32> to vector<16x16xbf16>
    %cst_35 = arith.constant dense<0.000000e+00> : vector<16x128xf32>
    %59 = tpu.matmul %58, %50, %cst_35 {dimension_numbers = #tpu.dot_dimension_numbers<[1], [0], [0], [1], [0, 0, 1, 1], [], []>} : vector<16x16xbf16>, vector<16x128xbf16>, vector<16x128xf32> -> vector<16x128xf32>
    %cst_36 = arith.constant dense<0.000000e+00> : vector<16x128xf32>
    %60 = tpu.matmul %58, %49, %cst_36 {dimension_numbers = #tpu.dot_dimension_numbers<[0], [0], [1], [1], [0, 1, 1, 1], [], []>} : vector<16x16xbf16>, vector<16x128xbf16>, vector<16x128xf32> -> vector<16x128xf32>
    %61 = tpu.concatenate %59, %60 in 0 : vector<16x128xf32>, vector<16x128xf32> -> vector<32x128xf32>
    %62 = tpu.concatenate %46, %61 in 1 : vector<32x128xf32>, vector<32x128xf32> -> vector<32x256xf32>
    %63 = arith.truncf %62 : vector<32x256xf32> to vector<32x256xbf16>
    %c0_37 = arith.constant 0 : index
    %c0_38 = arith.constant 0 : index
    %c0_39 = arith.constant 0 : index
    %64 = vector.load %arg5[%c0_37, %c0_38, %c0_39] : memref<1x4x32xf32, #tpu.memory_space<vmem>>, vector<1x4x32xf32>
    %65 = vector.shape_cast %64 : vector<1x4x32xf32> to vector<4x32xf32>
    %cst_40 = arith.constant 0.000000e+00 : f32
    %66 = vector.broadcast %cst_40 : f32 to vector<4x256xf32>
    %cst_41 = arith.constant 0.000000e+00 : f32
    %67 = vector.broadcast %cst_41 : f32 to vector<4x256xf32>
    %cst_42 = arith.constant 0.000000e+00 : f32
    %68 = vector.broadcast %cst_42 : f32 to vector<4x512xf32>
    %69 = arith.truncf %68 : vector<4x512xf32> to vector<4x512xbf16>
    %c0_43 = arith.constant 0 : index
    %c0_44 = arith.constant 0 : index
    %70 = vector.load %arg12[%c0_43, %c0_44] : memref<512x1024xbf16, #tpu.memory_space<vmem>>, vector<512x1024xbf16>
    %cst_45 = arith.constant dense<0.000000e+00> : vector<4x1024xf32>
    %71 = tpu.matmul %69, %70, %cst_45 {dimension_numbers = #tpu.dot_dimension_numbers<[1], [0], [0], [1], [0, 0, 1, 1], [], []>} : vector<4x512xbf16>, vector<512x1024xbf16>, vector<4x1024xf32> -> vector<4x1024xf32>
    %72 = arith.truncf %66 : vector<4x256xf32> to vector<4x256xbf16>
    %c0_46 = arith.constant 0 : index
    %c0_47 = arith.constant 0 : index
    %73 = vector.load %arg13[%c0_46, %c0_47] : memref<256x1024xbf16, #tpu.memory_space<vmem>>, vector<256x1024xbf16>
    %cst_48 = arith.constant dense<0.000000e+00> : vector<4x1024xf32>
    %74 = tpu.matmul %72, %73, %cst_48 {dimension_numbers = #tpu.dot_dimension_numbers<[1], [0], [0], [1], [0, 0, 1, 1], [], []>} : vector<4x256xbf16>, vector<256x1024xbf16>, vector<4x1024xf32> -> vector<4x1024xf32>
    %75 = arith.addf %71, %74 : vector<4x1024xf32>
    %c0_49 = arith.constant 0 : index
    %c0_50 = arith.constant 0 : index
    %76 = vector.load %arg14[%c0_49, %c0_50] : memref<1x1024xf32, #tpu.memory_space<vmem>>, vector<1x1024xf32>
    %77 = vector.broadcast %76 : vector<1x1024xf32> to vector<4x1024xf32>
    %78 = arith.addf %75, %77 : vector<4x1024xf32>
    %79 = vector.extract_strided_slice %78 {offsets = [0, 0], sizes = [4, 256], strides = [1, 1]} : vector<4x1024xf32> to vector<4x256xf32>
    %80 = arith.negf %79 : vector<4x256xf32>
    %81 = math.exp %80 : vector<4x256xf32>
    %cst_51 = arith.constant 1.000000e+00 : f32
    %82 = vector.broadcast %cst_51 : f32 to vector<4x256xf32>
    %83 = arith.addf %82, %81 : vector<4x256xf32>
    %84 = arith.divf %82, %83 : vector<4x256xf32>
    %85 = vector.extract_strided_slice %78 {offsets = [0, 256], sizes = [4, 256], strides = [1, 1]} : vector<4x1024xf32> to vector<4x256xf32>
    %86 = arith.negf %85 : vector<4x256xf32>
    %87 = math.exp %86 : vector<4x256xf32>
    %cst_52 = arith.constant 1.000000e+00 : f32
    %88 = vector.broadcast %cst_52 : f32 to vector<4x256xf32>
    %89 = arith.addf %88, %87 : vector<4x256xf32>
    %90 = arith.divf %88, %89 : vector<4x256xf32>
    %91 = vector.extract_strided_slice %78 {offsets = [0, 512], sizes = [4, 256], strides = [1, 1]} : vector<4x1024xf32> to vector<4x256xf32>
    %92 = math.tanh %91 : vector<4x256xf32>
    %93 = vector.extract_strided_slice %78 {offsets = [0, 768], sizes = [4, 256], strides = [1, 1]} : vector<4x1024xf32> to vector<4x256xf32>
    %94 = arith.negf %93 : vector<4x256xf32>
    %95 = math.exp %94 : vector<4x256xf32>
    %cst_53 = arith.constant 1.000000e+00 : f32
    %96 = vector.broadcast %cst_53 : f32 to vector<4x256xf32>
    %97 = arith.addf %96, %95 : vector<4x256xf32>
    %98 = arith.divf %96, %97 : vector<4x256xf32>
    %99 = arith.mulf %90, %67 : vector<4x256xf32>
    %100 = arith.mulf %84, %92 : vector<4x256xf32>
    %101 = arith.addf %99, %100 : vector<4x256xf32>
    %102 = math.tanh %101 : vector<4x256xf32>
    %103 = arith.mulf %98, %102 : vector<4x256xf32>
    %104 = arith.truncf %103 : vector<4x256xf32> to vector<4x256xbf16>
    %cst_54 = arith.constant dense<0.000000e+00> : vector<4x32xf32>
    %105 = tpu.matmul %104, %63, %cst_54 {dimension_numbers = #tpu.dot_dimension_numbers<[1], [1], [0], [0], [0, 0, 1, 0], [], []>} : vector<4x256xbf16>, vector<32x256xbf16>, vector<4x32xf32> -> vector<4x32xf32>
    %cst_55 = arith.constant 0.000000e+00 : f32
    %106 = vector.broadcast %cst_55 : f32 to vector<4x32xf32>
    %107 = arith.cmpf ogt, %65, %106 : vector<4x32xf32>
    %cst_56 = arith.constant -3.000000e+38 : f32
    %108 = vector.broadcast %cst_56 : f32 to vector<4x32xf32>
    %109 = arith.select %107, %105, %108 : vector<4x32xi1>, vector<4x32xf32>
    %cst_57 = arith.constant dense<0xFF800000> : vector<4xf32>
    %110 = vector.multi_reduction <maximumf>, %109, %cst_57 [1] : vector<4x32xf32> to vector<4xf32>
    %111 = vector.shape_cast %110 : vector<4xf32> to vector<4x1xf32>
    %112 = vector.broadcast %111 : vector<4x1xf32> to vector<4x32xf32>
    %113 = arith.subf %109, %112 : vector<4x32xf32>
    %114 = math.exp %113 : vector<4x32xf32>
    %cst_58 = arith.constant 0.000000e+00 : f32
    %115 = vector.broadcast %cst_58 : f32 to vector<4x32xf32>
    %116 = arith.select %107, %114, %115 : vector<4x32xi1>, vector<4x32xf32>
    %cst_59 = arith.constant dense<0.000000e+00> : vector<4xf32>
    %117 = vector.multi_reduction <add>, %116, %cst_59 [1] : vector<4x32xf32> to vector<4xf32>
    %118 = vector.shape_cast %117 : vector<4xf32> to vector<4x1xf32>
    %119 = arith.truncf %116 : vector<4x32xf32> to vector<4x32xbf16>
    %cst_60 = arith.constant dense<0.000000e+00> : vector<4x256xf32>
    %120 = tpu.matmul %119, %63, %cst_60 {dimension_numbers = #tpu.dot_dimension_numbers<[1], [0], [0], [1], [0, 0, 1, 1], [], []>} : vector<4x32xbf16>, vector<32x256xbf16>, vector<4x256xf32> -> vector<4x256xf32>
    %cst_61 = arith.constant 1.000000e-16 : f32
    %121 = vector.broadcast %cst_61 : f32 to vector<4x1xf32>
    %122 = arith.addf %118, %121 : vector<4x1xf32>
    %123 = tpu.reciprocal %122 {approx = true} : vector<4x1xf32> -> vector<4x1xf32>
    %124 = vector.broadcast %123 : vector<4x1xf32> to vector<4x256xf32>
    %125 = arith.mulf %120, %124 : vector<4x256xf32>
    %126 = tpu.concatenate %103, %125 in 1 : vector<4x256xf32>, vector<4x256xf32> -> vector<4x512xf32>
    %127 = arith.truncf %126 : vector<4x512xf32> to vector<4x512xbf16>
    %c0_62 = arith.constant 0 : index
    %c0_63 = arith.constant 0 : index
    %128 = vector.load %arg12[%c0_62, %c0_63] : memref<512x1024xbf16, #tpu.memory_space<vmem>>, vector<512x1024xbf16>
    %cst_64 = arith.constant dense<0.000000e+00> : vector<4x1024xf32>
    %129 = tpu.matmul %127, %128, %cst_64 {dimension_numbers = #tpu.dot_dimension_numbers<[1], [0], [0], [1], [0, 0, 1, 1], [], []>} : vector<4x512xbf16>, vector<512x1024xbf16>, vector<4x1024xf32> -> vector<4x1024xf32>
    %130 = arith.truncf %103 : vector<4x256xf32> to vector<4x256xbf16>
    %c0_65 = arith.constant 0 : index
    %c0_66 = arith.constant 0 : index
    %131 = vector.load %arg13[%c0_65, %c0_66] : memref<256x1024xbf16, #tpu.memory_space<vmem>>, vector<256x1024xbf16>
    %cst_67 = arith.constant dense<0.000000e+00> : vector<4x1024xf32>
    %132 = tpu.matmul %130, %131, %cst_67 {dimension_numbers = #tpu.dot_dimension_numbers<[1], [0], [0], [1], [0, 0, 1, 1], [], []>} : vector<4x256xbf16>, vector<256x1024xbf16>, vector<4x1024xf32> -> vector<4x1024xf32>
    %133 = arith.addf %129, %132 : vector<4x1024xf32>
    %c0_68 = arith.constant 0 : index
    %c0_69 = arith.constant 0 : index
    %134 = vector.load %arg14[%c0_68, %c0_69] : memref<1x1024xf32, #tpu.memory_space<vmem>>, vector<1x1024xf32>
    %135 = vector.broadcast %134 : vector<1x1024xf32> to vector<4x1024xf32>
    %136 = arith.addf %133, %135 : vector<4x1024xf32>
    %137 = vector.extract_strided_slice %136 {offsets = [0, 0], sizes = [4, 256], strides = [1, 1]} : vector<4x1024xf32> to vector<4x256xf32>
    %138 = arith.negf %137 : vector<4x256xf32>
    %139 = math.exp %138 : vector<4x256xf32>
    %cst_70 = arith.constant 1.000000e+00 : f32
    %140 = vector.broadcast %cst_70 : f32 to vector<4x256xf32>
    %141 = arith.addf %140, %139 : vector<4x256xf32>
    %142 = arith.divf %140, %141 : vector<4x256xf32>
    %143 = vector.extract_strided_slice %136 {offsets = [0, 256], sizes = [4, 256], strides = [1, 1]} : vector<4x1024xf32> to vector<4x256xf32>
    %144 = arith.negf %143 : vector<4x256xf32>
    %145 = math.exp %144 : vector<4x256xf32>
    %cst_71 = arith.constant 1.000000e+00 : f32
    %146 = vector.broadcast %cst_71 : f32 to vector<4x256xf32>
    %147 = arith.addf %146, %145 : vector<4x256xf32>
    %148 = arith.divf %146, %147 : vector<4x256xf32>
    %149 = vector.extract_strided_slice %136 {offsets = [0, 512], sizes = [4, 256], strides = [1, 1]} : vector<4x1024xf32> to vector<4x256xf32>
    %150 = math.tanh %149 : vector<4x256xf32>
    %151 = vector.extract_strided_slice %136 {offsets = [0, 768], sizes = [4, 256], strides = [1, 1]} : vector<4x1024xf32> to vector<4x256xf32>
    %152 = arith.negf %151 : vector<4x256xf32>
    %153 = math.exp %152 : vector<4x256xf32>
    %cst_72 = arith.constant 1.000000e+00 : f32
    %154 = vector.broadcast %cst_72 : f32 to vector<4x256xf32>
    %155 = arith.addf %154, %153 : vector<4x256xf32>
    %156 = arith.divf %154, %155 : vector<4x256xf32>
    %157 = arith.mulf %148, %101 : vector<4x256xf32>
    %158 = arith.mulf %142, %150 : vector<4x256xf32>
    %159 = arith.addf %157, %158 : vector<4x256xf32>
    %160 = math.tanh %159 : vector<4x256xf32>
    %161 = arith.mulf %156, %160 : vector<4x256xf32>
    %162 = arith.truncf %161 : vector<4x256xf32> to vector<4x256xbf16>
    %cst_73 = arith.constant dense<0.000000e+00> : vector<4x32xf32>
    %163 = tpu.matmul %162, %63, %cst_73 {dimension_numbers = #tpu.dot_dimension_numbers<[1], [1], [0], [0], [0, 0, 1, 0], [], []>} : vector<4x256xbf16>, vector<32x256xbf16>, vector<4x32xf32> -> vector<4x32xf32>
    %cst_74 = arith.constant 0.000000e+00 : f32
    %164 = vector.broadcast %cst_74 : f32 to vector<4x32xf32>
    %165 = arith.cmpf ogt, %65, %164 : vector<4x32xf32>
    %cst_75 = arith.constant -3.000000e+38 : f32
    %166 = vector.broadcast %cst_75 : f32 to vector<4x32xf32>
    %167 = arith.select %165, %163, %166 : vector<4x32xi1>, vector<4x32xf32>
    %cst_76 = arith.constant dense<0xFF800000> : vector<4xf32>
    %168 = vector.multi_reduction <maximumf>, %167, %cst_76 [1] : vector<4x32xf32> to vector<4xf32>
    %169 = vector.shape_cast %168 : vector<4xf32> to vector<4x1xf32>
    %170 = vector.broadcast %169 : vector<4x1xf32> to vector<4x32xf32>
    %171 = arith.subf %167, %170 : vector<4x32xf32>
    %172 = math.exp %171 : vector<4x32xf32>
    %cst_77 = arith.constant 0.000000e+00 : f32
    %173 = vector.broadcast %cst_77 : f32 to vector<4x32xf32>
    %174 = arith.select %165, %172, %173 : vector<4x32xi1>, vector<4x32xf32>
    %cst_78 = arith.constant dense<0.000000e+00> : vector<4xf32>
    %175 = vector.multi_reduction <add>, %174, %cst_78 [1] : vector<4x32xf32> to vector<4xf32>
    %176 = vector.shape_cast %175 : vector<4xf32> to vector<4x1xf32>
    %177 = arith.truncf %174 : vector<4x32xf32> to vector<4x32xbf16>
    %cst_79 = arith.constant dense<0.000000e+00> : vector<4x256xf32>
    %178 = tpu.matmul %177, %63, %cst_79 {dimension_numbers = #tpu.dot_dimension_numbers<[1], [0], [0], [1], [0, 0, 1, 1], [], []>} : vector<4x32xbf16>, vector<32x256xbf16>, vector<4x256xf32> -> vector<4x256xf32>
    %cst_80 = arith.constant 1.000000e-16 : f32
    %179 = vector.broadcast %cst_80 : f32 to vector<4x1xf32>
    %180 = arith.addf %176, %179 : vector<4x1xf32>
    %181 = tpu.reciprocal %180 {approx = true} : vector<4x1xf32> -> vector<4x1xf32>
    %182 = vector.broadcast %181 : vector<4x1xf32> to vector<4x256xf32>
    %183 = arith.mulf %178, %182 : vector<4x256xf32>
    %184 = tpu.concatenate %161, %183 in 1 : vector<4x256xf32>, vector<4x256xf32> -> vector<4x512xf32>
    %185 = vector.extract_strided_slice %184 {offsets = [0, 0], sizes = [2, 512], strides = [1, 1]} : vector<4x512xf32> to vector<2x512xf32>
    %186 = vector.extract_strided_slice %184 {offsets = [2, 0], sizes = [2, 512], strides = [1, 1]} : vector<4x512xf32> to vector<2x512xf32>
    %187 = tpu.concatenate %185, %186 in 1 : vector<2x512xf32>, vector<2x512xf32> -> vector<2x1024xf32>
    %188 = arith.truncf %187 : vector<2x1024xf32> to vector<2x1024xbf16>
    %c0_81 = arith.constant 0 : index
    %c0_82 = arith.constant 0 : index
    %189 = vector.load %arg15[%c0_81, %c0_82] : memref<1024x256xbf16, #tpu.memory_space<vmem>>, vector<1024x256xbf16>
    %cst_83 = arith.constant dense<0.000000e+00> : vector<2x256xf32>
    %190 = tpu.matmul %188, %189, %cst_83 {dimension_numbers = #tpu.dot_dimension_numbers<[1], [0], [0], [1], [0, 0, 1, 1], [], []>} : vector<2x1024xbf16>, vector<1024x256xbf16>, vector<2x256xf32> -> vector<2x256xf32>
    %c0_84 = arith.constant 0 : index
    %c0_85 = arith.constant 0 : index
    %191 = vector.load %arg16[%c0_84, %c0_85] : memref<1x256xf32, #tpu.memory_space<vmem>>, vector<1x256xf32>
    %192 = vector.broadcast %191 : vector<1x256xf32> to vector<2x256xf32>
    %193 = arith.addf %190, %192 : vector<2x256xf32>
    %cst_86 = arith.constant 0.000000e+00 : f32
    %194 = vector.broadcast %cst_86 : f32 to vector<2x256xf32>
    %195 = arith.maximumf %193, %194 : vector<2x256xf32>
    %196 = arith.truncf %195 : vector<2x256xf32> to vector<2x256xbf16>
    %c0_87 = arith.constant 0 : index
    %c0_88 = arith.constant 0 : index
    %197 = vector.load %arg17[%c0_87, %c0_88] : memref<256x128xbf16, #tpu.memory_space<vmem>>, vector<256x128xbf16>
    %cst_89 = arith.constant dense<0.000000e+00> : vector<2x128xf32>
    %198 = tpu.matmul %196, %197, %cst_89 {dimension_numbers = #tpu.dot_dimension_numbers<[1], [0], [0], [1], [0, 0, 1, 1], [], []>} : vector<2x256xbf16>, vector<256x128xbf16>, vector<2x128xf32> -> vector<2x128xf32>
    %c0_90 = arith.constant 0 : index
    %c0_91 = arith.constant 0 : index
    %199 = vector.load %arg18[%c0_90, %c0_91] : memref<1x128xf32, #tpu.memory_space<vmem>>, vector<1x128xf32>
    %200 = vector.broadcast %199 : vector<1x128xf32> to vector<2x128xf32>
    %201 = arith.addf %198, %200 : vector<2x128xf32>
    %cst_92 = arith.constant 0.000000e+00 : f32
    %202 = vector.broadcast %cst_92 : f32 to vector<2x128xf32>
    %203 = arith.maximumf %201, %202 : vector<2x128xf32>
    %204 = arith.truncf %203 : vector<2x128xf32> to vector<2x128xbf16>
    %c0_93 = arith.constant 0 : index
    %c0_94 = arith.constant 0 : index
    %205 = vector.load %arg19[%c0_93, %c0_94] : memref<128x128xbf16, #tpu.memory_space<vmem>>, vector<128x128xbf16>
    %cst_95 = arith.constant dense<0.000000e+00> : vector<2x128xf32>
    %206 = tpu.matmul %204, %205, %cst_95 {dimension_numbers = #tpu.dot_dimension_numbers<[1], [0], [0], [1], [0, 0, 1, 1], [], []>} : vector<2x128xbf16>, vector<128x128xbf16>, vector<2x128xf32> -> vector<2x128xf32>
    %c0_96 = arith.constant 0 : index
    %c0_97 = arith.constant 0 : index
    %207 = vector.load %arg20[%c0_96, %c0_97] : memref<1x128xf32, #tpu.memory_space<vmem>>, vector<1x128xf32>
    %208 = vector.broadcast %207 : vector<1x128xf32> to vector<2x128xf32>
    %209 = arith.addf %206, %208 : vector<2x128xf32>
    %210 = arith.negf %209 : vector<2x128xf32>
    %211 = math.exp %210 : vector<2x128xf32>
    %cst_98 = arith.constant 1.000000e+00 : f32
    %212 = vector.broadcast %cst_98 : f32 to vector<2x128xf32>
    %213 = arith.addf %212, %211 : vector<2x128xf32>
    %214 = arith.divf %212, %213 : vector<2x128xf32>
    %c0_99 = arith.constant 0 : index
    %c0_100 = arith.constant 0 : index
    %c0_101 = arith.constant 0 : index
    %215 = vector.load %arg21[%c0_99, %c0_100, %c0_101] : memref<1x2x128xf32, #tpu.memory_space<vmem>>, vector<1x2x128xf32>
    %216 = vector.shape_cast %215 : vector<1x2x128xf32> to vector<2x128xf32>
    %217 = vector.shape_cast %214 : vector<2x128xf32> to vector<1x2x128xf32>
    tpu.vector_store %arg21[%c0_99, %c0_100, %c0_101], %217 {strides = array<i32>} : memref<1x2x128xf32, #tpu.memory_space<vmem>>, vector<1x2x128xf32>,
    return
  }
  func.func @transform_0(%arg0: i32) -> (i32, i32, i32) {
    %c0_i32 = arith.constant 0 : i32
    %c0_i32_0 = arith.constant 0 : i32
    %c0_i32_1 = arith.constant 0 : i32
    return %arg0, %c0_i32, %c0_i32_0 : i32, i32, i32
  }
  func.func @transform_1(%arg0: i32) -> (i32, i32, i32) {
    %c0_i32 = arith.constant 0 : i32
    %c0_i32_0 = arith.constant 0 : i32
    %c0_i32_1 = arith.constant 0 : i32
    return %arg0, %c0_i32, %c0_i32_0 : i32, i32, i32
  }
  func.func @transform_2(%arg0: i32) -> (i32, i32, i32) {
    %c0_i32 = arith.constant 0 : i32
    %c0_i32_0 = arith.constant 0 : i32
    %c0_i32_1 = arith.constant 0 : i32
    return %arg0, %c0_i32, %c0_i32_0 : i32, i32, i32
  }
  func.func @transform_3(%arg0: i32) -> (i32, i32, i32) {
    %c0_i32 = arith.constant 0 : i32
    %c0_i32_0 = arith.constant 0 : i32
    %c0_i32_1 = arith.constant 0 : i32
    return %arg0, %c0_i32, %c0_i32_0 : i32, i32, i32
  }
  func.func @transform_4(%arg0: i32) -> (i32, i32, i32) {
    %c0_i32 = arith.constant 0 : i32
    %c0_i32_0 = arith.constant 0 : i32
    %c0_i32_1 = arith.constant 0 : i32
    return %arg0, %c0_i32, %c0_i32_0 : i32, i32, i32
  }
  func.func @transform_5(%arg0: i32) -> (i32, i32) {
    %c0_i32 = arith.constant 0 : i32
    %c0_i32_0 = arith.constant 0 : i32
    %c0_i32_1 = arith.constant 0 : i32
    return %c0_i32, %c0_i32_0 : i32, i32
  }
  func.func @transform_6(%arg0: i32) -> (i32, i32) {
    %c0_i32 = arith.constant 0 : i32
    %c0_i32_0 = arith.constant 0 : i32
    %c0_i32_1 = arith.constant 0 : i32
    return %c0_i32, %c0_i32_0 : i32, i32
  }
  func.func @transform_7(%arg0: i32) -> (i32, i32) {
    %c0_i32 = arith.constant 0 : i32
    %c0_i32_0 = arith.constant 0 : i32
    %c0_i32_1 = arith.constant 0 : i32
    return %c0_i32, %c0_i32_0 : i32, i32
  }
  func.func @transform_8(%arg0: i32) -> (i32, i32) {
    %c0_i32 = arith.constant 0 : i32
    %c0_i32_0 = arith.constant 0 : i32
    %c0_i32_1 = arith.constant 0 : i32
    return %c0_i32, %c0_i32_0 : i32, i32
  }
  func.func @transform_9(%arg0: i32) -> (i32, i32) {
    %c0_i32 = arith.constant 0 : i32
    %c0_i32_0 = arith.constant 0 : i32
    %c0_i32_1 = arith.constant 0 : i32
    return %c0_i32, %c0_i32_0 : i32, i32
  }
  func.func @transform_10(%arg0: i32) -> (i32, i32) {
    %c0_i32 = arith.constant 0 : i32
    %c0_i32_0 = arith.constant 0 : i32
    %c0_i32_1 = arith.constant 0 : i32
    return %c0_i32, %c0_i32_0 : i32, i32
  }
  func.func @transform_11(%arg0: i32) -> (i32, i32) {
    %c0_i32 = arith.constant 0 : i32
    %c0_i32_0 = arith.constant 0 : i32
    %c0_i32_1 = arith.constant 0 : i32
    return %c0_i32, %c0_i32_0 : i32, i32
  }
  func.func @transform_12(%arg0: i32) -> (i32, i32) {
    %c0_i32 = arith.constant 0 : i32
    %c0_i32_0 = arith.constant 0 : i32
    %c0_i32_1 = arith.constant 0 : i32
    return %c0_i32, %c0_i32_0 : i32, i32
  }
  func.func @transform_13(%arg0: i32) -> (i32, i32) {
    %c0_i32 = arith.constant 0 : i32
    %c0_i32_0 = arith.constant 0 : i32
    %c0_i32_1 = arith.constant 0 : i32
    return %c0_i32, %c0_i32_0 : i32, i32
  }
  func.func @transform_14(%arg0: i32) -> (i32, i32) {
    %c0_i32 = arith.constant 0 : i32
    %c0_i32_0 = arith.constant 0 : i32
    %c0_i32_1 = arith.constant 0 : i32
    return %c0_i32, %c0_i32_0 : i32, i32
  }
  func.func @transform_15(%arg0: i32) -> (i32, i32) {
    %c0_i32 = arith.constant 0 : i32
    %c0_i32_0 = arith.constant 0 : i32
    %c0_i32_1 = arith.constant 0 : i32
    return %c0_i32, %c0_i32_0 : i32, i32
  }
  func.func @transform_16(%arg0: i32) -> (i32, i32) {
    %c0_i32 = arith.constant 0 : i32
    %c0_i32_0 = arith.constant 0 : i32
    %c0_i32_1 = arith.constant 0 : i32
    return %c0_i32, %c0_i32_0 : i32, i32
  }
  func.func @transform_17(%arg0: i32) -> (i32, i32) {
    %c0_i32 = arith.constant 0 : i32
    %c0_i32_0 = arith.constant 0 : i32
    %c0_i32_1 = arith.constant 0 : i32
    return %c0_i32, %c0_i32_0 : i32, i32
  }
  func.func @transform_18(%arg0: i32) -> (i32, i32) {
    %c0_i32 = arith.constant 0 : i32
    %c0_i32_0 = arith.constant 0 : i32
    %c0_i32_1 = arith.constant 0 : i32
    return %c0_i32, %c0_i32_0 : i32, i32
  }
  func.func @transform_19(%arg0: i32) -> (i32, i32) {
    %c0_i32 = arith.constant 0 : i32
    %c0_i32_0 = arith.constant 0 : i32
    %c0_i32_1 = arith.constant 0 : i32
    return %c0_i32, %c0_i32_0 : i32, i32
  }
  func.func @transform_20(%arg0: i32) -> (i32, i32, i32) {
    %c0_i32 = arith.constant 0 : i32
    %c0_i32_0 = arith.constant 0 : i32
    %c0_i32_1 = arith.constant 0 : i32
    return %arg0, %c0_i32, %c0_i32_0 : i32, i32, i32
  }
}

</mosaic_0001>

<bundles_post_ra>
// kernel: tpu_custom_call.1
= control target key start
LH: loop header
LB: loop body
LE: loop exit
PB: predicated region body
PF: predicated region fallthrough
CT: control target
= control target key end

     0   :  { %s11323_s0 = inlined_call_operand.vmem [shape: bf16[4,32,32], index: 0, kind: input, shape index: {}]   ;;  %s11324_s1 = inlined_call_operand.vmem [shape: f32[4,32,16], index: 1, kind: input, shape index: {}]   ;;  %s11325_s2 = inlined_call_operand.hbm [shape: bf16[4,8,16], index: 2, kind: input, shape index: {}]   ;;  %s11326_s3 = inlined_call_operand.hbm [shape: bf16[4,8,16], index: 3, kind: input, shape index: {}]   ;;  %s11327_s4 = inlined_call_operand.hbm [shape: f32[4,4,32], index: 4, kind: input, shape index: {}]   ;;  %s11328_s5 = inlined_call_operand.hbm [shape: bf16[16,128], index: 5, kind: input, shape index: {}]   ;;  %s11329_s6 = inlined_call_operand.hbm [shape: f32[1,128], index: 6, kind: input, shape index: {}]   ;;  %s11330_s7 = inlined_call_operand.hbm [shape: bf16[128,128], index: 7, kind: input, shape index: {}]   ;;  %s11331_s8 = inlined_call_operand.hbm [shape: f32[1,128], index: 8, kind: input, shape index: {}]   ;;  %s11332_s9 = inlined_call_operand.hbm [shape: bf16[128,128], index: 9, kind: input, shape index: {}]   ;;  %s11333_s10 = inlined_call_operand.hbm [shape: f32[1,128], index: 10, kind: input, shape index: {}]   ;;  %s11334_s11 = inlined_call_operand.hbm [shape: bf16[512,1024], index: 11, kind: input, shape index: {}]   ;;  %s11335_s12 = inlined_call_operand.hbm [shape: bf16[256,1024], index: 12, kind: input, shape index: {}]   ;;  %s11336_s13 = inlined_call_operand.hbm [shape: f32[1,1024], index: 13, kind: input, shape index: {}]   ;;  %s11337_s14 = inlined_call_operand.hbm [shape: bf16[1024,256], index: 14, kind: input, shape index: {}]   ;;  %s11338_s15 = inlined_call_operand.hbm [shape: f32[1,256], index: 15, kind: input, shape index: {}]   ;;  %s11339_s16 = inlined_call_operand.vmem [shape: bf16[256,128], index: 16, kind: input, shape index: {}]   ;;  %s11340_s17 = inlined_call_operand.hbm [shape: f32[1,128], index: 17, kind: input, shape index: {}]   ;;  %s11341_s18 = inlined_call_operand.vmem [shape: bf16[128,128], index: 18, kind: input, shape index: {}]   ;;  %s11342_s19 = inlined_call_operand.vmem [shape: f32[1,128], index: 19, kind: input, shape index: {}]   ;;  %s11343_s20 = inlined_call_operand.hbm [shape: f32[4,2,128], index: 20, kind: output, shape index: {}]  }
   0x1   :  { %11731 = sst [smem:[#allocation391_spill]] %s11323_s0 }
   0x2   :  { %11732 = sst [smem:[#allocation392_spill]] %s11324_s1 }
   0x3   :  { %11733 = sst [smem:[#allocation393_spill]] %s11325_s2 }
   0x4   :  { %11734 = sst [smem:[#allocation394_spill]] %s11326_s3 }
   0x5   :  { %11735 = sst [smem:[#allocation395_spill]] %s11327_s4 }
   0x6   :  { %11736 = sst [smem:[#allocation396_spill]] %s11328_s5 }
   0x7   :  { %11737 = sst [smem:[#allocation397_spill]] %s11329_s6 }
   0x8   :  { %11738 = sst [smem:[#allocation398_spill]] %s11330_s7 }
   0x9   :  { %11739 = sst [smem:[#allocation399_spill]] %s11331_s8 }
   0xa   :  { %11740 = sst [smem:[#allocation400_spill]] %s11332_s9 }
   0xb   :  { %11741 = sst [smem:[#allocation401_spill]] %s11333_s10 }
   0xc   :  { %11742 = sst [smem:[#allocation402_spill]] %s11334_s11 }
   0xd   :  { %11743 = sst [smem:[#allocation403_spill]] %s11336_s13 }
   0xe   :  { %11744 = sst [smem:[#allocation404_spill]] %s11337_s14 }
   0xf   :  { %11745 = sst [smem:[#allocation405_spill]] %s11338_s15 }
  0x10   :  { %11746 = sst [smem:[#allocation406_spill]] %s11339_s16 }
  0x11   :  { %11747 = sst [smem:[#allocation407_spill]] %s11340_s17 }
  0x12   :  { %11748 = sst [smem:[#allocation408_spill]] %s11341_s18 }
  0x13   :  { %11749 = sst [smem:[#allocation409_spill]] %s11342_s19 }
  0x14   :  { %11750 = sst [smem:[#allocation410_spill]] %s11343_s20 }
  0x15   :  { %25 = vsyncpa [#allocation3], 0 }
  0x16   :  { %27 = vsyncpa [#allocation3 + $0x1], 0 }
  0x17   :  { %28 = vsyncpa [#allocation6], 0 }
  0x18   :  { %30 = vsyncpa [#allocation6 + $0x1], 0 }
  0x19   :  { %31 = vsyncpa [#allocation9], 0 }
  0x1a   :  { %32 = vsyncpa [#allocation12], 0 }
  0x1b   :  { %33 = vsyncpa [#allocation15], 0 }
  0x1c   :  { %34 = vsyncpa [#allocation18], 0 }
  0x1d   :  { %35 = vsyncpa [#allocation21], 0 }
  0x1e   :  { %36 = vsyncpa [#allocation24], 0 }
  0x1f   :  { %37 = vsyncpa [#allocation4], 0 }
  0x20   :  { %39 = vsyncpa [#allocation4 + $0x1], 0  ;;  %s8859_s1 = smov 0   ;;  %s8861_s22 = smov 0  }
  0x21   :  { %s8863_s23 = smov 0   ;;  %s8865_s24 = smov 0  }
  0x22 LB: > { %s8729_s2 = smov [#allocation8]   ;;  %s8880_s3 = sadd.s32 4294967295, %s8727_s24   ;;  %s8727_s24 = sphi %s8865_s24, %s12517_s24   ;;  %s8723_s23 = sphi %s8863_s23, %s12521_s23   ;;  %s8719_s22 = sphi %s8861_s22, %s12520_s22   ;;  %s8715_s1 = sphi %s8859_s1, %s12519_s1  }
  0x23   : > { %s533_s25 = sshll.u32 %s8729_s2, 4  ;;  %p6867_p0 = scmp.ge.s32.totalorder %s8727_s24, 1  ;;  %s8885_s25 = int_to_ptr.vmem [resolvable:$true] %s533_s25 }
  0x24   : > { %p11353_p1 = scmp.eq.s32.totalorder %s8880_s3, 0  ;;  %p521_p2 = scmp.lt.s32.totalorder %s8727_s24, 5 }
  0x25   : > { %s8730_s27 = smov [#allocation11]   ;;  %s8731_s29 = smov [#allocation14]  }
  0x26   : > { %p8887_p3 = pnand %p6867_p0, %p521_p2  ;;  %s557_s28 = sshll.u32 %s8730_s27, 4  ;;  %s8899_s28 = int_to_ptr.vmem [resolvable:$true] %s557_s28 }
  0x27   : > { %s581_s30 = sshll.u32 %s8731_s29, 4  ;;  %s11754_s5 = sld [smem:[#allocation396_spill]]  ;;  %s8901_s30 = int_to_ptr.vmem [resolvable:$true] %s581_s30 }
  0x28   : > { %s11751_s26 = scalar_select %p8887_p3, 1, 0 }
  0x29   : > { %p7758_p4 = pneg %p8887_p3 }
  0x2a   : > { %11752 = sst [smem:[#allocation36_spill]] %s11751_s26 }
  0x2b   : > { %p8895_p5 = pnand %p7758_p4, %p11353_p1 }
  0x2d   : > { %s11753_s4 = scalar_select %p8895_p5, 1, 0 }
  0x2e   : > { %s8207_s2 = scalar_lea.hbm %s11754_s5, 128  ;;  %p8911_p7 = pneg %p8895_p5 }
  0x2f   : > { %p8208_p6 = scmp.ne.s32.totalorder %s11754_s5, %s8207_s2  ;;  %p8214_p10 = scmp.lt.u32.totalorder %s8207_s2, %s11754_s5 }
  0x30   : > { %s11755_s27 = scalar_select %p8911_p7, 1, 0 }
  0x31   : > { %p8210_p8 = pnand %p8911_p7, %p8208_p6 }
  0x33   : > { %p8211_p9 = pneg %p8210_p8 }
  0x35   : > { %p8216_p11 = pnand %p8214_p10, %p8211_p9 }
  0x37   : > { %8219 = shalt.err (!%p8216_p11)
}
  0x38   : > { %s8220_s19 = scalar_lea.vmem %s8885_s25, 128  ;;  %p8228_p2 = scmp.lt.s32.totalorder %s8885_s25, %s8885_s25 }
  0x39   : > { %p8221_p12 = scmp.ne.s32.totalorder %s8885_s25, %s8220_s19  ;;  %p8229_p4 = scmp.lt.s32.totalorder %s8220_s19, %s8220_s19 }
  0x3b   : > { %p8223_p13 = pnand %p8221_p12, %p8911_p7  ;;  %p8230_p6 = por %p8229_p4, %p8228_p2 }
  0x3d   : > { %p8224_p0 = pneg %p8223_p13 }
  0x3f   : > { %p8231_p8 = pnand %p8230_p6, %p8224_p0 }
  0x41   : > { %8234 = shalt.err (!%p8231_p8)
}
  0x42   : > { %s8732_s20 = smov 64   ;;  %s8733_s18 = smov 4  }
  0x43   : > { %7761 = dma.hbm_to_vmem [thread:$0]  (!%p8895_p5), %s11754_s5, 128, %s8885_s25, [#allocation9], %s8732_s20, %s8732_s20, %s8733_s18  }
  0x44   : > { %s11756_s7 = sld [smem:[#allocation398_spill]] }
  0x4a   : > { %s8235_s19 = scalar_lea.hbm %s11756_s7, 1024 }
  0x4b   : > { %p8236_p9 = scmp.ne.s32.totalorder %s11756_s7, %s8235_s19  ;;  %p8242_p12 = scmp.lt.u32.totalorder %s8235_s19, %s11756_s7 }
  0x4d   : > { %p8238_p10 = pnand %p8236_p9, %p8911_p7 }
  0x4f   : > { %p8239_p11 = pneg %p8238_p10 }
  0x51   : > { %p8244_p13 = pnand %p8242_p12, %p8239_p11 }
  0x53   : > { %8247 = shalt.err (!%p8244_p13)
}
  0x54   : > { %s8248_s25 = scalar_lea.vmem %s8899_s28, 1024  ;;  %p8256_p6 = scmp.lt.s32.totalorder %s8899_s28, %s8899_s28 }
  0x55   : > { %p8249_p0 = scmp.ne.s32.totalorder %s8899_s28, %s8248_s25  ;;  %p8257_p8 = scmp.lt.s32.totalorder %s8248_s25, %s8248_s25 }
  0x57   : > { %p8251_p2 = pnand %p8249_p0, %p8911_p7  ;;  %p8258_p9 = por %p8257_p8, %p8256_p6 }
  0x59   : > { %p8252_p4 = pneg %p8251_p2 }
  0x5b   : > { %p8259_p10 = pnand %p8258_p9, %p8252_p4 }
  0x5d   : > { %8262 = shalt.err (!%p8259_p10)
}
  0x5e   : > { %7767 = dma.hbm_to_vmem [thread:$0]  (!%p8895_p5), %s11756_s7, 1024, %s8899_s28, [#allocation12], %s8732_s20, %s8732_s20, %s8733_s18  }
  0x5f   : > { %s11757_s9 = sld [smem:[#allocation400_spill]] }
  0x65   : > { %s8263_s0 = scalar_lea.hbm %s11757_s9, 1024 }
  0x66   : > { %p8264_p11 = scmp.ne.s32.totalorder %s11757_s9, %s8263_s0  ;;  %p8270_p0 = scmp.lt.u32.totalorder %s8263_s0, %s11757_s9 }
  0x68   : > { %p8266_p12 = pnand %p8264_p11, %p8911_p7 }
  0x6a   : > { %p8267_p13 = pneg %p8266_p12 }
  0x6c   : > { %p8272_p2 = pnand %p8270_p0, %p8267_p13 }
  0x6e   : > { %8275 = shalt.err (!%p8272_p2)
}
  0x6f   : > { %s8276_s28 = scalar_lea.vmem %s8901_s30, 1024  ;;  %p8284_p9 = scmp.lt.s32.totalorder %s8901_s30, %s8901_s30 }
  0x70   : > { %p8277_p4 = scmp.ne.s32.totalorder %s8901_s30, %s8276_s28  ;;  %p8285_p10 = scmp.lt.s32.totalorder %s8276_s28, %s8276_s28 }
  0x72   : > { %p8279_p6 = pnand %p8277_p4, %p8911_p7  ;;  %p8286_p11 = por %p8285_p10, %p8284_p9 }
  0x74   : > { %p8280_p8 = pneg %p8279_p6 }
  0x76   : > { %p8287_p12 = pnand %p8286_p11, %p8280_p8 }
  0x78   : > { %8290 = shalt.err (!%p8287_p12)
}
  0x79   : > { %7773 = dma.hbm_to_vmem [thread:$0]  (!%p8895_p5), %s11757_s9, 1024, %s8901_s30, [#allocation15], %s8732_s20, %s8732_s20, %s8733_s18  }
  0x7a   : > { %s8734_s16 = smov [#allocation17]   ;;  %s11758_s11 = sld [smem:[#allocation402_spill]] }
  0x7b   : > { %s605_s17 = sshll.u32 %s8734_s16, 4  ;;  %s606_s17 = int_to_ptr.vmem [resolvable:$true] %s605_s17 }
  0x80   : > { %s8291_s21 = scalar_lea.hbm %s11758_s11, 32768 }
  0x81   : > { %p8292_p13 = scmp.ne.s32.totalorder %s11758_s11, %s8291_s21  ;;  %p8298_p4 = scmp.lt.u32.totalorder %s8291_s21, %s11758_s11 }
  0x83   : > { %p8294_p0 = pnand %p8292_p13, %p8911_p7 }
  0x85   : > { %p8295_p2 = pneg %p8294_p0 }
  0x87   : > { %p8300_p6 = pnand %p8298_p4, %p8295_p2 }
  0x89   : > { %8303 = shalt.err (!%p8300_p6)
}
  0x8a   : > { %s8304_s30 = scalar_lea.vmem %s606_s17, 32768  ;;  %p8312_p11 = scmp.lt.s32.totalorder %s606_s17, %s606_s17 }
  0x8b   : > { %p8305_p8 = scmp.ne.s32.totalorder %s606_s17, %s8304_s30  ;;  %p8313_p12 = scmp.lt.s32.totalorder %s8304_s30, %s8304_s30 }
  0x8d   : > { %p8307_p9 = pnand %p8305_p8, %p8911_p7  ;;  %p8314_p1 = por %p8313_p12, %p8312_p11 }
  0x8f   : > { %p8308_p10 = pneg %p8307_p9 }
  0x91   : > { %p8315_p3 = pnand %p8314_p1, %p8308_p10 }
  0x93   : > { %8318 = shalt.err (!%p8315_p3)
}
  0x94   : > { %s11355_s20 = smov 512   ;;  %s11356_s18 = smov 32  }
  0x95   : > { %7779 = dma.hbm_to_vmem [thread:$0]  (!%p8895_p5), %s11758_s11, 32768, %s606_s17, [#allocation18], %s11355_s20, %s11355_s20, %s11356_s18  }
  0x96   : > { %s8737_s16 = smov [#allocation20]   ;;  %s8738_s0 = smov [#allocation23]  }
  0x97   : > { %s632_s26 = sshll.u32 %s8737_s16, 4  ;;  %s656_s21 = sshll.u32 %s8738_s0, 4  ;;  %s633_s26 = int_to_ptr.vmem [resolvable:$true] %s632_s26  ;;  %s9008_s21 = int_to_ptr.vmem [resolvable:$true] %s656_s21 }
  0x98   : > { %s11759_s13 = sld [smem:[#allocation403_spill]] }
  0x9e   : > { %s8319_s19 = scalar_lea.hbm %s11759_s13, 128 }
  0x9f   : > { %p8320_p1 = scmp.ne.s32.totalorder %s11759_s13, %s8319_s19  ;;  %p8326_p0 = scmp.lt.u32.totalorder %s8319_s19, %s11759_s13 }
  0xa1   : > { %p8322_p3 = pnand %p8320_p1, %p8911_p7 }
  0xa3   : > { %p8323_p13 = pneg %p8322_p3 }
  0xa5   : > { %p8328_p2 = pnand %p8326_p0, %p8323_p13 }
  0xa7   : > { %8331 = shalt.err (!%p8328_p2)
}
  0xa8   : > { %s8332_s14 = scalar_lea.vmem %s633_s26, 128  ;;  %p8340_p9 = scmp.lt.s32.totalorder %s633_s26, %s633_s26 }
  0xa9   : > { %p8333_p4 = scmp.ne.s32.totalorder %s633_s26, %s8332_s14  ;;  %p8341_p10 = scmp.lt.s32.totalorder %s8332_s14, %s8332_s14 }
  0xab   : > { %p8335_p6 = pnand %p8333_p4, %p8911_p7  ;;  %p8342_p11 = por %p8341_p10, %p8340_p9 }
  0xad   : > { %p8336_p8 = pneg %p8335_p6 }
  0xaf   : > { %p8343_p12 = pnand %p8342_p11, %p8336_p8 }
  0xb1   : > { %8346 = shalt.err (!%p8343_p12)
}
  0xb2   : > { %7785 = dma.hbm_to_vmem [thread:$0]  (!%p8895_p5), %s11759_s13, 128, %s633_s26, [#allocation21]  }
  0xb3   : > { %s11760_s15 = sld [smem:[#allocation405_spill]] }
  0xb9   : > { %s8347_s19 = scalar_lea.hbm %s11760_s15, 32 }
  0xba   : > { %p8348_p1 = scmp.ne.s32.totalorder %s11760_s15, %s8347_s19  ;;  %p8354_p0 = scmp.lt.u32.totalorder %s8347_s19, %s11760_s15 }
  0xbc   : > { %p8350_p3 = pnand %p8348_p1, %p8911_p7 }
  0xbe   : > { %p8351_p13 = pneg %p8350_p3 }
  0xc0   : > { %p8356_p2 = pnand %p8354_p0, %p8351_p13 }
  0xc2   : > { %8359 = shalt.err (!%p8356_p2)
}
  0xc3   : > { %s8360_s26 = scalar_lea.vmem %s9008_s21, 32  ;;  %p8368_p9 = scmp.lt.s32.totalorder %s9008_s21, %s9008_s21 }
  0xc4   : > { %p8361_p4 = scmp.ne.s32.totalorder %s9008_s21, %s8360_s26  ;;  %p8369_p10 = scmp.lt.s32.totalorder %s8360_s26, %s8360_s26 }
  0xc6   : > { %p8363_p6 = pnand %p8361_p4, %p8911_p7  ;;  %p8370_p11 = por %p8369_p10, %p8368_p9 }
  0xc8   : > { %p8364_p8 = pneg %p8363_p6 }
  0xca   : > { %p8371_p12 = pnand %p8370_p11, %p8364_p8 }
  0xcc   : > { %8374 = shalt.err (!%p8371_p12)
}
  0xcd   : > { %7791 = dma.hbm_to_vmem [thread:$0]  (!%p8895_p5), %s11760_s15, 32, %s9008_s21, [#allocation24]  }
  0xce   : > { %s6866_s0 = sadd.s32 4294967294, %s8727_s24   ;;  %s9053_s2 = sadd.s32 1, %s8727_s24  }
  0xcf   : > { %11761 = sst [smem:[#allocation37_spill]] %s9053_s2  ;;  %s101_s29 = ssub.s32 %s8727_s24, %s9053_s2 }
  0xd0   : > { %s104_s19 = sadd.s32 1, %s8723_s23  ;;  %p102_p1 = scmp.eq.s32.totalorder %s101_s29, 0 }
  0xd1   : > { %p111_p3 = scmp.ne.s32.totalorder %s8723_s23, %s8719_s22  ;;  %p112_p13 = scmp.eq.s32.totalorder %s8727_s24, 0 }
  0xd2   : > { %p117_p0 = scmp.ne.s32.totalorder %s8719_s22, %s8715_s1  ;;  %p11763_p4 = scmp.eq.s32.totalorder %s8880_s3, 0 }
  0xd3   : > { %s9064_s28 = scalar_select %p102_p1, %s8723_s23, %s104_s19  }
  0xd4   : > { %p113_p2 = por %p112_p13, %p111_p3  ;;  %p9068_p6 = por %p11763_p4, %p117_p0 }
  0xd5   : > { %11762 = sst [smem:[#allocation38_spill]] %s9064_s28  ;;  %p508_p8 = scmp.eq.s32.totalorder %s8880_s3, 3 }
  0xd6   : > { %s11764_s30 = scalar_select %p9068_p6, 1, 0 }
  0xd7   : > { %p514_p9 = scmp.eq.s32.totalorder %s6866_s0, 3  ;;  %p7821_p10 = scmp.lt.s32.totalorder %s8727_s24, 4 }
  0xd8   : > { %s11357_s21 = sand.u32 1, %s8723_s23   ;;  %p9075_p11 = por %p508_p8, %p111_p3 }
  0xd9   : > { %p9079_p12 = por %p514_p9, %p117_p0  ;;  %s9085_s26 = sshll.u32 %s11357_s21, 2 }
  0xda   : > { %s11765_s25 = scalar_select %p9075_p11, 1, 0 }
  0xdb   : > { %s11766_s17 = scalar_select %p9079_p12, 1, 0 }
  0xdc   : > { %s9088_s14 = sshll.u32 %s8727_s24, 6  ;;  %p9090_p1 = pnand %p7821_p10, %p113_p2 }
  0xdd   : > { %11767 = sst [smem:[#allocation39_spill]] %s11766_s17  ;;  %s721_s0 = sand.u32 1, %s8727_s24  }
  0xde   : > { %s11768_s16 = scalar_select %p9090_p1, 1, 0 }
  0xdf   : > { %s11769_s20 = sld [smem:[#allocation394_spill]]  ;;  %s725_s21 = scalar_lea.vmem [#allocation5], %s9085_s26 }
  0xe0   : > { %s732_s5 = sshll.u32 %s725_s21, 4  ;;  %s8739_s7 = smov [#allocation10]   ;;  %s9102_s5 = int_to_ptr.vmem [resolvable:$true] %s732_s5 }
  0xe1   : > { %s9104_s9 = sshll.u32 %s8739_s7, 4  ;;  %s9106_s11 = scalar_lea.sflag [#allocation6], %s721_s0  ;;  %s548_s9 = int_to_ptr.vmem [resolvable:$true] %s9104_s9 }
  0xe2   : > { %p9112_p13 = pneg %p9090_p1 }
  0xe4   : > { %s11770_s29 = scalar_select %p9112_p13, 1, 0 }
  0xe5   : > { %s9099_s18 = scalar_lea.hbm %s11769_s20, %s9088_s14  ;;  %s8380_s15 = scalar_lea.hbm %s11769_s20, 256 }
  0xe6   : > { %s8375_s13 = scalar_lea.hbm %s9099_s18, 64  ;;  %p8381_p4 = scmp.lt.u32.totalorder %s9099_s18, %s11769_s20 }
  0xe7   : > { %p8376_p3 = scmp.ne.s32.totalorder %s9099_s18, %s8375_s13  ;;  %p8382_p8 = scmp.lt.u32.totalorder %s8380_s15, %s8375_s13 }
  0xe8   : > { %p8384_p10 = scmp.lt.u32.totalorder %s8375_s13, %s9099_s18 }
  0xe9   : > { %p8378_p0 = pnand %p9112_p13, %p8376_p3  ;;  %p8383_p9 = por %p8382_p8, %p8381_p4 }
  0xeb   : > { %p8379_p2 = pneg %p8378_p0  ;;  %p8385_p12 = por %p8384_p10, %p8383_p9 }
  0xed   : > { %p8386_p11 = pnand %p8385_p12, %p8379_p2 }
  0xef   : > { %8389 = shalt.err (!%p8386_p11)
}
  0xf0   : > { %s8390_s0 = scalar_lea.vmem %s9102_s5, 64  ;;  %s8740_s19 = smov [#allocation5]  }
  0xf1   : > { %p8391_p3 = scmp.ne.s32.totalorder %s9102_s5, %s8390_s0  ;;  %s8395_s21 = sshll.u32 %s8740_s19, 4  ;;  %s8396_s21 = int_to_ptr.vmem [resolvable:$false] %s8395_s21 }
  0xf2   : > { %s8397_s28 = scalar_lea.vmem %s8396_s21, 128  ;;  %p8398_p5 = scmp.lt.s32.totalorder %s9102_s5, %s8396_s21 }
  0xf3   : > { %p8393_p0 = pnand %p8391_p3, %p9112_p13  ;;  %p8399_p7 = scmp.lt.s32.totalorder %s8397_s28, %s8390_s0 }
  0xf5   : > { %p8394_p6 = pneg %p8393_p0  ;;  %p8400_p4 = por %p8399_p7, %p8398_p5 }
  0xf7   : > { %p8401_p8 = pnand %p8400_p4, %p8394_p6 }
  0xf9   : > { %8404 = shalt.err (!%p8401_p8)
}
  0xfa   : > { %7801 = dma.hbm_to_vmem [thread:$0]  (!%p9090_p1), %s9099_s18, 64, %s9102_s5, %s9106_s11  }
  0xfb   : > { %s11771_s6 = sld [smem:[#allocation397_spill]]  ;;  %p11772_p5 = scmp.ne.s32.totalorder %s11755_s27, 0 }
 0x101   : > { %s8405_s7 = scalar_lea.hbm %s11771_s6, 16 }
 0x102   : > { %p8406_p11 = scmp.ne.s32.totalorder %s11771_s6, %s8405_s7  ;;  %p8412_p12 = scmp.lt.u32.totalorder %s8405_s7, %s11771_s6 }
 0x104   : > { %p8408_p7 = pnand %p8406_p11, %p11772_p5 }
 0x106   : > { %p8409_p6 = pneg %p8408_p7 }
 0x108   : > { %p8414_p2 = pnand %p8412_p12, %p8409_p6 }
 0x10a   : > { %8417 = shalt.err (!%p8414_p2)
}
 0x10b   : > { %s8418_s28 = scalar_lea.vmem %s548_s9, 16  ;;  %s8425_s5 = scalar_lea.vmem %s548_s9, 32 }
 0x10c   : > { %p8419_p9 = scmp.ne.s32.totalorder %s548_s9, %s8418_s28  ;;  %p8426_p0 = scmp.lt.s32.totalorder %s548_s9, %s548_s9 }
 0x10d   : > { %p8427_p4 = scmp.lt.s32.totalorder %s8425_s5, %s8418_s28 }
 0x10e   : > { %p8421_p10 = pnand %p8419_p9, %p11772_p5 }
 0x10f   : > { %p8428_p8 = por %p8427_p4, %p8426_p0 }
 0x110   : > { %p8422_p3 = pneg %p8421_p10 }
 0x112   : > { %p8429_p1 = pnand %p8428_p8, %p8422_p3 }
 0x114   : > { %8432 = shalt.err (!%p8429_p1)
}
 0x115   : > { %p11773_p11 = scmp.ne.s32.totalorder %s11753_s4, 0  ;;  %s8741_s13 = smov [#allocation13]  }
 0x116   : > { %s571_s15 = sshll.u32 %s8741_s13, 4  ;;  %s8742_s7 = smov [#allocation16]   ;;  %s572_s15 = int_to_ptr.vmem [resolvable:$true] %s571_s15 }
 0x117   : > { %7764 = dma.hbm_to_vmem [thread:$0]  (!%p11773_p11), %s11771_s6, 16, %s548_s9, [#allocation9]  }
 0x118   : > { %s595_s19 = sshll.u32 %s8742_s7, 4  ;;  %s11774_s8 = sld [smem:[#allocation399_spill]]  ;;  %s596_s19 = int_to_ptr.vmem [resolvable:$true] %s595_s19 }
 0x11e   : > { %s8433_s2 = scalar_lea.hbm %s11774_s8, 16 }
 0x11f   : > { %p8434_p1 = scmp.ne.s32.totalorder %s11774_s8, %s8433_s2  ;;  %p8440_p12 = scmp.lt.u32.totalorder %s8433_s2, %s11774_s8 }
 0x121   : > { %p8436_p7 = pnand %p8434_p1, %p11772_p5 }
 0x123   : > { %p8437_p6 = pneg %p8436_p7 }
 0x125   : > { %p8442_p2 = pnand %p8440_p12, %p8437_p6 }
 0x127   : > { %8445 = shalt.err (!%p8442_p2)
}
 0x128   : > { %s8446_s9 = scalar_lea.vmem %s572_s15, 16  ;;  %s8453_s18 = scalar_lea.vmem %s572_s15, 32 }
 0x129   : > { %p8447_p9 = scmp.ne.s32.totalorder %s572_s15, %s8446_s9  ;;  %p8454_p0 = scmp.lt.s32.totalorder %s572_s15, %s572_s15 }
 0x12a   : > { %p8455_p4 = scmp.lt.s32.totalorder %s8453_s18, %s8446_s9 }
 0x12b   : > { %p8449_p10 = pnand %p8447_p9, %p11772_p5 }
 0x12c   : > { %p8456_p8 = por %p8455_p4, %p8454_p0 }
 0x12d   : > { %p8450_p3 = pneg %p8449_p10 }
 0x12f   : > { %p8457_p13 = pnand %p8456_p8, %p8450_p3 }
 0x131   : > { %8460 = shalt.err (!%p8457_p13)
}
 0x132   : > { %7770 = dma.hbm_to_vmem [thread:$0]  (!%p11773_p11), %s11774_s8, 16, %s572_s15, [#allocation12]  }
 0x133   : > { %s11775_s10 = sld [smem:[#allocation401_spill]] }
 0x139   : > { %s8461_s0 = scalar_lea.hbm %s11775_s10, 16 }
 0x13a   : > { %p8462_p1 = scmp.ne.s32.totalorder %s11775_s10, %s8461_s0  ;;  %p8468_p13 = scmp.lt.u32.totalorder %s8461_s0, %s11775_s10 }
 0x13c   : > { %p8464_p7 = pnand %p8462_p1, %p11772_p5 }
 0x13e   : > { %p8465_p6 = pneg %p8464_p7 }
 0x140   : > { %p8470_p12 = pnand %p8468_p13, %p8465_p6 }
 0x142   : > { %8473 = shalt.err (!%p8470_p12)
}
 0x143   : > { %s8474_s9 = scalar_lea.vmem %s596_s19, 16  ;;  %s8481_s15 = scalar_lea.vmem %s596_s19, 32 }
 0x144   : > { %p8475_p2 = scmp.ne.s32.totalorder %s596_s19, %s8474_s9  ;;  %p8482_p3 = scmp.lt.s32.totalorder %s596_s19, %s596_s19 }
 0x145   : > { %p8483_p0 = scmp.lt.s32.totalorder %s8481_s15, %s8474_s9 }
 0x146   : > { %p8477_p9 = pnand %p8475_p2, %p11772_p5 }
 0x147   : > { %p8484_p4 = por %p8483_p0, %p8482_p3 }
 0x148   : > { %p8478_p10 = pneg %p8477_p9 }
 0x14a   : > { %p8485_p8 = pnand %p8484_p4, %p8478_p10 }
 0x14c   : > { %8488 = shalt.err (!%p8485_p8)
}
 0x14d   : > { %7776 = dma.hbm_to_vmem [thread:$0]  (!%p11773_p11), %s11775_s10, 16, %s596_s19, [#allocation15]  }
 0x14e   : > { %s8743_s7 = smov [#allocation19]   ;;  %s8744_s17 = smov [#allocation22]  }
 0x14f   : > { %s618_s2 = sshll.u32 %s8743_s7, 4  ;;  %s642_s0 = sshll.u32 %s8744_s17, 4  ;;  %s619_s2 = int_to_ptr.vmem [resolvable:$true] %s618_s2  ;;  %s643_s0 = int_to_ptr.vmem [resolvable:$true] %s642_s0 }
 0x150   : > { %s8489_s5 = scalar_lea.hbm %s11335_s12, 16384 }
 0x151   : > { %p8490_p1 = scmp.ne.s32.totalorder %s11335_s12, %s8489_s5  ;;  %p8496_p13 = scmp.lt.u32.totalorder %s8489_s5, %s11335_s12 }
 0x153   : > { %p8492_p7 = pnand %p8490_p1, %p11772_p5 }
 0x155   : > { %p8493_p6 = pneg %p8492_p7 }
 0x157   : > { %p8498_p12 = pnand %p8496_p13, %p8493_p6 }
 0x159   : > { %8501 = shalt.err (!%p8498_p12)
}
 0x15a   : > { %s8502_s19 = scalar_lea.vmem %s619_s2, 16384  ;;  %p8510_p3 = scmp.lt.s32.totalorder %s619_s2, %s619_s2 }
 0x15b   : > { %p8503_p2 = scmp.ne.s32.totalorder %s619_s2, %s8502_s19  ;;  %p8511_p0 = scmp.lt.s32.totalorder %s8502_s19, %s8502_s19 }
 0x15d   : > { %p8505_p9 = pnand %p8503_p2, %p11772_p5  ;;  %p8512_p4 = por %p8511_p0, %p8510_p3 }
 0x15f   : > { %p8506_p10 = pneg %p8505_p9 }
 0x161   : > { %p8513_p8 = pnand %p8512_p4, %p8506_p10 }
 0x163   : > { %8516 = shalt.err (!%p8513_p8)
}
 0x164   : > { %s11776_s13 = smov 32   ;;  %s11777_s7 = smov 512  }
 0x165   : > { %7782 = dma.hbm_to_vmem [thread:$0]  (!%p11773_p11), %s11335_s12, 16384, %s619_s2, [#allocation18], %s11777_s7, %s11777_s7, %s11776_s13  }
 0x166   : > { %s11778_s20 = sld [smem:[#allocation404_spill]] }
 0x16c   : > { %s8517_s9 = scalar_lea.hbm %s11778_s20, 16384 }
 0x16d   : > { %p8518_p1 = scmp.ne.s32.totalorder %s11778_s20, %s8517_s9  ;;  %p8524_p13 = scmp.lt.u32.totalorder %s8517_s9, %s11778_s20 }
 0x16f   : > { %p8520_p7 = pnand %p8518_p1, %p11772_p5 }
 0x171   : > { %p8521_p6 = pneg %p8520_p7 }
 0x173   : > { %p8526_p12 = pnand %p8524_p13, %p8521_p6 }
 0x175   : > { %8529 = shalt.err (!%p8526_p12)
}
 0x176   : > { %s8530_s17 = scalar_lea.vmem %s643_s0, 16384  ;;  %p8538_p3 = scmp.lt.s32.totalorder %s643_s0, %s643_s0 }
 0x177   : > { %p8531_p2 = scmp.ne.s32.totalorder %s643_s0, %s8530_s17  ;;  %p8539_p0 = scmp.lt.s32.totalorder %s8530_s17, %s8530_s17 }
 0x179   : > { %p8533_p9 = pnand %p8531_p2, %p11772_p5  ;;  %p8540_p4 = por %p8539_p0, %p8538_p3 }
 0x17b   : > { %p8534_p10 = pneg %p8533_p9 }
 0x17d   : > { %p8541_p8 = pnand %p8540_p4, %p8534_p10 }
 0x17f   : > { %8544 = shalt.err (!%p8541_p8)
}
 0x180   : > { %s8745_s2 = smov 128   ;;  %s8746_s13 = smov 8  }
 0x181   : > { %7788 = dma.hbm_to_vmem [thread:$0]  (!%p11773_p11), %s11778_s20, 16384, %s643_s0, [#allocation21], %s8745_s2, %s8745_s2, %s8746_s13  }
 0x182   : > { %s8747_s21 = smov [#allocation25]   ;;  %s11779_s15 = sld [smem:[#allocation407_spill]] }
 0x183   : > { %s670_s28 = sshll.u32 %s8747_s21, 4  ;;  %s671_s28 = int_to_ptr.vmem [resolvable:$true] %s670_s28 }
 0x188   : > { %s8545_s18 = scalar_lea.hbm %s11779_s15, 16 }
 0x189   : > { %p8546_p1 = scmp.ne.s32.totalorder %s11779_s15, %s8545_s18  ;;  %p8552_p13 = scmp.lt.u32.totalorder %s8545_s18, %s11779_s15 }
 0x18b   : > { %p8548_p7 = pnand %p8546_p1, %p11772_p5 }
 0x18d   : > { %p8549_p6 = pneg %p8548_p7 }
 0x18f   : > { %p8554_p12 = pnand %p8552_p13, %p8549_p6 }
 0x191   : > { %8557 = shalt.err (!%p8554_p12)
}
 0x192   : > { %s8558_s0 = scalar_lea.vmem %s671_s28, 16  ;;  %s8565_s2 = scalar_lea.vmem %s671_s28, 32 }
 0x193   : > { %p8559_p2 = scmp.ne.s32.totalorder %s671_s28, %s8558_s0  ;;  %p8566_p3 = scmp.lt.s32.totalorder %s671_s28, %s671_s28 }
 0x194   : > { %p8567_p0 = scmp.lt.s32.totalorder %s8565_s2, %s8558_s0 }
 0x195   : > { %p8561_p9 = pnand %p8559_p2, %p11772_p5 }
 0x196   : > { %p8568_p4 = por %p8567_p0, %p8566_p3 }
 0x197   : > { %p8562_p10 = pneg %p8561_p9 }
 0x199   : > { %p8569_p8 = pnand %p8568_p4, %p8562_p10 }
 0x19b   : > { %8572 = shalt.err (!%p8569_p8)
}
 0x19c   : > { %7794 = dma.hbm_to_vmem [thread:$0]  (!%p11773_p11), %s11779_s15, 16, %s671_s28, [#allocation24]  }
 0x19d   : > { %s11780_s27 = sld [smem:[#allocation393_spill]]  ;;  %s707_s21 = scalar_lea.vmem [#allocation2], %s9085_s26 }
 0x19e   : > { %s714_s5 = sshll.u32 %s707_s21, 4  ;;  %s11781_s4 = sand.u32 1, %s8723_s23   ;;  %s715_s5 = int_to_ptr.vmem [resolvable:$true] %s714_s5 }
 0x19f   : > { %s704_s9 = scalar_lea.sflag [#allocation3], %s11781_s4  ;;  %p11782_p1 = scmp.ne.s32.totalorder %s11770_s29, 0 }
 0x1a3   : > { %s9252_s7 = scalar_lea.hbm %s11780_s27, %s9088_s14  ;;  %s8578_s17 = scalar_lea.hbm %s11780_s27, 256 }
 0x1a4   : > { %s8573_s18 = scalar_lea.hbm %s9252_s7, 64  ;;  %p8579_p11 = scmp.lt.u32.totalorder %s9252_s7, %s11780_s27 }
 0x1a5   : > { %p8574_p5 = scmp.ne.s32.totalorder %s9252_s7, %s8573_s18  ;;  %p8580_p13 = scmp.lt.u32.totalorder %s8578_s17, %s8573_s18 }
 0x1a6   : > { %p8582_p2 = scmp.lt.u32.totalorder %s8573_s18, %s9252_s7 }
 0x1a7   : > { %p8576_p7 = pnand %p8574_p5, %p11782_p1  ;;  %p8581_p12 = por %p8580_p13, %p8579_p11 }
 0x1a9   : > { %p8577_p6 = pneg %p8576_p7  ;;  %p8583_p9 = por %p8582_p2, %p8581_p12 }
 0x1ab   : > { %p8584_p10 = pnand %p8583_p9, %p8577_p6 }
 0x1ad   : > { %8587 = shalt.err (!%p8584_p10)
}
 0x1ae   : > { %s8588_s13 = scalar_lea.vmem %s715_s5, 64  ;;  %s8748_s6 = smov [#allocation2]  }
 0x1af   : > { %p8589_p3 = scmp.ne.s32.totalorder %s715_s5, %s8588_s13  ;;  %s8593_s8 = sshll.u32 %s8748_s6, 4  ;;  %s8594_s8 = int_to_ptr.vmem [resolvable:$false] %s8593_s8 }
 0x1b0   : > { %s8595_s10 = scalar_lea.vmem %s8594_s8, 128  ;;  %p8596_p8 = scmp.lt.s32.totalorder %s715_s5, %s8594_s8 }
 0x1b1   : > { %p8591_p0 = pnand %p8589_p3, %p11782_p1  ;;  %p8597_p5 = scmp.lt.s32.totalorder %s8595_s10, %s8588_s13 }
 0x1b3   : > { %p8592_p4 = pneg %p8591_p0  ;;  %p8598_p7 = por %p8597_p5, %p8596_p8 }
 0x1b5   : > { %p8599_p11 = pnand %p8598_p7, %p8592_p4 }
 0x1b7   : > { %8602 = shalt.err (!%p8599_p11)
}
 0x1b8   : > { %p11783_p13 = scmp.ne.s32.totalorder %s11768_s16, 0  ;;  %s11784_s18 = sld [smem:[#allocation395_spill]] }
 0x1b9   : > { %s743_s19 = scalar_lea.vmem [#allocation7], %s9085_s26 }
 0x1ba   : > { %7798 = dma.hbm_to_vmem [thread:$0]  (!%p11783_p13), %s9252_s7, 64, %s715_s5, %s704_s9  }
 0x1bb   : > { %s750_s17 = sshll.u32 %s743_s19, 4  ;;  %s751_s17 = int_to_ptr.vmem [resolvable:$true] %s750_s17 }
 0x1be   : > { %s9278_s28 = scalar_lea.hbm %s11784_s18, %s9088_s14  ;;  %s8608_s7 = scalar_lea.hbm %s11784_s18, 256 }
 0x1bf   : > { %s8603_s0 = scalar_lea.hbm %s9278_s28, 64  ;;  %p8609_p9 = scmp.lt.u32.totalorder %s9278_s28, %s11784_s18 }
 0x1c0   : > { %p8604_p6 = scmp.ne.s32.totalorder %s9278_s28, %s8603_s0  ;;  %p8610_p10 = scmp.lt.u32.totalorder %s8608_s7, %s8603_s0 }
 0x1c1   : > { %p8612_p0 = scmp.lt.u32.totalorder %s8603_s0, %s9278_s28 }
 0x1c2   : > { %p8606_p12 = pnand %p8604_p6, %p11782_p1  ;;  %p8611_p3 = por %p8610_p10, %p8609_p9 }
 0x1c4   : > { %p8607_p2 = pneg %p8606_p12  ;;  %p8613_p4 = por %p8612_p0, %p8611_p3 }
 0x1c6   : > { %p8614_p8 = pnand %p8613_p4, %p8607_p2 }
 0x1c8   : > { %8617 = shalt.err (!%p8614_p8)
}
 0x1c9   : > { %s8618_s26 = scalar_lea.vmem %s751_s17, 64  ;;  %s8749_s14 = smov [#allocation7]  }
 0x1ca   : > { %p8619_p5 = scmp.ne.s32.totalorder %s751_s17, %s8618_s26  ;;  %s8623_s6 = sshll.u32 %s8749_s14, 4  ;;  %s8624_s6 = int_to_ptr.vmem [resolvable:$false] %s8623_s6 }
 0x1cb   : > { %s8625_s8 = scalar_lea.vmem %s8624_s6, 128  ;;  %p8626_p6 = scmp.lt.s32.totalorder %s751_s17, %s8624_s6 }
 0x1cc   : > { %p8621_p7 = pnand %p8619_p5, %p11782_p1  ;;  %p8627_p12 = scmp.lt.s32.totalorder %s8625_s8, %s8618_s26 }
 0x1ce   : > { %p8622_p11 = pneg %p8621_p7  ;;  %p8628_p13 = por %p8627_p12, %p8626_p6 }
 0x1d0   : > { %p8629_p9 = pnand %p8628_p13, %p8622_p11 }
 0x1d2   : > { %8632 = shalt.err (!%p8629_p9)
}
 0x1d3   : > { %p11785_p10 = scmp.ne.s32.totalorder %s11768_s16, 0  ;;  %s11786_s10 = sld [smem:[#allocation36_spill]] }
 0x1d5   : > { %7804 = dma.hbm_to_vmem [thread:$0]  (!%p11785_p10), %s9278_s28, 64, %s751_s17, %s9106_s11  }
 0x1d9   : > { %p11787_p2 = scmp.ne.s32.totalorder %s11786_s10, 0 }
 0x1db   : > { %759 = sbr.rel (%p11787_p2) target bundleno = 5498 (0x157a), region = 100 }
 0x1e2   : > { %s9302_s29 = sand.u32 1, %s8719_s22   ;;  %p11788_p1 = scmp.ne.s32.totalorder %s11764_s30, 0 }
 0x1e3   : > { %s9305_s21 = sshll.u32 %s9302_s29, 2  ;;  %s762_s4 = scalar_lea.sflag [#allocation3], %s9302_s29 }
 0x1e4   : > { %s765_s19 = scalar_lea.vmem [#allocation2], %s9305_s21 }
 0x1e5   : > { %8678 = dma.done.wait (%p11788_p1), %s762_s4, 64  }
 0x1e6   : > { %8680 = vsyncadd (%p11788_p1), %s762_s4, 4294967232  ;;  %s770_s11 = sand.u32 1, %s8880_s3   ;;  %s774_s28 = scalar_lea.vmem [#allocation5], %s9305_s21 }
 0x1e7   : > { %s771_s16 = scalar_lea.sflag [#allocation6], %s770_s11 }
 0x1e8   : > { %8682 = dma.done.wait (%p11788_p1), %s771_s16, 128  }
 0x1e9   : > { %8684 = vsyncadd (%p11788_p1), %s771_s16, 4294967168  ;;  %s783_s17 = scalar_lea.vmem [#allocation7], %s9305_s21  ;;  %p11789_p13 = scmp.eq.s32.totalorder %s8880_s3, 0 }
 0x1eb   : > { %8686 = dma.done.wait (%p11789_p13), [#allocation9], 144   ;;  %p11790_p3 = pmov %p11789_p13 }
 0x1ed   : > { %8688 = vsyncadd (%p11790_p3), [#allocation9], 4294967152  ;;  %p11791_p0 = pmov %p11790_p3 }
 0x1ef   : > { %8690 = dma.done.wait (%p11791_p0), [#allocation12], 1040   ;;  %p11792_p4 = pmov %p11791_p0 }
 0x1f0   : > { %p11793_p8 = pmov %p11791_p0 }
 0x1f1   : > { %8692 = vsyncadd (%p11792_p4), [#allocation12], 4294966256 }
 0x1f2   : > { %8694 = dma.done.wait (%p11793_p8), [#allocation15], 1040   ;;  %p11794_p5 = pmov %p11791_p0 }
 0x1f3   : > { %p11795_p7 = pmov %p11791_p0 }
 0x1f4   : > { %8696 = vsyncadd (%p11794_p5), [#allocation15], 4294966256 }
 0x1f5   : > { %8698 = dma.done.wait (%p11795_p7), [#allocation18], 49152   ;;  %p11796_p11 = pmov %p11791_p0 }
 0x1f6   : > { %p11797_p6 = pmov %p11791_p0 }
 0x1f7   : > { %8700 = vsyncadd (%p11796_p11), [#allocation18], 4294918144 }
 0x1f8   : > { %8702 = dma.done.wait (%p11797_p6), [#allocation21], 16512   ;;  %p11798_p12 = pmov %p11791_p0 }
 0x1f9   : > { %p11799_p9 = pmov %p11791_p0 }
 0x1fa   : > { %8704 = vsyncadd (%p11798_p12), [#allocation21], 4294950784 }
 0x1fb   : > { %8706 = dma.done.wait (%p11799_p9), [#allocation24], 48   ;;  %p11800_p10 = pmov %p11791_p0 }
 0x1fc   : > { %p908_p2 = scmp.lt.s32.totalorder %s8880_s3, 3  ;;  %s11801_s7 = sld [smem:[#allocation392_spill]]  ;;  %v7888_v0 = vld [vmem:[#allocation8] sm:$0xff]   ;;  %vm937_vm0 = vcmask 130048   ;;  %vm1012_vm1 = vcmask 261120   ;;  %v7891_v14 = vld [vmem:[#allocation11] sm:$0xff]  }
 0x1fd   : > { %8708 = vsyncadd (%p11800_p10), [#allocation24], 4294967248  ;;  %7574 = vmatprep.subr.bf16.mxu0 %v7888_v0  ;;  %s11802_s6 = sld [smem:[#allocation391_spill]]  ;;  %v7892_v16 = vld [vmem:[#allocation11 + $0x8] sm:$0xff]   ;;  %v7893_v17 = vld [vmem:[#allocation11 + $0x10] sm:$0xff]   ;;  %vm1494_vm2 = vcmask 1043456  }
 0x1fe   : > { %s909_s30 = scalar_select %p908_p2, %s8880_s3, 3  ;;  %7575 = vmatpush3.bf16.msra.mxu0 %v7888_v0  ;;  %v7894_v18 = vld [vmem:[#allocation11 + $0x18] sm:$0xff]   ;;  %v7895_v19 = vld [vmem:[#allocation11 + $0x20] sm:$0xff]   ;;  %v7896_v20 = vld [vmem:[#allocation11 + $0x28] sm:$0xff]   ;;  %vm8751_vm3 = vmmov 0   ;;  %vm1490_vm4 = vcmask 64512  }
 0x1ff   : > { %v7897_v21 = vld [vmem:[#allocation11 + $0x30] sm:$0xff]   ;;  %v7898_v22 = vld [vmem:[#allocation11 + $0x38] sm:$0xff]   ;;  %v7899_v48 = vld [vmem:[#allocation14] sm:$0xff]   ;;  %vm4628_vm6 = vcmask 257024   ;;  %s12507_s4 = sld [smem:[#allocation406_spill]]  ;;  %s12512_s14 = sld [smem:[#allocation409_spill]] }
 0x200   : > { %s7499_s0 = sshll.u32 %s909_s30, 5  ;;  %s7498_s9 = sshll.u32 %s909_s30, 4  ;;  %v6911_v23 = vld [vmem:[#allocation10] ss:$0 sm:$0xff]  ;;  %v7900_v49 = vld [vmem:[#allocation14 + $0x8] sm:$0xff]   ;;  %v7901_v50 = vld [vmem:[#allocation14 + $0x10] sm:$0xff]  }
 0x201   : > { %v7902_v51 = vld [vmem:[#allocation14 + $0x18] sm:$0xff]   ;;  %v7903_v52 = vld [vmem:[#allocation14 + $0x20] sm:$0xff]   ;;  %v7904_v53 = vld [vmem:[#allocation14 + $0x28] sm:$0xff]   ;;  %s7495_s10 = sshll.u32 %s8880_s3, 5  ;;  %s6602_s30 = scalar_lea.sflag [#allocation4], %s9302_s29 }
 0x202   : > { %s917_s5 = scalar_lea.vmem %s11801_s7, %s7499_s0  ;;  %v7905_v54 = vld [vmem:[#allocation14 + $0x30] sm:$0xff]   ;;  %v7906_v55 = vld [vmem:[#allocation14 + $0x38] sm:$0xff]   ;;  %p12514_p13 = scmp.ne.s32.totalorder %s11765_s25, 0 }
 0x203   : > { %v923_v1 = vld [vmem:[%s917_s5] sm:$0xff]  ;;  %v924_v2 = vld [vmem:[%s917_s5 + $0x8] sm:$0xff]  ;;  %v925_v3 = vld [vmem:[%s917_s5 + $0x10] sm:$0xff]  ;;  %s912_s8 = scalar_lea.vmem %s11802_s6, %s7498_s9  ;;  %s12511_s6 = sld [smem:[#allocation408_spill]] }
 0x204   : > { %v927_v4 = vpack.c.bf16 %v924_v2, %v923_v1  ;;  %v926_v5 = vld [vmem:[%s917_s5 + $0x18] sm:$0xff]  ;;  %v7889_v7 = vld [vmem:[%s912_s8] sm:$0xff]   ;;  %v9356_v15 = vld [vmem:[%s912_s8 + $0x8] sm:$0xff]   ;;  %s6903_s8 = sshll.u32 %s9302_s29, 1  ;;  %s8753_s3 = smov [#allocation26]  }
 0x205   : > { %v928_v6 = vpack.c.bf16 %v926_v5, %v925_v3  ;;  %7584 = vmatprep.mubr.msk.bf16.mxu1 %vm1012_vm1, %v7889_v7  ;;  %v6924_v56 = vld [vmem:[#allocation13] ss:$0 sm:$0xff]  ;;  %s907_s21 = scalar_lea.vmem [#allocation26], %s6903_s8  ;;  %s8637_s2 = sshll.u32 %s8753_s3, 4  ;;  %s8638_s2 = int_to_ptr.vmem [resolvable:$false] %s8637_s2 }
 0x206   : > { %7576 = vmatprep.mubr.msk.bf16.mxu0 %vm937_vm0, %v927_v4  ;;  %s8639_s13 = scalar_lea.vmem %s8638_s2, 64 }
 0x207   : > { %7577 = vmatmul.mubr.msk.bf16.vlgmr.msra.gmra.mrb[0].mxu0 %vm937_vm0, %v928_v6 }
 0x208   : > { %7640 = vmatprep.mubr.msk.bf16.mxu0 %vm1012_vm1, %v7889_v7 }
 0x2da   : > { %v7578_v8 = vpop.f32.mrb[0].mxu0 }
 0x2db   : > { %v978_v9 = vpop.f32.mrb[1].mxu0 }
 0x2dc   : > { %v7579_v10 = vpop.f32.mrb[2].mxu0 }
 0x2dd   : > { %v994_v11 = vpack.c.bf16 %v7579_v10, %v7578_v8  ;;  %v981_v12 = vpop.f32.mrb[3].mxu0 }
 0x2de   : > { %v993_v13 = vpack.c.bf16 %v981_v12, %v978_v9 }
 0x2e0   : > { %7580 = vmatprep.subr.bf16.mxu1 %v993_v13 }
 0x2e1   : > { %7581 = vmatpush3.bf16.msra.mxu1 %v993_v13 }
 0x2e2   : > { %7582 = vmatprep.subr.bf16.mxu1 %v994_v11 }
 0x2e5   : > { %7583 = vmatpush3.bf16.msra.mxu1 %v994_v11 }
 0x2e6   : > { %7588 = vmatprep.subr.bf16.mxu1 %v7891_v14 }
 0x2e8   : > { %7585 = vmatmul.mubr.msk.bf16.vlgmr.msra.gmra.mrb[0].mxu1 %vm1012_vm1, %v9356_v15 }
 0x2e9   : > { %7589 = vmatpush3.bf16.msra.mxu1 %v7891_v14 }
 0x2ea   : > { %7590 = vmatprep.subr.bf16.mxu1 %v7892_v16 }
 0x2ed   : > { %7591 = vmatpush3.bf16.msra.mxu1 %v7892_v16 }
 0x2ee   : > { %7592 = vmatprep.subr.bf16.mxu1 %v7893_v17 }
 0x2f1   : > { %7593 = vmatpush3.bf16.msra.mxu1 %v7893_v17 }
 0x2f2   : > { %7594 = vmatprep.subr.bf16.mxu1 %v7894_v18 }
 0x2f5   : > { %7595 = vmatpush3.bf16.msra.mxu1 %v7894_v18  ;;  %v6935_v18 = vld [vmem:[#allocation16] ss:$0 sm:$0xff] }
 0x2f6   : > { %7596 = vmatprep.subr.bf16.mxu1 %v7895_v19 }
 0x2f9   : > { %7597 = vmatpush3.bf16.msra.mxu1 %v7895_v19 }
 0x2fa   : > { %7598 = vmatprep.subr.bf16.mxu1 %v7896_v20 }
 0x2fd   : > { %7599 = vmatpush3.bf16.msra.mxu1 %v7896_v20 }
 0x2fe   : > { %7600 = vmatprep.subr.bf16.mxu1 %v7897_v21 }
 0x301   : > { %7601 = vmatpush3.bf16.msra.mxu1 %v7897_v21 }
 0x302   : > { %7602 = vmatprep.subr.bf16.mxu1 %v7898_v22 }
 0x305   : > { %7603 = vmatpush3.bf16.msra.mxu1 %v7898_v22 }
 0x3bb   : > { %v7586_v24 = vpop.f32.mrb[0].mxu1 }
 0x3bc   : > { %v1062_v25 = vadd.f32 %v7586_v24, %v6911_v23  ;;  %v1053_v26 = vpop.f32.mrb[1].mxu1 }
 0x3bd   : > { %v1054_v27 = vadd.f32 %v6911_v23, %v1053_v26  ;;  %v7587_v28 = vpop.f32.mrb[2].mxu1 }
 0x3be   : > { %v1065_v29 = vadd.f32 %v7587_v28, %v6911_v23  ;;  %v1056_v30 = vpop.f32.mrb[3].mxu1  ;;  %v1070_v33 = vmul.f32 0.2, %v1062_v25 }
 0x3bf   : > { %v1068_v31 = vmul.f32 0.2, %v1054_v27  ;;  %v1057_v32 = vadd.f32 %v6911_v23, %v1056_v30 }
 0x3c0   : > { %v1071_v34 = vmul.f32 0.2, %v1065_v29  ;;  %v9366_v39 = vmax.f32 %v1062_v25, %v1070_v33 }
 0x3c1   : > { %v1069_v35 = vmul.f32 0.2, %v1057_v32  ;;  %v9362_v37 = vmax.f32 %v1054_v27, %v1068_v31 }
 0x3c2   : > { %v9360_v36 = vmax.f32 %v1065_v29, %v1071_v34 }
 0x3c3   : > { %v9364_v38 = vmax.f32 %v1057_v32, %v1069_v35 }
 0x3c4   : > { %v1077_v41 = vpack.c.bf16 %v9360_v36, %v9366_v39 }
 0x3c5   : > { %v1076_v40 = vpack.c.bf16 %v9364_v38, %v9362_v37 }
 0x3c7   : > { %7604 = vmatprep.mubr.bf16.mxu1 %v1076_v40 }
 0x3c8   : > { %7605 = vmatmul.mubr.bf16.vlgmr.msra.gmra.mrb[4].mxu1 %v1077_v41 }
 0x3c9   : > { %7612 = vmatprep.mubr.msk.bf16.mxu1 %vm1012_vm1, %v7889_v7 }
 0x49b   : > { %v7606_v42 = vpop.f32.mrb[4].mxu1 }
 0x49c   : > { %v1176_v43 = vpop.f32.mrb[5].mxu1 }
 0x49d   : > { %v7607_v44 = vpop.f32.mrb[6].mxu1 }
 0x49e   : > { %v1192_v45 = vpack.c.bf16 %v7607_v44, %v7606_v42  ;;  %v1179_v46 = vpop.f32.mrb[7].mxu1 }
 0x49f   : > { %v1191_v47 = vpack.c.bf16 %v1179_v46, %v1176_v43 }
 0x4a1   : > { %7608 = vmatprep.subr.bf16.mxu1 %v1191_v47 }
 0x4a2   : > { %7609 = vmatpush3.bf16.msra.mxu1 %v1191_v47 }
 0x4a3   : > { %7610 = vmatprep.subr.bf16.mxu1 %v1192_v45 }
 0x4a6   : > { %7611 = vmatpush3.bf16.msra.mxu1 %v1192_v45 }
 0x4a7   : > { %7616 = vmatprep.subr.bf16.mxu1 %v7899_v48 }
 0x4a9   : > { %7613 = vmatmul.mubr.msk.bf16.vlgmr.msra.gmra.mrb[8].mxu1 %vm1012_vm1, %v9356_v15 }
 0x4aa   : > { %7617 = vmatpush3.bf16.msra.mxu1 %v7899_v48 }
 0x4ab   : > { %7618 = vmatprep.subr.bf16.mxu1 %v7900_v49 }
 0x4ae   : > { %7619 = vmatpush3.bf16.msra.mxu1 %v7900_v49  ;;  %v1472_v49 = vld [vmem:[%s765_s19] sm:$0xf]  ;;  %s6615_s19 = sshll.u32 %s907_s21, 4  ;;  %s11282_s19 = int_to_ptr.vmem [resolvable:$true] %s6615_s19 }
 0x4af   : > { %7620 = vmatprep.subr.bf16.mxu1 %v7901_v50  ;;  %s8633_s0 = scalar_lea.vmem %s11282_s19, 32  ;;  %p8640_p4 = scmp.lt.s32.totalorder %s11282_s19, %s8638_s2 }
 0x4b0   : > { %p8634_p1 = scmp.ne.s32.totalorder %s11282_s19, %s8633_s0  ;;  %p8641_p8 = scmp.lt.s32.totalorder %s8639_s13, %s8633_s0 }
 0x4b2   : > { %7621 = vmatpush3.bf16.msra.mxu1 %v7901_v50  ;;  %p8635_p3 = pnand %p8634_p1, %p12514_p13  ;;  %p8642_p5 = por %p8641_p8, %p8640_p4 }
 0x4b3   : > { %7622 = vmatprep.subr.bf16.mxu1 %v7902_v51 }
 0x4b4   : > { %p8636_p0 = pneg %p8635_p3 }
 0x4b6   : > { %7623 = vmatpush3.bf16.msra.mxu1 %v7902_v51  ;;  %p8643_p7 = pnand %p8642_p5, %p8636_p0 }
 0x4b7   : > { %7624 = vmatprep.subr.bf16.mxu1 %v7903_v52 }
 0x4ba   : > { %7625 = vmatpush3.bf16.msra.mxu1 %v7903_v52 }
 0x4bb   : > { %7626 = vmatprep.subr.bf16.mxu1 %v7904_v53 }
 0x4be   : > { %7627 = vmatpush3.bf16.msra.mxu1 %v7904_v53 }
 0x4bf   : > { %7628 = vmatprep.subr.bf16.mxu1 %v7905_v54 }
 0x4c2   : > { %7629 = vmatpush3.bf16.msra.mxu1 %v7905_v54 }
 0x4c3   : > { %7630 = vmatprep.subr.bf16.mxu1 %v7906_v55 }
 0x4c6   : > { %7631 = vmatpush3.bf16.msra.mxu1 %v7906_v55 }
 0x57c   : > { %v7614_v57 = vpop.f32.mrb[8].mxu1 }
 0x57d   : > { %v1243_v58 = vadd.f32 %v7614_v57, %v6924_v56  ;;  %v1234_v59 = vpop.f32.mrb[9].mxu1 }
 0x57e   : > { %v1235_v60 = vadd.f32 %v6924_v56, %v1234_v59  ;;  %v7615_v61 = vpop.f32.mrb[10].mxu1 }
 0x57f   : > { %v1251_v62 = vmul.f32 0.2, %v1243_v58  ;;  %v1246_v63 = vadd.f32 %v7615_v61, %v6924_v56  ;;  %v1237_v0 = vpop.f32.mrb[11].mxu1 }
 0x580   : > { %v1249_v1 = vmul.f32 0.2, %v1235_v60  ;;  %v1238_v2 = vadd.f32 %v6924_v56, %v1237_v0 }
 0x581   : > { %v1252_v3 = vmul.f32 0.2, %v1246_v63  ;;  %v1255_v5 = vmax.f32 %v1243_v58, %v1251_v62 }
 0x582   : > { %v1250_v4 = vmul.f32 0.2, %v1238_v2  ;;  %v1253_v7 = vmax.f32 %v1235_v60, %v1249_v1 }
 0x583   : > { %v1256_v6 = vmax.f32 %v1246_v63, %v1252_v3  ;;  %v1440_v31 = vadd.f32 %v1255_v5, %v9366_v39 }
 0x584   : > { %v1254_v8 = vmax.f32 %v1238_v2, %v1250_v4  ;;  %v1438_v34 = vadd.f32 %v1253_v7, %v9362_v37  ;;  %v11372_v37 = vmov 0.0  }
 0x585   : > { %v1258_v9 = vpack.c.bf16 %v1256_v6, %v1255_v5  ;;  %7650 = vmatprep.subr.bf16.mxu1 %v11372_v37  ;;  %v1948_v5 = vld [vmem:[#allocation19 + $0x10] sm:$0xff] }
 0x586   : > { %v1257_v10 = vpack.c.bf16 %v1254_v8, %v1253_v7  ;;  %v1439_v41 = vadd.f32 %v1254_v8, %v9364_v38 }
 0x588   : > { %7632 = vmatprep.mubr.bf16.mxu1 %v1257_v10  ;;  %v1950_v10 = vld [vmem:[#allocation19 + $0x20] sm:$0xff] }
 0x589   : > { %7633 = vmatmul.mubr.bf16.vlgmr.msra.gmra.mrb[12].mxu1 %v1258_v9  ;;  %v1946_v9 = vld [vmem:[#allocation19] sm:$0xff] }
 0x58a   : > { %7652 = vmatprep.mubr.msk.bf16.mxu1 %vm8751_vm3, %v11372_v37 }
 0x65c   : > { %v7634_v11 = vpop.f32.mrb[12].mxu1 }
 0x65d   : > { %v1357_v12 = vpop.f32.mrb[13].mxu1 }
 0x65e   : > { %v7635_v13 = vpop.f32.mrb[14].mxu1 }
 0x65f   : > { %v1373_v14 = vpack.c.bf16 %v7635_v13, %v7634_v11  ;;  %v1360_v16 = vpop.f32.mrb[15].mxu1  ;;  %v9410_v11 = vcombine.low %v1946_v9, %v1950_v10 }
 0x660   : > { %v1372_v17 = vpack.c.bf16 %v1360_v16, %v1357_v12  ;;  %v9412_v12 = vcombine.high %v1946_v9, %v1950_v10  ;;  %v2044_v9 = vld [vmem:[#allocation19 + $0x310] sm:$0xff] }
 0x661   : > { %11806 = vst [vmem:[#allocation43_spill] sm:$0xff] %v9410_v11  ;;  %v2048_v10 = vld [vmem:[#allocation19 + $0x330] sm:$0xff] }
 0x662   : > { %7636 = vmatprep.subr.bf16.mxu0 %v1372_v17 }
 0x663   : > { %7637 = vmatpush3.bf16.msra.mxu0 %v1372_v17 }
 0x664   : > { %7638 = vmatprep.subr.bf16.mxu0 %v1373_v14 }
 0x667   : > { %7639 = vmatpush3.bf16.msra.mxu0 %v1373_v14 }
 0x668   : > { %7644 = vmatprep.subr.bf16.mxu0 %v11372_v37 }
 0x66a   : > { %7641 = vmatmul.mubr.msk.bf16.vlgmr.msra.gmra.mrb[4].mxu0 %vm1012_vm1, %v9356_v15  ;;  %v1441_v15 = vadd.f32 %v1256_v6, %v9360_v36  ;;  %v1473_v36 = vld [vmem:[%s774_s28] sm:$0xf]  ;;  %v1952_v6 = vld [vmem:[#allocation19 + $0x30] sm:$0xff]  ;;  %s12513_s28 = sld [smem:[#allocation410_spill]] }
 0x66b   : > { %v1496_v38 = vsel %vm1494_vm2, %v1473_v36, 0  ;;  %7646 = vmatprep.mubr.msk.bf16.mxu0 %vm8751_vm3, %v11372_v37  ;;  %v9405_v7 = vcombine.low %v1948_v5, %v1952_v6  ;;  %v9407_v8 = vcombine.high %v1948_v5, %v1952_v6 }
 0x66c   : > { %7645 = vmatpush3.bf16.msra.mxu0 %v1496_v38 }
 0x66d   : > { %7656 = vmatprep.subr.bf16.mxu0 %v11372_v37  ;;  %11804 = vst [vmem:[#allocation41_spill] sm:$0xff] %v9405_v7  ;;  %11805 = vst [vmem:[#allocation42_spill] sm:$0xff] %v9407_v8 }
 0x73d   : > { %v7642_v19 = vpop.f32.mrb[4].mxu0 }
 0x73e   : > { %v1424_v20 = vadd.f32 %v7642_v19, %v6935_v18  ;;  %v1415_v21 = vpop.f32.mrb[5].mxu0 }
 0x73f   : > { %v1416_v22 = vadd.f32 %v6935_v18, %v1415_v21  ;;  %v7643_v23 = vpop.f32.mrb[6].mxu0 }
 0x740   : > { %v1432_v24 = vmul.f32 0.2, %v1424_v20  ;;  %v1427_v25 = vadd.f32 %v7643_v23, %v6935_v18  ;;  %v1418_v26 = vpop.f32.mrb[7].mxu0  ;;  %v1960_v23 = vld [vmem:[#allocation19 + $0x70] sm:$0xff] }
 0x741   : > { %v1430_v27 = vmul.f32 0.2, %v1416_v22  ;;  %v1419_v28 = vadd.f32 %v6935_v18, %v1418_v26 }
 0x742   : > { %v1436_v29 = vmax.f32 %v1424_v20, %v1432_v24  ;;  %v1433_v30 = vmul.f32 0.2, %v1427_v25 }
 0x743   : > { %v1434_v32 = vmax.f32 %v1416_v22, %v1430_v27  ;;  %v1431_v33 = vmul.f32 0.2, %v1419_v28  ;;  %v1956_v22 = vld [vmem:[#allocation19 + $0x50] sm:$0xff] }
 0x744   : > { %v1437_v35 = vmax.f32 %v1427_v25, %v1433_v30  ;;  %v1444_v40 = vadd.f32 %v1440_v31, %v1436_v29  ;;  %v9415_v27 = vcombine.high %v1956_v22, %v1960_v23  ;;  %v1968_v29 = vld [vmem:[#allocation19 + $0xb0] sm:$0xff]  ;;  %v9419_v30 = vcombine.low %v1956_v22, %v1960_v23 }
 0x745   : > { %v1435_v42 = vmax.f32 %v1419_v28, %v1431_v33  ;;  %v1442_v43 = vadd.f32 %v1438_v34, %v1434_v32  ;;  %v1964_v28 = vld [vmem:[#allocation19 + $0x90] sm:$0xff]  ;;  %v11374_v31 = vmov 0  }
 0x746   : > { %v1448_v44 = vmul.f32 %v1444_v40, %v1444_v40  ;;  %v1445_v45 = vadd.f32 %v1441_v15, %v1437_v35  ;;  %11807 = vst [vmem:[#allocation44_spill] sm:$0xff] %v9415_v27  ;;  %11808 = vst [vmem:[#allocation45_spill] sm:$0xff] %v9419_v30  ;;  %v9423_v32 = vcombine.high %v1964_v28, %v1968_v29  ;;  %v1972_v33 = vld [vmem:[#allocation19 + $0xd0] sm:$0xff] }
 0x747   : > { %v1446_v46 = vmul.f32 %v1442_v43, %v1442_v43  ;;  %v1443_v47 = vadd.f32 %v1439_v41, %v1435_v42  ;;  %v1976_v34 = vld [vmem:[#allocation19 + $0xf0] sm:$0xff]  ;;  %v9426_v15 = vcombine.low %v1964_v28, %v1968_v29  ;;  %v1690_v29 = vld [vmem:[#allocation17] sm:$0xff] }
 0x748   : > { %1454 = vadd.xlane.f32.xlu0 %v1448_v44  ;;  %v1449_v39 = vmul.f32 %v1445_v45, %v1445_v45  ;;  %11809 = vst [vmem:[#allocation46_spill] sm:$0xff] %v9423_v32  ;;  %v9429_v35 = vcombine.high %v1972_v33, %v1976_v34  ;;  %v1984_v41 = vld [vmem:[#allocation19 + $0x130] sm:$0xff]  ;;  %v9432_v42 = vcombine.low %v1972_v33, %v1976_v34  ;;  %v1694_v33 = vld [vmem:[#allocation17 + $0x20] sm:$0xff] }
 0x749   : > { %1450 = vadd.xlane.f32.xlu1 %v1446_v46  ;;  %v1447_v48 = vmul.f32 %v1443_v47, %v1443_v47  ;;  %11810 = vst [vmem:[#allocation47_spill] sm:$0xff] %v9426_v15  ;;  %v1988_v44 = vld [vmem:[#allocation19 + $0x150] sm:$0xff] }
 0x74a   : > { %11811 = vst [vmem:[#allocation48_spill] sm:$0xff] %v9429_v35  ;;  %11812 = vst [vmem:[#allocation49_spill] sm:$0xff] %v9432_v42 }
 0x74c   : > { %1456 = vadd.xlane.f32.xlu0 %v1449_v39  ;;  %v1996_v39 = vld [vmem:[#allocation19 + $0x190] sm:$0xff] }
 0x74d   : > { %1452 = vadd.xlane.f32.xlu1 %v1447_v48  ;;  %v2000_v48 = vld [vmem:[#allocation19 + $0x1b0] sm:$0xff] }
 0x74e   : > { %v9447_v38 = vcombine.high %v1996_v39, %v2000_v48 }
 0x750   : > { %11817 = vst [vmem:[#allocation54_spill] sm:$0xff] %v9447_v38 }
 0x779   : > { %1474 = vxpose.xlu0.c.b16.start.end [1/1] (short) (narrow) %v1472_v49, 16  ;;  %v2004_v49 = vld [vmem:[#allocation19 + $0x1d0] sm:$0xff] }
 0x7d5   : > { %v1455_v50 = vpop.xlane.xlu0 %1454 }
 0x7d6   : > { %v1460_v51 = vmax.f32 %v1455_v50, 1e-24  ;;  %v1451_v52 = vpop.xlane.xlu1 %1450  ;;  %v2008_v50 = vld [vmem:[#allocation19 + $0x1f0] sm:$0xff] }
 0x7d7   : > { %v1458_v57 = vmax.f32 %v1451_v52, 1e-24  ;;  %v9453_v52 = vcombine.high %v2004_v49, %v2008_v50 }
 0x7d8   : > { %8123 = vrsqrt.f32 %v1460_v51  ;;  %v9450_v51 = vcombine.low %v1996_v39, %v2000_v48  ;;  %v1706_v48 = vld [vmem:[#allocation17 + $0x80] sm:$0xff] }
 0x7d9   : > { %v1457_v53 = vpop.xlane.xlu0 %1456  ;;  %11819 = vst [vmem:[#allocation56_spill] sm:$0xff] %v9453_v52 }
 0x7da   : > { %v1461_v54 = vmax.f32 %v1457_v53, 1e-24  ;;  %v1453_v55 = vpop.xlane.xlu1 %1452  ;;  %11818 = vst [vmem:[#allocation55_spill] sm:$0xff] %v9450_v51  ;;  %v2012_v53 = vld [vmem:[#allocation19 + $0x210] sm:$0xff] }
 0x7db   : > { %v1459_v56 = vmax.f32 %v1453_v55, 1e-24  ;;  %v9456_v55 = vcombine.low %v2004_v49, %v2008_v50  ;;  %v1710_v49 = vld [vmem:[#allocation17 + $0xa0] sm:$0xff] }
 0x7dc   : > { %8125 = vrsqrt.f32 %v1461_v54  ;;  %v2016_v54 = vld [vmem:[#allocation19 + $0x230] sm:$0xff] }
 0x7dd   : > { %8127 = vrsqrt.f32 %v1459_v56  ;;  %11820 = vst [vmem:[#allocation57_spill] sm:$0xff] %v9456_v55  ;;  %v9459_v56 = vcombine.high %v2012_v53, %v2016_v54 }
 0x7de   : > { %8129 = vrsqrt.f32 %v1458_v57  ;;  %v2020_v57 = vld [vmem:[#allocation19 + $0x250] sm:$0xff] }
 0x7df   : > { %v1482_v58 = vpop.trf.xlu0  ;;  %11821 = vst [vmem:[#allocation58_spill] sm:$0xff] %v9459_v56 }
 0x7e0   : > { %7647 = vmatmul.mubr.msk.bf16.vlgmr.msra.gmra.mrb[8].mxu0 %vm1490_vm4, %v1482_v58  ;;  %v2024_v58 = vld [vmem:[#allocation19 + $0x270] sm:$0xff] }
 0x7e1   : > { %7658 = vmatprep.mubr.msk.bf16.mxu0 %vm8751_vm3, %v11372_v37 }
 0x7e2   : > { %v8124_v59 = vpop.eup %8123 }
 0x7e3   : > { %v1468_v61 = vmul.f32 %v8124_v59, %v1444_v40  ;;  %v1980_v40 = vld [vmem:[#allocation19 + $0x110] sm:$0xff]  ;;  %v9462_v59 = vcombine.low %v2012_v53, %v2016_v54  ;;  %v9521_v53 = vcombine.high %v1706_v48, %v1710_v49  ;;  %v1714_v54 = vld [vmem:[#allocation17 + $0xc0] sm:$0xff] }
 0x7e4   : > { %v9438_v46 = vcombine.low %v1980_v40, %v1984_v41 }
 0x7e5   : > { %11822 = vst [vmem:[#allocation59_spill] sm:$0xff] %v9462_v59  ;;  %11841 = vst [vmem:[#allocation78_spill] sm:$0xff] %v9521_v53 }
 0x7e6   : > { %v8126_v60 = vpop.eup %8125  ;;  %11814 = vst [vmem:[#allocation51_spill] sm:$0xff] %v9438_v46 }
 0x7e7   : > { %v1469_v62 = vmul.f32 %v8126_v60, %v1445_v45  ;;  %v8128_v63 = vpop.eup %8127  ;;  %v1992_v45 = vld [vmem:[#allocation19 + $0x170] sm:$0xff]  ;;  %v9465_v60 = vcombine.high %v2020_v57, %v2024_v58 }
 0x7e8   : > { %v8130_v1 = vpop.eup %8129  ;;  %v1467_v2 = vmul.f32 %v8128_v63, %v1443_v47  ;;  %v9441_v47 = vcombine.high %v1988_v44, %v1992_v45  ;;  %v9444_v36 = vcombine.low %v1988_v44, %v1992_v45  ;;  %v9468_v63 = vcombine.low %v2020_v57, %v2024_v58  ;;  %v1702_v44 = vld [vmem:[#allocation17 + $0x60] sm:$0xff] }
 0x7e9   : > { %v9394_v0 = vpack.c.bf16 %v1469_v62, %v1468_v61  ;;  %v1466_v3 = vmul.f32 %v8130_v1, %v1442_v43  ;;  %v9435_v43 = vcombine.high %v1980_v40, %v1984_v41  ;;  %11823 = vst [vmem:[#allocation60_spill] sm:$0xff] %v9465_v60  ;;  %v2028_v61 = vld [vmem:[#allocation19 + $0x290] sm:$0xff]  ;;  %v9507_v40 = vcombine.high %v1690_v29, %v1694_v33  ;;  %v1698_v41 = vld [vmem:[#allocation17 + $0x40] sm:$0xff] }
 0x7ea   : > { %11815 = vst [vmem:[#allocation52_spill] sm:$0xff] %v9441_v47  ;;  %11816 = vst [vmem:[#allocation53_spill] sm:$0xff] %v9444_v36  ;;  %v2032_v62 = vld [vmem:[#allocation19 + $0x2b0] sm:$0xff]  ;;  %v9510_v45 = vcombine.low %v1690_v29, %v1694_v33  ;;  %v9513_v39 = vcombine.high %v1698_v41, %v1702_v44  ;;  %v9517_v50 = vcombine.low %v1698_v41, %v1702_v44  ;;  %v1718_v57 = vld [vmem:[#allocation17 + $0xe0] sm:$0xff] }
 0x7eb   : > { %11803 = vst [vmem:[#allocation40_spill] sm:$0xff] %v9394_v0  ;;  %7651 = vmatpush3.bf16.xpose.msra.mxu1 %v9394_v0  ;;  %7657 = vmatpush3.bf16.msra.mxu0 %v9394_v0  ;;  %v9399_v4 = vpack.c.bf16 %v1467_v2, %v1466_v3  ;;  %11813 = vst [vmem:[#allocation50_spill] sm:$0xff] %v9435_v43  ;;  %v9471_v1 = vcombine.high %v2028_v61, %v2032_v62  ;;  %v2036_v2 = vld [vmem:[#allocation19 + $0x2d0] sm:$0xff]  ;;  %v1746_v33 = vld [vmem:[#allocation17 + $0x1c0] sm:$0xff] }
 0x7ec   : > { %7662 = vmatprep.subr.bf16.mxu1 %v11372_v37  ;;  %2796 = vmatprep.subr.bf16.mxu0 %v9407_v8  ;;  %11824 = vst [vmem:[#allocation61_spill] sm:$0xff] %v9468_v63  ;;  %v2040_v3 = vld [vmem:[#allocation19 + $0x2f0] sm:$0xff]  ;;  %v9474_v5 = vcombine.low %v2028_v61, %v2032_v62  ;;  %11837 = vst [vmem:[#allocation74_spill] sm:$0xff] %v9507_v40  ;;  %v9524_v58 = vcombine.low %v1706_v48, %v1710_v49  ;;  %v1722_v62 = vld [vmem:[#allocation17 + $0x100] sm:$0xff] }
 0x7ed   : > { %11825 = vst [vmem:[#allocation62_spill] sm:$0xff] %v9471_v1  ;;  %v9477_v6 = vcombine.high %v2036_v2, %v2040_v3  ;;  %11838 = vst [vmem:[#allocation75_spill] sm:$0xff] %v9510_v45  ;;  %v9527_v61 = vcombine.high %v1714_v54, %v1718_v57  ;;  %v1750_v41 = vld [vmem:[#allocation17 + $0x1e0] sm:$0xff]  ;;  %v1704_v8 = vld [vmem:[#allocation17 + $0x70] sm:$0xff] }
 0x7ee   : > { %11826 = vst [vmem:[#allocation63_spill] sm:$0xff] %v9474_v5  ;;  %11839 = vst [vmem:[#allocation76_spill] sm:$0xff] %v9513_v39  ;;  %v9551_v48 = vcombine.high %v1746_v33, %v1750_v41  ;;  %v1754_v49 = vld [vmem:[#allocation17 + $0x200] sm:$0xff] }
 0x7ef   : > { %11827 = vst [vmem:[#allocation64_spill] sm:$0xff] %v9477_v6  ;;  %11840 = vst [vmem:[#allocation77_spill] sm:$0xff] %v9517_v50 }
 0x7f0   : > { %11842 = vst [vmem:[#allocation79_spill] sm:$0xff] %v9524_v58  ;;  %11843 = vst [vmem:[#allocation80_spill] sm:$0xff] %v9527_v61 }
 0x7f1   : > { %11851 = vst [vmem:[#allocation88_spill] sm:$0xff] %v9551_v48 }
 0x7f2   : > { %7653 = vmatmul.mubr.bf16.vlgmr.msra.gmra.mrb[16].mxu1 %v9399_v4 }
 0x7f3   : > { %7663 = vmatpush3.bf16.msra.mxu1 %v9399_v4  ;;  %7664 = vmatprep.mubr.msk.bf16.mxu1 %vm8751_vm3, %v11372_v37  ;;  %v1774_v37 = vld [vmem:[#allocation17 + $0x2a0] sm:$0xff] }
 0x7f4   : > { %2714 = vmatprep.subr.bf16.mxu1 %v9412_v12 }
 0x8b3   : > { %v1532_v13 = vpop.f32.mrb[8].mxu0 }
 0x8b4   : > { %v7648_v14 = vpop.f32.mrb[9].mxu0 }
 0x8b5   : > { %v1535_v16 = vpop.f32.mrb[10].mxu0  ;;  %v9483_v14 = vcombine.high %v2044_v9, %v2048_v10 }
 0x8b6   : > { %v7649_v17 = vpop.f32.mrb[11].mxu0 }
 0x8b7   : > { %11829 = vst [vmem:[#allocation66_spill] sm:$0xff] %v9483_v14  ;;  %v2056_v17 = vld [vmem:[#allocation19 + $0x370] sm:$0xff] }
 0x8c5   : > { %v1573_v18 = vpop.f32.mrb[16].mxu1 }
 0x8c6   : > { %v1580_v19 = vmul.f32 %v1573_v18, %v1532_v13  ;;  %v7654_v20 = vpop.f32.mrb[17].mxu1  ;;  %v9480_v13 = vcombine.low %v2036_v2, %v2040_v3  ;;  %v9486_v18 = vcombine.low %v2044_v9, %v2048_v10  ;;  %v1726_v2 = vld [vmem:[#allocation17 + $0x120] sm:$0xff]  ;;  %v9530_v3 = vcombine.low %v1714_v54, %v1718_v57 }
 0x8c7   : > { %v1576_v21 = vpop.f32.mrb[18].mxu1  ;;  %v2060_v20 = vld [vmem:[#allocation19 + $0x390] sm:$0xff]  ;;  %v9533_v9 = vcombine.high %v1722_v62, %v1726_v2  ;;  %v1730_v10 = vld [vmem:[#allocation17 + $0x140] sm:$0xff]  ;;  %v9554_v57 = vcombine.low %v1746_v33, %v1750_v41 }
 0x8c8   : > { %v1581_v24 = vmul.f32 %v1576_v21, %v1535_v16  ;;  %v7655_v25 = vpop.f32.mrb[19].mxu1  ;;  %11828 = vst [vmem:[#allocation65_spill] sm:$0xff] %v9480_v13  ;;  %v2052_v16 = vld [vmem:[#allocation19 + $0x350] sm:$0xff]  ;;  %11830 = vst [vmem:[#allocation67_spill] sm:$0xff] %v9486_v18  ;;  %v1758_v54 = vld [vmem:[#allocation17 + $0x220] sm:$0xff] }
 0x8c9   : > { %v2064_v21 = vld [vmem:[#allocation19 + $0x3b0] sm:$0xff]  ;;  %v9492_v22 = vcombine.low %v2052_v16, %v2056_v17  ;;  %11844 = vst [vmem:[#allocation81_spill] sm:$0xff] %v9530_v3  ;;  %11845 = vst [vmem:[#allocation82_spill] sm:$0xff] %v9533_v9 }
 0x8ca   : > { %v1582_v26 = vpack.c.bf16 %v1581_v24, %v1580_v19  ;;  %v9489_v19 = vcombine.high %v2052_v16, %v2056_v17  ;;  %v9495_v23 = vcombine.high %v2060_v20, %v2064_v21  ;;  %v2068_v24 = vld [vmem:[#allocation19 + $0x3d0] sm:$0xff]  ;;  %v1734_v16 = vld [vmem:[#allocation17 + $0x160] sm:$0xff]  ;;  %v9536_v17 = vcombine.low %v1722_v62, %v1726_v2  ;;  %11852 = vst [vmem:[#allocation89_spill] sm:$0xff] %v9554_v57 }
 0x8cb   : > { %11832 = vst [vmem:[#allocation69_spill] sm:$0xff] %v9492_v22  ;;  %v2072_v25 = vld [vmem:[#allocation19 + $0x3f0] sm:$0xff]  ;;  %v9557_v62 = vcombine.high %v1754_v49, %v1758_v54  ;;  %v1762_v2 = vld [vmem:[#allocation17 + $0x240] sm:$0xff] }
 0x8cc   : > { %1627 = vxpose.xlu1.c.b16.start.end [1/1] (short) (narrow) %v1582_v26, 16  ;;  %7659 = vmatmul.mubr.msk.bf16.vlgmr.msra.gmra.mrb[12].mxu0 %vm937_vm0, %v1582_v26  ;;  %11831 = vst [vmem:[#allocation68_spill] sm:$0xff] %v9489_v19  ;;  %11833 = vst [vmem:[#allocation70_spill] sm:$0xff] %v9495_v23  ;;  %v9498_v26 = vcombine.low %v2060_v20, %v2064_v21  ;;  %v9501_v28 = vcombine.high %v2068_v24, %v2072_v25  ;;  %v1738_v21 = vld [vmem:[#allocation17 + $0x180] sm:$0xff] }
 0x8cd   : > { %2797 = vmatpush1.bf16.msra.mxu0 %v9405_v7  ;;  %2828 = vmatprep.mubr.bf16.mxu0 %v11374_v31  ;;  %v9504_v34 = vcombine.low %v2068_v24, %v2072_v25  ;;  %11846 = vst [vmem:[#allocation83_spill] sm:$0xff] %v9536_v17  ;;  %v9539_v20 = vcombine.high %v1730_v10, %v1734_v16  ;;  %v1742_v24 = vld [vmem:[#allocation17 + $0x1a0] sm:$0xff]  ;;  %11853 = vst [vmem:[#allocation90_spill] sm:$0xff] %v9557_v62  ;;  %v1700_v7 = vld [vmem:[#allocation17 + $0x50] sm:$0xff] }
 0x8ce   : > { %2798 = vmatprep.subr.bf16.mxu0 %v9415_v27  ;;  %11834 = vst [vmem:[#allocation71_spill] sm:$0xff] %v9498_v26  ;;  %11835 = vst [vmem:[#allocation72_spill] sm:$0xff] %v9501_v28  ;;  %v9542_v25 = vcombine.low %v1730_v10, %v1734_v16  ;;  %v9545_v29 = vcombine.high %v1738_v21, %v1742_v24  ;;  %v9548_v44 = vcombine.low %v1738_v21, %v1742_v24  ;;  %v1766_v10 = vld [vmem:[#allocation17 + $0x260] sm:$0xff]  ;;  %v1696_v27 = vld [vmem:[#allocation17 + $0x30] sm:$0xff] }
 0x8cf   : > { %11836 = vst [vmem:[#allocation73_spill] sm:$0xff] %v9504_v34  ;;  %11847 = vst [vmem:[#allocation84_spill] sm:$0xff] %v9539_v20  ;;  %v9560_v16 = vcombine.low %v1754_v49, %v1758_v54  ;;  %v9563_v21 = vcombine.high %v1762_v2, %v1766_v10  ;;  %v1770_v24 = vld [vmem:[#allocation17 + $0x280] sm:$0xff]  ;;  %v9566_v33 = vcombine.low %v1762_v2, %v1766_v10 }
 0x8d0   : > { %11848 = vst [vmem:[#allocation85_spill] sm:$0xff] %v9542_v25  ;;  %11849 = vst [vmem:[#allocation86_spill] sm:$0xff] %v9545_v29  ;;  %v9569_v41 = vcombine.high %v1770_v24, %v1774_v37  ;;  %v9572_v49 = vcombine.low %v1770_v24, %v1774_v37  ;;  %v1962_v2 = vld [vmem:[#allocation19 + $0x80] sm:$0xff] }
 0x8d1   : > { %2799 = vmatpush1.bf16.msra.mxu0 %v9419_v30  ;;  %11850 = vst [vmem:[#allocation87_spill] sm:$0xff] %v9548_v44  ;;  %11854 = vst [vmem:[#allocation91_spill] sm:$0xff] %v9560_v16  ;;  %v1966_v10 = vld [vmem:[#allocation19 + $0xa0] sm:$0xff]  ;;  %v1692_v30 = vld [vmem:[#allocation17 + $0x10] sm:$0xff] }
 0x8d2   : > { %2800 = vmatprep.subr.bf16.mxu0 %v9423_v32  ;;  %11855 = vst [vmem:[#allocation92_spill] sm:$0xff] %v9563_v21  ;;  %11856 = vst [vmem:[#allocation93_spill] sm:$0xff] %v9566_v33  ;;  %v9588_v24 = vcombine.high %v1962_v2, %v1966_v10  ;;  %v1815_v32 = vld [vmem:[#allocation17 + $0x3e8] sm:$0xff] }
 0x8d3   : > { %11857 = vst [vmem:[#allocation94_spill] sm:$0xff] %v9569_v41  ;;  %11858 = vst [vmem:[#allocation95_spill] sm:$0xff] %v9572_v49 }
 0x8d4   : > { %11864 = vst [vmem:[#allocation100_spill] sm:$0xff] %v9588_v24 }
 0x8d5   : > { %2801 = vmatpush1.bf16.msra.mxu0 %v9426_v15  ;;  %v1811_v15 = vld [vmem:[#allocation17 + $0x3c8] sm:$0xff] }
 0x8d6   : > { %2802 = vmatprep.subr.bf16.mxu0 %v9429_v35  ;;  %v1807_v35 = vld [vmem:[#allocation17 + $0x3a8] sm:$0xff] }
 0x8d9   : > { %2803 = vmatpush1.bf16.msra.mxu0 %v9432_v42  ;;  %v1803_v42 = vld [vmem:[#allocation17 + $0x388] sm:$0xff] }
 0x8da   : > { %2804 = vmatprep.subr.bf16.mxu0 %v9435_v43  ;;  %v1799_v43 = vld [vmem:[#allocation17 + $0x368] sm:$0xff] }
 0x8dd   : > { %2805 = vmatpush1.bf16.msra.mxu0 %v9438_v46  ;;  %v1795_v46 = vld [vmem:[#allocation17 + $0x348] sm:$0xff] }
 0x8de   : > { %2806 = vmatprep.subr.bf16.mxu0 %v9441_v47  ;;  %v1791_v47 = vld [vmem:[#allocation17 + $0x328] sm:$0xff] }
 0x8e1   : > { %2807 = vmatpush1.bf16.msra.mxu0 %v9444_v36  ;;  %v1787_v36 = vld [vmem:[#allocation17 + $0x308] sm:$0xff] }
 0x8e2   : > { %2808 = vmatprep.subr.bf16.mxu0 %v9447_v38  ;;  %v1783_v38 = vld [vmem:[#allocation17 + $0x2e8] sm:$0xff] }
 0x8e5   : > { %2809 = vmatpush1.bf16.msra.mxu0 %v9450_v51  ;;  %v1779_v51 = vld [vmem:[#allocation17 + $0x2c8] sm:$0xff] }
 0x8e6   : > { %2810 = vmatprep.subr.bf16.mxu0 %v9453_v52  ;;  %v1775_v52 = vld [vmem:[#allocation17 + $0x2a8] sm:$0xff] }
 0x8e9   : > { %2811 = vmatpush1.bf16.msra.mxu0 %v9456_v55  ;;  %v1771_v55 = vld [vmem:[#allocation17 + $0x288] sm:$0xff] }
 0x8ea   : > { %2812 = vmatprep.subr.bf16.mxu0 %v9459_v56  ;;  %v1767_v56 = vld [vmem:[#allocation17 + $0x268] sm:$0xff] }
 0x8ed   : > { %2813 = vmatpush1.bf16.msra.mxu0 %v9462_v59  ;;  %v1763_v59 = vld [vmem:[#allocation17 + $0x248] sm:$0xff] }
 0x8ee   : > { %2814 = vmatprep.subr.bf16.mxu0 %v9465_v60  ;;  %v1759_v60 = vld [vmem:[#allocation17 + $0x228] sm:$0xff] }
 0x8f1   : > { %2815 = vmatpush1.bf16.msra.mxu0 %v9468_v63  ;;  %v1755_v63 = vld [vmem:[#allocation17 + $0x208] sm:$0xff] }
 0x8f2   : > { %2816 = vmatprep.subr.bf16.mxu0 %v9471_v1  ;;  %v1751_v1 = vld [vmem:[#allocation17 + $0x1e8] sm:$0xff] }
 0x8f5   : > { %2817 = vmatpush1.bf16.msra.mxu0 %v9474_v5  ;;  %v1747_v5 = vld [vmem:[#allocation17 + $0x1c8] sm:$0xff] }
 0x8f6   : > { %2818 = vmatprep.subr.bf16.mxu0 %v9477_v6  ;;  %v1743_v6 = vld [vmem:[#allocation17 + $0x1a8] sm:$0xff] }
 0x8f9   : > { %2819 = vmatpush1.bf16.msra.mxu0 %v9480_v13  ;;  %v1739_v13 = vld [vmem:[#allocation17 + $0x188] sm:$0xff] }
 0x8fa   : > { %2820 = vmatprep.subr.bf16.mxu0 %v9483_v14  ;;  %v1735_v14 = vld [vmem:[#allocation17 + $0x168] sm:$0xff] }
 0x8fd   : > { %2821 = vmatpush1.bf16.msra.mxu0 %v9486_v18  ;;  %v1731_v18 = vld [vmem:[#allocation17 + $0x148] sm:$0xff] }
 0x8fe   : > { %2822 = vmatprep.subr.bf16.mxu0 %v9489_v19  ;;  %v1727_v19 = vld [vmem:[#allocation17 + $0x128] sm:$0xff] }
 0x901   : > { %2823 = vmatpush1.bf16.msra.mxu0 %v9492_v22  ;;  %v1723_v22 = vld [vmem:[#allocation17 + $0x108] sm:$0xff] }
 0x902   : > { %2824 = vmatprep.subr.bf16.mxu0 %v9495_v23  ;;  %v1719_v23 = vld [vmem:[#allocation17 + $0xe8] sm:$0xff] }
 0x905   : > { %2825 = vmatpush1.bf16.msra.mxu0 %v9498_v26  ;;  %v1715_v26 = vld [vmem:[#allocation17 + $0xc8] sm:$0xff] }
 0x906   : > { %2826 = vmatprep.subr.bf16.mxu0 %v9501_v28  ;;  %v1711_v28 = vld [vmem:[#allocation17 + $0xa8] sm:$0xff] }
 0x909   : > { %2827 = vmatpush1.bf16.msra.mxu0 %v9504_v34  ;;  %v1707_v34 = vld [vmem:[#allocation17 + $0x88] sm:$0xff] }
 0x90a   : > { %4158 = vmatprep.subr.bf16.mxu0 %v9507_v40  ;;  %v1703_v40 = vld [vmem:[#allocation17 + $0x68] sm:$0xff] }
 0x90c   : > { %2829 = vmatmul.mubr.bf16.vlgmr.msra.gmra.mrb[16].mxu0 %v11374_v31 }
 0x90d   : > { %4159 = vmatpush1.bf16.msra.mxu0 %v9510_v45  ;;  %4190 = vmatprep.mubr.bf16.mxu0 %v11374_v31  ;;  %v1954_v31 = vld [vmem:[#allocation19 + $0x40] sm:$0xff]  ;;  %v1699_v45 = vld [vmem:[#allocation17 + $0x48] sm:$0xff] }
 0x90e   : > { %4160 = vmatprep.subr.bf16.mxu0 %v9513_v39  ;;  %v1695_v39 = vld [vmem:[#allocation17 + $0x28] sm:$0xff] }
 0x911   : > { %4161 = vmatpush1.bf16.msra.mxu0 %v9517_v50  ;;  %v1691_v50 = vld [vmem:[#allocation17 + $0x8] sm:$0xff] }
 0x912   : > { %4162 = vmatprep.subr.bf16.mxu0 %v9521_v53  ;;  %v1814_v53 = vld [vmem:[#allocation17 + $0x3e0] sm:$0xff] }
 0x915   : > { %4163 = vmatpush1.bf16.msra.mxu0 %v9524_v58  ;;  %v1810_v58 = vld [vmem:[#allocation17 + $0x3c0] sm:$0xff] }
 0x916   : > { %4164 = vmatprep.subr.bf16.mxu0 %v9527_v61  ;;  %v1806_v61 = vld [vmem:[#allocation17 + $0x3a0] sm:$0xff] }
 0x919   : > { %4165 = vmatpush1.bf16.msra.mxu0 %v9530_v3  ;;  %v1802_v3 = vld [vmem:[#allocation17 + $0x380] sm:$0xff] }
 0x91a   : > { %4166 = vmatprep.subr.bf16.mxu0 %v9533_v9  ;;  %v1798_v9 = vld [vmem:[#allocation17 + $0x360] sm:$0xff] }
 0x91d   : > { %4167 = vmatpush1.bf16.msra.mxu0 %v9536_v17  ;;  %v1794_v17 = vld [vmem:[#allocation17 + $0x340] sm:$0xff] }
 0x91e   : > { %4168 = vmatprep.subr.bf16.mxu0 %v9539_v20  ;;  %v1974_v20 = vld [vmem:[#allocation19 + $0xe0] sm:$0xff] }
 0x921   : > { %4169 = vmatpush1.bf16.msra.mxu0 %v9542_v25 }
 0x922   : > { %4170 = vmatprep.subr.bf16.mxu0 %v9545_v29  ;;  %v1790_v29 = vld [vmem:[#allocation17 + $0x320] sm:$0xff] }
 0x925   : > { %4171 = vmatpush1.bf16.msra.mxu0 %v9548_v44  ;;  %v1778_v44 = vld [vmem:[#allocation17 + $0x2c0] sm:$0xff] }
 0x926   : > { %4172 = vmatprep.subr.bf16.mxu0 %v9551_v48  ;;  %v1958_v48 = vld [vmem:[#allocation19 + $0x60] sm:$0xff] }
 0x927   : > { %v9574_v54 = vcombine.high %v1954_v31, %v1958_v48  ;;  %v9581_v25 = vcombine.low %v1954_v31, %v1958_v48  ;;  %v9594_v31 = vcombine.low %v1962_v2, %v1966_v10  ;;  %v9615_v10 = vcombine.high %v1802_v3, %v1806_v61 }
 0x929   : > { %4173 = vmatpush1.bf16.msra.mxu0 %v9554_v57  ;;  %v1782_v57 = vld [vmem:[#allocation17 + $0x2e0] sm:$0xff]  ;;  %11859 = vst [vmem:[#allocation96_spill] sm:$0xff] %v9574_v54  ;;  %11861 = vst [vmem:[#allocation98_spill] sm:$0xff] %v9581_v25 }
 0x92a   : > { %4174 = vmatprep.subr.bf16.mxu0 %v9557_v62  ;;  %v9586_v37 = vcombine.low %v1778_v44, %v1782_v57  ;;  %11866 = vst [vmem:[#allocation102_spill] sm:$0xff] %v9594_v31  ;;  %11873 = vst [vmem:[#allocation109_spill] sm:$0xff] %v9615_v10 }
 0x92c   : > { %11863 = vst [vmem:[#allocation99_spill] sm:$0xff] %v9586_v37 }
 0x92d   : > { %4175 = vmatpush1.bf16.msra.mxu0 %v9560_v16  ;;  %v9577_v16 = vcombine.high %v1778_v44, %v1782_v57  ;;  %v9603_v57 = vcombine.high %v1794_v17, %v1798_v9 }
 0x92e   : > { %4176 = vmatprep.subr.bf16.mxu0 %v9563_v21  ;;  %v1786_v21 = vld [vmem:[#allocation17 + $0x300] sm:$0xff] }
 0x92f   : > { %11860 = vst [vmem:[#allocation97_spill] sm:$0xff] %v9577_v16  ;;  %v9598_v44 = vcombine.low %v1786_v21, %v1790_v29  ;;  %11869 = vst [vmem:[#allocation105_spill] sm:$0xff] %v9603_v57 }
 0x931   : > { %4177 = vmatpush1.bf16.msra.mxu0 %v9566_v33  ;;  %v11862_v33 = vmov 0   ;;  %11867 = vst [vmem:[#allocation103_spill] sm:$0xff] %v9598_v44 }
 0x932   : > { %v1635_v62 = vpop.trf.xlu1  ;;  %4178 = vmatprep.subr.bf16.mxu0 %v9569_v41  ;;  %v9591_v41 = vcombine.high %v1786_v21, %v1790_v29  ;;  %v9610_v29 = vcombine.low %v1794_v17, %v1798_v9  ;;  %v9622_v9 = vcombine.low %v1802_v3, %v1806_v61  ;;  %v9634_v61 = vcombine.low %v1810_v58, %v1814_v53 }
 0x933   : > { %7665 = vmatmul.mubr.msk.bf16.vlgmr.msra.gmra.mrb[20].mxu1 %vm937_vm0, %v1635_v62  ;;  %v1970_v62 = vld [vmem:[#allocation19 + $0xc0] sm:$0xff] }
 0x934   : > { %2715 = vmatpush1.bf16.msra.mxu1 %v9410_v11  ;;  %2746 = vmatprep.mubr.bf16.mxu1 %v11862_v33  ;;  %11865 = vst [vmem:[#allocation101_spill] sm:$0xff] %v9591_v41  ;;  %v9600_v48 = vcombine.high %v1970_v62, %v1974_v20  ;;  %v9606_v2 = vcombine.low %v1970_v62, %v1974_v20  ;;  %11871 = vst [vmem:[#allocation107_spill] sm:$0xff] %v9610_v29  ;;  %v1697_v11 = vld [vmem:[#allocation17 + $0x38] sm:$0xff] }
 0x935   : > { %4179 = vmatpush1.bf16.msra.mxu0 %v9572_v49  ;;  %2716 = vmatprep.subr.bf16.mxu1 %v9574_v54  ;;  %v1982_v49 = vld [vmem:[#allocation19 + $0x120] sm:$0xff]  ;;  %11875 = vst [vmem:[#allocation111_spill] sm:$0xff] %v9622_v9  ;;  %v9627_v62 = vcombine.high %v1810_v58, %v1814_v53  ;;  %11879 = vst [vmem:[#allocation115_spill] sm:$0xff] %v9634_v61  ;;  %v9646_v53 = vcombine.low %v1691_v50, %v1695_v39  ;;  %v1693_v54 = vld [vmem:[#allocation17 + $0x18] sm:$0xff] }
 0x936   : > { %4180 = vmatprep.subr.bf16.mxu0 %v9577_v16  ;;  %11868 = vst [vmem:[#allocation104_spill] sm:$0xff] %v9600_v48  ;;  %v1978_v16 = vld [vmem:[#allocation19 + $0x100] sm:$0xff]  ;;  %11870 = vst [vmem:[#allocation106_spill] sm:$0xff] %v9606_v2 }
 0x937   : > { %v9612_v21 = vcombine.high %v1978_v16, %v1982_v49  ;;  %v9618_v20 = vcombine.low %v1978_v16, %v1982_v49  ;;  %11877 = vst [vmem:[#allocation113_spill] sm:$0xff] %v9627_v62  ;;  %v9639_v49 = vcombine.high %v1691_v50, %v1695_v39  ;;  %11883 = vst [vmem:[#allocation119_spill] sm:$0xff] %v9646_v53 }
 0x938   : > { %2717 = vmatpush1.bf16.msra.mxu1 %v9581_v25  ;;  %v9659_v39 = vcombine.low %v1699_v45, %v1703_v40  ;;  %v1816_v25 = vld [vmem:[#allocation17 + $0x3f0] sm:$0xff] }
 0x939   : > { %4181 = vmatpush1.bf16.msra.mxu0 %v9586_v37  ;;  %2718 = vmatprep.subr.bf16.mxu1 %v9588_v24  ;;  %11872 = vst [vmem:[#allocation108_spill] sm:$0xff] %v9612_v21  ;;  %v1990_v37 = vld [vmem:[#allocation19 + $0x160] sm:$0xff]  ;;  %11874 = vst [vmem:[#allocation110_spill] sm:$0xff] %v9618_v20  ;;  %v1812_v24 = vld [vmem:[#allocation17 + $0x3d0] sm:$0xff] }
 0x93a   : > { %4182 = vmatprep.subr.bf16.mxu0 %v9591_v41  ;;  %v1986_v41 = vld [vmem:[#allocation19 + $0x140] sm:$0xff]  ;;  %11881 = vst [vmem:[#allocation117_spill] sm:$0xff] %v9639_v49  ;;  %11887 = vst [vmem:[#allocation123_spill] sm:$0xff] %v9659_v39 }
 0x93b   : > { %v9624_v17 = vcombine.high %v1986_v41, %v1990_v37  ;;  %v9630_v16 = vcombine.low %v1986_v41, %v1990_v37  ;;  %v9651_v37 = vcombine.high %v1699_v45, %v1703_v40  ;;  %v9672_v40 = vcombine.low %v1707_v34, %v1711_v28 }
 0x93c   : > { %2719 = vmatpush1.bf16.msra.mxu1 %v9594_v31  ;;  %v1808_v31 = vld [vmem:[#allocation17 + $0x3b0] sm:$0xff] }
 0x93d   : > { %4183 = vmatpush1.bf16.msra.mxu0 %v9598_v44  ;;  %2720 = vmatprep.subr.bf16.mxu1 %v9600_v48  ;;  %11876 = vst [vmem:[#allocation112_spill] sm:$0xff] %v9624_v17  ;;  %v1998_v44 = vld [vmem:[#allocation19 + $0x1a0] sm:$0xff]  ;;  %11878 = vst [vmem:[#allocation114_spill] sm:$0xff] %v9630_v16  ;;  %v1804_v48 = vld [vmem:[#allocation17 + $0x390] sm:$0xff] }
 0x93e   : > { %4184 = vmatprep.subr.bf16.mxu0 %v9603_v57  ;;  %v1994_v57 = vld [vmem:[#allocation19 + $0x180] sm:$0xff]  ;;  %11885 = vst [vmem:[#allocation121_spill] sm:$0xff] %v9651_v37  ;;  %11891 = vst [vmem:[#allocation127_spill] sm:$0xff] %v9672_v40 }
 0x93f   : > { %v9636_v3 = vcombine.high %v1994_v57, %v1998_v44  ;;  %v9642_v41 = vcombine.low %v1994_v57, %v1998_v44  ;;  %v9664_v57 = vcombine.high %v1707_v34, %v1711_v28  ;;  %v9684_v28 = vcombine.low %v1715_v26, %v1719_v23 }
 0x940   : > { %2721 = vmatpush1.bf16.msra.mxu1 %v9606_v2  ;;  %v1800_v2 = vld [vmem:[#allocation17 + $0x370] sm:$0xff] }
 0x941   : > { %4185 = vmatpush1.bf16.msra.mxu0 %v9610_v29  ;;  %2722 = vmatprep.subr.bf16.mxu1 %v9612_v21  ;;  %11880 = vst [vmem:[#allocation116_spill] sm:$0xff] %v9636_v3  ;;  %v2006_v29 = vld [vmem:[#allocation19 + $0x1e0] sm:$0xff]  ;;  %11882 = vst [vmem:[#allocation118_spill] sm:$0xff] %v9642_v41  ;;  %v1796_v21 = vld [vmem:[#allocation17 + $0x350] sm:$0xff] }
 0x942   : > { %4186 = vmatprep.subr.bf16.mxu0 %v9615_v10  ;;  %v2002_v10 = vld [vmem:[#allocation19 + $0x1c0] sm:$0xff]  ;;  %11889 = vst [vmem:[#allocation125_spill] sm:$0xff] %v9664_v57  ;;  %11895 = vst [vmem:[#allocation131_spill] sm:$0xff] %v9684_v28 }
 0x943   : > { %v9648_v58 = vcombine.high %v2002_v10, %v2006_v29  ;;  %v9655_v44 = vcombine.low %v2002_v10, %v2006_v29  ;;  %v9677_v10 = vcombine.high %v1715_v26, %v1719_v23  ;;  %v9696_v23 = vcombine.low %v1723_v22, %v1727_v19 }
 0x944   : > { %2723 = vmatpush1.bf16.msra.mxu1 %v9618_v20  ;;  %v1792_v20 = vld [vmem:[#allocation17 + $0x330] sm:$0xff] }
 0x945   : > { %4187 = vmatpush1.bf16.msra.mxu0 %v9622_v9  ;;  %2724 = vmatprep.subr.bf16.mxu1 %v9624_v17  ;;  %11884 = vst [vmem:[#allocation120_spill] sm:$0xff] %v9648_v58  ;;  %v2014_v9 = vld [vmem:[#allocation19 + $0x220] sm:$0xff]  ;;  %11886 = vst [vmem:[#allocation122_spill] sm:$0xff] %v9655_v44  ;;  %v1788_v17 = vld [vmem:[#allocation17 + $0x310] sm:$0xff] }
 0x946   : > { %4188 = vmatprep.subr.bf16.mxu0 %v9627_v62  ;;  %v2010_v62 = vld [vmem:[#allocation19 + $0x200] sm:$0xff]  ;;  %11893 = vst [vmem:[#allocation129_spill] sm:$0xff] %v9677_v10  ;;  %11899 = vst [vmem:[#allocation135_spill] sm:$0xff] %v9696_v23 }
 0x947   : > { %v9661_v50 = vcombine.high %v2010_v62, %v2014_v9  ;;  %v9668_v29 = vcombine.low %v2010_v62, %v2014_v9  ;;  %v9689_v62 = vcombine.high %v1723_v22, %v1727_v19  ;;  %v9708_v19 = vcombine.low %v1731_v18, %v1735_v14 }
 0x948   : > { %2725 = vmatpush1.bf16.msra.mxu1 %v9630_v16  ;;  %v1784_v16 = vld [vmem:[#allocation17 + $0x2f0] sm:$0xff] }
 0x949   : > { %4189 = vmatpush1.bf16.msra.mxu0 %v9634_v61  ;;  %2726 = vmatprep.subr.bf16.mxu1 %v9636_v3  ;;  %11888 = vst [vmem:[#allocation124_spill] sm:$0xff] %v9661_v50  ;;  %v2022_v61 = vld [vmem:[#allocation19 + $0x260] sm:$0xff]  ;;  %11890 = vst [vmem:[#allocation126_spill] sm:$0xff] %v9668_v29  ;;  %v1780_v3 = vld [vmem:[#allocation17 + $0x2d0] sm:$0xff] }
 0x94a   : > { %4240 = vmatprep.subr.bf16.mxu0 %v9639_v49  ;;  %v2018_v49 = vld [vmem:[#allocation19 + $0x240] sm:$0xff]  ;;  %11897 = vst [vmem:[#allocation133_spill] sm:$0xff] %v9689_v62  ;;  %11903 = vst [vmem:[#allocation139_spill] sm:$0xff] %v9708_v19 }
 0x94b   : > { %v9674_v45 = vcombine.high %v2018_v49, %v2022_v61  ;;  %v9680_v9 = vcombine.low %v2018_v49, %v2022_v61  ;;  %v9701_v49 = vcombine.high %v1731_v18, %v1735_v14  ;;  %v9720_v14 = vcombine.low %v1739_v13, %v1743_v6 }
 0x94c   : > { %2727 = vmatpush1.bf16.msra.mxu1 %v9642_v41  ;;  %4191 = vmatmul.mubr.bf16.vlgmr.msra.gmra.mrb[20].mxu0 %v11862_v33  ;;  %v1776_v41 = vld [vmem:[#allocation17 + $0x2b0] sm:$0xff] }
 0x94d   : > { %4241 = vmatpush1.bf16.msra.mxu0 %v9646_v53  ;;  %2728 = vmatprep.subr.bf16.mxu1 %v9648_v58  ;;  %11892 = vst [vmem:[#allocation128_spill] sm:$0xff] %v9674_v45  ;;  %v2030_v53 = vld [vmem:[#allocation19 + $0x2a0] sm:$0xff]  ;;  %11894 = vst [vmem:[#allocation130_spill] sm:$0xff] %v9680_v9  ;;  %v1772_v58 = vld [vmem:[#allocation17 + $0x290] sm:$0xff] }
 0x94e   : > { %4242 = vmatprep.subr.bf16.mxu0 %v9651_v37  ;;  %4272 = vmatprep.mubr.bf16.mxu0 %v11862_v33  ;;  %v2026_v37 = vld [vmem:[#allocation19 + $0x280] sm:$0xff]  ;;  %11901 = vst [vmem:[#allocation137_spill] sm:$0xff] %v9701_v49  ;;  %11907 = vst [vmem:[#allocation143_spill] sm:$0xff] %v9720_v14 }
 0x94f   : > { %v9686_v34 = vcombine.high %v2026_v37, %v2030_v53  ;;  %v9692_v61 = vcombine.low %v2026_v37, %v2030_v53  ;;  %v9713_v37 = vcombine.high %v1739_v13, %v1743_v6  ;;  %v9732_v6 = vcombine.low %v1747_v5, %v1751_v1 }
 0x950   : > { %2729 = vmatpush1.bf16.msra.mxu1 %v9655_v44  ;;  %v1768_v44 = vld [vmem:[#allocation17 + $0x270] sm:$0xff] }
 0x951   : > { %4243 = vmatpush1.bf16.msra.mxu0 %v9659_v39  ;;  %2730 = vmatprep.subr.bf16.mxu1 %v9661_v50  ;;  %11896 = vst [vmem:[#allocation132_spill] sm:$0xff] %v9686_v34  ;;  %v2038_v39 = vld [vmem:[#allocation19 + $0x2e0] sm:$0xff]  ;;  %11898 = vst [vmem:[#allocation134_spill] sm:$0xff] %v9692_v61  ;;  %v2059_v50 = vld [vmem:[#allocation19 + $0x388] sm:$0xff] }
 0x952   : > { %4244 = vmatprep.subr.bf16.mxu0 %v9664_v57  ;;  %v2034_v57 = vld [vmem:[#allocation19 + $0x2c0] sm:$0xff]  ;;  %11905 = vst [vmem:[#allocation141_spill] sm:$0xff] %v9713_v37  ;;  %11911 = vst [vmem:[#allocation147_spill] sm:$0xff] %v9732_v6 }
 0x953   : > { %v9698_v26 = vcombine.high %v2034_v57, %v2038_v39  ;;  %v9704_v53 = vcombine.low %v2034_v57, %v2038_v39  ;;  %v9725_v57 = vcombine.high %v1747_v5, %v1751_v1  ;;  %v9744_v1 = vcombine.low %v1755_v63, %v1759_v60 }
 0x954   : > { %2731 = vmatpush1.bf16.msra.mxu1 %v9668_v29 }
 0x955   : > { %4245 = vmatpush1.bf16.msra.mxu0 %v9672_v40  ;;  %2732 = vmatprep.subr.bf16.mxu1 %v9674_v45  ;;  %11900 = vst [vmem:[#allocation136_spill] sm:$0xff] %v9698_v26  ;;  %v2046_v40 = vld [vmem:[#allocation19 + $0x320] sm:$0xff]  ;;  %11902 = vst [vmem:[#allocation138_spill] sm:$0xff] %v9704_v53 }
 0x956   : > { %4246 = vmatprep.subr.bf16.mxu0 %v9677_v10  ;;  %v2042_v10 = vld [vmem:[#allocation19 + $0x300] sm:$0xff]  ;;  %11909 = vst [vmem:[#allocation145_spill] sm:$0xff] %v9725_v57  ;;  %11915 = vst [vmem:[#allocation151_spill] sm:$0xff] %v9744_v1 }
 0x957   : > { %v9710_v22 = vcombine.high %v2042_v10, %v2046_v40  ;;  %v9716_v39 = vcombine.low %v2042_v10, %v2046_v40  ;;  %v9737_v10 = vcombine.high %v1755_v63, %v1759_v60  ;;  %v9756_v60 = vcombine.low %v1763_v59, %v1767_v56 }
 0x958   : > { %2733 = vmatpush1.bf16.msra.mxu1 %v9680_v9  ;;  %v1752_v9 = vld [vmem:[#allocation17 + $0x1f0] sm:$0xff] }
 0x959   : > { %4247 = vmatpush1.bf16.msra.mxu0 %v9684_v28  ;;  %2734 = vmatprep.subr.bf16.mxu1 %v9686_v34  ;;  %11904 = vst [vmem:[#allocation140_spill] sm:$0xff] %v9710_v22  ;;  %v2054_v28 = vld [vmem:[#allocation19 + $0x360] sm:$0xff]  ;;  %11906 = vst [vmem:[#allocation142_spill] sm:$0xff] %v9716_v39  ;;  %v1748_v34 = vld [vmem:[#allocation17 + $0x1d0] sm:$0xff] }
 0x95a   : > { %4248 = vmatprep.subr.bf16.mxu0 %v9689_v62  ;;  %v2050_v62 = vld [vmem:[#allocation19 + $0x340] sm:$0xff]  ;;  %11913 = vst [vmem:[#allocation149_spill] sm:$0xff] %v9737_v10  ;;  %11919 = vst [vmem:[#allocation155_spill] sm:$0xff] %v9756_v60  ;;  %v9923_v29 = vcombine.high %v1748_v34, %v1752_v9 }
 0x95b   : > { %v9722_v18 = vcombine.high %v2050_v62, %v2054_v28  ;;  %v9728_v40 = vcombine.low %v2050_v62, %v2054_v28  ;;  %v9749_v62 = vcombine.high %v1763_v59, %v1767_v56  ;;  %v9768_v56 = vcombine.low %v1771_v55, %v1775_v52 }
 0x95c   : > { %2735 = vmatpush1.bf16.msra.mxu1 %v9692_v61  ;;  %11946 = vst [vmem:[#allocation182_spill] sm:$0xff] %v9923_v29 }
 0x95d   : > { %4249 = vmatpush1.bf16.msra.mxu0 %v9696_v23  ;;  %2736 = vmatprep.subr.bf16.mxu1 %v9698_v26  ;;  %11908 = vst [vmem:[#allocation144_spill] sm:$0xff] %v9722_v18  ;;  %v2062_v23 = vld [vmem:[#allocation19 + $0x3a0] sm:$0xff]  ;;  %11910 = vst [vmem:[#allocation146_spill] sm:$0xff] %v9728_v40  ;;  %v1744_v26 = vld [vmem:[#allocation17 + $0x1b0] sm:$0xff] }
 0x95e   : > { %4250 = vmatprep.subr.bf16.mxu0 %v9701_v49  ;;  %v2058_v49 = vld [vmem:[#allocation19 + $0x380] sm:$0xff]  ;;  %11917 = vst [vmem:[#allocation153_spill] sm:$0xff] %v9749_v62  ;;  %11921 = vst [vmem:[#allocation157_spill] sm:$0xff] %v9768_v56 }
 0x95f   : > { %v9734_v13 = vcombine.high %v2058_v49, %v2062_v23  ;;  %v9740_v28 = vcombine.low %v2058_v49, %v2062_v23  ;;  %v9761_v49 = vcombine.high %v1771_v55, %v1775_v52  ;;  %v9782_v52 = vcombine.low %v1779_v51, %v1783_v38 }
 0x960   : > { %2737 = vmatpush1.bf16.msra.mxu1 %v9704_v53  ;;  %v1740_v53 = vld [vmem:[#allocation17 + $0x190] sm:$0xff] }
 0x961   : > { %4251 = vmatpush1.bf16.msra.mxu0 %v9708_v19  ;;  %2738 = vmatprep.subr.bf16.mxu1 %v9710_v22  ;;  %11912 = vst [vmem:[#allocation148_spill] sm:$0xff] %v9734_v13  ;;  %v2070_v19 = vld [vmem:[#allocation19 + $0x3e0] sm:$0xff]  ;;  %11914 = vst [vmem:[#allocation150_spill] sm:$0xff] %v9740_v28  ;;  %v1736_v22 = vld [vmem:[#allocation17 + $0x170] sm:$0xff] }
 0x962   : > { %4252 = vmatprep.subr.bf16.mxu0 %v9713_v37  ;;  %v2066_v37 = vld [vmem:[#allocation19 + $0x3c0] sm:$0xff]  ;;  %11920 = vst [vmem:[#allocation156_spill] sm:$0xff] %v9761_v49  ;;  %11923 = vst [vmem:[#allocation159_spill] sm:$0xff] %v9782_v52 }
 0x963   : > { %v9746_v5 = vcombine.high %v2066_v37, %v2070_v19  ;;  %v9752_v23 = vcombine.low %v2066_v37, %v2070_v19  ;;  %v9773_v37 = vcombine.high %v1779_v51, %v1783_v38  ;;  %v9794_v38 = vcombine.low %v1787_v36, %v1791_v47 }
 0x964   : > { %2739 = vmatpush1.bf16.msra.mxu1 %v9716_v39  ;;  %v1732_v39 = vld [vmem:[#allocation17 + $0x150] sm:$0xff] }
 0x965   : > { %4253 = vmatpush1.bf16.msra.mxu0 %v9720_v14  ;;  %2740 = vmatprep.subr.bf16.mxu1 %v9722_v18  ;;  %11916 = vst [vmem:[#allocation152_spill] sm:$0xff] %v9746_v5  ;;  %v1951_v14 = vld [vmem:[#allocation19 + $0x28] sm:$0xff]  ;;  %11918 = vst [vmem:[#allocation154_spill] sm:$0xff] %v9752_v23  ;;  %v1728_v18 = vld [vmem:[#allocation17 + $0x130] sm:$0xff] }
 0x966   : > { %4254 = vmatprep.subr.bf16.mxu0 %v9725_v57  ;;  %v1947_v57 = vld [vmem:[#allocation19 + $0x8] sm:$0xff]  ;;  %11922 = vst [vmem:[#allocation158_spill] sm:$0xff] %v9773_v37  ;;  %11925 = vst [vmem:[#allocation161_spill] sm:$0xff] %v9794_v38 }
 0x967   : > { %v9758_v63 = vcombine.high %v1947_v57, %v1951_v14  ;;  %v9764_v19 = vcombine.low %v1947_v57, %v1951_v14  ;;  %v9787_v57 = vcombine.high %v1787_v36, %v1791_v47  ;;  %v9806_v47 = vcombine.low %v1795_v46, %v1799_v43 }
 0x968   : > { %2741 = vmatpush1.bf16.msra.mxu1 %v9728_v40  ;;  %v1724_v40 = vld [vmem:[#allocation17 + $0x110] sm:$0xff] }
 0x969   : > { %4255 = vmatpush1.bf16.msra.mxu0 %v9732_v6  ;;  %2742 = vmatprep.subr.bf16.mxu1 %v9734_v13  ;;  %v1959_v6 = vld [vmem:[#allocation19 + $0x68] sm:$0xff]  ;;  %11924 = vst [vmem:[#allocation160_spill] sm:$0xff] %v9787_v57  ;;  %11927 = vst [vmem:[#allocation163_spill] sm:$0xff] %v9806_v47  ;;  %v1720_v13 = vld [vmem:[#allocation17 + $0xf0] sm:$0xff] }
 0x96a   : > { %4256 = vmatprep.subr.bf16.mxu0 %v9737_v10  ;;  %v1955_v10 = vld [vmem:[#allocation19 + $0x48] sm:$0xff] }
 0x96b   : > { %v9770_v59 = vcombine.high %v1955_v10, %v1959_v6  ;;  %v9777_v14 = vcombine.low %v1955_v10, %v1959_v6  ;;  %v9799_v10 = vcombine.high %v1795_v46, %v1799_v43  ;;  %v9818_v43 = vcombine.low %v1803_v42, %v1807_v35 }
 0x96c   : > { %2743 = vmatpush1.bf16.msra.mxu1 %v9740_v28  ;;  %v1716_v28 = vld [vmem:[#allocation17 + $0xd0] sm:$0xff] }
 0x96d   : > { %4257 = vmatpush1.bf16.msra.mxu0 %v9744_v1  ;;  %2744 = vmatprep.subr.bf16.mxu1 %v9746_v5  ;;  %v1967_v1 = vld [vmem:[#allocation19 + $0xa8] sm:$0xff]  ;;  %11926 = vst [vmem:[#allocation162_spill] sm:$0xff] %v9799_v10  ;;  %11929 = vst [vmem:[#allocation165_spill] sm:$0xff] %v9818_v43  ;;  %v1712_v5 = vld [vmem:[#allocation17 + $0xb0] sm:$0xff] }
 0x96e   : > { %4258 = vmatprep.subr.bf16.mxu0 %v9749_v62  ;;  %v1963_v62 = vld [vmem:[#allocation19 + $0x88] sm:$0xff] }
 0x96f   : > { %v9784_v55 = vcombine.high %v1963_v62, %v1967_v1  ;;  %v9790_v6 = vcombine.low %v1963_v62, %v1967_v1  ;;  %v9811_v62 = vcombine.high %v1803_v42, %v1807_v35  ;;  %v9830_v35 = vcombine.low %v1811_v15, %v1815_v32 }
 0x970   : > { %2745 = vmatpush1.bf16.msra.mxu1 %v9752_v23  ;;  %v1708_v23 = vld [vmem:[#allocation17 + $0x90] sm:$0xff] }
 0x971   : > { %4259 = vmatpush1.bf16.msra.mxu0 %v9756_v60  ;;  %2755 = vmatprep.subr.bf16.mxu1 %v9758_v63  ;;  %v1975_v60 = vld [vmem:[#allocation19 + $0xe8] sm:$0xff]  ;;  %11928 = vst [vmem:[#allocation164_spill] sm:$0xff] %v9811_v62  ;;  %11931 = vst [vmem:[#allocation167_spill] sm:$0xff] %v9830_v35 }
 0x972   : > { %4260 = vmatprep.subr.bf16.mxu0 %v9761_v49  ;;  %v1971_v49 = vld [vmem:[#allocation19 + $0xc8] sm:$0xff] }
 0x973   : > { %2747 = vmatmul.mubr.bf16.vlgmr.msra.gmra.mrb[24].mxu1 %v11862_v33  ;;  %v9796_v51 = vcombine.high %v1971_v49, %v1975_v60  ;;  %v9802_v1 = vcombine.low %v1971_v49, %v1975_v60  ;;  %v9823_v49 = vcombine.high %v1811_v15, %v1815_v32  ;;  %v9842_v32 = vcombine.low %v1692_v30, %v1696_v27 }
 0x974   : > { %2756 = vmatpush1.bf16.msra.mxu1 %v9764_v19  ;;  %2787 = vmatprep.mubr.bf16.mxu1 %v11862_v33 }
 0x975   : > { %4261 = vmatpush1.bf16.msra.mxu0 %v9768_v56  ;;  %2757 = vmatprep.subr.bf16.mxu1 %v9770_v59  ;;  %v1983_v56 = vld [vmem:[#allocation19 + $0x128] sm:$0xff]  ;;  %11930 = vst [vmem:[#allocation166_spill] sm:$0xff] %v9823_v49  ;;  %11933 = vst [vmem:[#allocation169_spill] sm:$0xff] %v9842_v32 }
 0x976   : > { %4262 = vmatprep.subr.bf16.mxu0 %v9773_v37  ;;  %v1979_v37 = vld [vmem:[#allocation19 + $0x108] sm:$0xff] }
 0x977   : > { %v9808_v36 = vcombine.high %v1979_v37, %v1983_v56  ;;  %v9814_v60 = vcombine.low %v1979_v37, %v1983_v56  ;;  %v9835_v37 = vcombine.high %v1692_v30, %v1696_v27  ;;  %v9855_v27 = vcombine.low %v1700_v7, %v1704_v8 }
 0x978   : > { %2758 = vmatpush1.bf16.msra.mxu1 %v9777_v14 }
 0x979   : > { %4263 = vmatpush1.bf16.msra.mxu0 %v9782_v52  ;;  %2759 = vmatprep.subr.bf16.mxu1 %v9784_v55  ;;  %v1991_v52 = vld [vmem:[#allocation19 + $0x168] sm:$0xff]  ;;  %11932 = vst [vmem:[#allocation168_spill] sm:$0xff] %v9835_v37  ;;  %11935 = vst [vmem:[#allocation171_spill] sm:$0xff] %v9855_v27 }
 0x97a   : > { %4264 = vmatprep.subr.bf16.mxu0 %v9787_v57  ;;  %v1987_v57 = vld [vmem:[#allocation19 + $0x148] sm:$0xff] }
 0x97b   : > { %v9820_v46 = vcombine.high %v1987_v57, %v1991_v52  ;;  %v9826_v56 = vcombine.low %v1987_v57, %v1991_v52  ;;  %v9847_v57 = vcombine.high %v1700_v7, %v1704_v8  ;;  %v9868_v7 = vcombine.low %v1708_v23, %v1712_v5 }
 0x97c   : > { %2760 = vmatpush1.bf16.msra.mxu1 %v9790_v6 }
 0x97d   : > { %4265 = vmatpush1.bf16.msra.mxu0 %v9794_v38  ;;  %2761 = vmatprep.subr.bf16.mxu1 %v9796_v51  ;;  %v1999_v38 = vld [vmem:[#allocation19 + $0x1a8] sm:$0xff]  ;;  %11934 = vst [vmem:[#allocation170_spill] sm:$0xff] %v9847_v57  ;;  %11937 = vst [vmem:[#allocation173_spill] sm:$0xff] %v9868_v7 }
 0x97e   : > { %4266 = vmatprep.subr.bf16.mxu0 %v9799_v10  ;;  %v1995_v10 = vld [vmem:[#allocation19 + $0x188] sm:$0xff] }
 0x97f   : > { %v9832_v42 = vcombine.high %v1995_v10, %v1999_v38  ;;  %v9838_v52 = vcombine.low %v1995_v10, %v1999_v38  ;;  %v9860_v10 = vcombine.high %v1708_v23, %v1712_v5  ;;  %v9880_v5 = vcombine.low %v1716_v28, %v1720_v13 }
 0x980   : > { %2762 = vmatpush1.bf16.msra.mxu1 %v9802_v1 }
 0x981   : > { %4267 = vmatpush1.bf16.msra.mxu0 %v9806_v47  ;;  %2763 = vmatprep.subr.bf16.mxu1 %v9808_v36  ;;  %v2007_v47 = vld [vmem:[#allocation19 + $0x1e8] sm:$0xff]  ;;  %11936 = vst [vmem:[#allocation172_spill] sm:$0xff] %v9860_v10  ;;  %11939 = vst [vmem:[#allocation175_spill] sm:$0xff] %v9880_v5 }
 0x982   : > { %4268 = vmatprep.subr.bf16.mxu0 %v9811_v62  ;;  %v2003_v62 = vld [vmem:[#allocation19 + $0x1c8] sm:$0xff] }
 0x983   : > { %v9844_v15 = vcombine.high %v2003_v62, %v2007_v47  ;;  %v9851_v38 = vcombine.low %v2003_v62, %v2007_v47  ;;  %v9873_v62 = vcombine.high %v1716_v28, %v1720_v13  ;;  %v9892_v13 = vcombine.low %v1724_v40, %v1728_v18 }
 0x984   : > { %2764 = vmatpush1.bf16.msra.mxu1 %v9814_v60 }
 0x985   : > { %4269 = vmatpush1.bf16.msra.mxu0 %v9818_v43  ;;  %2765 = vmatprep.subr.bf16.mxu1 %v9820_v46  ;;  %v2015_v43 = vld [vmem:[#allocation19 + $0x228] sm:$0xff]  ;;  %11938 = vst [vmem:[#allocation174_spill] sm:$0xff] %v9873_v62  ;;  %11941 = vst [vmem:[#allocation177_spill] sm:$0xff] %v9892_v13 }
 0x986   : > { %4270 = vmatprep.subr.bf16.mxu0 %v9823_v49  ;;  %v2011_v49 = vld [vmem:[#allocation19 + $0x208] sm:$0xff] }
 0x987   : > { %v9857_v30 = vcombine.high %v2011_v49, %v2015_v43  ;;  %v9864_v47 = vcombine.low %v2011_v49, %v2015_v43  ;;  %v9885_v49 = vcombine.high %v1724_v40, %v1728_v18  ;;  %v9904_v18 = vcombine.low %v1732_v39, %v1736_v22 }
 0x988   : > { %2766 = vmatpush1.bf16.msra.mxu1 %v9826_v56 }
 0x989   : > { %4271 = vmatpush1.bf16.msra.mxu0 %v9830_v35  ;;  %2767 = vmatprep.subr.bf16.mxu1 %v9832_v42  ;;  %v2023_v35 = vld [vmem:[#allocation19 + $0x268] sm:$0xff]  ;;  %11940 = vst [vmem:[#allocation176_spill] sm:$0xff] %v9885_v49  ;;  %11943 = vst [vmem:[#allocation179_spill] sm:$0xff] %v9904_v18 }
 0x98a   : > { %4322 = vmatprep.subr.bf16.mxu0 %v9835_v37  ;;  %v2019_v37 = vld [vmem:[#allocation19 + $0x248] sm:$0xff] }
 0x98b   : > { %v9870_v8 = vcombine.high %v2019_v37, %v2023_v35  ;;  %v9876_v43 = vcombine.low %v2019_v37, %v2023_v35  ;;  %v9897_v37 = vcombine.high %v1732_v39, %v1736_v22  ;;  %v9916_v39 = vcombine.low %v1740_v53, %v1744_v26 }
 0x98c   : > { %2768 = vmatpush1.bf16.msra.mxu1 %v9838_v52  ;;  %4273 = vmatmul.mubr.bf16.vlgmr.msra.gmra.mrb[24].mxu0 %v11862_v33 }
 0x98d   : > { %4323 = vmatpush1.bf16.msra.mxu0 %v9842_v32  ;;  %2769 = vmatprep.subr.bf16.mxu1 %v9844_v15  ;;  %v2031_v32 = vld [vmem:[#allocation19 + $0x2a8] sm:$0xff]  ;;  %11942 = vst [vmem:[#allocation178_spill] sm:$0xff] %v9897_v37  ;;  %11945 = vst [vmem:[#allocation181_spill] sm:$0xff] %v9916_v39 }
 0x98e   : > { %4324 = vmatprep.subr.bf16.mxu0 %v9847_v57  ;;  %4354 = vmatprep.mubr.bf16.mxu0 %v11862_v33  ;;  %v2027_v57 = vld [vmem:[#allocation19 + $0x288] sm:$0xff] }
 0x98f   : > { %v9882_v23 = vcombine.high %v2027_v57, %v2031_v32  ;;  %v9888_v35 = vcombine.low %v2027_v57, %v2031_v32  ;;  %v9909_v57 = vcombine.high %v1740_v53, %v1744_v26  ;;  %v9930_v26 = vcombine.low %v1748_v34, %v1752_v9  ;;  %v2067_v53 = vld [vmem:[#allocation19 + $0x3c8] sm:$0xff] }
 0x990   : > { %2770 = vmatpush1.bf16.msra.mxu1 %v9851_v38 }
 0x991   : > { %4325 = vmatpush1.bf16.msra.mxu0 %v9855_v27  ;;  %2771 = vmatprep.subr.bf16.mxu1 %v9857_v30  ;;  %v2039_v27 = vld [vmem:[#allocation19 + $0x2e8] sm:$0xff]  ;;  %11944 = vst [vmem:[#allocation180_spill] sm:$0xff] %v9909_v57  ;;  %11947 = vst [vmem:[#allocation183_spill] sm:$0xff] %v9930_v26 }
 0x992   : > { %4326 = vmatprep.subr.bf16.mxu0 %v9860_v10  ;;  %v2035_v10 = vld [vmem:[#allocation19 + $0x2c8] sm:$0xff] }
 0x993   : > { %v9894_v28 = vcombine.high %v2035_v10, %v2039_v27  ;;  %v9900_v32 = vcombine.low %v2035_v10, %v2039_v27 }
 0x994   : > { %2772 = vmatpush1.bf16.msra.mxu1 %v9864_v47 }
 0x995   : > { %4327 = vmatpush1.bf16.msra.mxu0 %v9868_v7  ;;  %2773 = vmatprep.subr.bf16.mxu1 %v9870_v8  ;;  %v2047_v7 = vld [vmem:[#allocation19 + $0x328] sm:$0xff] }
 0x996   : > { %4328 = vmatprep.subr.bf16.mxu0 %v9873_v62  ;;  %v2043_v62 = vld [vmem:[#allocation19 + $0x308] sm:$0xff] }
 0x997   : > { %v9906_v40 = vcombine.high %v2043_v62, %v2047_v7  ;;  %v9912_v10 = vcombine.low %v2043_v62, %v2047_v7  ;;  %v1756_v7 = vld [vmem:[#allocation17 + $0x210] sm:$0xff] }
 0x998   : > { %2774 = vmatpush1.bf16.msra.mxu1 %v9876_v43  ;;  %v1760_v62 = vld [vmem:[#allocation17 + $0x230] sm:$0xff] }
 0x999   : > { %4329 = vmatpush1.bf16.msra.mxu0 %v9880_v5  ;;  %2775 = vmatprep.subr.bf16.mxu1 %v9882_v23  ;;  %v2055_v5 = vld [vmem:[#allocation19 + $0x368] sm:$0xff]  ;;  %v9942_v9 = vcombine.low %v1756_v7, %v1760_v62 }
 0x99a   : > { %4330 = vmatprep.subr.bf16.mxu0 %v9885_v49  ;;  %v2051_v49 = vld [vmem:[#allocation19 + $0x348] sm:$0xff] }
 0x99b   : > { %11949 = vst [vmem:[#allocation185_spill] sm:$0xff] %v9942_v9 }
 0x99c   : > { %2776 = vmatpush1.bf16.msra.mxu1 %v9888_v35 }
 0x99d   : > { %4331 = vmatpush1.bf16.msra.mxu0 %v9892_v13  ;;  %2777 = vmatprep.subr.bf16.mxu1 %v9894_v28 }
 0x99e   : > { %4332 = vmatprep.subr.bf16.mxu0 %v9897_v37  ;;  %v9918_v37 = vcombine.high %v2051_v49, %v2055_v5 }
 0x99f   : > { %v1620_v61 = vpop.f32.mrb[12].mxu0 }
 0x9a0   : > { %2778 = vmatpush1.bf16.msra.mxu1 %v9900_v32  ;;  %v7660_v27 = vpop.f32.mrb[13].mxu0 }
 0x9a1   : > { %4333 = vmatpush1.bf16.msra.mxu0 %v9904_v18  ;;  %v1623_v22 = vpop.f32.mrb[14].mxu0  ;;  %2779 = vmatprep.subr.bf16.mxu1 %v9906_v40  ;;  %v2063_v27 = vld [vmem:[#allocation19 + $0x3a8] sm:$0xff]  ;;  %v9926_v18 = vcombine.low %v2051_v49, %v2055_v5 }
 0x9a2   : > { %v9920_v13 = vpack.c.bf16 %v1623_v22, %v1620_v61  ;;  %v7661_v45 = vpop.f32.mrb[15].mxu0  ;;  %4334 = vmatprep.subr.bf16.mxu0 %v9909_v57  ;;  %v9932_v61 = vcombine.high %v2059_v50, %v2063_v27  ;;  %v2071_v22 = vld [vmem:[#allocation19 + $0x3e8] sm:$0xff]  ;;  %v1764_v57 = vld [vmem:[#allocation17 + $0x250] sm:$0xff]  ;;  %v9938_v5 = vcombine.low %v2059_v50, %v2063_v27 }
 0x9a3   : > { %v9935_v45 = vcombine.high %v1756_v7, %v1760_v62  ;;  %v9944_v34 = vcombine.high %v2067_v53, %v2071_v22  ;;  %v9947_v49 = vcombine.high %v1764_v57, %v1768_v44  ;;  %v9950_v50 = vcombine.low %v2067_v53, %v2071_v22 }
 0x9a4   : > { %2780 = vmatpush1.bf16.msra.mxu1 %v9912_v10  ;;  %v9954_v27 = vcombine.low %v1764_v57, %v1768_v44  ;;  %v9959_v62 = vcombine.high %v1772_v58, %v1776_v41  ;;  %v9966_v44 = vcombine.low %v1772_v58, %v1776_v41  ;;  %v9971_v22 = vcombine.high %v1780_v3, %v1784_v16 }
 0x9a5   : > { %4335 = vmatpush1.bf16.msra.mxu0 %v9916_v39  ;;  %2781 = vmatprep.subr.bf16.mxu1 %v9918_v37  ;;  %11948 = vst [vmem:[#allocation184_spill] sm:$0xff] %v9935_v45  ;;  %11950 = vst [vmem:[#allocation186_spill] sm:$0xff] %v9947_v49  ;;  %v1953_v39 = vld [vmem:[#allocation19 + $0x38] sm:$0xff]  ;;  %v9980_v41 = vcombine.low %v1780_v3, %v1784_v16  ;;  %v9992_v16 = vcombine.low %v1788_v17, %v1792_v20 }
 0x9a6   : > { %4336 = vmatprep.subr.bf16.mxu0 %v9923_v29  ;;  %v1949_v29 = vld [vmem:[#allocation19 + $0x18] sm:$0xff]  ;;  %11951 = vst [vmem:[#allocation187_spill] sm:$0xff] %v9954_v27  ;;  %11952 = vst [vmem:[#allocation188_spill] sm:$0xff] %v9959_v62 }
 0x9a7   : > { %v9956_v7 = vcombine.high %v1949_v29, %v1953_v39  ;;  %v9962_v53 = vcombine.low %v1949_v29, %v1953_v39  ;;  %11953 = vst [vmem:[#allocation189_spill] sm:$0xff] %v9966_v44  ;;  %11955 = vst [vmem:[#allocation191_spill] sm:$0xff] %v9971_v22  ;;  %v9985_v39 = vcombine.high %v1788_v17, %v1792_v20 }
 0x9a8   : > { %2782 = vmatpush1.bf16.msra.mxu1 %v9926_v18  ;;  %11957 = vst [vmem:[#allocation193_spill] sm:$0xff] %v9980_v41  ;;  %11961 = vst [vmem:[#allocation197_spill] sm:$0xff] %v9992_v16  ;;  %v10004_v20 = vcombine.low %v1796_v21, %v1800_v2 }
 0x9a9   : > { %4337 = vmatpush1.bf16.msra.mxu0 %v9930_v26  ;;  %2783 = vmatprep.subr.bf16.mxu1 %v9932_v61  ;;  %v1961_v26 = vld [vmem:[#allocation19 + $0x78] sm:$0xff]  ;;  %11959 = vst [vmem:[#allocation195_spill] sm:$0xff] %v9985_v39 }
 0x9aa   : > { %4338 = vmatprep.subr.bf16.mxu0 %v9935_v45  ;;  %v1957_v45 = vld [vmem:[#allocation19 + $0x58] sm:$0xff]  ;;  %11965 = vst [vmem:[#allocation201_spill] sm:$0xff] %v10004_v20 }
 0x9ab   : > { %v9968_v57 = vcombine.high %v1957_v45, %v1961_v26  ;;  %v9975_v29 = vcombine.low %v1957_v45, %v1961_v26  ;;  %v9997_v45 = vcombine.high %v1796_v21, %v1800_v2  ;;  %v10016_v2 = vcombine.low %v1804_v48, %v1808_v31 }
 0x9ac   : > { %2784 = vmatpush1.bf16.msra.mxu1 %v9938_v5 }
 0x9ad   : > { %4339 = vmatpush1.bf16.msra.mxu0 %v9942_v9  ;;  %2785 = vmatprep.subr.bf16.mxu1 %v9944_v34  ;;  %11954 = vst [vmem:[#allocation190_spill] sm:$0xff] %v9968_v57  ;;  %v1969_v9 = vld [vmem:[#allocation19 + $0xb8] sm:$0xff]  ;;  %11956 = vst [vmem:[#allocation192_spill] sm:$0xff] %v9975_v29 }
 0x9ae   : > { %4340 = vmatprep.subr.bf16.mxu0 %v9947_v49  ;;  %v1965_v49 = vld [vmem:[#allocation19 + $0x98] sm:$0xff]  ;;  %11963 = vst [vmem:[#allocation199_spill] sm:$0xff] %v9997_v45  ;;  %11969 = vst [vmem:[#allocation205_spill] sm:$0xff] %v10016_v2 }
 0x9af   : > { %v9982_v58 = vcombine.high %v1965_v49, %v1969_v9  ;;  %v9988_v26 = vcombine.low %v1965_v49, %v1969_v9  ;;  %v10009_v49 = vcombine.high %v1804_v48, %v1808_v31  ;;  %v10028_v31 = vcombine.low %v1812_v24, %v1816_v25 }
 0x9b0   : > { %2786 = vmatpush1.bf16.msra.mxu1 %v9950_v50 }
 0x9b1   : > { %4341 = vmatpush1.bf16.msra.mxu0 %v9954_v27  ;;  %2837 = vmatprep.subr.bf16.mxu1 %v9956_v7  ;;  %11958 = vst [vmem:[#allocation194_spill] sm:$0xff] %v9982_v58  ;;  %v1977_v27 = vld [vmem:[#allocation19 + $0xf8] sm:$0xff]  ;;  %11960 = vst [vmem:[#allocation196_spill] sm:$0xff] %v9988_v26 }
 0x9b2   : > { %4342 = vmatprep.subr.bf16.mxu0 %v9959_v62  ;;  %v1973_v62 = vld [vmem:[#allocation19 + $0xd8] sm:$0xff]  ;;  %11967 = vst [vmem:[#allocation203_spill] sm:$0xff] %v10009_v49  ;;  %11973 = vst [vmem:[#allocation209_spill] sm:$0xff] %v10028_v31 }
 0x9b3   : > { %2788 = vmatmul.mubr.bf16.vlgmr.msra.gmra.mrb[28].mxu1 %v11862_v33  ;;  %v9994_v3 = vcombine.high %v1973_v62, %v1977_v27  ;;  %v10000_v9 = vcombine.low %v1973_v62, %v1977_v27  ;;  %v10021_v62 = vcombine.high %v1812_v24, %v1816_v25  ;;  %v10040_v25 = vcombine.low %v1693_v54, %v1697_v11 }
 0x9b4   : > { %2838 = vmatpush1.bf16.msra.mxu1 %v9962_v53  ;;  %2869 = vmatprep.mubr.bf16.mxu1 %v11862_v33 }
 0x9b5   : > { %4343 = vmatpush1.bf16.msra.mxu0 %v9966_v44  ;;  %2839 = vmatprep.subr.bf16.mxu1 %v9968_v57  ;;  %11962 = vst [vmem:[#allocation198_spill] sm:$0xff] %v9994_v3  ;;  %v1985_v44 = vld [vmem:[#allocation19 + $0x138] sm:$0xff]  ;;  %11964 = vst [vmem:[#allocation200_spill] sm:$0xff] %v10000_v9 }
 0x9b6   : > { %4344 = vmatprep.subr.bf16.mxu0 %v9971_v22  ;;  %v1981_v22 = vld [vmem:[#allocation19 + $0x118] sm:$0xff]  ;;  %11971 = vst [vmem:[#allocation207_spill] sm:$0xff] %v10021_v62  ;;  %11977 = vst [vmem:[#allocation213_spill] sm:$0xff] %v10040_v25 }
 0x9b7   : > { %v10006_v17 = vcombine.high %v1981_v22, %v1985_v44  ;;  %v10012_v27 = vcombine.low %v1981_v22, %v1985_v44  ;;  %v10033_v22 = vcombine.high %v1693_v54, %v1697_v11 }
 0x9b8   : > { %2840 = vmatpush1.bf16.msra.mxu1 %v9975_v29 }
 0x9b9   : > { %4345 = vmatpush1.bf16.msra.mxu0 %v9980_v41  ;;  %2841 = vmatprep.subr.bf16.mxu1 %v9982_v58  ;;  %11966 = vst [vmem:[#allocation202_spill] sm:$0xff] %v10006_v17  ;;  %v1993_v41 = vld [vmem:[#allocation19 + $0x178] sm:$0xff]  ;;  %11968 = vst [vmem:[#allocation204_spill] sm:$0xff] %v10012_v27 }
 0x9ba   : > { %4346 = vmatprep.subr.bf16.mxu0 %v9985_v39  ;;  %v1989_v39 = vld [vmem:[#allocation19 + $0x158] sm:$0xff]  ;;  %11975 = vst [vmem:[#allocation211_spill] sm:$0xff] %v10033_v22 }
 0x9bb   : > { %v10018_v21 = vcombine.high %v1989_v39, %v1993_v41  ;;  %v10024_v44 = vcombine.low %v1989_v39, %v1993_v41 }
 0x9bc   : > { %2842 = vmatpush1.bf16.msra.mxu1 %v9988_v26 }
 0x9bd   : > { %4347 = vmatpush1.bf16.msra.mxu0 %v9992_v16  ;;  %2843 = vmatprep.subr.bf16.mxu1 %v9994_v3  ;;  %11970 = vst [vmem:[#allocation206_spill] sm:$0xff] %v10018_v21  ;;  %v2001_v16 = vld [vmem:[#allocation19 + $0x1b8] sm:$0xff]  ;;  %11972 = vst [vmem:[#allocation208_spill] sm:$0xff] %v10024_v44 }
 0x9be   : > { %4348 = vmatprep.subr.bf16.mxu0 %v9997_v45  ;;  %v1997_v45 = vld [vmem:[#allocation19 + $0x198] sm:$0xff] }
 0x9bf   : > { %v10030_v48 = vcombine.high %v1997_v45, %v2001_v16  ;;  %v10036_v41 = vcombine.low %v1997_v45, %v2001_v16 }
 0x9c0   : > { %2844 = vmatpush1.bf16.msra.mxu1 %v10000_v9  ;;  %v1705_v9 = vld [vmem:[#allocation17 + $0x78] sm:$0xff] }
 0x9c1   : > { %4349 = vmatpush1.bf16.msra.mxu0 %v10004_v20  ;;  %2845 = vmatprep.subr.bf16.mxu1 %v10006_v17  ;;  %11974 = vst [vmem:[#allocation210_spill] sm:$0xff] %v10030_v48  ;;  %v2009_v20 = vld [vmem:[#allocation19 + $0x1f8] sm:$0xff]  ;;  %11976 = vst [vmem:[#allocation212_spill] sm:$0xff] %v10036_v41 }
 0x9c2   : > { %4350 = vmatprep.subr.bf16.mxu0 %v10009_v49  ;;  %v2005_v49 = vld [vmem:[#allocation19 + $0x1d8] sm:$0xff] }
 0x9c3   : > { %v1701_v17 = vld [vmem:[#allocation17 + $0x58] sm:$0xff]  ;;  %v10042_v24 = vcombine.high %v2005_v49, %v2009_v20  ;;  %v10049_v16 = vcombine.low %v2005_v49, %v2009_v20 }
 0x9c4   : > { %2846 = vmatpush1.bf16.msra.mxu1 %v10012_v27  ;;  %v10045_v39 = vcombine.high %v1701_v17, %v1705_v9  ;;  %v1713_v27 = vld [vmem:[#allocation17 + $0xb8] sm:$0xff]  ;;  %v10053_v11 = vcombine.low %v1701_v17, %v1705_v9 }
 0x9c5   : > { %4351 = vmatpush1.bf16.msra.mxu0 %v10016_v2  ;;  %2847 = vmatprep.subr.bf16.mxu1 %v10018_v21  ;;  %11978 = vst [vmem:[#allocation214_spill] sm:$0xff] %v10042_v24  ;;  %v2017_v2 = vld [vmem:[#allocation19 + $0x238] sm:$0xff]  ;;  %11980 = vst [vmem:[#allocation216_spill] sm:$0xff] %v10049_v16 }
 0x9c6   : > { %4352 = vmatprep.subr.bf16.mxu0 %v10021_v62  ;;  %11979 = vst [vmem:[#allocation215_spill] sm:$0xff] %v10045_v39  ;;  %v2013_v62 = vld [vmem:[#allocation19 + $0x218] sm:$0xff]  ;;  %11981 = vst [vmem:[#allocation217_spill] sm:$0xff] %v10053_v11 }
 0x9c7   : > { %v1709_v21 = vld [vmem:[#allocation17 + $0x98] sm:$0xff]  ;;  %v10055_v54 = vcombine.high %v2013_v62, %v2017_v2  ;;  %v10062_v20 = vcombine.low %v2013_v62, %v2017_v2 }
 0x9c8   : > { %2848 = vmatpush1.bf16.msra.mxu1 %v10024_v44  ;;  %v10058_v45 = vcombine.high %v1709_v21, %v1713_v27  ;;  %v10066_v9 = vcombine.low %v1709_v21, %v1713_v27  ;;  %v1729_v44 = vld [vmem:[#allocation17 + $0x138] sm:$0xff] }
 0x9c9   : > { %4353 = vmatpush1.bf16.msra.mxu0 %v10028_v31  ;;  %2849 = vmatprep.subr.bf16.mxu1 %v10030_v48  ;;  %11982 = vst [vmem:[#allocation218_spill] sm:$0xff] %v10055_v54  ;;  %v2025_v31 = vld [vmem:[#allocation19 + $0x278] sm:$0xff]  ;;  %11984 = vst [vmem:[#allocation220_spill] sm:$0xff] %v10062_v20 }
 0x9ca   : > { %4404 = vmatprep.subr.bf16.mxu0 %v10033_v22  ;;  %11983 = vst [vmem:[#allocation219_spill] sm:$0xff] %v10058_v45  ;;  %v2021_v22 = vld [vmem:[#allocation19 + $0x258] sm:$0xff]  ;;  %11985 = vst [vmem:[#allocation221_spill] sm:$0xff] %v10066_v9 }
 0x9cb   : > { %v1721_v48 = vld [vmem:[#allocation17 + $0xf8] sm:$0xff]  ;;  %v10068_v17 = vcombine.high %v2021_v22, %v2025_v31  ;;  %v10074_v2 = vcombine.low %v2021_v22, %v2025_v31 }
 0x9cc   : > { %2850 = vmatpush1.bf16.msra.mxu1 %v10036_v41  ;;  %4355 = vmatmul.mubr.bf16.vlgmr.msra.gmra.mrb[28].mxu0 %v11862_v33  ;;  %v1717_v41 = vld [vmem:[#allocation17 + $0xd8] sm:$0xff] }
 0x9cd   : > { %4405 = vmatpush1.bf16.msra.mxu0 %v10040_v25  ;;  %2851 = vmatprep.subr.bf16.mxu1 %v10042_v24  ;;  %11986 = vst [vmem:[#allocation222_spill] sm:$0xff] %v10068_v17  ;;  %v10071_v49 = vcombine.high %v1717_v41, %v1721_v48  ;;  %v2033_v25 = vld [vmem:[#allocation19 + $0x2b8] sm:$0xff]  ;;  %11988 = vst [vmem:[#allocation224_spill] sm:$0xff] %v10074_v2  ;;  %v10078_v27 = vcombine.low %v1717_v41, %v1721_v48 }
 0x9ce   : > { %4406 = vmatprep.subr.bf16.mxu0 %v10045_v39  ;;  %4436 = vmatprep.mubr.bf16.mxu0 %v11862_v33  ;;  %v2029_v39 = vld [vmem:[#allocation19 + $0x298] sm:$0xff] }
 0x9cf   : > { %11987 = vst [vmem:[#allocation223_spill] sm:$0xff] %v10071_v49  ;;  %v1725_v24 = vld [vmem:[#allocation17 + $0x118] sm:$0xff]  ;;  %11989 = vst [vmem:[#allocation225_spill] sm:$0xff] %v10078_v27  ;;  %v10080_v21 = vcombine.high %v2029_v39, %v2033_v25  ;;  %v10086_v31 = vcombine.low %v2029_v39, %v2033_v25 }
 0x9d0   : > { %2852 = vmatpush1.bf16.msra.mxu1 %v10049_v16  ;;  %v10083_v62 = vcombine.high %v1725_v24, %v1729_v44  ;;  %v1737_v16 = vld [vmem:[#allocation17 + $0x178] sm:$0xff]  ;;  %v10090_v48 = vcombine.low %v1725_v24, %v1729_v44 }
 0x9d1   : > { %4407 = vmatpush1.bf16.msra.mxu0 %v10053_v11  ;;  %2853 = vmatprep.subr.bf16.mxu1 %v10055_v54  ;;  %11990 = vst [vmem:[#allocation226_spill] sm:$0xff] %v10080_v21  ;;  %v2041_v11 = vld [vmem:[#allocation19 + $0x2f8] sm:$0xff]  ;;  %11992 = vst [vmem:[#allocation228_spill] sm:$0xff] %v10086_v31 }
 0x9d2   : > { %4408 = vmatprep.subr.bf16.mxu0 %v10058_v45  ;;  %11991 = vst [vmem:[#allocation227_spill] sm:$0xff] %v10083_v62  ;;  %v2037_v45 = vld [vmem:[#allocation19 + $0x2d8] sm:$0xff]  ;;  %11993 = vst [vmem:[#allocation229_spill] sm:$0xff] %v10090_v48 }
 0x9d3   : > { %v1733_v54 = vld [vmem:[#allocation17 + $0x158] sm:$0xff]  ;;  %v10092_v22 = vcombine.high %v2037_v45, %v2041_v11  ;;  %v10098_v25 = vcombine.low %v2037_v45, %v2041_v11 }
 0x9d4   : > { %2854 = vmatpush1.bf16.msra.mxu1 %v10062_v20  ;;  %v10095_v41 = vcombine.high %v1733_v54, %v1737_v16  ;;  %v1745_v20 = vld [vmem:[#allocation17 + $0x1b8] sm:$0xff]  ;;  %v10102_v44 = vcombine.low %v1733_v54, %v1737_v16 }
 0x9d5   : > { %4409 = vmatpush1.bf16.msra.mxu0 %v10066_v9  ;;  %2855 = vmatprep.subr.bf16.mxu1 %v10068_v17  ;;  %11994 = vst [vmem:[#allocation230_spill] sm:$0xff] %v10092_v22  ;;  %v2049_v9 = vld [vmem:[#allocation19 + $0x338] sm:$0xff]  ;;  %11996 = vst [vmem:[#allocation232_spill] sm:$0xff] %v10098_v25 }
 0x9d6   : > { %4410 = vmatprep.subr.bf16.mxu0 %v10071_v49  ;;  %11995 = vst [vmem:[#allocation231_spill] sm:$0xff] %v10095_v41  ;;  %v2045_v49 = vld [vmem:[#allocation19 + $0x318] sm:$0xff]  ;;  %11997 = vst [vmem:[#allocation233_spill] sm:$0xff] %v10102_v44 }
 0x9d7   : > { %v1741_v17 = vld [vmem:[#allocation17 + $0x198] sm:$0xff]  ;;  %v10104_v24 = vcombine.high %v2045_v49, %v2049_v9  ;;  %v10112_v11 = vcombine.low %v2045_v49, %v2049_v9 }
 0x9d8   : > { %2856 = vmatpush1.bf16.msra.mxu1 %v10074_v2  ;;  %v10107_v39 = vcombine.high %v1741_v17, %v1745_v20  ;;  %v1753_v2 = vld [vmem:[#allocation17 + $0x1f8] sm:$0xff]  ;;  %v10118_v16 = vcombine.low %v1741_v17, %v1745_v20 }
 0x9d9   : > { %4411 = vmatpush1.bf16.msra.mxu0 %v10078_v27  ;;  %2857 = vmatprep.subr.bf16.mxu1 %v10080_v21  ;;  %11998 = vst [vmem:[#allocation234_spill] sm:$0xff] %v10104_v24  ;;  %v2057_v27 = vld [vmem:[#allocation19 + $0x378] sm:$0xff]  ;;  %12000 = vst [vmem:[#allocation236_spill] sm:$0xff] %v10112_v11 }
 0x9da   : > { %4412 = vmatprep.subr.bf16.mxu0 %v10083_v62  ;;  %11999 = vst [vmem:[#allocation235_spill] sm:$0xff] %v10107_v39  ;;  %v2053_v62 = vld [vmem:[#allocation19 + $0x358] sm:$0xff]  ;;  %12001 = vst [vmem:[#allocation237_spill] sm:$0xff] %v10118_v16 }
 0x9db   : > { %v1749_v21 = vld [vmem:[#allocation17 + $0x1d8] sm:$0xff]  ;;  %v10120_v54 = vcombine.high %v2053_v62, %v2057_v27  ;;  %v10126_v26 = vcombine.low %v2053_v62, %v2057_v27 }
 0x9dc   : > { %2858 = vmatpush1.bf16.msra.mxu1 %v10086_v31  ;;  %v2065_v31 = vld [vmem:[#allocation19 + $0x3b8] sm:$0xff]  ;;  %v10130_v20 = vcombine.low %v1749_v21, %v1753_v2 }
 0x9dd   : > { %4413 = vmatpush1.bf16.msra.mxu0 %v10090_v48  ;;  %2859 = vmatprep.subr.bf16.mxu1 %v10092_v22  ;;  %12002 = vst [vmem:[#allocation238_spill] sm:$0xff] %v10120_v54  ;;  %v10123_v48 = vcombine.high %v1749_v21, %v1753_v2  ;;  %v2061_v22 = vld [vmem:[#allocation19 + $0x398] sm:$0xff]  ;;  %12004 = vst [vmem:[#allocation240_spill] sm:$0xff] %v10126_v26 }
 0x9de   : > { %4414 = vmatprep.subr.bf16.mxu0 %v10095_v41  ;;  %v1757_v9 = vld [vmem:[#allocation17 + $0x218] sm:$0xff]  ;;  %12005 = vst [vmem:[#allocation241_spill] sm:$0xff] %v10130_v20  ;;  %v10132_v17 = vcombine.high %v2061_v22, %v2065_v31  ;;  %v10138_v27 = vcombine.low %v2061_v22, %v2065_v31 }
 0x9df   : > { %v10109_v3 = vpop.f32.mrb[16].mxu0  ;;  %12003 = vst [vmem:[#allocation239_spill] sm:$0xff] %v10123_v48  ;;  %v1761_v49 = vld [vmem:[#allocation17 + $0x238] sm:$0xff] }
 0x9e0   : > { %2860 = vmatpush1.bf16.msra.mxu1 %v10098_v25  ;;  %v10114_v45 = vpop.f32.mrb[17].mxu0  ;;  %12006 = vst [vmem:[#allocation242_spill] sm:$0xff] %v10132_v17  ;;  %12008 = vst [vmem:[#allocation244_spill] sm:$0xff] %v10138_v27  ;;  %v10142_v2 = vcombine.low %v1757_v9, %v1761_v49 }
 0x9e1   : > { %4415 = vmatpush1.bf16.msra.mxu0 %v10102_v44  ;;  %2861 = vmatprep.subr.bf16.mxu1 %v10104_v24  ;;  %v2834_v41 = vpop.f32.mrb[18].mxu0  ;;  %v1765_v44 = vld [vmem:[#allocation17 + $0x258] sm:$0xff] }
 0x9e2   : > { %4416 = vmatprep.subr.bf16.mxu0 %v10107_v39  ;;  %v2835_v25 = vpop.f32.mrb[19].mxu0  ;;  %v10135_v41 = vcombine.high %v1757_v9, %v1761_v49  ;;  %v2069_v39 = vld [vmem:[#allocation19 + $0x3d8] sm:$0xff]  ;;  %12009 = vst [vmem:[#allocation245_spill] sm:$0xff] %v10142_v2 }
 0x9e3   : > { %v2073_v25 = vld [vmem:[#allocation19 + $0x3f8] sm:$0xff] }
 0x9e4   : > { %2862 = vmatpush1.bf16.msra.mxu1 %v10112_v11  ;;  %12007 = vst [vmem:[#allocation243_spill] sm:$0xff] %v10135_v41  ;;  %v1769_v24 = vld [vmem:[#allocation17 + $0x278] sm:$0xff]  ;;  %v10144_v21 = vcombine.high %v2069_v39, %v2073_v25  ;;  %v10150_v31 = vcombine.low %v2069_v39, %v2073_v25 }
 0x9e5   : > { %4417 = vmatpush1.bf16.msra.mxu0 %v10118_v16  ;;  %2863 = vmatprep.subr.bf16.mxu1 %v10120_v54  ;;  %v10147_v62 = vcombine.high %v1765_v44, %v1769_v24  ;;  %v1822_v16 = vld [vmem:[#allocation17 + $0x420] sm:$0xff]  ;;  %v1773_v54 = vld [vmem:[#allocation17 + $0x298] sm:$0xff]  ;;  %v10154_v22 = vcombine.low %v1765_v44, %v1769_v24 }
 0x9e6   : > { %4418 = vmatprep.subr.bf16.mxu0 %v10123_v48  ;;  %12010 = vst [vmem:[#allocation246_spill] sm:$0xff] %v10144_v21  ;;  %v1818_v48 = vld [vmem:[#allocation17 + $0x400] sm:$0xff]  ;;  %v1777_v11 = vld [vmem:[#allocation17 + $0x2b8] sm:$0xff]  ;;  %12012 = vst [vmem:[#allocation248_spill] sm:$0xff] %v10150_v31 }
 0x9e7   : > { %12011 = vst [vmem:[#allocation247_spill] sm:$0xff] %v10147_v62  ;;  %12013 = vst [vmem:[#allocation249_spill] sm:$0xff] %v10154_v22  ;;  %v10156_v9 = vcombine.high %v1818_v48, %v1822_v16  ;;  %v10159_v49 = vcombine.high %v1773_v54, %v1777_v11  ;;  %v10162_v39 = vcombine.low %v1818_v48, %v1822_v16 }
 0x9e8   : > { %2864 = vmatpush1.bf16.msra.mxu1 %v10126_v26  ;;  %v1785_v26 = vld [vmem:[#allocation17 + $0x2f8] sm:$0xff]  ;;  %v10166_v44 = vcombine.low %v1773_v54, %v1777_v11 }
 0x9e9   : > { %4419 = vmatpush1.bf16.msra.mxu0 %v10130_v20  ;;  %2865 = vmatprep.subr.bf16.mxu1 %v10132_v17  ;;  %12014 = vst [vmem:[#allocation250_spill] sm:$0xff] %v10156_v9  ;;  %12015 = vst [vmem:[#allocation251_spill] sm:$0xff] %v10159_v49  ;;  %v1830_v20 = vld [vmem:[#allocation17 + $0x460] sm:$0xff]  ;;  %v1781_v17 = vld [vmem:[#allocation17 + $0x2d8] sm:$0xff] }
 0x9ea   : > { %4420 = vmatprep.subr.bf16.mxu0 %v10135_v41  ;;  %v1826_v41 = vld [vmem:[#allocation17 + $0x440] sm:$0xff]  ;;  %12016 = vst [vmem:[#allocation252_spill] sm:$0xff] %v10162_v39  ;;  %12017 = vst [vmem:[#allocation253_spill] sm:$0xff] %v10166_v44  ;;  %v10171_v25 = vcombine.high %v1781_v17, %v1785_v26  ;;  %v10180_v11 = vcombine.low %v1781_v17, %v1785_v26 }
 0x9eb   : > { %v10168_v24 = vcombine.high %v1826_v41, %v1830_v20  ;;  %v10175_v48 = vcombine.low %v1826_v41, %v1830_v20 }
 0x9ec   : > { %2866 = vmatpush1.bf16.msra.mxu1 %v10138_v27  ;;  %12019 = vst [vmem:[#allocation255_spill] sm:$0xff] %v10171_v25  ;;  %12021 = vst [vmem:[#allocation257_spill] sm:$0xff] %v10180_v11  ;;  %v1809_v27 = vld [vmem:[#allocation17 + $0x3b8] sm:$0xff] }
 0x9ed   : > { %4421 = vmatpush1.bf16.msra.mxu0 %v10142_v2  ;;  %2867 = vmatprep.subr.bf16.mxu1 %v10144_v21  ;;  %12018 = vst [vmem:[#allocation254_spill] sm:$0xff] %v10168_v24  ;;  %v1838_v2 = vld [vmem:[#allocation17 + $0x4a0] sm:$0xff]  ;;  %v1789_v21 = vld [vmem:[#allocation17 + $0x318] sm:$0xff]  ;;  %12020 = vst [vmem:[#allocation256_spill] sm:$0xff] %v10175_v48 }
 0x9ee   : > { %4422 = vmatprep.subr.bf16.mxu0 %v10147_v62  ;;  %v1834_v62 = vld [vmem:[#allocation17 + $0x480] sm:$0xff] }
 0x9ef   : > { %v10182_v16 = vcombine.high %v1834_v62, %v1838_v2  ;;  %v10188_v20 = vcombine.low %v1834_v62, %v1838_v2 }
 0x9f0   : > { %2868 = vmatpush1.bf16.msra.mxu1 %v10150_v31  ;;  %v1793_v31 = vld [vmem:[#allocation17 + $0x338] sm:$0xff] }
 0x9f1   : > { %4423 = vmatpush1.bf16.msra.mxu0 %v10154_v22  ;;  %4199 = vmatprep.subr.bf16.mxu1 %v10156_v9  ;;  %12022 = vst [vmem:[#allocation258_spill] sm:$0xff] %v10182_v16  ;;  %v10185_v54 = vcombine.high %v1789_v21, %v1793_v31  ;;  %v1846_v22 = vld [vmem:[#allocation17 + $0x4e0] sm:$0xff]  ;;  %v1797_v9 = vld [vmem:[#allocation17 + $0x358] sm:$0xff]  ;;  %12024 = vst [vmem:[#allocation260_spill] sm:$0xff] %v10188_v20  ;;  %v10192_v26 = vcombine.low %v1789_v21, %v1793_v31 }
 0x9f2   : > { %4424 = vmatprep.subr.bf16.mxu0 %v10159_v49  ;;  %v1842_v49 = vld [vmem:[#allocation17 + $0x4c0] sm:$0xff] }
 0x9f3   : > { %2870 = vmatmul.mubr.bf16.vlgmr.msra.gmra.mrb[32].mxu1 %v11862_v33  ;;  %12023 = vst [vmem:[#allocation259_spill] sm:$0xff] %v10185_v54  ;;  %12025 = vst [vmem:[#allocation261_spill] sm:$0xff] %v10192_v26  ;;  %v10194_v17 = vcombine.high %v1842_v49, %v1846_v22  ;;  %v10200_v2 = vcombine.low %v1842_v49, %v1846_v22 }
 0x9f4   : > { %4200 = vmatpush1.bf16.msra.mxu1 %v10162_v39  ;;  %4231 = vmatprep.mubr.bf16.mxu1 %v11862_v33  ;;  %v1801_v39 = vld [vmem:[#allocation17 + $0x378] sm:$0xff] }
 0x9f5   : > { %4425 = vmatpush1.bf16.msra.mxu0 %v10166_v44  ;;  %4201 = vmatprep.subr.bf16.mxu1 %v10168_v24  ;;  %12026 = vst [vmem:[#allocation262_spill] sm:$0xff] %v10194_v17  ;;  %v10197_v41 = vcombine.high %v1797_v9, %v1801_v39  ;;  %v1854_v44 = vld [vmem:[#allocation17 + $0x520] sm:$0xff]  ;;  %v1805_v24 = vld [vmem:[#allocation17 + $0x398] sm:$0xff]  ;;  %12028 = vst [vmem:[#allocation264_spill] sm:$0xff] %v10200_v2  ;;  %v10204_v21 = vcombine.low %v1797_v9, %v1801_v39 }
 0x9f6   : > { %4426 = vmatprep.subr.bf16.mxu0 %v10171_v25  ;;  %v1850_v25 = vld [vmem:[#allocation17 + $0x500] sm:$0xff]  ;;  %v10209_v31 = vcombine.high %v1805_v24, %v1809_v27  ;;  %v10216_v9 = vcombine.low %v1805_v24, %v1809_v27 }
 0x9f7   : > { %12027 = vst [vmem:[#allocation263_spill] sm:$0xff] %v10197_v41  ;;  %12029 = vst [vmem:[#allocation265_spill] sm:$0xff] %v10204_v21  ;;  %v10206_v62 = vcombine.high %v1850_v25, %v1854_v44  ;;  %v10212_v22 = vcombine.low %v1850_v25, %v1854_v44  ;;  %v1874_v25 = vld [vmem:[#allocation17 + $0x5c0] sm:$0xff] }
 0x9f8   : > { %4202 = vmatpush1.bf16.msra.mxu1 %v10175_v48  ;;  %12031 = vst [vmem:[#allocation267_spill] sm:$0xff] %v10209_v31  ;;  %v1817_v48 = vld [vmem:[#allocation17 + $0x3f8] sm:$0xff]  ;;  %12033 = vst [vmem:[#allocation269_spill] sm:$0xff] %v10216_v9 }
 0x9f9   : > { %4427 = vmatpush1.bf16.msra.mxu0 %v10180_v11  ;;  %4203 = vmatprep.subr.bf16.mxu1 %v10182_v16  ;;  %12030 = vst [vmem:[#allocation266_spill] sm:$0xff] %v10206_v62  ;;  %v1862_v11 = vld [vmem:[#allocation17 + $0x560] sm:$0xff]  ;;  %v1813_v16 = vld [vmem:[#allocation17 + $0x3d8] sm:$0xff]  ;;  %12032 = vst [vmem:[#allocation268_spill] sm:$0xff] %v10212_v22 }
 0x9fa   : > { %4428 = vmatprep.subr.bf16.mxu0 %v10185_v54  ;;  %v1858_v54 = vld [vmem:[#allocation17 + $0x540] sm:$0xff]  ;;  %v10221_v39 = vcombine.high %v1813_v16, %v1817_v48  ;;  %v10228_v44 = vcombine.low %v1813_v16, %v1817_v48 }
 0x9fb   : > { %v10218_v49 = vcombine.high %v1858_v54, %v1862_v11  ;;  %v1882_v16 = vld [vmem:[#allocation17 + $0x600] sm:$0xff] }
 0x9fc   : > { %4204 = vmatpush1.bf16.msra.mxu1 %v10188_v20  ;;  %12035 = vst [vmem:[#allocation271_spill] sm:$0xff] %v10221_v39  ;;  %12037 = vst [vmem:[#allocation273_spill] sm:$0xff] %v10228_v44  ;;  %v1888_v20 = vld [vmem:[#allocation17 + $0x630] sm:$0xff] }
 0x9fd   : > { %4429 = vmatpush1.bf16.msra.mxu0 %v10192_v26  ;;  %4205 = vmatprep.subr.bf16.mxu1 %v10194_v17  ;;  %12034 = vst [vmem:[#allocation270_spill] sm:$0xff] %v10218_v49  ;;  %v1870_v26 = vld [vmem:[#allocation17 + $0x5a0] sm:$0xff]  ;;  %v10224_v17 = vcombine.low %v1858_v54, %v1862_v11 }
 0x9fe   : > { %4430 = vmatprep.subr.bf16.mxu0 %v10197_v41  ;;  %v1866_v41 = vld [vmem:[#allocation17 + $0x580] sm:$0xff] }
 0x9ff   : > { %12036 = vst [vmem:[#allocation272_spill] sm:$0xff] %v10224_v17  ;;  %v10230_v27 = vcombine.high %v1866_v41, %v1870_v26 }
 0xa00   : > { %4206 = vmatpush1.bf16.msra.mxu1 %v10200_v2 }
 0xa01   : > { %4431 = vmatpush1.bf16.msra.mxu0 %v10204_v21  ;;  %4207 = vmatprep.subr.bf16.mxu1 %v10206_v62  ;;  %12038 = vst [vmem:[#allocation274_spill] sm:$0xff] %v10230_v27 }
 0xa02   : > { %4432 = vmatprep.subr.bf16.mxu0 %v10209_v31  ;;  %v1878_v31 = vld [vmem:[#allocation17 + $0x5e0] sm:$0xff] }
 0xa03   : > { %v10240_v48 = vcombine.high %v1874_v25, %v1878_v31 }
 0xa04   : > { %4208 = vmatpush1.bf16.msra.mxu1 %v10212_v22  ;;  %v10234_v22 = vcombine.low %v1866_v41, %v1870_v26  ;;  %v1890_v41 = vld [vmem:[#allocation17 + $0x640] sm:$0xff] }
 0xa05   : > { %4433 = vmatpush1.bf16.msra.mxu0 %v10216_v9  ;;  %4209 = vmatprep.subr.bf16.mxu1 %v10218_v49  ;;  %12040 = vst [vmem:[#allocation276_spill] sm:$0xff] %v10240_v48  ;;  %v1902_v9 = vld [vmem:[#allocation17 + $0x6a0] sm:$0xff]  ;;  %v1887_v49 = vld [vmem:[#allocation17 + $0x628] sm:$0xff] }
 0xa06   : > { %v1680_v24 = vpop.f32.mrb[20].mxu1  ;;  %4434 = vmatprep.subr.bf16.mxu0 %v10221_v39  ;;  %12039 = vst [vmem:[#allocation275_spill] sm:$0xff] %v10234_v22  ;;  %v1886_v39 = vld [vmem:[#allocation17 + $0x620] sm:$0xff] }
 0xa07   : > { %v7666_v21 = vpop.f32.mrb[21].mxu1  ;;  %v10248_v26 = vcombine.high %v1882_v16, %v1886_v39 }
 0xa08   : > { %4210 = vmatpush1.bf16.msra.mxu1 %v10224_v17  ;;  %v1683_v62 = vpop.f32.mrb[22].mxu1  ;;  %v10245_v21 = vcombine.low %v1874_v25, %v1878_v31  ;;  %v1879_v17 = vld [vmem:[#allocation17 + $0x5e8] sm:$0xff] }
 0xa09   : > { %v10236_v11 = vpack.c.bf16 %v1683_v62, %v1680_v24  ;;  %4435 = vmatpush1.bf16.msra.mxu0 %v10228_v44  ;;  %v7667_v54 = vpop.f32.mrb[23].mxu1  ;;  %4211 = vmatprep.subr.bf16.mxu1 %v10230_v27  ;;  %12042 = vst [vmem:[#allocation278_spill] sm:$0xff] %v10248_v26  ;;  %v1894_v62 = vld [vmem:[#allocation17 + $0x660] sm:$0xff]  ;;  %v10251_v24 = vcombine.low %v1882_v16, %v1886_v39 }
 0xa0a   : > { %4586 = vmatprep.subr.bf16.mxu0 %v9920_v13  ;;  %12041 = vst [vmem:[#allocation277_spill] sm:$0xff] %v10245_v21  ;;  %v10254_v54 = vcombine.high %v1890_v41, %v1894_v62  ;;  %v1898_v44 = vld [vmem:[#allocation17 + $0x680] sm:$0xff]  ;;  %v10259_v31 = vcombine.low %v1890_v41, %v1894_v62 }
 0xa0b   : > { %12043 = vst [vmem:[#allocation279_spill] sm:$0xff] %v10251_v24  ;;  %v10262_v25 = vcombine.high %v1898_v44, %v1902_v9  ;;  %v1906_v39 = vld [vmem:[#allocation17 + $0x6c0] sm:$0xff] }
 0xa0c   : > { %4212 = vmatpush1.bf16.msra.mxu1 %v10234_v22  ;;  %4437 = vmatmul.mubr.bf16.vlgmr.msra.gmra.mrb[32].mxu0 %v11862_v33  ;;  %12044 = vst [vmem:[#allocation280_spill] sm:$0xff] %v10254_v54  ;;  %12045 = vst [vmem:[#allocation281_spill] sm:$0xff] %v10259_v31  ;;  %v1910_v16 = vld [vmem:[#allocation17 + $0x6e0] sm:$0xff] }
 0xa0d   : > { %4213 = vmatprep.subr.bf16.mxu1 %v10240_v48  ;;  %12046 = vst [vmem:[#allocation282_spill] sm:$0xff] %v10262_v25  ;;  %v1914_v48 = vld [vmem:[#allocation17 + $0x700] sm:$0xff]  ;;  %v10273_v41 = vcombine.low %v1906_v39, %v1910_v16 }
 0xa0f   : > { %12049 = vst [vmem:[#allocation285_spill] sm:$0xff] %v10273_v41 }
 0xa10   : > { %4214 = vmatpush1.bf16.msra.mxu1 %v10245_v21  ;;  %v10268_v21 = vcombine.high %v1906_v39, %v1910_v16  ;;  %v1930_v16 = vld [vmem:[#allocation17 + $0x780] sm:$0xff] }
 0xa11   : > { %4215 = vmatprep.subr.bf16.mxu1 %v10248_v26  ;;  %v10265_v26 = vcombine.low %v1898_v44, %v1902_v9  ;;  %v1922_v9 = vld [vmem:[#allocation17 + $0x740] sm:$0xff] }
 0xa12   : > { %4587 = vmatpush1.bf16.xpose.msra.mxu0 %v9399_v4  ;;  %12048 = vst [vmem:[#allocation284_spill] sm:$0xff] %v10268_v21  ;;  %v1926_v44 = vld [vmem:[#allocation17 + $0x760] sm:$0xff] }
 0xa13   : > { %4588 = vmatprep.subr.bf16.mxu0 %v10236_v11  ;;  %12047 = vst [vmem:[#allocation283_spill] sm:$0xff] %v10265_v26  ;;  %v10289_v22 = vcombine.low %v1922_v9, %v1926_v44 }
 0xa14   : > { %4216 = vmatpush1.bf16.msra.mxu1 %v10251_v24  ;;  %v1918_v24 = vld [vmem:[#allocation17 + $0x720] sm:$0xff] }
 0xa15   : > { %4217 = vmatprep.subr.bf16.mxu1 %v10254_v54  ;;  %v10276_v62 = vcombine.high %v1914_v48, %v1918_v24  ;;  %12053 = vst [vmem:[#allocation289_spill] sm:$0xff] %v10289_v22 }
 0xa17   : > { %12050 = vst [vmem:[#allocation286_spill] sm:$0xff] %v10276_v62 }
 0xa18   : > { %4218 = vmatpush1.bf16.msra.mxu1 %v10259_v31 }
 0xa19   : > { %4219 = vmatprep.subr.bf16.mxu1 %v10262_v25  ;;  %v10281_v25 = vcombine.low %v1914_v48, %v1918_v24  ;;  %v1938_v48 = vld [vmem:[#allocation17 + $0x7c0] sm:$0xff] }
 0xa1a   : > { %4589 = vmatpush1.bf16.xpose.msra.mxu0 %v9394_v0  ;;  %v1942_v24 = vld [vmem:[#allocation17 + $0x7e0] sm:$0xff] }
 0xa1b   : > { %4731 = vmatprep.subr.bf16.mxu0 %v9758_v63  ;;  %12051 = vst [vmem:[#allocation287_spill] sm:$0xff] %v10281_v25  ;;  %v10286_v63 = vcombine.high %v1922_v9, %v1926_v44  ;;  %v10301_v9 = vcombine.low %v1938_v48, %v1942_v24 }
 0xa1c   : > { %4220 = vmatpush1.bf16.msra.mxu1 %v10265_v26  ;;  %v1934_v26 = vld [vmem:[#allocation17 + $0x7a0] sm:$0xff] }
 0xa1d   : > { %4221 = vmatprep.subr.bf16.mxu1 %v10268_v21  ;;  %12052 = vst [vmem:[#allocation288_spill] sm:$0xff] %v10286_v63  ;;  %v10292_v27 = vcombine.high %v1930_v16, %v1934_v26  ;;  %12057 = vst [vmem:[#allocation293_spill] sm:$0xff] %v10301_v9 }
 0xa1f   : > { %v10278_v31 = vpop.f32.mrb[20].mxu0  ;;  %12054 = vst [vmem:[#allocation290_spill] sm:$0xff] %v10292_v27 }
 0xa20   : > { %4222 = vmatpush1.bf16.msra.mxu1 %v10273_v41  ;;  %v10283_v54 = vpop.f32.mrb[21].mxu0  ;;  %v10295_v41 = vcombine.low %v1930_v16, %v1934_v26 }
 0xa21   : > { %4223 = vmatprep.subr.bf16.mxu1 %v10276_v62  ;;  %v4196_v39 = vpop.f32.mrb[22].mxu0  ;;  %v1819_v62 = vld [vmem:[#allocation17 + $0x408] sm:$0xff] }
 0xa22   : > { %v4197_v21 = vpop.f32.mrb[23].mxu0  ;;  %12055 = vst [vmem:[#allocation291_spill] sm:$0xff] %v10295_v41  ;;  %v10298_v39 = vcombine.high %v1938_v48, %v1942_v24 }
 0xa23   : > { %v1823_v21 = vld [vmem:[#allocation17 + $0x428] sm:$0xff] }
 0xa24   : > { %4224 = vmatpush1.bf16.msra.mxu1 %v10281_v25  ;;  %12056 = vst [vmem:[#allocation292_spill] sm:$0xff] %v10298_v39  ;;  %v10304_v44 = vcombine.high %v1819_v62, %v1823_v21  ;;  %v1831_v25 = vld [vmem:[#allocation17 + $0x468] sm:$0xff]  ;;  %v10307_v26 = vcombine.low %v1819_v62, %v1823_v21 }
 0xa25   : > { %4225 = vmatprep.subr.bf16.mxu1 %v10286_v63  ;;  %v1827_v63 = vld [vmem:[#allocation17 + $0x448] sm:$0xff] }
 0xa26   : > { %12058 = vst [vmem:[#allocation294_spill] sm:$0xff] %v10304_v44  ;;  %12059 = vst [vmem:[#allocation295_spill] sm:$0xff] %v10307_v26  ;;  %v10310_v16 = vcombine.high %v1827_v63, %v1831_v25  ;;  %v10314_v48 = vcombine.low %v1827_v63, %v1831_v25  ;;  %v1843_v62 = vld [vmem:[#allocation17 + $0x4c8] sm:$0xff] }
 0xa27   : > { %v1847_v21 = vld [vmem:[#allocation17 + $0x4e8] sm:$0xff] }
 0xa28   : > { %4226 = vmatpush1.bf16.msra.mxu1 %v10289_v22  ;;  %12060 = vst [vmem:[#allocation296_spill] sm:$0xff] %v10310_v16  ;;  %v1839_v22 = vld [vmem:[#allocation17 + $0x4a8] sm:$0xff]  ;;  %12061 = vst [vmem:[#allocation297_spill] sm:$0xff] %v10314_v48  ;;  %v10327_v25 = vcombine.low %v1843_v62, %v1847_v21 }
 0xa29   : > { %4227 = vmatprep.subr.bf16.mxu1 %v10292_v27  ;;  %v1835_v27 = vld [vmem:[#allocation17 + $0x488] sm:$0xff] }
 0xa2a   : > { %v10318_v24 = vcombine.high %v1835_v27, %v1839_v22  ;;  %12065 = vst [vmem:[#allocation301_spill] sm:$0xff] %v10327_v25 }
 0xa2c   : > { %4228 = vmatpush1.bf16.msra.mxu1 %v10295_v41  ;;  %12062 = vst [vmem:[#allocation298_spill] sm:$0xff] %v10318_v24  ;;  %v1863_v41 = vld [vmem:[#allocation17 + $0x568] sm:$0xff] }
 0xa2d   : > { %4229 = vmatprep.subr.bf16.mxu1 %v10298_v39  ;;  %v1851_v39 = vld [vmem:[#allocation17 + $0x508] sm:$0xff] }
 0xa30   : > { %4230 = vmatpush1.bf16.msra.mxu1 %v10301_v9  ;;  %v10324_v9 = vcombine.high %v1843_v62, %v1847_v21 }
 0xa31   : > { %4281 = vmatprep.subr.bf16.mxu1 %v10304_v44  ;;  %v10321_v44 = vcombine.low %v1835_v27, %v1839_v22 }
 0xa32   : > { %12064 = vst [vmem:[#allocation300_spill] sm:$0xff] %v10324_v9 }
 0xa33   : > { %4232 = vmatmul.mubr.bf16.vlgmr.msra.gmra.mrb[36].mxu1 %v11862_v33  ;;  %12063 = vst [vmem:[#allocation299_spill] sm:$0xff] %v10321_v44 }
 0xa34   : > { %4282 = vmatpush1.bf16.msra.mxu1 %v10307_v26  ;;  %4313 = vmatprep.mubr.bf16.mxu1 %v11862_v33  ;;  %v1855_v26 = vld [vmem:[#allocation17 + $0x528] sm:$0xff] }
 0xa35   : > { %4283 = vmatprep.subr.bf16.mxu1 %v10310_v16  ;;  %v10330_v63 = vcombine.high %v1851_v39, %v1855_v26  ;;  %v1859_v16 = vld [vmem:[#allocation17 + $0x548] sm:$0xff]  ;;  %v10333_v22 = vcombine.low %v1851_v39, %v1855_v26 }
 0xa36   : > { %v10336_v27 = vcombine.high %v1859_v16, %v1863_v41  ;;  %v10339_v62 = vcombine.low %v1859_v16, %v1863_v41 }
 0xa37   : > { %12066 = vst [vmem:[#allocation302_spill] sm:$0xff] %v10330_v63  ;;  %12067 = vst [vmem:[#allocation303_spill] sm:$0xff] %v10333_v22 }
 0xa38   : > { %4284 = vmatpush1.bf16.msra.mxu1 %v10314_v48  ;;  %12068 = vst [vmem:[#allocation304_spill] sm:$0xff] %v10336_v27  ;;  %v1871_v48 = vld [vmem:[#allocation17 + $0x5a8] sm:$0xff]  ;;  %12069 = vst [vmem:[#allocation305_spill] sm:$0xff] %v10339_v62 }
 0xa39   : > { %4285 = vmatprep.subr.bf16.mxu1 %v10318_v24  ;;  %v1867_v24 = vld [vmem:[#allocation17 + $0x588] sm:$0xff] }
 0xa3a   : > { %v10342_v21 = vcombine.high %v1867_v24, %v1871_v48 }
 0xa3c   : > { %4286 = vmatpush1.bf16.msra.mxu1 %v10321_v44  ;;  %12070 = vst [vmem:[#allocation306_spill] sm:$0xff] %v10342_v21  ;;  %v1875_v44 = vld [vmem:[#allocation17 + $0x5c8] sm:$0xff] }
 0xa3d   : > { %4287 = vmatprep.subr.bf16.mxu1 %v10324_v9  ;;  %v10354_v16 = vcombine.high %v1875_v44, %v1879_v17  ;;  %v10357_v2 = vcombine.low %v1875_v44, %v1879_v17 }
 0xa3f   : > { %12072 = vst [vmem:[#allocation308_spill] sm:$0xff] %v10354_v16  ;;  %12073 = vst [vmem:[#allocation309_spill] sm:$0xff] %v10357_v2 }
 0xa40   : > { %4288 = vmatpush1.bf16.msra.mxu1 %v10327_v25 }
 0xa41   : > { %4289 = vmatprep.subr.bf16.mxu1 %v10330_v63 }
 0xa44   : > { %4290 = vmatpush1.bf16.msra.mxu1 %v10333_v22  ;;  %v10351_v22 = vcombine.low %v1867_v24, %v1871_v48 }
 0xa45   : > { %4291 = vmatprep.subr.bf16.mxu1 %v10336_v27  ;;  %v1883_v27 = vld [vmem:[#allocation17 + $0x608] sm:$0xff] }
 0xa46   : > { %v2748_v9 = vpop.f32.mrb[24].mxu1  ;;  %12071 = vst [vmem:[#allocation307_spill] sm:$0xff] %v10351_v22  ;;  %v10363_v48 = vcombine.low %v1883_v27, %v1887_v49 }
 0xa47   : > { %v2750_v25 = vpop.f32.mrb[25].mxu1  ;;  %v10345_v39 = vadd.f32 %v10278_v31, %v2748_v9  ;;  %v10360_v31 = vcombine.high %v1883_v27, %v1887_v49  ;;  %v1895_v9 = vld [vmem:[#allocation17 + $0x668] sm:$0xff] }
 0xa48   : > { %v2752_v26 = vpop.f32.mrb[26].mxu1  ;;  %v10348_v63 = vadd.f32 %v10283_v54, %v2750_v25  ;;  %4292 = vmatpush1.bf16.msra.mxu1 %v10339_v62  ;;  %v1891_v54 = vld [vmem:[#allocation17 + $0x648] sm:$0xff]  ;;  %12075 = vst [vmem:[#allocation311_spill] sm:$0xff] %v10363_v48  ;;  %v1880_v62 = vld [vmem:[#allocation17 + $0x5f0] sm:$0xff] }
 0xa49   : > { %v2753_v41 = vpop.f32.mrb[27].mxu1  ;;  %4293 = vmatprep.subr.bf16.mxu1 %v10342_v21  ;;  %12074 = vst [vmem:[#allocation310_spill] sm:$0xff] %v10360_v31  ;;  %v10366_v24 = vcombine.high %v1891_v54, %v1895_v9  ;;  %v1899_v25 = vld [vmem:[#allocation17 + $0x688] sm:$0xff]  ;;  %v10369_v17 = vcombine.low %v1891_v54, %v1895_v9 }
 0xa4a   : > { %v1903_v26 = vld [vmem:[#allocation17 + $0x6a8] sm:$0xff] }
 0xa4b   : > { %12076 = vst [vmem:[#allocation312_spill] sm:$0xff] %v10366_v24  ;;  %12077 = vst [vmem:[#allocation313_spill] sm:$0xff] %v10369_v17  ;;  %v10372_v44 = vcombine.high %v1899_v25, %v1903_v26  ;;  %v1907_v41 = vld [vmem:[#allocation17 + $0x6c8] sm:$0xff]  ;;  %v10375_v49 = vcombine.low %v1899_v25, %v1903_v26 }
 0xa4c   : > { %4294 = vmatpush1.bf16.msra.mxu1 %v10351_v22 }
 0xa4d   : > { %4295 = vmatprep.subr.bf16.mxu1 %v10354_v16  ;;  %12078 = vst [vmem:[#allocation314_spill] sm:$0xff] %v10372_v44  ;;  %v1911_v16 = vld [vmem:[#allocation17 + $0x6e8] sm:$0xff]  ;;  %12079 = vst [vmem:[#allocation315_spill] sm:$0xff] %v10375_v49 }
 0xa4e   : > { %v10378_v27 = vcombine.high %v1907_v41, %v1911_v16  ;;  %v10381_v54 = vcombine.low %v1907_v41, %v1911_v16  ;;  %v1931_v41 = vld [vmem:[#allocation17 + $0x788] sm:$0xff] }
 0xa50   : > { %4296 = vmatpush1.bf16.msra.mxu1 %v10357_v2  ;;  %12080 = vst [vmem:[#allocation316_spill] sm:$0xff] %v10378_v27  ;;  %v1919_v2 = vld [vmem:[#allocation17 + $0x728] sm:$0xff]  ;;  %12081 = vst [vmem:[#allocation317_spill] sm:$0xff] %v10381_v54 }
 0xa51   : > { %4297 = vmatprep.subr.bf16.mxu1 %v10360_v31  ;;  %v1915_v31 = vld [vmem:[#allocation17 + $0x708] sm:$0xff] }
 0xa52   : > { %v10384_v9 = vcombine.high %v1915_v31, %v1919_v2  ;;  %v10389_v25 = vcombine.low %v1915_v31, %v1919_v2  ;;  %v1939_v2 = vld [vmem:[#allocation17 + $0x7c8] sm:$0xff] }
 0xa53   : > { %v1943_v31 = vld [vmem:[#allocation17 + $0x7e8] sm:$0xff] }
 0xa54   : > { %4298 = vmatpush1.bf16.msra.mxu1 %v10363_v48  ;;  %12082 = vst [vmem:[#allocation318_spill] sm:$0xff] %v10384_v9  ;;  %v1927_v48 = vld [vmem:[#allocation17 + $0x768] sm:$0xff]  ;;  %12083 = vst [vmem:[#allocation319_spill] sm:$0xff] %v10389_v25 }
 0xa55   : > { %4299 = vmatprep.subr.bf16.mxu1 %v10366_v24  ;;  %v1923_v24 = vld [vmem:[#allocation17 + $0x748] sm:$0xff] }
 0xa58   : > { %4300 = vmatpush1.bf16.msra.mxu1 %v10369_v17  ;;  %v10397_v17 = vcombine.low %v1923_v24, %v1927_v48 }
 0xa59   : > { %4301 = vmatprep.subr.bf16.mxu1 %v10372_v44  ;;  %v10394_v44 = vcombine.high %v1923_v24, %v1927_v48  ;;  %v10409_v48 = vcombine.low %v1939_v2, %v1943_v31 }
 0xa5a   : > { %12085 = vst [vmem:[#allocation321_spill] sm:$0xff] %v10397_v17 }
 0xa5b   : > { %12084 = vst [vmem:[#allocation320_spill] sm:$0xff] %v10394_v44  ;;  %12089 = vst [vmem:[#allocation325_spill] sm:$0xff] %v10409_v48 }
 0xa5c   : > { %4302 = vmatpush1.bf16.msra.mxu1 %v10375_v49  ;;  %v1935_v49 = vld [vmem:[#allocation17 + $0x7a8] sm:$0xff] }
 0xa5d   : > { %4303 = vmatprep.subr.bf16.mxu1 %v10378_v27  ;;  %v10400_v21 = vcombine.high %v1931_v41, %v1935_v49 }
 0xa5f   : > { %v10386_v22 = vpop.f32.mrb[24].mxu0  ;;  %12086 = vst [vmem:[#allocation322_spill] sm:$0xff] %v10400_v21 }
 0xa60   : > { %4304 = vmatpush1.bf16.msra.mxu1 %v10381_v54  ;;  %v10391_v26 = vpop.f32.mrb[25].mxu0  ;;  %v10403_v54 = vcombine.low %v1931_v41, %v1935_v49 }
 0xa61   : > { %4305 = vmatprep.subr.bf16.mxu1 %v10384_v9  ;;  %v4278_v16 = vpop.f32.mrb[26].mxu0  ;;  %v1820_v9 = vld [vmem:[#allocation17 + $0x410] sm:$0xff] }
 0xa62   : > { %v4279_v27 = vpop.f32.mrb[27].mxu0  ;;  %12087 = vst [vmem:[#allocation323_spill] sm:$0xff] %v10403_v54  ;;  %v10406_v16 = vcombine.high %v1939_v2, %v1943_v31 }
 0xa63   : > { %v1824_v27 = vld [vmem:[#allocation17 + $0x430] sm:$0xff] }
 0xa64   : > { %4306 = vmatpush1.bf16.msra.mxu1 %v10389_v25  ;;  %12088 = vst [vmem:[#allocation324_spill] sm:$0xff] %v10406_v16  ;;  %v10412_v24 = vcombine.high %v1820_v9, %v1824_v27  ;;  %v1832_v25 = vld [vmem:[#allocation17 + $0x470] sm:$0xff]  ;;  %v10415_v49 = vcombine.low %v1820_v9, %v1824_v27 }
 0xa65   : > { %4307 = vmatprep.subr.bf16.mxu1 %v10394_v44  ;;  %v1828_v44 = vld [vmem:[#allocation17 + $0x450] sm:$0xff] }
 0xa66   : > { %12090 = vst [vmem:[#allocation326_spill] sm:$0xff] %v10412_v24  ;;  %12091 = vst [vmem:[#allocation327_spill] sm:$0xff] %v10415_v49  ;;  %v10418_v41 = vcombine.high %v1828_v44, %v1832_v25  ;;  %v10422_v2 = vcombine.low %v1828_v44, %v1832_v25  ;;  %v1844_v9 = vld [vmem:[#allocation17 + $0x4d0] sm:$0xff] }
 0xa67   : > { %v1848_v27 = vld [vmem:[#allocation17 + $0x4f0] sm:$0xff] }
 0xa68   : > { %4308 = vmatpush1.bf16.msra.mxu1 %v10397_v17  ;;  %12092 = vst [vmem:[#allocation328_spill] sm:$0xff] %v10418_v41  ;;  %v1840_v17 = vld [vmem:[#allocation17 + $0x4b0] sm:$0xff]  ;;  %12093 = vst [vmem:[#allocation329_spill] sm:$0xff] %v10422_v2  ;;  %v10435_v44 = vcombine.low %v1844_v9, %v1848_v27 }
 0xa69   : > { %4309 = vmatprep.subr.bf16.mxu1 %v10400_v21  ;;  %v1836_v21 = vld [vmem:[#allocation17 + $0x490] sm:$0xff] }
 0xa6a   : > { %v10426_v31 = vcombine.high %v1836_v21, %v1840_v17  ;;  %12097 = vst [vmem:[#allocation333_spill] sm:$0xff] %v10435_v44 }
 0xa6c   : > { %4310 = vmatpush1.bf16.msra.mxu1 %v10403_v54  ;;  %12094 = vst [vmem:[#allocation330_spill] sm:$0xff] %v10426_v31  ;;  %v1864_v54 = vld [vmem:[#allocation17 + $0x570] sm:$0xff] }
 0xa6d   : > { %4311 = vmatprep.subr.bf16.mxu1 %v10406_v16  ;;  %v1852_v16 = vld [vmem:[#allocation17 + $0x510] sm:$0xff] }
 0xa70   : > { %4312 = vmatpush1.bf16.msra.mxu1 %v10409_v48  ;;  %v10432_v48 = vcombine.high %v1844_v9, %v1848_v27 }
 0xa71   : > { %4363 = vmatprep.subr.bf16.mxu1 %v10412_v24  ;;  %v10429_v24 = vcombine.low %v1836_v21, %v1840_v17 }
 0xa72   : > { %12096 = vst [vmem:[#allocation332_spill] sm:$0xff] %v10432_v48 }
 0xa73   : > { %4314 = vmatmul.mubr.bf16.vlgmr.msra.gmra.mrb[40].mxu1 %v11862_v33  ;;  %12095 = vst [vmem:[#allocation331_spill] sm:$0xff] %v10429_v24 }
 0xa74   : > { %4364 = vmatpush1.bf16.msra.mxu1 %v10415_v49  ;;  %4395 = vmatprep.mubr.bf16.mxu1 %v11862_v33  ;;  %v1856_v49 = vld [vmem:[#allocation17 + $0x530] sm:$0xff] }
 0xa75   : > { %4365 = vmatprep.subr.bf16.mxu1 %v10418_v41  ;;  %v10438_v25 = vcombine.high %v1852_v16, %v1856_v49  ;;  %v1860_v41 = vld [vmem:[#allocation17 + $0x550] sm:$0xff]  ;;  %v10441_v21 = vcombine.low %v1852_v16, %v1856_v49 }
 0xa76   : > { %v10444_v17 = vcombine.high %v1860_v41, %v1864_v54  ;;  %v10447_v9 = vcombine.low %v1860_v41, %v1864_v54 }
 0xa77   : > { %12098 = vst [vmem:[#allocation334_spill] sm:$0xff] %v10438_v25  ;;  %12099 = vst [vmem:[#allocation335_spill] sm:$0xff] %v10441_v21 }
 0xa78   : > { %4366 = vmatpush1.bf16.msra.mxu1 %v10422_v2  ;;  %12100 = vst [vmem:[#allocation336_spill] sm:$0xff] %v10444_v17  ;;  %v1872_v2 = vld [vmem:[#allocation17 + $0x5b0] sm:$0xff]  ;;  %12101 = vst [vmem:[#allocation337_spill] sm:$0xff] %v10447_v9 }
 0xa79   : > { %4367 = vmatprep.subr.bf16.mxu1 %v10426_v31  ;;  %v1868_v31 = vld [vmem:[#allocation17 + $0x590] sm:$0xff] }
 0xa7a   : > { %v10450_v27 = vcombine.high %v1868_v31, %v1872_v2 }
 0xa7c   : > { %4368 = vmatpush1.bf16.msra.mxu1 %v10429_v24  ;;  %12102 = vst [vmem:[#allocation338_spill] sm:$0xff] %v10450_v27  ;;  %v1876_v24 = vld [vmem:[#allocation17 + $0x5d0] sm:$0xff] }
 0xa7d   : > { %4369 = vmatprep.subr.bf16.mxu1 %v10432_v48  ;;  %v10462_v41 = vcombine.high %v1876_v24, %v1880_v62  ;;  %v10465_v58 = vcombine.low %v1876_v24, %v1880_v62 }
 0xa7f   : > { %12104 = vst [vmem:[#allocation340_spill] sm:$0xff] %v10462_v41  ;;  %12105 = vst [vmem:[#allocation341_spill] sm:$0xff] %v10465_v58 }
 0xa80   : > { %4370 = vmatpush1.bf16.msra.mxu1 %v10435_v44 }
 0xa81   : > { %4371 = vmatprep.subr.bf16.mxu1 %v10438_v25 }
 0xa84   : > { %4372 = vmatpush1.bf16.msra.mxu1 %v10441_v21  ;;  %v10459_v21 = vcombine.low %v1868_v31, %v1872_v2 }
 0xa85   : > { %4373 = vmatprep.subr.bf16.mxu1 %v10444_v17  ;;  %v1884_v17 = vld [vmem:[#allocation17 + $0x610] sm:$0xff] }
 0xa86   : > { %v2789_v48 = vpop.f32.mrb[28].mxu1  ;;  %12103 = vst [vmem:[#allocation339_spill] sm:$0xff] %v10459_v21  ;;  %v10471_v2 = vcombine.low %v1884_v17, %v1888_v20 }
 0xa87   : > { %v2791_v44 = vpop.f32.mrb[29].mxu1  ;;  %v10453_v16 = vadd.f32 %v10386_v22, %v2789_v48  ;;  %v10468_v22 = vcombine.high %v1884_v17, %v1888_v20  ;;  %v1896_v48 = vld [vmem:[#allocation17 + $0x670] sm:$0xff] }
 0xa88   : > { %v2793_v49 = vpop.f32.mrb[30].mxu1  ;;  %v10456_v25 = vadd.f32 %v10391_v26, %v2791_v44  ;;  %4374 = vmatpush1.bf16.msra.mxu1 %v10447_v9  ;;  %v1892_v26 = vld [vmem:[#allocation17 + $0x650] sm:$0xff]  ;;  %12107 = vst [vmem:[#allocation343_spill] sm:$0xff] %v10471_v2  ;;  %v1897_v9 = vld [vmem:[#allocation17 + $0x678] sm:$0xff] }
 0xa89   : > { %v2794_v54 = vpop.f32.mrb[31].mxu1  ;;  %4375 = vmatprep.subr.bf16.mxu1 %v10450_v27  ;;  %12106 = vst [vmem:[#allocation342_spill] sm:$0xff] %v10468_v22  ;;  %v10474_v31 = vcombine.high %v1892_v26, %v1896_v48  ;;  %v1900_v44 = vld [vmem:[#allocation17 + $0x690] sm:$0xff]  ;;  %v10477_v62 = vcombine.low %v1892_v26, %v1896_v48 }
 0xa8a   : > { %v1904_v49 = vld [vmem:[#allocation17 + $0x6b0] sm:$0xff] }
 0xa8b   : > { %12108 = vst [vmem:[#allocation344_spill] sm:$0xff] %v10474_v31  ;;  %12109 = vst [vmem:[#allocation345_spill] sm:$0xff] %v10477_v62  ;;  %v10480_v24 = vcombine.high %v1900_v44, %v1904_v49  ;;  %v1908_v54 = vld [vmem:[#allocation17 + $0x6d0] sm:$0xff]  ;;  %v10483_v20 = vcombine.low %v1900_v44, %v1904_v49 }
 0xa8c   : > { %4376 = vmatpush1.bf16.msra.mxu1 %v10459_v21 }
 0xa8d   : > { %4377 = vmatprep.subr.bf16.mxu1 %v10462_v41  ;;  %12110 = vst [vmem:[#allocation346_spill] sm:$0xff] %v10480_v24  ;;  %v1912_v41 = vld [vmem:[#allocation17 + $0x6f0] sm:$0xff]  ;;  %12111 = vst [vmem:[#allocation347_spill] sm:$0xff] %v10483_v20 }
 0xa8e   : > { %v10486_v17 = vcombine.high %v1908_v54, %v1912_v41  ;;  %v10489_v26 = vcombine.low %v1908_v54, %v1912_v41 }
 0xa90   : > { %4378 = vmatpush1.bf16.msra.mxu1 %v10465_v58  ;;  %12112 = vst [vmem:[#allocation348_spill] sm:$0xff] %v10486_v17  ;;  %v1920_v58 = vld [vmem:[#allocation17 + $0x730] sm:$0xff]  ;;  %12113 = vst [vmem:[#allocation349_spill] sm:$0xff] %v10489_v26 }
 0xa91   : > { %4379 = vmatprep.subr.bf16.mxu1 %v10468_v22  ;;  %v1916_v22 = vld [vmem:[#allocation17 + $0x710] sm:$0xff] }
 0xa92   : > { %v10492_v48 = vcombine.high %v1916_v22, %v1920_v58  ;;  %v10495_v44 = vcombine.low %v1916_v22, %v1920_v58 }
 0xa94   : > { %4380 = vmatpush1.bf16.msra.mxu1 %v10471_v2  ;;  %12114 = vst [vmem:[#allocation350_spill] sm:$0xff] %v10492_v48  ;;  %v1928_v2 = vld [vmem:[#allocation17 + $0x770] sm:$0xff]  ;;  %12115 = vst [vmem:[#allocation351_spill] sm:$0xff] %v10495_v44 }
 0xa95   : > { %4381 = vmatprep.subr.bf16.mxu1 %v10474_v31  ;;  %v1924_v31 = vld [vmem:[#allocation17 + $0x750] sm:$0xff] }
 0xa98   : > { %4382 = vmatpush1.bf16.msra.mxu1 %v10477_v62  ;;  %v1936_v62 = vld [vmem:[#allocation17 + $0x7b0] sm:$0xff] }
 0xa99   : > { %4383 = vmatprep.subr.bf16.mxu1 %v10480_v24 }
 0xa9c   : > { %4384 = vmatpush1.bf16.msra.mxu1 %v10483_v20  ;;  %v10501_v20 = vcombine.high %v1924_v31, %v1928_v2 }
 0xa9d   : > { %4385 = vmatprep.subr.bf16.mxu1 %v10486_v17  ;;  %v1932_v17 = vld [vmem:[#allocation17 + $0x790] sm:$0xff] }
 0xa9e   : > { %12116 = vst [vmem:[#allocation352_spill] sm:$0xff] %v10501_v20  ;;  %v10510_v58 = vcombine.high %v1932_v17, %v1936_v62  ;;  %v10513_v22 = vcombine.low %v1932_v17, %v1936_v62 }
 0xa9f   : > { %v4356_v21 = vpop.f32.mrb[28].mxu0 }
 0xaa0   : > { %4386 = vmatpush1.bf16.msra.mxu1 %v10489_v26  ;;  %v10498_v49 = vadd.f32 %v4356_v21, %v10109_v3  ;;  %v4358_v24 = vpop.f32.mrb[29].mxu0  ;;  %v10507_v26 = vcombine.low %v1924_v31, %v1928_v2  ;;  %12118 = vst [vmem:[#allocation354_spill] sm:$0xff] %v10510_v58  ;;  %v1940_v3 = vld [vmem:[#allocation17 + $0x7d0] sm:$0xff]  ;;  %12119 = vst [vmem:[#allocation355_spill] sm:$0xff] %v10513_v22 }
 0xaa1   : > { %4387 = vmatprep.subr.bf16.mxu1 %v10492_v48  ;;  %v10504_v41 = vadd.f32 %v4358_v24, %v10114_v45  ;;  %v4360_v54 = vpop.f32.mrb[30].mxu0  ;;  %v1944_v21 = vld [vmem:[#allocation17 + $0x7f0] sm:$0xff]  ;;  %v1821_v24 = vld [vmem:[#allocation17 + $0x418] sm:$0xff] }
 0xaa2   : > { %v4361_v27 = vpop.f32.mrb[31].mxu0  ;;  %12117 = vst [vmem:[#allocation353_spill] sm:$0xff] %v10507_v26  ;;  %v10516_v45 = vcombine.high %v1940_v3, %v1944_v21  ;;  %v10519_v2 = vcombine.low %v1940_v3, %v1944_v21  ;;  %v1829_v54 = vld [vmem:[#allocation17 + $0x458] sm:$0xff] }
 0xaa3   : > { %v1825_v27 = vld [vmem:[#allocation17 + $0x438] sm:$0xff] }
 0xaa4   : > { %4388 = vmatpush1.bf16.msra.mxu1 %v10495_v44  ;;  %12120 = vst [vmem:[#allocation356_spill] sm:$0xff] %v10516_v45  ;;  %12121 = vst [vmem:[#allocation357_spill] sm:$0xff] %v10519_v2  ;;  %v10522_v31 = vcombine.high %v1821_v24, %v1825_v27  ;;  %v10525_v62 = vcombine.low %v1821_v24, %v1825_v27  ;;  %v1845_v24 = vld [vmem:[#allocation17 + $0x4d8] sm:$0xff] }
 0xaa5   : > { %4389 = vmatprep.subr.bf16.mxu1 %v10501_v20  ;;  %v1833_v20 = vld [vmem:[#allocation17 + $0x478] sm:$0xff] }
 0xaa6   : > { %12122 = vst [vmem:[#allocation358_spill] sm:$0xff] %v10522_v31  ;;  %12123 = vst [vmem:[#allocation359_spill] sm:$0xff] %v10525_v62  ;;  %v10528_v17 = vcombine.high %v1829_v54, %v1833_v20  ;;  %v10532_v3 = vcombine.low %v1829_v54, %v1833_v20  ;;  %v1849_v27 = vld [vmem:[#allocation17 + $0x4f8] sm:$0xff] }
 0xaa7   : > { %v10545_v20 = vcombine.low %v1845_v24, %v1849_v27  ;;  %v1881_v44 = vld [vmem:[#allocation17 + $0x5f8] sm:$0xff] }
 0xaa8   : > { %4390 = vmatpush1.bf16.msra.mxu1 %v10507_v26  ;;  %12124 = vst [vmem:[#allocation360_spill] sm:$0xff] %v10528_v17  ;;  %v1841_v26 = vld [vmem:[#allocation17 + $0x4b8] sm:$0xff]  ;;  %12125 = vst [vmem:[#allocation361_spill] sm:$0xff] %v10532_v3 }
 0xaa9   : > { %4391 = vmatprep.subr.bf16.mxu1 %v10510_v58  ;;  %v1837_v58 = vld [vmem:[#allocation17 + $0x498] sm:$0xff]  ;;  %12129 = vst [vmem:[#allocation365_spill] sm:$0xff] %v10545_v20 }
 0xaaa   : > { %v10536_v21 = vcombine.high %v1837_v58, %v1841_v26 }
 0xaac   : > { %4392 = vmatpush1.bf16.msra.mxu1 %v10513_v22  ;;  %12126 = vst [vmem:[#allocation362_spill] sm:$0xff] %v10536_v21  ;;  %v1865_v22 = vld [vmem:[#allocation17 + $0x578] sm:$0xff] }
 0xaad   : > { %4393 = vmatprep.subr.bf16.mxu1 %v10516_v45  ;;  %v1853_v45 = vld [vmem:[#allocation17 + $0x518] sm:$0xff] }
 0xab0   : > { %4394 = vmatpush1.bf16.msra.mxu1 %v10519_v2  ;;  %v10542_v2 = vcombine.high %v1845_v24, %v1849_v27 }
 0xab1   : > { %4445 = vmatprep.subr.bf16.mxu1 %v10522_v31  ;;  %v10539_v31 = vcombine.low %v1837_v58, %v1841_v26 }
 0xab2   : > { %12128 = vst [vmem:[#allocation364_spill] sm:$0xff] %v10542_v2 }
 0xab3   : > { %4396 = vmatmul.mubr.bf16.vlgmr.msra.gmra.mrb[44].mxu1 %v11862_v33  ;;  %12127 = vst [vmem:[#allocation363_spill] sm:$0xff] %v10539_v31 }
 0xab4   : > { %4446 = vmatpush1.bf16.msra.mxu1 %v10525_v62  ;;  %4477 = vmatprep.mubr.bf16.mxu1 %v11862_v33  ;;  %v1857_v62 = vld [vmem:[#allocation17 + $0x538] sm:$0xff] }
 0xab5   : > { %4447 = vmatprep.subr.bf16.mxu1 %v10528_v17  ;;  %v10548_v54 = vcombine.high %v1853_v45, %v1857_v62  ;;  %v1861_v17 = vld [vmem:[#allocation17 + $0x558] sm:$0xff]  ;;  %v10551_v26 = vcombine.low %v1853_v45, %v1857_v62 }
 0xab6   : > { %v10554_v58 = vcombine.high %v1861_v17, %v1865_v22  ;;  %v10557_v24 = vcombine.low %v1861_v17, %v1865_v22  ;;  %v1885_v22 = vld [vmem:[#allocation17 + $0x618] sm:$0xff] }
 0xab7   : > { %12130 = vst [vmem:[#allocation366_spill] sm:$0xff] %v10548_v54  ;;  %12131 = vst [vmem:[#allocation367_spill] sm:$0xff] %v10551_v26  ;;  %v1889_v17 = vld [vmem:[#allocation17 + $0x638] sm:$0xff] }
 0xab8   : > { %4448 = vmatpush1.bf16.msra.mxu1 %v10532_v3  ;;  %12132 = vst [vmem:[#allocation368_spill] sm:$0xff] %v10554_v58  ;;  %v1873_v3 = vld [vmem:[#allocation17 + $0x5b8] sm:$0xff]  ;;  %12133 = vst [vmem:[#allocation369_spill] sm:$0xff] %v10557_v24 }
 0xab9   : > { %4449 = vmatprep.subr.bf16.mxu1 %v10536_v21  ;;  %v1869_v21 = vld [vmem:[#allocation17 + $0x598] sm:$0xff] }
 0xaba   : > { %v10560_v27 = vcombine.high %v1869_v21, %v1873_v3  ;;  %v10563_v62 = vcombine.low %v1869_v21, %v1873_v3  ;;  %v10575_v3 = vcombine.low %v1885_v22, %v1889_v17 }
 0xabc   : > { %4450 = vmatpush1.bf16.msra.mxu1 %v10539_v31  ;;  %12134 = vst [vmem:[#allocation370_spill] sm:$0xff] %v10560_v27  ;;  %v1877_v31 = vld [vmem:[#allocation17 + $0x5d8] sm:$0xff]  ;;  %12135 = vst [vmem:[#allocation371_spill] sm:$0xff] %v10563_v62 }
 0xabd   : > { %4451 = vmatprep.subr.bf16.mxu1 %v10542_v2  ;;  %v10566_v48 = vcombine.high %v1877_v31, %v1881_v44  ;;  %12139 = vst [vmem:[#allocation375_spill] sm:$0xff] %v10575_v3 }
 0xabf   : > { %12136 = vst [vmem:[#allocation372_spill] sm:$0xff] %v10566_v48 }
 0xac0   : > { %4452 = vmatpush1.bf16.msra.mxu1 %v10545_v20 }
 0xac1   : > { %4453 = vmatprep.subr.bf16.mxu1 %v10548_v54 }
 0xac4   : > { %4454 = vmatpush1.bf16.msra.mxu1 %v10551_v26  ;;  %v10572_v26 = vcombine.high %v1885_v22, %v1889_v17 }
 0xac5   : > { %4455 = vmatprep.subr.bf16.mxu1 %v10554_v58  ;;  %v10569_v58 = vcombine.low %v1877_v31, %v1881_v44 }
 0xac6   : > { %v2871_v2 = vpop.f32.mrb[32].mxu1  ;;  %12138 = vst [vmem:[#allocation374_spill] sm:$0xff] %v10572_v26 }
 0xac7   : > { %v2873_v20 = vpop.f32.mrb[33].mxu1  ;;  %12137 = vst [vmem:[#allocation373_spill] sm:$0xff] %v10569_v58 }
 0xac8   : > { %v2875_v45 = vpop.f32.mrb[34].mxu1  ;;  %4456 = vmatpush1.bf16.msra.mxu1 %v10557_v24 }
 0xac9   : > { %v2876_v54 = vpop.f32.mrb[35].mxu1  ;;  %4457 = vmatprep.subr.bf16.mxu1 %v10560_v27  ;;  %v1893_v45 = vld [vmem:[#allocation17 + $0x658] sm:$0xff] }
 0xaca   : > { %v10578_v21 = vcombine.high %v1893_v45, %v1897_v9  ;;  %v1901_v54 = vld [vmem:[#allocation17 + $0x698] sm:$0xff]  ;;  %v10581_v44 = vcombine.low %v1893_v45, %v1897_v9 }
 0xacb   : > { %v1905_v27 = vld [vmem:[#allocation17 + $0x6b8] sm:$0xff] }
 0xacc   : > { %4458 = vmatpush1.bf16.msra.mxu1 %v10563_v62  ;;  %12140 = vst [vmem:[#allocation376_spill] sm:$0xff] %v10578_v21  ;;  %12141 = vst [vmem:[#allocation377_spill] sm:$0xff] %v10581_v44  ;;  %v10584_v31 = vcombine.high %v1901_v54, %v1905_v27  ;;  %v1913_v62 = vld [vmem:[#allocation17 + $0x6f8] sm:$0xff]  ;;  %v10587_v22 = vcombine.low %v1901_v54, %v1905_v27 }
 0xacd   : > { %4459 = vmatprep.subr.bf16.mxu1 %v10566_v48  ;;  %v1909_v48 = vld [vmem:[#allocation17 + $0x6d8] sm:$0xff] }
 0xace   : > { %12142 = vst [vmem:[#allocation378_spill] sm:$0xff] %v10584_v31  ;;  %12143 = vst [vmem:[#allocation379_spill] sm:$0xff] %v10587_v22  ;;  %v10590_v17 = vcombine.high %v1909_v48, %v1913_v62  ;;  %v10593_v9 = vcombine.low %v1909_v48, %v1913_v62 }
 0xad0   : > { %4460 = vmatpush1.bf16.msra.mxu1 %v10569_v58  ;;  %12144 = vst [vmem:[#allocation380_spill] sm:$0xff] %v10590_v17  ;;  %v1921_v58 = vld [vmem:[#allocation17 + $0x738] sm:$0xff] }
 0xad1   : > { %4461 = vmatprep.subr.bf16.mxu1 %v10572_v26  ;;  %v1917_v26 = vld [vmem:[#allocation17 + $0x718] sm:$0xff] }
 0xad2   : > { %v10596_v45 = vcombine.high %v1917_v26, %v1921_v58  ;;  %v10601_v54 = vcombine.low %v1917_v26, %v1921_v58  ;;  %v1941_v26 = vld [vmem:[#allocation17 + $0x7d8] sm:$0xff] }
 0xad3   : > { %v1945_v58 = vld [vmem:[#allocation17 + $0x7f8] sm:$0xff] }
 0xad4   : > { %4462 = vmatpush1.bf16.msra.mxu1 %v10575_v3  ;;  %v1929_v3 = vld [vmem:[#allocation17 + $0x778] sm:$0xff]  ;;  %12145 = vst [vmem:[#allocation381_spill] sm:$0xff] %v10601_v54 }
 0xad5   : > { %4463 = vmatprep.subr.bf16.mxu1 %v10578_v21  ;;  %v1925_v21 = vld [vmem:[#allocation17 + $0x758] sm:$0xff] }
 0xad6   : > { %v10606_v48 = vcombine.high %v1925_v21, %v1929_v3  ;;  %v10609_v57 = vcombine.low %v1925_v21, %v1929_v3 }
 0xad8   : > { %4464 = vmatpush1.bf16.msra.mxu1 %v10581_v44  ;;  %12146 = vst [vmem:[#allocation382_spill] sm:$0xff] %v10606_v48  ;;  %12147 = vst [vmem:[#allocation383_spill] sm:$0xff] %v10609_v57 }
 0xad9   : > { %4465 = vmatprep.subr.bf16.mxu1 %v10584_v31 }
 0xadc   : > { %4466 = vmatpush1.bf16.msra.mxu1 %v10587_v22  ;;  %v1937_v22 = vld [vmem:[#allocation17 + $0x7b8] sm:$0xff] }
 0xadd   : > { %4467 = vmatprep.subr.bf16.mxu1 %v10590_v17  ;;  %v1933_v17 = vld [vmem:[#allocation17 + $0x798] sm:$0xff] }
 0xadf   : > { %v4438_v24 = vpop.f32.mrb[32].mxu0 }
 0xae0   : > { %v10598_v44 = vadd.f32 %v4438_v24, %v2871_v2  ;;  %v4440_v27 = vpop.f32.mrb[33].mxu0  ;;  %4468 = vmatpush1.bf16.msra.mxu1 %v10593_v9  ;;  %v10612_v2 = vcombine.high %v1933_v17, %v1937_v22  ;;  %v10618_v24 = vcombine.high %v1941_v26, %v1945_v58 }
 0xae1   : > { %v10603_v31 = vadd.f32 %v4440_v27, %v2873_v20  ;;  %4469 = vmatprep.subr.bf16.mxu1 %v10596_v45  ;;  %v4442_v62 = vpop.f32.mrb[34].mxu0  ;;  %v10615_v20 = vcombine.low %v1933_v17, %v1937_v22 }
 0xae2   : > { %v4443_v29 = vpop.f32.mrb[35].mxu0  ;;  %12148 = vst [vmem:[#allocation384_spill] sm:$0xff] %v10612_v2  ;;  %12150 = vst [vmem:[#allocation386_spill] sm:$0xff] %v10618_v24 }
 0xae3   : > { %12149 = vst [vmem:[#allocation385_spill] sm:$0xff] %v10615_v20  ;;  %v10621_v29 = vcombine.low %v1941_v26, %v1945_v58 }
 0xae4   : > { %4470 = vmatpush1.bf16.msra.mxu1 %v10601_v54 }
 0xae5   : > { %4471 = vmatprep.subr.bf16.mxu1 %v10606_v48  ;;  %12151 = vst [vmem:[#allocation387_spill] sm:$0xff] %v10621_v29 }
 0xae8   : > { %4472 = vmatpush1.bf16.msra.mxu1 %v10609_v57 }
 0xae9   : > { %4473 = vmatprep.subr.bf16.mxu1 %v10612_v2  ;;  %v4488_v2 = vlaneseq }
 0xaeb   : > { %v10636_v57 = vshrl.u32 %v4488_v2, 7 }
 0xaec   : > { %4474 = vmatpush1.bf16.msra.mxu1 %v10615_v20 }
 0xaed   : > { %4475 = vmatprep.subr.bf16.mxu1 %v10618_v24 }
 0xaf0   : > { %4476 = vmatpush1.bf16.msra.mxu1 %v10621_v29 }
 0xaf1   : > { %4643 = vmatprep.subr.bf16.mxu1 %v9920_v13 }
 0xaf3   : > { %4478 = vmatmul.mubr.bf16.vlgmr.msra.gmra.mrb[48].mxu1 %v11862_v33 }
 0xaf4   : > { %4644 = vmatpush1.bf16.msra.mxu1 %v9399_v4  ;;  %4675 = vmatprep.mubr.bf16.mxu1 %v11862_v33 }
 0xaf5   : > { %4645 = vmatprep.subr.bf16.mxu1 %v10236_v11 }
 0xaf8   : > { %4646 = vmatpush1.bf16.msra.mxu1 %v9394_v0  ;;  %v4486_v0 = vld [vmem:[#allocation20] sm:$0xff] }
 0xaf9   : > { %4690 = vmatprep.subr.bf16.mxu1 %v9412_v12  ;;  %v11724_v12 = vsub.s32 0, %v10636_v57 }
 0xb06   : > { %v4233_v3 = vpop.f32.mrb[36].mxu1 }
 0xb07   : > { %v4234_v21 = vadd.f32 %v4233_v3, %v10345_v39  ;;  %v4235_v22 = vpop.f32.mrb[37].mxu1  ;;  %v11726_v39 = vsub.s32 1, %v10636_v57  ;;  %v4502_v3 = vsub.s32 3, %v10636_v57 }
 0xb08   : > { %v4236_v17 = vadd.f32 %v4235_v22, %v10348_v63  ;;  %v4237_v27 = vpop.f32.mrb[38].mxu1  ;;  %v4498_v63 = vsub.s32 2, %v10636_v57 }
 0xb09   : > { %v4238_v62 = vpop.f32.mrb[39].mxu1  ;;  %v10652_v2 = vrot.slane %v4486_v0, %v4502_v3  ;;  %v4506_v3 = vsub.s32 4, %v10636_v57 }
 0xb0b   : > { %12154 = vst [vmem:[#allocation390_spill] sm:$0xff] %v10652_v2 }
 0xb46   : > { %v4315_v26 = vpop.f32.mrb[40].mxu1 }
 0xb47   : > { %v4316_v58 = vadd.f32 %v4315_v26, %v10453_v16  ;;  %v4317_v29 = vpop.f32.mrb[41].mxu1  ;;  %v10644_v16 = vrot.slane %v4486_v0, %v11724_v12 }
 0xb48   : > { %v4318_v33 = vadd.f32 %v4317_v29, %v10456_v25  ;;  %v4319_v24 = vpop.f32.mrb[42].mxu1  ;;  %v10648_v25 = vrot.slane %v4486_v0, %v11726_v39 }
 0xb49   : > { %v4320_v20 = vpop.f32.mrb[43].mxu1  ;;  %v4528_v24 = vadd.f32 %v10644_v16, %v4234_v21  ;;  %v4510_v21 = vsub.s32 5, %v10636_v57 }
 0xb4a   : > { %12152 = vst [vmem:[#allocation388_spill] sm:$0xff] %v10648_v25  ;;  %v10650_v20 = vrot.slane %v4486_v0, %v4498_v63  ;;  %v4529_v29 = vadd.f32 %v10648_v25, %v4236_v17  ;;  %v4531_v27 = vadd.f32 %v10652_v2, %v4318_v33  ;;  %v10660_v33 = vrot.slane %v4486_v0, %v4506_v3 }
 0xb4b   : > { %v7325_v62 = vmul.f32 -1.442695, %v4528_v24 }
 0xb4c   : > { %12153 = vst [vmem:[#allocation389_spill] sm:$0xff] %v10650_v20  ;;  %v4530_v22 = vadd.f32 %v10650_v20, %v4316_v58  ;;  %v7326_v26 = vmul.f32 -1.442695, %v4529_v29  ;;  %v7328_v48 = vmul.f32 -1.442695, %v4531_v27 }
 0xb4d   : > { %8131 = vpow2.f32 %v7325_v62 }
 0xb4e   : > { %v7327_v12 = vmul.f32 -1.442695, %v4530_v22  ;;  %8133 = vpow2.f32 %v7326_v26  ;;  %v10662_v22 = vrot.slane %v4486_v0, %v4510_v21 }
 0xb50   : > { %8135 = vpow2.f32 %v7327_v12 }
 0xb51   : > { %8137 = vpow2.f32 %v7328_v48 }
 0xb57   : > { %v8132_v63 = vpop.eup %8131 }
 0xb58   : > { %v8134_v39 = vpop.eup %8133  ;;  %v4542_v25 = vadd.f32 1.0, %v8132_v63 }
 0xb59   : > { %v4543_v58 = vadd.f32 1.0, %v8134_v39 }
 0xb5a   : > { %v8136_v54 = vpop.eup %8135  ;;  %8139 = vrcp.f32 %v4542_v25 }
 0xb5b   : > { %v8138_v17 = vpop.eup %8137  ;;  %v4554_v20 = vadd.f32 1.0, %v8136_v54  ;;  %8141 = vrcp.f32 %v4543_v58 }
 0xb5c   : > { %v4555_v24 = vadd.f32 1.0, %v8138_v17 }
 0xb5d   : > { %8143 = vrcp.f32 %v4554_v20 }
 0xb5e   : > { %8145 = vrcp.f32 %v4555_v24  ;;  %v4514_v24 = vsub.s32 6, %v10636_v57 }
 0xb64   : > { %v8140_v39 = vpop.eup %8139 }
 0xb65   : > { %v8142_v3 = vpop.eup %8141 }
 0xb67   : > { %v8144_v21 = vpop.eup %8143 }
 0xb68   : > { %v8146_v25 = vpop.eup %8145 }
 0xb69   : > { %v4575_v2 = vmul.f32 0.0, %v8146_v25 }
 0xb86   : > { %v4397_v29 = vpop.f32.mrb[44].mxu1 }
 0xb87   : > { %v4398_v48 = vadd.f32 %v4397_v29, %v10498_v49  ;;  %v4399_v12 = vpop.f32.mrb[45].mxu1  ;;  %v4574_v29 = vmul.f32 0.0, %v8144_v21 }
 0xb88   : > { %v4400_v27 = vadd.f32 %v4399_v12, %v10504_v41  ;;  %v4401_v62 = vpop.f32.mrb[46].mxu1 }
 0xb89   : > { %v4532_v26 = vadd.f32 %v10660_v33, %v4398_v48  ;;  %v4402_v63 = vpop.f32.mrb[47].mxu1  ;;  %v4518_v48 = vsub.s32 7, %v10636_v57 }
 0xb8a   : > { %v4533_v54 = vadd.f32 %v10662_v22, %v4400_v27  ;;  %v10674_v27 = vrot.slane %v4486_v0, %v4514_v24 }
 0xb8b   : > { %8147 = vtanh.f32 %v4532_v26  ;;  %v10676_v26 = vrot.slane %v4486_v0, %v4518_v48 }
 0xb8c   : > { %8149 = vtanh.f32 %v4533_v54 }
 0xb95   : > { %v8148_v17 = vpop.eup %8147 }
 0xb96   : > { %v8150_v49 = vpop.eup %8149  ;;  %v4576_v58 = vmul.f32 %v8148_v17, %v8140_v39 }
 0xb97   : > { %v4577_v41 = vmul.f32 %v8150_v49, %v8142_v3 }
 0xb98   : > { %v10668_v12 = vadd.f32 %v4576_v58, %v4574_v29 }
 0xb99   : > { %v10670_v20 = vadd.f32 %v4577_v41, %v4575_v2 }
 0xbc6   : > { %v4479_v62 = vpop.f32.mrb[48].mxu1 }
 0xbc7   : > { %v4480_v63 = vadd.f32 %v4479_v62, %v10598_v44  ;;  %v4481_v54 = vpop.f32.mrb[49].mxu1 }
 0xbc8   : > { %v4482_v39 = vadd.f32 %v4481_v54, %v10603_v31  ;;  %v4483_v21 = vpop.f32.mrb[50].mxu1 }
 0xbc9   : > { %v4534_v3 = vadd.f32 %v10674_v27, %v4480_v63  ;;  %v4484_v25 = vpop.f32.mrb[51].mxu1  ;;  %v12188_v21 = vld [vmem:[#allocation256_spill] sm:$0xff] }
 0xbca   : > { %v4535_v2 = vadd.f32 %v10676_v26, %v4482_v39  ;;  %v12190_v25 = vld [vmem:[#allocation260_spill] sm:$0xff] }
 0xbcb   : > { %v7329_v17 = vmul.f32 -1.442695, %v4534_v3  ;;  %v12189_v3 = vld [vmem:[#allocation258_spill] sm:$0xff] }
 0xbcc   : > { %v7330_v49 = vmul.f32 -1.442695, %v4535_v2  ;;  %v12191_v2 = vld [vmem:[#allocation262_spill] sm:$0xff] }
 0xbcd   : > { %8151 = vpow2.f32 %v7329_v17  ;;  %v12192_v17 = vld [vmem:[#allocation264_spill] sm:$0xff] }
 0xbce   : > { %8153 = vpow2.f32 %v7330_v49  ;;  %v12193_v49 = vld [vmem:[#allocation266_spill] sm:$0xff] }
 0xbcf   : > { %8155 = vtanh.f32 %v10668_v12 }
 0xbd0   : > { %8157 = vtanh.f32 %v10670_v20 }
 0xbd7   : > { %v8152_v29 = vpop.eup %8151 }
 0xbd8   : > { %v8154_v58 = vpop.eup %8153  ;;  %v4568_v0 = vadd.f32 1.0, %v8152_v29  ;;  %v12194_v29 = vld [vmem:[#allocation268_spill] sm:$0xff] }
 0xbd9   : > { %v4569_v44 = vadd.f32 1.0, %v8154_v58  ;;  %v8156_v31 = vpop.eup %8155  ;;  %v12195_v58 = vld [vmem:[#allocation270_spill] sm:$0xff] }
 0xbda   : > { %8159 = vrcp.f32 %v4568_v0  ;;  %v8158_v41 = vpop.eup %8157  ;;  %v12196_v0 = vld [vmem:[#allocation272_spill] sm:$0xff] }
 0xbdb   : > { %8161 = vrcp.f32 %v4569_v44  ;;  %v12197_v44 = vld [vmem:[#allocation274_spill] sm:$0xff] }
 0xbe4   : > { %v8160_v24 = vpop.eup %8159 }
 0xbe5   : > { %v8162_v48 = vpop.eup %8161  ;;  %v4582_v62 = vmul.f32 %v8160_v24, %v8156_v31  ;;  %v12198_v31 = vld [vmem:[#allocation275_spill] sm:$0xff]  ;;  %v12200_v24 = vld [vmem:[#allocation277_spill] sm:$0xff] }
 0xbe6   : > { %v4583_v63 = vmul.f32 %v8162_v48, %v8158_v41  ;;  %v12199_v41 = vld [vmem:[#allocation276_spill] sm:$0xff]  ;;  %v12201_v48 = vld [vmem:[#allocation278_spill] sm:$0xff] }
 0xbe7   : > { %v10686_v39 = vpack.c.bf16 %v4582_v62, %v4582_v62  ;;  %v12202_v62 = vld [vmem:[#allocation279_spill] sm:$0xff] }
 0xbe8   : > { %v10684_v54 = vpack.c.bf16 %v4583_v63, %v4583_v63  ;;  %v12203_v63 = vld [vmem:[#allocation280_spill] sm:$0xff] }
 0xbea   : > { %4618 = vmatprep.mubr.bf16.mxu0 %v10684_v54 }
 0xbeb   : > { %4619 = vmatmul.mubr.bf16.vlgmr.msra.gmra.mrb[36].mxu0 %v10686_v39 }
 0xbec   : > { %4732 = vmatpush1.bf16.msra.mxu0 %v9764_v19  ;;  %4763 = vmatprep.mubr.bf16.mxu0 %v10684_v54  ;;  %v12155_v19 = vld [vmem:[#allocation190_spill] sm:$0xff] }
 0xbed   : > { %4733 = vmatprep.subr.bf16.mxu0 %v9770_v59  ;;  %v12156_v59 = vld [vmem:[#allocation192_spill] sm:$0xff] }
 0xbf0   : > { %4734 = vmatpush1.bf16.msra.mxu0 %v9777_v14  ;;  %v12157_v14 = vld [vmem:[#allocation194_spill] sm:$0xff] }
 0xbf1   : > { %4735 = vmatprep.subr.bf16.mxu0 %v9784_v55  ;;  %v12158_v55 = vld [vmem:[#allocation196_spill] sm:$0xff] }
 0xbf4   : > { %4736 = vmatpush1.bf16.msra.mxu0 %v9790_v6  ;;  %v12159_v6 = vld [vmem:[#allocation198_spill] sm:$0xff] }
 0xbf5   : > { %4737 = vmatprep.subr.bf16.mxu0 %v9796_v51  ;;  %v12160_v51 = vld [vmem:[#allocation200_spill] sm:$0xff] }
 0xbf8   : > { %4738 = vmatpush1.bf16.msra.mxu0 %v9802_v1  ;;  %v12161_v1 = vld [vmem:[#allocation202_spill] sm:$0xff] }
 0xbf9   : > { %4739 = vmatprep.subr.bf16.mxu0 %v9808_v36  ;;  %v12162_v36 = vld [vmem:[#allocation204_spill] sm:$0xff] }
 0xbfc   : > { %4740 = vmatpush1.bf16.msra.mxu0 %v9814_v60  ;;  %v12163_v60 = vld [vmem:[#allocation206_spill] sm:$0xff] }
 0xbfd   : > { %4741 = vmatprep.subr.bf16.mxu0 %v9820_v46  ;;  %v12164_v46 = vld [vmem:[#allocation208_spill] sm:$0xff] }
 0xc00   : > { %4742 = vmatpush1.bf16.msra.mxu0 %v9826_v56  ;;  %v12165_v56 = vld [vmem:[#allocation210_spill] sm:$0xff] }
 0xc01   : > { %4743 = vmatprep.subr.bf16.mxu0 %v9832_v42  ;;  %v12166_v42 = vld [vmem:[#allocation212_spill] sm:$0xff] }
 0xc04   : > { %4744 = vmatpush1.bf16.msra.mxu0 %v9838_v52  ;;  %v12167_v52 = vld [vmem:[#allocation214_spill] sm:$0xff] }
 0xc05   : > { %4745 = vmatprep.subr.bf16.mxu0 %v9844_v15  ;;  %v12168_v15 = vld [vmem:[#allocation216_spill] sm:$0xff] }
 0xc08   : > { %4746 = vmatpush1.bf16.msra.mxu0 %v9851_v38  ;;  %v12169_v38 = vld [vmem:[#allocation218_spill] sm:$0xff] }
 0xc09   : > { %4747 = vmatprep.subr.bf16.mxu0 %v9857_v30  ;;  %v12170_v30 = vld [vmem:[#allocation220_spill] sm:$0xff] }
 0xc0c   : > { %4748 = vmatpush1.bf16.msra.mxu0 %v9864_v47  ;;  %v12171_v47 = vld [vmem:[#allocation222_spill] sm:$0xff] }
 0xc0d   : > { %4749 = vmatprep.subr.bf16.mxu0 %v9870_v8  ;;  %v12172_v8 = vld [vmem:[#allocation224_spill] sm:$0xff] }
 0xc10   : > { %4750 = vmatpush1.bf16.msra.mxu0 %v9876_v43  ;;  %v12173_v43 = vld [vmem:[#allocation226_spill] sm:$0xff] }
 0xc11   : > { %4751 = vmatprep.subr.bf16.mxu0 %v9882_v23  ;;  %v12174_v23 = vld [vmem:[#allocation228_spill] sm:$0xff] }
 0xc14   : > { %4752 = vmatpush1.bf16.msra.mxu0 %v9888_v35  ;;  %v12175_v35 = vld [vmem:[#allocation230_spill] sm:$0xff] }
 0xc15   : > { %4753 = vmatprep.subr.bf16.mxu0 %v9894_v28  ;;  %v12176_v28 = vld [vmem:[#allocation232_spill] sm:$0xff] }
 0xc18   : > { %4754 = vmatpush1.bf16.msra.mxu0 %v9900_v32  ;;  %v12178_v32 = vld [vmem:[#allocation236_spill] sm:$0xff] }
 0xc19   : > { %4755 = vmatprep.subr.bf16.mxu0 %v9906_v40  ;;  %v12180_v40 = vld [vmem:[#allocation240_spill] sm:$0xff] }
 0xc1c   : > { %4756 = vmatpush1.bf16.msra.mxu0 %v9912_v10  ;;  %v12181_v10 = vld [vmem:[#allocation242_spill] sm:$0xff] }
 0xc1d   : > { %4757 = vmatprep.subr.bf16.mxu0 %v9918_v37  ;;  %v12177_v37 = vld [vmem:[#allocation234_spill] sm:$0xff] }
 0xc20   : > { %4758 = vmatpush1.bf16.msra.mxu0 %v9926_v18  ;;  %v12179_v18 = vld [vmem:[#allocation238_spill] sm:$0xff] }
 0xc21   : > { %4759 = vmatprep.subr.bf16.mxu0 %v9932_v61  ;;  %v12182_v61 = vld [vmem:[#allocation244_spill] sm:$0xff] }
 0xc24   : > { %4760 = vmatpush1.bf16.msra.mxu0 %v9938_v5  ;;  %v12183_v5 = vld [vmem:[#allocation246_spill] sm:$0xff] }
 0xc25   : > { %4761 = vmatprep.subr.bf16.mxu0 %v9944_v34  ;;  %v12184_v34 = vld [vmem:[#allocation248_spill] sm:$0xff] }
 0xc28   : > { %4762 = vmatpush1.bf16.msra.mxu0 %v9950_v50  ;;  %v12185_v50 = vld [vmem:[#allocation250_spill] sm:$0xff] }
 0xc29   : > { %4813 = vmatprep.subr.bf16.mxu0 %v9956_v7  ;;  %v12186_v7 = vld [vmem:[#allocation252_spill] sm:$0xff] }
 0xc2b   : > { %4764 = vmatmul.mubr.bf16.vlgmr.msra.gmra.mrb[40].mxu0 %v10686_v39 }
 0xc2c   : > { %4814 = vmatpush1.bf16.msra.mxu0 %v9962_v53  ;;  %4845 = vmatprep.mubr.bf16.mxu0 %v10684_v54  ;;  %v12187_v53 = vld [vmem:[#allocation254_spill] sm:$0xff] }
 0xc2d   : > { %4815 = vmatprep.subr.bf16.mxu0 %v12155_v19  ;;  %v12204_v19 = vld [vmem:[#allocation281_spill] sm:$0xff] }
 0xc30   : > { %4816 = vmatpush1.bf16.msra.mxu0 %v12156_v59  ;;  %v12205_v59 = vld [vmem:[#allocation282_spill] sm:$0xff] }
 0xc31   : > { %4817 = vmatprep.subr.bf16.mxu0 %v12157_v14  ;;  %v12206_v14 = vld [vmem:[#allocation283_spill] sm:$0xff] }
 0xc34   : > { %4818 = vmatpush1.bf16.msra.mxu0 %v12158_v55  ;;  %v12207_v55 = vld [vmem:[#allocation284_spill] sm:$0xff] }
 0xc35   : > { %4819 = vmatprep.subr.bf16.mxu0 %v12159_v6  ;;  %v12208_v6 = vld [vmem:[#allocation285_spill] sm:$0xff] }
 0xc38   : > { %4820 = vmatpush1.bf16.msra.mxu0 %v12160_v51  ;;  %v12209_v51 = vld [vmem:[#allocation286_spill] sm:$0xff] }
 0xc39   : > { %4821 = vmatprep.subr.bf16.mxu0 %v12161_v1  ;;  %v12210_v1 = vld [vmem:[#allocation287_spill] sm:$0xff] }
 0xc3c   : > { %4822 = vmatpush1.bf16.msra.mxu0 %v12162_v36  ;;  %v12211_v36 = vld [vmem:[#allocation288_spill] sm:$0xff] }
 0xc3d   : > { %4823 = vmatprep.subr.bf16.mxu0 %v12163_v60  ;;  %v12212_v60 = vld [vmem:[#allocation289_spill] sm:$0xff] }
 0xc40   : > { %4824 = vmatpush1.bf16.msra.mxu0 %v12164_v46  ;;  %v12213_v46 = vld [vmem:[#allocation290_spill] sm:$0xff] }
 0xc41   : > { %4825 = vmatprep.subr.bf16.mxu0 %v12165_v56  ;;  %v12214_v56 = vld [vmem:[#allocation291_spill] sm:$0xff] }
 0xc44   : > { %4826 = vmatpush1.bf16.msra.mxu0 %v12166_v42  ;;  %v12215_v42 = vld [vmem:[#allocation292_spill] sm:$0xff] }
 0xc45   : > { %4827 = vmatprep.subr.bf16.mxu0 %v12167_v52  ;;  %v12216_v52 = vld [vmem:[#allocation293_spill] sm:$0xff] }
 0xc48   : > { %4828 = vmatpush1.bf16.msra.mxu0 %v12168_v15  ;;  %v12217_v15 = vld [vmem:[#allocation294_spill] sm:$0xff] }
 0xc49   : > { %4829 = vmatprep.subr.bf16.mxu0 %v12169_v38  ;;  %v10792_v38 = vld [vmem:[%s783_s17] sm:$0xf]  ;;  %s11280_s17 = scalar_lea.hbm %s12513_s28, %s7495_s10 }
 0xc4a   : > { %vm4626_vm5 = vcmp.gt.f32.partialorder %v10792_v38, 0.0  ;;  %v7921_v38 = vld [vmem:[#allocation22 + $0x44] ss:$8 sps:$4 sm:$0xff]  }
 0xc4c   : > { %4830 = vmatpush1.bf16.msra.mxu0 %v12170_v30 }
 0xc4d   : > { %4831 = vmatprep.subr.bf16.mxu0 %v12171_v47 }
 0xc50   : > { %4832 = vmatpush1.bf16.msra.mxu0 %v12172_v8 }
 0xc51   : > { %4833 = vmatprep.subr.bf16.mxu0 %v12173_v43 }
 0xc54   : > { %4834 = vmatpush1.bf16.msra.mxu0 %v12174_v23 }
 0xc55   : > { %4835 = vmatprep.subr.bf16.mxu0 %v12175_v35 }
 0xc58   : > { %4836 = vmatpush1.bf16.msra.mxu0 %v12176_v28 }
 0xc59   : > { %4837 = vmatprep.subr.bf16.mxu0 %v12177_v37 }
 0xc5c   : > { %4838 = vmatpush1.bf16.msra.mxu0 %v12178_v32 }
 0xc5d   : > { %4839 = vmatprep.subr.bf16.mxu0 %v12179_v18 }
 0xc60   : > { %4840 = vmatpush1.bf16.msra.mxu0 %v12180_v40 }
 0xc61   : > { %4841 = vmatprep.subr.bf16.mxu0 %v12181_v10 }
 0xc64   : > { %4842 = vmatpush1.bf16.msra.mxu0 %v12182_v61 }
 0xc65   : > { %4843 = vmatprep.subr.bf16.mxu0 %v12183_v5 }
 0xc68   : > { %4844 = vmatpush1.bf16.msra.mxu0 %v12184_v34 }
 0xc69   : > { %4895 = vmatprep.subr.bf16.mxu0 %v12185_v50 }
 0xc6b   : > { %4846 = vmatmul.mubr.bf16.vlgmr.msra.gmra.mrb[44].mxu0 %v10686_v39 }
 0xc6c   : > { %4896 = vmatpush1.bf16.msra.mxu0 %v12186_v7 }
 0xc6d   : > { %4897 = vmatprep.subr.bf16.mxu0 %v12187_v53 }
 0xc70   : > { %4898 = vmatpush1.bf16.msra.mxu0 %v12188_v21 }
 0xc71   : > { %4899 = vmatprep.subr.bf16.mxu0 %v12189_v3 }
 0xc74   : > { %4900 = vmatpush1.bf16.msra.mxu0 %v12190_v25 }
 0xc75   : > { %4901 = vmatprep.subr.bf16.mxu0 %v12191_v2  ;;  %v12218_v2 = vld [vmem:[#allocation43_spill] sm:$0xff] }
 0xc78   : > { %4902 = vmatpush1.bf16.msra.mxu0 %v12192_v17  ;;  %v12219_v17 = vld [vmem:[#allocation96_spill] sm:$0xff] }
 0xc79   : > { %4903 = vmatprep.subr.bf16.mxu0 %v12193_v49  ;;  %v12220_v49 = vld [vmem:[#allocation98_spill] sm:$0xff] }
 0xc7c   : > { %4904 = vmatpush1.bf16.msra.mxu0 %v12194_v29  ;;  %v12221_v29 = vld [vmem:[#allocation100_spill] sm:$0xff] }
 0xc7d   : > { %4905 = vmatprep.subr.bf16.mxu0 %v12195_v58  ;;  %v12222_v58 = vld [vmem:[#allocation102_spill] sm:$0xff] }
 0xc80   : > { %4906 = vmatpush1.bf16.msra.mxu0 %v12196_v0  ;;  %v12223_v0 = vld [vmem:[#allocation104_spill] sm:$0xff] }
 0xc81   : > { %4907 = vmatprep.subr.bf16.mxu0 %v12197_v44  ;;  %v12224_v44 = vld [vmem:[#allocation106_spill] sm:$0xff] }
 0xc84   : > { %4908 = vmatpush1.bf16.msra.mxu0 %v12198_v31  ;;  %v12225_v31 = vld [vmem:[#allocation108_spill] sm:$0xff] }
 0xc85   : > { %4909 = vmatprep.subr.bf16.mxu0 %v12199_v41  ;;  %v12226_v41 = vld [vmem:[#allocation110_spill] sm:$0xff] }
 0xc88   : > { %4910 = vmatpush1.bf16.msra.mxu0 %v12200_v24  ;;  %v12227_v24 = vld [vmem:[#allocation112_spill] sm:$0xff] }
 0xc89   : > { %4911 = vmatprep.subr.bf16.mxu0 %v12201_v48  ;;  %v12228_v48 = vld [vmem:[#allocation114_spill] sm:$0xff] }
 0xc8c   : > { %4912 = vmatpush1.bf16.msra.mxu0 %v12202_v62  ;;  %v12229_v62 = vld [vmem:[#allocation116_spill] sm:$0xff] }
 0xc8d   : > { %4913 = vmatprep.subr.bf16.mxu0 %v12203_v63  ;;  %v12230_v63 = vld [vmem:[#allocation118_spill] sm:$0xff] }
 0xc90   : > { %4914 = vmatpush1.bf16.msra.mxu0 %v12204_v19  ;;  %v12231_v19 = vld [vmem:[#allocation120_spill] sm:$0xff] }
 0xc91   : > { %4915 = vmatprep.subr.bf16.mxu0 %v12205_v59  ;;  %v12232_v59 = vld [vmem:[#allocation122_spill] sm:$0xff] }
 0xc94   : > { %4916 = vmatpush1.bf16.msra.mxu0 %v12206_v14  ;;  %v12233_v14 = vld [vmem:[#allocation124_spill] sm:$0xff] }
 0xc95   : > { %4917 = vmatprep.subr.bf16.mxu0 %v12207_v55  ;;  %v12234_v55 = vld [vmem:[#allocation126_spill] sm:$0xff] }
 0xc98   : > { %4918 = vmatpush1.bf16.msra.mxu0 %v12208_v6  ;;  %v12235_v6 = vld [vmem:[#allocation128_spill] sm:$0xff] }
 0xc99   : > { %4919 = vmatprep.subr.bf16.mxu0 %v12209_v51  ;;  %v12236_v51 = vld [vmem:[#allocation130_spill] sm:$0xff] }
 0xc9c   : > { %4920 = vmatpush1.bf16.msra.mxu0 %v12210_v1  ;;  %v12237_v1 = vld [vmem:[#allocation132_spill] sm:$0xff] }
 0xc9d   : > { %4921 = vmatprep.subr.bf16.mxu0 %v12211_v36  ;;  %v12238_v36 = vld [vmem:[#allocation134_spill] sm:$0xff] }
 0xca0   : > { %4922 = vmatpush1.bf16.msra.mxu0 %v12212_v60  ;;  %v12239_v60 = vld [vmem:[#allocation136_spill] sm:$0xff] }
 0xca1   : > { %4923 = vmatprep.subr.bf16.mxu0 %v12213_v46  ;;  %v12240_v46 = vld [vmem:[#allocation138_spill] sm:$0xff] }
 0xca4   : > { %4924 = vmatpush1.bf16.msra.mxu0 %v12214_v56  ;;  %v12241_v56 = vld [vmem:[#allocation140_spill] sm:$0xff] }
 0xca5   : > { %4925 = vmatprep.subr.bf16.mxu0 %v12215_v42  ;;  %v12242_v42 = vld [vmem:[#allocation142_spill] sm:$0xff] }
 0xca8   : > { %4926 = vmatpush1.bf16.msra.mxu0 %v12216_v52  ;;  %v12243_v52 = vld [vmem:[#allocation144_spill] sm:$0xff] }
 0xca9   : > { %4977 = vmatprep.subr.bf16.mxu0 %v12217_v15  ;;  %v12244_v15 = vld [vmem:[#allocation146_spill] sm:$0xff] }
 0xcbe   : > { %v4620_v30 = vpop.f32.mrb[36].mxu0 }
 0xcbf   : > { %v4627_v47 = vsel %vm4626_vm5, %v4620_v30, -3e+38  ;;  %v4622_v8 = vpop.f32.mrb[37].mxu0  ;;  %v12245_v30 = vld [vmem:[#allocation148_spill] sm:$0xff] }
 0xcc0   : > { %v4623_v43 = vpop.f32.mrb[38].mxu0  ;;  %v4629_v23 = vsel %vm4628_vm6, %v4627_v47, -inf  ;;  %v12247_v8 = vld [vmem:[#allocation152_spill] sm:$0xff] }
 0xcc1   : > { %4630 = vmax.xlane.f32.xlu0 %v4629_v23  ;;  %v4624_v35 = vpop.f32.mrb[39].mxu0  ;;  %v12248_v43 = vld [vmem:[#allocation154_spill] sm:$0xff] }
 0xcc2   : > { %v12249_v23 = vld [vmem:[#allocation42_spill] sm:$0xff]  ;;  %v12250_v35 = vld [vmem:[#allocation41_spill] sm:$0xff] }
 0xcfe   : > { %v10798_v28 = vpop.f32.mrb[40].mxu0 }
 0xcff   : > { %v10800_v37 = vpop.f32.mrb[41].mxu0 }
 0xd00   : > { %v4769_v32 = vpop.f32.mrb[42].mxu0 }
 0xd01   : > { %v4770_v18 = vpop.f32.mrb[43].mxu0  ;;  %v12251_v32 = vld [vmem:[#allocation44_spill] sm:$0xff] }
 0xd02   : > { %v12252_v18 = vld [vmem:[#allocation45_spill] sm:$0xff] }
 0xd3e   : > { %v10802_v40 = vpop.f32.mrb[44].mxu0 }
 0xd3f   : > { %v10804_v10 = vpop.f32.mrb[45].mxu0 }
 0xd40   : > { %v4851_v61 = vpop.f32.mrb[46].mxu0 }
 0xd41   : > { %v4852_v5 = vpop.f32.mrb[47].mxu0  ;;  %v12253_v61 = vld [vmem:[#allocation46_spill] sm:$0xff] }
 0xd42   : > { %v12254_v5 = vld [vmem:[#allocation47_spill] sm:$0xff] }
 0xd4e   : > { %v4631_v34 = vpop.xlane.xlu0 %4630 }
 0xd4f   : > { %v4632_v50 = vsub.f32 %v4627_v47, %v4631_v34  ;;  %v12246_v47 = vld [vmem:[#allocation150_spill] sm:$0xff]  ;;  %v12255_v34 = vld [vmem:[#allocation48_spill] sm:$0xff] }
 0xd51   : > { %v4633_v7 = vmul.f32 1.442695, %v4632_v50  ;;  %v12256_v50 = vld [vmem:[#allocation49_spill] sm:$0xff] }
 0xd53   : > { %8163 = vpow2.f32 %v4633_v7  ;;  %v12257_v7 = vld [vmem:[#allocation50_spill] sm:$0xff] }
 0xd5d   : > { %v8164_v53 = vpop.eup %8163 }
 0xd5e   : > { %v4635_v21 = vsel %vm4626_vm5, %v8164_v53, 0.0  ;;  %v12258_v53 = vld [vmem:[#allocation51_spill] sm:$0xff] }
 0xd5f   : > { %v4636_v3 = vsel %vm4628_vm6, %v4635_v21, 0.0  ;;  %v4639_v25 = vpack.c.bf16 %v4635_v21, %v4635_v21  ;;  %v12259_v21 = vld [vmem:[#allocation52_spill] sm:$0xff] }
 0xd60   : > { %4637 = vadd.xlane.f32.xlu1 %v4636_v3  ;;  %v12260_v3 = vld [vmem:[#allocation53_spill] sm:$0xff] }
 0xd61   : > { %7331 = vmatmul.mubr.msk.bf16.vlgmr.msra.gmra.mrb[52].mxu1 %vm1012_vm1, %v4639_v25  ;;  %v12261_v25 = vld [vmem:[#allocation54_spill] sm:$0xff] }
 0xd62   : > { %4691 = vmatpush1.bf16.msra.mxu1 %v12218_v2  ;;  %4722 = vmatprep.mubr.bf16.mxu1 %v10684_v54  ;;  %v12262_v2 = vld [vmem:[#allocation55_spill] sm:$0xff] }
 0xd63   : > { %4692 = vmatprep.subr.bf16.mxu1 %v12219_v17  ;;  %v12263_v17 = vld [vmem:[#allocation56_spill] sm:$0xff] }
 0xd66   : > { %4693 = vmatpush1.bf16.msra.mxu1 %v12220_v49  ;;  %v12264_v49 = vld [vmem:[#allocation57_spill] sm:$0xff] }
 0xd67   : > { %4694 = vmatprep.subr.bf16.mxu1 %v12221_v29  ;;  %v12265_v29 = vld [vmem:[#allocation58_spill] sm:$0xff] }
 0xd6a   : > { %4695 = vmatpush1.bf16.msra.mxu1 %v12222_v58  ;;  %v12266_v58 = vld [vmem:[#allocation59_spill] sm:$0xff] }
 0xd6b   : > { %4696 = vmatprep.subr.bf16.mxu1 %v12223_v0  ;;  %v12267_v0 = vld [vmem:[#allocation60_spill] sm:$0xff] }
 0xd6e   : > { %4697 = vmatpush1.bf16.msra.mxu1 %v12224_v44  ;;  %v12268_v44 = vld [vmem:[#allocation61_spill] sm:$0xff] }
 0xd6f   : > { %4698 = vmatprep.subr.bf16.mxu1 %v12225_v31  ;;  %v12269_v31 = vld [vmem:[#allocation62_spill] sm:$0xff] }
 0xd72   : > { %4699 = vmatpush1.bf16.msra.mxu1 %v12226_v41  ;;  %v12270_v41 = vld [vmem:[#allocation63_spill] sm:$0xff] }
 0xd73   : > { %4700 = vmatprep.subr.bf16.mxu1 %v12227_v24  ;;  %v12271_v24 = vld [vmem:[#allocation64_spill] sm:$0xff] }
 0xd76   : > { %4701 = vmatpush1.bf16.msra.mxu1 %v12228_v48  ;;  %v12272_v48 = vld [vmem:[#allocation65_spill] sm:$0xff] }
 0xd77   : > { %4702 = vmatprep.subr.bf16.mxu1 %v12229_v62  ;;  %v12273_v62 = vld [vmem:[#allocation66_spill] sm:$0xff] }
 0xd7a   : > { %4703 = vmatpush1.bf16.msra.mxu1 %v12230_v63  ;;  %v12274_v63 = vld [vmem:[#allocation67_spill] sm:$0xff] }
 0xd7b   : > { %4704 = vmatprep.subr.bf16.mxu1 %v12231_v19  ;;  %v12275_v19 = vld [vmem:[#allocation68_spill] sm:$0xff] }
 0xd7e   : > { %4705 = vmatpush1.bf16.msra.mxu1 %v12232_v59  ;;  %v12276_v59 = vld [vmem:[#allocation69_spill] sm:$0xff] }
 0xd7f   : > { %4706 = vmatprep.subr.bf16.mxu1 %v12233_v14  ;;  %v12277_v14 = vld [vmem:[#allocation70_spill] sm:$0xff] }
 0xd82   : > { %4707 = vmatpush1.bf16.msra.mxu1 %v12234_v55  ;;  %v12278_v55 = vld [vmem:[#allocation71_spill] sm:$0xff] }
 0xd83   : > { %4708 = vmatprep.subr.bf16.mxu1 %v12235_v6  ;;  %v12279_v6 = vld [vmem:[#allocation72_spill] sm:$0xff] }
 0xd86   : > { %4709 = vmatpush1.bf16.msra.mxu1 %v12236_v51  ;;  %v12280_v51 = vld [vmem:[#allocation73_spill] sm:$0xff] }
 0xd87   : > { %4710 = vmatprep.subr.bf16.mxu1 %v12237_v1  ;;  %v12281_v1 = vld [vmem:[#allocation74_spill] sm:$0xff] }
 0xd8a   : > { %4711 = vmatpush1.bf16.msra.mxu1 %v12238_v36  ;;  %v12282_v36 = vld [vmem:[#allocation75_spill] sm:$0xff] }
 0xd8b   : > { %4712 = vmatprep.subr.bf16.mxu1 %v12239_v60  ;;  %v12283_v60 = vld [vmem:[#allocation76_spill] sm:$0xff] }
 0xd8e   : > { %4713 = vmatpush1.bf16.msra.mxu1 %v12240_v46  ;;  %v12284_v46 = vld [vmem:[#allocation77_spill] sm:$0xff] }
 0xd8f   : > { %4714 = vmatprep.subr.bf16.mxu1 %v12241_v56  ;;  %v12285_v56 = vld [vmem:[#allocation78_spill] sm:$0xff] }
 0xd92   : > { %4715 = vmatpush1.bf16.msra.mxu1 %v12242_v42  ;;  %v12286_v42 = vld [vmem:[#allocation79_spill] sm:$0xff] }
 0xd93   : > { %4716 = vmatprep.subr.bf16.mxu1 %v12243_v52  ;;  %v12287_v52 = vld [vmem:[#allocation80_spill] sm:$0xff] }
 0xd96   : > { %4717 = vmatpush1.bf16.msra.mxu1 %v12244_v15  ;;  %v12288_v15 = vld [vmem:[#allocation81_spill] sm:$0xff] }
 0xd97   : > { %4718 = vmatprep.subr.bf16.mxu1 %v12245_v30  ;;  %v12289_v30 = vld [vmem:[#allocation82_spill] sm:$0xff] }
 0xd9a   : > { %4719 = vmatpush1.bf16.msra.mxu1 %v12246_v47  ;;  %v12290_v47 = vld [vmem:[#allocation83_spill] sm:$0xff] }
 0xd9b   : > { %4720 = vmatprep.subr.bf16.mxu1 %v12247_v8  ;;  %v12291_v8 = vld [vmem:[#allocation84_spill] sm:$0xff] }
 0xd9e   : > { %4721 = vmatpush1.bf16.msra.mxu1 %v12248_v43  ;;  %v12292_v43 = vld [vmem:[#allocation85_spill] sm:$0xff] }
 0xd9f   : > { %4772 = vmatprep.subr.bf16.mxu1 %v12249_v23  ;;  %v12293_v23 = vld [vmem:[#allocation86_spill] sm:$0xff] }
 0xda1   : > { %4723 = vmatmul.mubr.bf16.vlgmr.msra.gmra.mrb[56].mxu1 %v10686_v39 }
 0xda2   : > { %4773 = vmatpush1.bf16.msra.mxu1 %v12250_v35  ;;  %4804 = vmatprep.mubr.bf16.mxu1 %v10684_v54  ;;  %v12294_v35 = vld [vmem:[#allocation87_spill] sm:$0xff] }
 0xda3   : > { %4774 = vmatprep.subr.bf16.mxu1 %v12251_v32  ;;  %v12295_v32 = vld [vmem:[#allocation88_spill] sm:$0xff] }
 0xda6   : > { %4775 = vmatpush1.bf16.msra.mxu1 %v12252_v18  ;;  %v12296_v18 = vld [vmem:[#allocation89_spill] sm:$0xff] }
 0xda7   : > { %4776 = vmatprep.subr.bf16.mxu1 %v12253_v61  ;;  %v12297_v61 = vld [vmem:[#allocation90_spill] sm:$0xff] }
 0xdaa   : > { %4777 = vmatpush1.bf16.msra.mxu1 %v12254_v5  ;;  %v12298_v5 = vld [vmem:[#allocation91_spill] sm:$0xff] }
 0xdab   : > { %4778 = vmatprep.subr.bf16.mxu1 %v12255_v34  ;;  %v12299_v34 = vld [vmem:[#allocation92_spill] sm:$0xff] }
 0xdae   : > { %4779 = vmatpush1.bf16.msra.mxu1 %v12256_v50  ;;  %v12300_v50 = vld [vmem:[#allocation93_spill] sm:$0xff] }
 0xdaf   : > { %4780 = vmatprep.subr.bf16.mxu1 %v12257_v7  ;;  %v12301_v7 = vld [vmem:[#allocation94_spill] sm:$0xff] }
 0xdb2   : > { %4781 = vmatpush1.bf16.msra.mxu1 %v12258_v53  ;;  %v12302_v53 = vld [vmem:[#allocation95_spill] sm:$0xff] }
 0xdb3   : > { %4782 = vmatprep.subr.bf16.mxu1 %v12259_v21  ;;  %v12303_v21 = vld [vmem:[#allocation97_spill] sm:$0xff] }
 0xdb6   : > { %4783 = vmatpush1.bf16.msra.mxu1 %v12260_v3  ;;  %v12304_v3 = vld [vmem:[#allocation99_spill] sm:$0xff] }
 0xdb7   : > { %4784 = vmatprep.subr.bf16.mxu1 %v12261_v25  ;;  %v12305_v25 = vld [vmem:[#allocation101_spill] sm:$0xff] }
 0xdba   : > { %4785 = vmatpush1.bf16.msra.mxu1 %v12262_v2  ;;  %v12306_v2 = vld [vmem:[#allocation103_spill] sm:$0xff] }
 0xdbb   : > { %4786 = vmatprep.subr.bf16.mxu1 %v12263_v17  ;;  %v12307_v17 = vld [vmem:[#allocation105_spill] sm:$0xff] }
 0xdbe   : > { %4787 = vmatpush1.bf16.msra.mxu1 %v12264_v49  ;;  %v12308_v49 = vld [vmem:[#allocation107_spill] sm:$0xff] }
 0xdbf   : > { %4788 = vmatprep.subr.bf16.mxu1 %v12265_v29  ;;  %v12309_v29 = vld [vmem:[#allocation109_spill] sm:$0xff] }
 0xdc2   : > { %4789 = vmatpush1.bf16.msra.mxu1 %v12266_v58  ;;  %v12310_v58 = vld [vmem:[#allocation111_spill] sm:$0xff] }
 0xdc3   : > { %4790 = vmatprep.subr.bf16.mxu1 %v12267_v0  ;;  %v12311_v0 = vld [vmem:[#allocation113_spill] sm:$0xff] }
 0xdc6   : > { %4791 = vmatpush1.bf16.msra.mxu1 %v12268_v44  ;;  %v12312_v44 = vld [vmem:[#allocation115_spill] sm:$0xff] }
 0xdc7   : > { %4792 = vmatprep.subr.bf16.mxu1 %v12269_v31  ;;  %v12313_v31 = vld [vmem:[#allocation117_spill] sm:$0xff] }
 0xdca   : > { %4793 = vmatpush1.bf16.msra.mxu1 %v12270_v41  ;;  %v12314_v41 = vld [vmem:[#allocation119_spill] sm:$0xff] }
 0xdcb   : > { %4794 = vmatprep.subr.bf16.mxu1 %v12271_v24 }
 0xdce   : > { %4795 = vmatpush1.bf16.msra.mxu1 %v12272_v48  ;;  %v12315_v48 = vld [vmem:[#allocation121_spill] sm:$0xff] }
 0xdcf   : > { %4796 = vmatprep.subr.bf16.mxu1 %v12273_v62 }
 0xdd2   : > { %4797 = vmatpush1.bf16.msra.mxu1 %v12274_v63  ;;  %v12316_v63 = vld [vmem:[#allocation123_spill] sm:$0xff] }
 0xdd3   : > { %4798 = vmatprep.subr.bf16.mxu1 %v12275_v19  ;;  %v12317_v19 = vld [vmem:[#allocation125_spill] sm:$0xff] }
 0xdd6   : > { %4799 = vmatpush1.bf16.msra.mxu1 %v12276_v59  ;;  %v12318_v59 = vld [vmem:[#allocation127_spill] sm:$0xff] }
 0xdd7   : > { %4800 = vmatprep.subr.bf16.mxu1 %v12277_v14  ;;  %v12319_v14 = vld [vmem:[#allocation129_spill] sm:$0xff] }
 0xdda   : > { %4801 = vmatpush1.bf16.msra.mxu1 %v12278_v55  ;;  %v12320_v55 = vld [vmem:[#allocation131_spill] sm:$0xff] }
 0xddb   : > { %4802 = vmatprep.subr.bf16.mxu1 %v12279_v6  ;;  %v12321_v6 = vld [vmem:[#allocation133_spill] sm:$0xff] }
 0xdde   : > { %4803 = vmatpush1.bf16.msra.mxu1 %v12280_v51  ;;  %v12322_v51 = vld [vmem:[#allocation135_spill] sm:$0xff] }
 0xddf   : > { %4854 = vmatprep.subr.bf16.mxu1 %v12281_v1  ;;  %v12323_v1 = vld [vmem:[#allocation137_spill] sm:$0xff] }
 0xde1   : > { %4805 = vmatmul.mubr.bf16.vlgmr.msra.gmra.mrb[60].mxu1 %v10686_v39 }
 0xde2   : > { %4855 = vmatpush1.bf16.msra.mxu1 %v12282_v36  ;;  %4886 = vmatprep.mubr.bf16.mxu1 %v10684_v54 }
 0xde3   : > { %4856 = vmatprep.subr.bf16.mxu1 %v12283_v60 }
 0xde6   : > { %4857 = vmatpush1.bf16.msra.mxu1 %v12284_v46 }
 0xde7   : > { %4858 = vmatprep.subr.bf16.mxu1 %v12285_v56 }
 0xdea   : > { %4859 = vmatpush1.bf16.msra.mxu1 %v12286_v42 }
 0xdeb   : > { %4860 = vmatprep.subr.bf16.mxu1 %v12287_v52  ;;  %v12324_v52 = vld [vmem:[#allocation139_spill] sm:$0xff] }
 0xded   : > { %v4638_v24 = vpop.xlane.xlu1 %4637 }
 0xdee   : > { %4861 = vmatpush1.bf16.msra.mxu1 %v12288_v15  ;;  %v4684_v62 = vadd.f32 1e-16, %v4638_v24  ;;  %v12348_v24 = vld [vmem:[#allocation305_spill] sm:$0xff] }
 0xdef   : > { %4862 = vmatprep.subr.bf16.mxu1 %v12289_v30 }
 0xdf0   : > { %8165 = vrcp.f32 %v4684_v62  ;;  %v12350_v62 = vld [vmem:[#allocation161_spill] sm:$0xff] }
 0xdf2   : > { %4863 = vmatpush1.bf16.msra.mxu1 %v12290_v47  ;;  %v12325_v47 = vld [vmem:[#allocation141_spill] sm:$0xff] }
 0xdf3   : > { %4864 = vmatprep.subr.bf16.mxu1 %v12291_v8 }
 0xdf6   : > { %4865 = vmatpush1.bf16.msra.mxu1 %v12292_v43 }
 0xdf7   : > { %4866 = vmatprep.subr.bf16.mxu1 %v12293_v23  ;;  %v12326_v23 = vld [vmem:[#allocation143_spill] sm:$0xff] }
 0xdfa   : > { %4867 = vmatpush1.bf16.msra.mxu1 %v12294_v35  ;;  %v8166_v36 = vpop.eup %8165  ;;  %v12327_v35 = vld [vmem:[#allocation145_spill] sm:$0xff] }
 0xdfb   : > { %4868 = vmatprep.subr.bf16.mxu1 %v12295_v32  ;;  %v12328_v32 = vld [vmem:[#allocation295_spill] sm:$0xff] }
 0xdfe   : > { %4869 = vmatpush1.bf16.msra.mxu1 %v12296_v18  ;;  %v12329_v18 = vld [vmem:[#allocation296_spill] sm:$0xff] }
 0xdff   : > { %4870 = vmatprep.subr.bf16.mxu1 %v12297_v61  ;;  %v12330_v61 = vld [vmem:[#allocation147_spill] sm:$0xff] }
 0xe02   : > { %4871 = vmatpush1.bf16.msra.mxu1 %v12298_v5  ;;  %v12331_v5 = vld [vmem:[#allocation149_spill] sm:$0xff] }
 0xe03   : > { %4872 = vmatprep.subr.bf16.mxu1 %v12299_v34  ;;  %v12332_v34 = vld [vmem:[#allocation297_spill] sm:$0xff] }
 0xe06   : > { %4873 = vmatpush1.bf16.msra.mxu1 %v12300_v50  ;;  %v12333_v50 = vld [vmem:[#allocation298_spill] sm:$0xff] }
 0xe07   : > { %4874 = vmatprep.subr.bf16.mxu1 %v12301_v7  ;;  %v12334_v7 = vld [vmem:[#allocation151_spill] sm:$0xff] }
 0xe0a   : > { %4875 = vmatpush1.bf16.msra.mxu1 %v12302_v53  ;;  %v12335_v53 = vld [vmem:[#allocation153_spill] sm:$0xff] }
 0xe0b   : > { %4876 = vmatprep.subr.bf16.mxu1 %v12303_v21  ;;  %v12336_v21 = vld [vmem:[#allocation299_spill] sm:$0xff] }
 0xe0e   : > { %4877 = vmatpush1.bf16.msra.mxu1 %v12304_v3  ;;  %v12337_v3 = vld [vmem:[#allocation300_spill] sm:$0xff] }
 0xe0f   : > { %4878 = vmatprep.subr.bf16.mxu1 %v12305_v25  ;;  %v12338_v25 = vld [vmem:[#allocation155_spill] sm:$0xff] }
 0xe12   : > { %4879 = vmatpush1.bf16.msra.mxu1 %v12306_v2  ;;  %v12339_v2 = vld [vmem:[#allocation156_spill] sm:$0xff] }
 0xe13   : > { %4880 = vmatprep.subr.bf16.mxu1 %v12307_v17  ;;  %v12340_v17 = vld [vmem:[#allocation301_spill] sm:$0xff] }
 0xe16   : > { %4881 = vmatpush1.bf16.msra.mxu1 %v12308_v49  ;;  %v12341_v49 = vld [vmem:[#allocation302_spill] sm:$0xff] }
 0xe17   : > { %4882 = vmatprep.subr.bf16.mxu1 %v12309_v29  ;;  %v12342_v29 = vld [vmem:[#allocation157_spill] sm:$0xff] }
 0xe1a   : > { %4883 = vmatpush1.bf16.msra.mxu1 %v12310_v58  ;;  %v12343_v58 = vld [vmem:[#allocation158_spill] sm:$0xff] }
 0xe1b   : > { %4884 = vmatprep.subr.bf16.mxu1 %v12311_v0  ;;  %v12344_v0 = vld [vmem:[#allocation303_spill] sm:$0xff] }
 0xe1e   : > { %4885 = vmatpush1.bf16.msra.mxu1 %v12312_v44  ;;  %v12345_v44 = vld [vmem:[#allocation304_spill] sm:$0xff] }
 0xe1f   : > { %4936 = vmatprep.subr.bf16.mxu1 %v12313_v31  ;;  %v12346_v31 = vld [vmem:[#allocation159_spill] sm:$0xff] }
 0xe21   : > { %4887 = vmatmul.mubr.bf16.vlgmr.msra.gmra.mrb[64].mxu1 %v10686_v39 }
 0xe22   : > { %4937 = vmatpush1.bf16.msra.mxu1 %v12314_v41  ;;  %4968 = vmatprep.mubr.bf16.mxu1 %v10684_v54  ;;  %v12347_v41 = vld [vmem:[#allocation160_spill] sm:$0xff] }
 0xe23   : > { %4938 = vmatprep.subr.bf16.mxu1 %v12315_v48  ;;  %v12349_v48 = vld [vmem:[#allocation306_spill] sm:$0xff] }
 0xe26   : > { %4939 = vmatpush1.bf16.msra.mxu1 %v12316_v63  ;;  %v12351_v63 = vld [vmem:[#allocation162_spill] sm:$0xff] }
 0xe27   : > { %4940 = vmatprep.subr.bf16.mxu1 %v12317_v19  ;;  %v12352_v19 = vld [vmem:[#allocation307_spill] sm:$0xff] }
 0xe2a   : > { %4941 = vmatpush1.bf16.msra.mxu1 %v12318_v59  ;;  %v12353_v59 = vld [vmem:[#allocation308_spill] sm:$0xff] }
 0xe2b   : > { %4942 = vmatprep.subr.bf16.mxu1 %v12319_v14  ;;  %v12354_v14 = vld [vmem:[#allocation163_spill] sm:$0xff] }
 0xe2e   : > { %4943 = vmatpush1.bf16.msra.mxu1 %v12320_v55  ;;  %v12355_v55 = vld [vmem:[#allocation164_spill] sm:$0xff] }
 0xe2f   : > { %4944 = vmatprep.subr.bf16.mxu1 %v12321_v6  ;;  %v12356_v6 = vld [vmem:[#allocation309_spill] sm:$0xff] }
 0xe32   : > { %4945 = vmatpush1.bf16.msra.mxu1 %v12322_v51  ;;  %v12357_v51 = vld [vmem:[#allocation310_spill] sm:$0xff] }
 0xe33   : > { %4946 = vmatprep.subr.bf16.mxu1 %v12323_v1  ;;  %v12358_v1 = vld [vmem:[#allocation165_spill] sm:$0xff] }
 0xe34   : > { %v4677_v60 = vpop.f32.mrb[52].mxu1 }
 0xe35   : > { %v4686_v46 = vmul.f32 %v8166_v36, %v4677_v60  ;;  %v4679_v56 = vpop.f32.mrb[53].mxu1  ;;  %v12360_v60 = vld [vmem:[#allocation311_spill] sm:$0xff] }
 0xe36   : > { %v4687_v42 = vmul.f32 %v8166_v36, %v4679_v56  ;;  %4947 = vmatpush1.bf16.msra.mxu1 %v12324_v52  ;;  %v4681_v15 = vpop.f32.mrb[54].mxu1  ;;  %v12359_v36 = vld [vmem:[#allocation166_spill] sm:$0xff]  ;;  %v12362_v56 = vld [vmem:[#allocation167_spill] sm:$0xff]  ;;  %v12364_v52 = vld [vmem:[#allocation313_spill] sm:$0xff] }
 0xe37   : > { %v4682_v30 = vpop.f32.mrb[55].mxu1  ;;  %4948 = vmatprep.subr.bf16.mxu1 %v12325_v47  ;;  %v10927_v43 = vpack.c.bf16 %v4686_v46, %v4686_v46  ;;  %v12361_v46 = vld [vmem:[#allocation312_spill] sm:$0xff]  ;;  %v12365_v15 = vld [vmem:[#allocation314_spill] sm:$0xff] }
 0xe38   : > { %v10925_v8 = vpack.c.bf16 %v4687_v42, %v4687_v42  ;;  %v12363_v42 = vld [vmem:[#allocation168_spill] sm:$0xff]  ;;  %v12366_v30 = vld [vmem:[#allocation169_spill] sm:$0xff]  ;;  %v12367_v47 = vld [vmem:[#allocation170_spill] sm:$0xff] }
 0xe3a   : > { %4949 = vmatpush1.bf16.msra.mxu1 %v12326_v23  ;;  %4927 = vmatprep.mubr.bf16.mxu0 %v10925_v8  ;;  %v12368_v23 = vld [vmem:[#allocation315_spill] sm:$0xff] }
 0xe3b   : > { %4928 = vmatmul.mubr.bf16.vlgmr.msra.gmra.mrb[48].mxu0 %v10927_v43  ;;  %4950 = vmatprep.subr.bf16.mxu1 %v12327_v35  ;;  %v12369_v35 = vld [vmem:[#allocation316_spill] sm:$0xff] }
 0xe3c   : > { %4978 = vmatpush1.bf16.msra.mxu0 %v12328_v32  ;;  %5009 = vmatprep.mubr.bf16.mxu0 %v10925_v8  ;;  %v12370_v32 = vld [vmem:[#allocation171_spill] sm:$0xff] }
 0xe3d   : > { %4979 = vmatprep.subr.bf16.mxu0 %v12329_v18  ;;  %v12371_v18 = vld [vmem:[#allocation172_spill] sm:$0xff] }
 0xe3e   : > { %4951 = vmatpush1.bf16.msra.mxu1 %v12330_v61  ;;  %v12372_v61 = vld [vmem:[#allocation317_spill] sm:$0xff] }
 0xe3f   : > { %4952 = vmatprep.subr.bf16.mxu1 %v12331_v5  ;;  %v12373_v5 = vld [vmem:[#allocation318_spill] sm:$0xff] }
 0xe40   : > { %4980 = vmatpush1.bf16.msra.mxu0 %v12332_v34  ;;  %v12374_v34 = vld [vmem:[#allocation173_spill] sm:$0xff] }
 0xe41   : > { %4981 = vmatprep.subr.bf16.mxu0 %v12333_v50  ;;  %v12375_v50 = vld [vmem:[#allocation174_spill] sm:$0xff] }
 0xe42   : > { %4953 = vmatpush1.bf16.msra.mxu1 %v12334_v7  ;;  %v12376_v7 = vld [vmem:[#allocation319_spill] sm:$0xff] }
 0xe43   : > { %4954 = vmatprep.subr.bf16.mxu1 %v12335_v53  ;;  %v12377_v53 = vld [vmem:[#allocation320_spill] sm:$0xff] }
 0xe44   : > { %4982 = vmatpush1.bf16.msra.mxu0 %v12336_v21  ;;  %v12378_v21 = vld [vmem:[#allocation175_spill] sm:$0xff] }
 0xe45   : > { %4983 = vmatprep.subr.bf16.mxu0 %v12337_v3  ;;  %v12379_v3 = vld [vmem:[#allocation176_spill] sm:$0xff] }
 0xe46   : > { %4955 = vmatpush1.bf16.msra.mxu1 %v12338_v25  ;;  %v12380_v25 = vld [vmem:[#allocation321_spill] sm:$0xff] }
 0xe47   : > { %4956 = vmatprep.subr.bf16.mxu1 %v12339_v2  ;;  %v12381_v2 = vld [vmem:[#allocation322_spill] sm:$0xff] }
 0xe48   : > { %4984 = vmatpush1.bf16.msra.mxu0 %v12340_v17  ;;  %v12382_v17 = vld [vmem:[#allocation177_spill] sm:$0xff] }
 0xe49   : > { %4985 = vmatprep.subr.bf16.mxu0 %v12341_v49  ;;  %v12383_v49 = vld [vmem:[#allocation178_spill] sm:$0xff] }
 0xe4a   : > { %4957 = vmatpush1.bf16.msra.mxu1 %v12342_v29 }
 0xe4b   : > { %4958 = vmatprep.subr.bf16.mxu1 %v12343_v58  ;;  %v12384_v58 = vld [vmem:[#allocation323_spill] sm:$0xff] }
 0xe4c   : > { %4986 = vmatpush1.bf16.msra.mxu0 %v12344_v0 }
 0xe4d   : > { %4987 = vmatprep.subr.bf16.mxu0 %v12345_v44  ;;  %v12385_v44 = vld [vmem:[#allocation324_spill] sm:$0xff] }
 0xe4e   : > { %4959 = vmatpush1.bf16.msra.mxu1 %v12346_v31 }
 0xe4f   : > { %4960 = vmatprep.subr.bf16.mxu1 %v12347_v41  ;;  %v12386_v41 = vld [vmem:[#allocation179_spill] sm:$0xff] }
 0xe50   : > { %4988 = vmatpush1.bf16.msra.mxu0 %v12348_v24 }
 0xe51   : > { %4989 = vmatprep.subr.bf16.mxu0 %v12349_v48  ;;  %v12387_v48 = vld [vmem:[#allocation180_spill] sm:$0xff] }
 0xe52   : > { %4961 = vmatpush1.bf16.msra.mxu1 %v12350_v62  ;;  %v12388_v62 = vld [vmem:[#allocation325_spill] sm:$0xff] }
 0xe53   : > { %4962 = vmatprep.subr.bf16.mxu1 %v12351_v63  ;;  %v12389_v63 = vld [vmem:[#allocation326_spill] sm:$0xff] }
 0xe54   : > { %4990 = vmatpush1.bf16.msra.mxu0 %v12352_v19  ;;  %v12390_v19 = vld [vmem:[#allocation181_spill] sm:$0xff] }
 0xe55   : > { %4991 = vmatprep.subr.bf16.mxu0 %v12353_v59  ;;  %v12391_v59 = vld [vmem:[#allocation182_spill] sm:$0xff] }
 0xe56   : > { %4963 = vmatpush1.bf16.msra.mxu1 %v12354_v14  ;;  %v12392_v14 = vld [vmem:[#allocation327_spill] sm:$0xff] }
 0xe57   : > { %4964 = vmatprep.subr.bf16.mxu1 %v12355_v55  ;;  %v12393_v55 = vld [vmem:[#allocation328_spill] sm:$0xff] }
 0xe58   : > { %4992 = vmatpush1.bf16.msra.mxu0 %v12356_v6  ;;  %v12394_v6 = vld [vmem:[#allocation183_spill] sm:$0xff] }
 0xe59   : > { %4993 = vmatprep.subr.bf16.mxu0 %v12357_v51  ;;  %v12395_v51 = vld [vmem:[#allocation184_spill] sm:$0xff] }
 0xe5a   : > { %4965 = vmatpush1.bf16.msra.mxu1 %v12358_v1  ;;  %v12396_v1 = vld [vmem:[#allocation329_spill] sm:$0xff] }
 0xe5b   : > { %4966 = vmatprep.subr.bf16.mxu1 %v12359_v36  ;;  %v12397_v36 = vld [vmem:[#allocation330_spill] sm:$0xff] }
 0xe5c   : > { %4994 = vmatpush1.bf16.msra.mxu0 %v12360_v60  ;;  %v12398_v60 = vld [vmem:[#allocation185_spill] sm:$0xff] }
 0xe5d   : > { %4995 = vmatprep.subr.bf16.mxu0 %v12361_v46  ;;  %v12399_v46 = vld [vmem:[#allocation186_spill] sm:$0xff] }
 0xe5e   : > { %4967 = vmatpush1.bf16.msra.mxu1 %v12362_v56  ;;  %v12400_v56 = vld [vmem:[#allocation331_spill] sm:$0xff] }
 0xe5f   : > { %5018 = vmatprep.subr.bf16.mxu1 %v12363_v42  ;;  %v12401_v42 = vld [vmem:[#allocation332_spill] sm:$0xff] }
 0xe60   : > { %4996 = vmatpush1.bf16.msra.mxu0 %v12364_v52  ;;  %v12402_v52 = vld [vmem:[#allocation187_spill] sm:$0xff] }
 0xe61   : > { %4969 = vmatmul.mubr.bf16.vlgmr.msra.gmra.mrb[68].mxu1 %v10686_v39  ;;  %4997 = vmatprep.subr.bf16.mxu0 %v12365_v15  ;;  %v12403_v15 = vld [vmem:[#allocation188_spill] sm:$0xff] }
 0xe62   : > { %5019 = vmatpush1.bf16.msra.mxu1 %v12366_v30  ;;  %5050 = vmatprep.mubr.bf16.mxu1 %v10684_v54  ;;  %v12404_v30 = vld [vmem:[#allocation333_spill] sm:$0xff] }
 0xe63   : > { %5020 = vmatprep.subr.bf16.mxu1 %v12367_v47  ;;  %v12405_v47 = vld [vmem:[#allocation334_spill] sm:$0xff] }
 0xe64   : > { %4998 = vmatpush1.bf16.msra.mxu0 %v12368_v23  ;;  %v12406_v23 = vld [vmem:[#allocation189_spill] sm:$0xff] }
 0xe65   : > { %4999 = vmatprep.subr.bf16.mxu0 %v12369_v35  ;;  %v12407_v35 = vld [vmem:[#allocation191_spill] sm:$0xff] }
 0xe66   : > { %5021 = vmatpush1.bf16.msra.mxu1 %v12370_v32  ;;  %v12408_v32 = vld [vmem:[#allocation335_spill] sm:$0xff] }
 0xe67   : > { %5022 = vmatprep.subr.bf16.mxu1 %v12371_v18  ;;  %v12409_v18 = vld [vmem:[#allocation336_spill] sm:$0xff] }
 0xe68   : > { %5000 = vmatpush1.bf16.msra.mxu0 %v12372_v61  ;;  %v12410_v61 = vld [vmem:[#allocation193_spill] sm:$0xff] }
 0xe69   : > { %5001 = vmatprep.subr.bf16.mxu0 %v12373_v5  ;;  %v12411_v5 = vld [vmem:[#allocation195_spill] sm:$0xff] }
 0xe6a   : > { %5023 = vmatpush1.bf16.msra.mxu1 %v12374_v34  ;;  %v12412_v34 = vld [vmem:[#allocation337_spill] sm:$0xff] }
 0xe6b   : > { %5024 = vmatprep.subr.bf16.mxu1 %v12375_v50  ;;  %v12413_v50 = vld [vmem:[#allocation338_spill] sm:$0xff] }
 0xe6c   : > { %5002 = vmatpush1.bf16.msra.mxu0 %v12376_v7  ;;  %v12414_v7 = vld [vmem:[#allocation197_spill] sm:$0xff] }
 0xe6d   : > { %5003 = vmatprep.subr.bf16.mxu0 %v12377_v53  ;;  %v12415_v53 = vld [vmem:[#allocation199_spill] sm:$0xff] }
 0xe6e   : > { %5025 = vmatpush1.bf16.msra.mxu1 %v12378_v21  ;;  %v12416_v21 = vld [vmem:[#allocation339_spill] sm:$0xff] }
 0xe6f   : > { %5026 = vmatprep.subr.bf16.mxu1 %v12379_v3  ;;  %v12417_v3 = vld [vmem:[#allocation340_spill] sm:$0xff] }
 0xe70   : > { %5004 = vmatpush1.bf16.msra.mxu0 %v12380_v25  ;;  %v12418_v25 = vld [vmem:[#allocation201_spill] sm:$0xff] }
 0xe71   : > { %5005 = vmatprep.subr.bf16.mxu0 %v12381_v2  ;;  %v12419_v2 = vld [vmem:[#allocation203_spill] sm:$0xff] }
 0xe72   : > { %5027 = vmatpush1.bf16.msra.mxu1 %v12382_v17  ;;  %v12420_v17 = vld [vmem:[#allocation341_spill] sm:$0xff] }
 0xe73   : > { %5028 = vmatprep.subr.bf16.mxu1 %v12383_v49  ;;  %v12421_v49 = vld [vmem:[#allocation342_spill] sm:$0xff] }
 0xe74   : > { %v10992_v29 = vpop.f32.mrb[56].mxu1  ;;  %5006 = vmatpush1.bf16.msra.mxu0 %v12384_v58  ;;  %v12422_v58 = vld [vmem:[#allocation205_spill] sm:$0xff] }
 0xe75   : > { %v10995_v0 = vpop.f32.mrb[57].mxu1  ;;  %5007 = vmatprep.subr.bf16.mxu0 %v12385_v44  ;;  %v12423_v44 = vld [vmem:[#allocation207_spill] sm:$0xff] }
 0xe76   : > { %v4728_v31 = vpop.f32.mrb[58].mxu1  ;;  %5029 = vmatpush1.bf16.msra.mxu1 %v12386_v41  ;;  %v12425_v41 = vld [vmem:[#allocation344_spill] sm:$0xff] }
 0xe77   : > { %v4729_v24 = vpop.f32.mrb[59].mxu1  ;;  %5030 = vmatprep.subr.bf16.mxu1 %v12387_v48  ;;  %v12424_v31 = vld [vmem:[#allocation343_spill] sm:$0xff] }
 0xe78   : > { %5008 = vmatpush1.bf16.msra.mxu0 %v12388_v62  ;;  %v12426_v24 = vld [vmem:[#allocation209_spill] sm:$0xff]  ;;  %v12427_v48 = vld [vmem:[#allocation211_spill] sm:$0xff] }
 0xe79   : > { %5059 = vmatprep.subr.bf16.mxu0 %v12389_v63  ;;  %v12428_v62 = vld [vmem:[#allocation345_spill] sm:$0xff]  ;;  %v12429_v63 = vld [vmem:[#allocation346_spill] sm:$0xff] }
 0xe7a   : > { %5031 = vmatpush1.bf16.msra.mxu1 %v12390_v19  ;;  %v12430_v19 = vld [vmem:[#allocation213_spill] sm:$0xff] }
 0xe7b   : > { %5010 = vmatmul.mubr.bf16.vlgmr.msra.gmra.mrb[52].mxu0 %v10927_v43  ;;  %5032 = vmatprep.subr.bf16.mxu1 %v12391_v59  ;;  %v12431_v59 = vld [vmem:[#allocation215_spill] sm:$0xff] }
 0xe7c   : > { %5060 = vmatpush1.bf16.msra.mxu0 %v12392_v14  ;;  %5091 = vmatprep.mubr.bf16.mxu0 %v10925_v8  ;;  %v12432_v14 = vld [vmem:[#allocation347_spill] sm:$0xff] }
 0xe7d   : > { %5061 = vmatprep.subr.bf16.mxu0 %v12393_v55  ;;  %v12433_v55 = vld [vmem:[#allocation348_spill] sm:$0xff] }
 0xe7e   : > { %5033 = vmatpush1.bf16.msra.mxu1 %v12394_v6  ;;  %v12434_v6 = vld [vmem:[#allocation217_spill] sm:$0xff] }
 0xe7f   : > { %5034 = vmatprep.subr.bf16.mxu1 %v12395_v51  ;;  %v12435_v51 = vld [vmem:[#allocation219_spill] sm:$0xff] }
 0xe80   : > { %5062 = vmatpush1.bf16.msra.mxu0 %v12396_v1  ;;  %v12436_v1 = vld [vmem:[#allocation349_spill] sm:$0xff] }
 0xe81   : > { %5063 = vmatprep.subr.bf16.mxu0 %v12397_v36  ;;  %v12437_v36 = vld [vmem:[#allocation350_spill] sm:$0xff] }
 0xe82   : > { %5035 = vmatpush1.bf16.msra.mxu1 %v12398_v60  ;;  %v12438_v60 = vld [vmem:[#allocation221_spill] sm:$0xff] }
 0xe83   : > { %5036 = vmatprep.subr.bf16.mxu1 %v12399_v46  ;;  %v12439_v46 = vld [vmem:[#allocation223_spill] sm:$0xff] }
 0xe84   : > { %5064 = vmatpush1.bf16.msra.mxu0 %v12400_v56  ;;  %v12440_v56 = vld [vmem:[#allocation351_spill] sm:$0xff] }
 0xe85   : > { %5065 = vmatprep.subr.bf16.mxu0 %v12401_v42  ;;  %v12442_v42 = vld [vmem:[#allocation225_spill] sm:$0xff] }
 0xe86   : > { %5037 = vmatpush1.bf16.msra.mxu1 %v12402_v52  ;;  %v12443_v52 = vld [vmem:[#allocation227_spill] sm:$0xff] }
 0xe87   : > { %5038 = vmatprep.subr.bf16.mxu1 %v12403_v15  ;;  %v12444_v15 = vld [vmem:[#allocation353_spill] sm:$0xff] }
 0xe88   : > { %5066 = vmatpush1.bf16.msra.mxu0 %v12404_v30  ;;  %v12445_v30 = vld [vmem:[#allocation354_spill] sm:$0xff] }
 0xe89   : > { %5067 = vmatprep.subr.bf16.mxu0 %v12405_v47  ;;  %v12446_v47 = vld [vmem:[#allocation229_spill] sm:$0xff] }
 0xe8a   : > { %5039 = vmatpush1.bf16.msra.mxu1 %v12406_v23  ;;  %v12447_v23 = vld [vmem:[#allocation231_spill] sm:$0xff] }
 0xe8b   : > { %5040 = vmatprep.subr.bf16.mxu1 %v12407_v35 }
 0xe8c   : > { %5068 = vmatpush1.bf16.msra.mxu0 %v12408_v32  ;;  %v12448_v32 = vld [vmem:[#allocation355_spill] sm:$0xff] }
 0xe8d   : > { %5069 = vmatprep.subr.bf16.mxu0 %v12409_v18 }
 0xe8e   : > { %5041 = vmatpush1.bf16.msra.mxu1 %v12410_v61  ;;  %v12449_v61 = vld [vmem:[#allocation356_spill] sm:$0xff] }
 0xe8f   : > { %5042 = vmatprep.subr.bf16.mxu1 %v12411_v5 }
 0xe90   : > { %5070 = vmatpush1.bf16.msra.mxu0 %v12412_v34  ;;  %v12450_v34 = vld [vmem:[#allocation233_spill] sm:$0xff] }
 0xe91   : > { %5071 = vmatprep.subr.bf16.mxu0 %v12413_v50 }
 0xe92   : > { %5043 = vmatpush1.bf16.msra.mxu1 %v12414_v7  ;;  %v12451_v7 = vld [vmem:[#allocation235_spill] sm:$0xff] }
 0xe93   : > { %5044 = vmatprep.subr.bf16.mxu1 %v12415_v53  ;;  %v12452_v53 = vld [vmem:[#allocation357_spill] sm:$0xff] }
 0xe94   : > { %5072 = vmatpush1.bf16.msra.mxu0 %v12416_v21  ;;  %v12453_v21 = vld [vmem:[#allocation358_spill] sm:$0xff] }
 0xe95   : > { %5073 = vmatprep.subr.bf16.mxu0 %v12417_v3  ;;  %v12454_v3 = vld [vmem:[#allocation237_spill] sm:$0xff] }
 0xe96   : > { %5045 = vmatpush1.bf16.msra.mxu1 %v12418_v25  ;;  %v12455_v25 = vld [vmem:[#allocation239_spill] sm:$0xff] }
 0xe97   : > { %5046 = vmatprep.subr.bf16.mxu1 %v12419_v2  ;;  %v12456_v2 = vld [vmem:[#allocation359_spill] sm:$0xff] }
 0xe98   : > { %5074 = vmatpush1.bf16.msra.mxu0 %v12420_v17  ;;  %v12457_v17 = vld [vmem:[#allocation360_spill] sm:$0xff] }
 0xe99   : > { %5075 = vmatprep.subr.bf16.mxu0 %v12421_v49  ;;  %v12458_v49 = vld [vmem:[#allocation241_spill] sm:$0xff] }
 0xe9a   : > { %5047 = vmatpush1.bf16.msra.mxu1 %v12422_v58  ;;  %v12459_v58 = vld [vmem:[#allocation243_spill] sm:$0xff] }
 0xe9b   : > { %5048 = vmatprep.subr.bf16.mxu1 %v12423_v44  ;;  %v12460_v44 = vld [vmem:[#allocation361_spill] sm:$0xff] }
 0xe9c   : > { %5076 = vmatpush1.bf16.msra.mxu0 %v12424_v31  ;;  %v12461_v31 = vld [vmem:[#allocation362_spill] sm:$0xff] }
 0xe9d   : > { %5077 = vmatprep.subr.bf16.mxu0 %v12425_v41  ;;  %v12462_v41 = vld [vmem:[#allocation245_spill] sm:$0xff] }
 0xe9e   : > { %5049 = vmatpush1.bf16.msra.mxu1 %v12426_v24  ;;  %v12463_v24 = vld [vmem:[#allocation247_spill] sm:$0xff] }
 0xe9f   : > { %5100 = vmatprep.subr.bf16.mxu1 %v12427_v48  ;;  %v12464_v48 = vld [vmem:[#allocation363_spill] sm:$0xff] }
 0xea0   : > { %5078 = vmatpush1.bf16.msra.mxu0 %v12428_v62  ;;  %v12465_v62 = vld [vmem:[#allocation364_spill] sm:$0xff] }
 0xea1   : > { %5051 = vmatmul.mubr.bf16.vlgmr.msra.gmra.mrb[72].mxu1 %v10686_v39  ;;  %5079 = vmatprep.subr.bf16.mxu0 %v12429_v63  ;;  %v12466_v63 = vld [vmem:[#allocation249_spill] sm:$0xff] }
 0xea2   : > { %5101 = vmatpush1.bf16.msra.mxu1 %v12430_v19  ;;  %5132 = vmatprep.mubr.bf16.mxu1 %v10684_v54  ;;  %v12441_v54 = vld [vmem:[#allocation352_spill] sm:$0xff]  ;;  %v12468_v19 = vld [vmem:[#allocation365_spill] sm:$0xff] }
 0xea3   : > { %5102 = vmatprep.subr.bf16.mxu1 %v12431_v59  ;;  %v12469_v59 = vld [vmem:[#allocation366_spill] sm:$0xff] }
 0xea4   : > { %5080 = vmatpush1.bf16.msra.mxu0 %v12432_v14  ;;  %v12470_v14 = vld [vmem:[#allocation253_spill] sm:$0xff] }
 0xea5   : > { %5081 = vmatprep.subr.bf16.mxu0 %v12433_v55  ;;  %v12471_v55 = vld [vmem:[#allocation255_spill] sm:$0xff] }
 0xea6   : > { %5103 = vmatpush1.bf16.msra.mxu1 %v12434_v6  ;;  %v12472_v6 = vld [vmem:[#allocation367_spill] sm:$0xff] }
 0xea7   : > { %5104 = vmatprep.subr.bf16.mxu1 %v12435_v51  ;;  %v12473_v51 = vld [vmem:[#allocation368_spill] sm:$0xff] }
 0xea8   : > { %5082 = vmatpush1.bf16.msra.mxu0 %v12436_v1  ;;  %v12474_v1 = vld [vmem:[#allocation257_spill] sm:$0xff] }
 0xea9   : > { %5083 = vmatprep.subr.bf16.mxu0 %v12437_v36  ;;  %v12475_v36 = vld [vmem:[#allocation259_spill] sm:$0xff] }
 0xeaa   : > { %5105 = vmatpush1.bf16.msra.mxu1 %v12438_v60  ;;  %v12476_v60 = vld [vmem:[#allocation369_spill] sm:$0xff] }
 0xeab   : > { %5106 = vmatprep.subr.bf16.mxu1 %v12439_v46  ;;  %v12477_v46 = vld [vmem:[#allocation370_spill] sm:$0xff] }
 0xeac   : > { %5084 = vmatpush1.bf16.msra.mxu0 %v12440_v56  ;;  %v12478_v56 = vld [vmem:[#allocation261_spill] sm:$0xff] }
 0xead   : > { %5085 = vmatprep.subr.bf16.mxu0 %v12441_v54  ;;  %v12479_v54 = vld [vmem:[#allocation263_spill] sm:$0xff] }
 0xeae   : > { %5107 = vmatpush1.bf16.msra.mxu1 %v12442_v42  ;;  %v12480_v42 = vld [vmem:[#allocation371_spill] sm:$0xff] }
 0xeaf   : > { %5108 = vmatprep.subr.bf16.mxu1 %v12443_v52  ;;  %v12481_v52 = vld [vmem:[#allocation372_spill] sm:$0xff] }
 0xeb0   : > { %5086 = vmatpush1.bf16.msra.mxu0 %v12444_v15  ;;  %v12482_v15 = vld [vmem:[#allocation265_spill] sm:$0xff] }
 0xeb1   : > { %5087 = vmatprep.subr.bf16.mxu0 %v12445_v30  ;;  %v12483_v30 = vld [vmem:[#allocation267_spill] sm:$0xff] }
 0xeb2   : > { %5109 = vmatpush1.bf16.msra.mxu1 %v12446_v47  ;;  %v12484_v47 = vld [vmem:[#allocation373_spill] sm:$0xff] }
 0xeb3   : > { %5110 = vmatprep.subr.bf16.mxu1 %v12447_v23  ;;  %v12485_v23 = vld [vmem:[#allocation374_spill] sm:$0xff] }
 0xeb4   : > { %v11064_v35 = vpop.f32.mrb[60].mxu1  ;;  %5088 = vmatpush1.bf16.msra.mxu0 %v12448_v32  ;;  %v12486_v32 = vld [vmem:[#allocation269_spill] sm:$0xff] }
 0xeb5   : > { %v11067_v18 = vpop.f32.mrb[61].mxu1  ;;  %5089 = vmatprep.subr.bf16.mxu0 %v12449_v61  ;;  %v12487_v61 = vld [vmem:[#allocation271_spill] sm:$0xff] }
 0xeb6   : > { %v4810_v5 = vpop.f32.mrb[62].mxu1  ;;  %5111 = vmatpush1.bf16.msra.mxu1 %v12450_v34  ;;  %v12489_v34 = vld [vmem:[#allocation376_spill] sm:$0xff] }
 0xeb7   : > { %v4811_v50 = vpop.f32.mrb[63].mxu1  ;;  %5112 = vmatprep.subr.bf16.mxu1 %v12451_v7  ;;  %v12488_v5 = vld [vmem:[#allocation375_spill] sm:$0xff]  ;;  %v12491_v7 = vld [vmem:[#allocation377_spill] sm:$0xff] }
 0xeb8   : > { %5090 = vmatpush1.bf16.msra.mxu0 %v12452_v53  ;;  %v12490_v50 = vld [vmem:[#allocation273_spill] sm:$0xff]  ;;  %v12492_v53 = vld [vmem:[#allocation378_spill] sm:$0xff] }
 0xeb9   : > { %5141 = vmatprep.subr.bf16.mxu0 %v12453_v21  ;;  %v12493_v21 = vld [vmem:[#allocation379_spill] sm:$0xff] }
 0xeba   : > { %5113 = vmatpush1.bf16.msra.mxu1 %v12454_v3  ;;  %v12494_v3 = vld [vmem:[#allocation380_spill] sm:$0xff] }
 0xebb   : > { %5092 = vmatmul.mubr.bf16.vlgmr.msra.gmra.mrb[56].mxu0 %v10927_v43  ;;  %5114 = vmatprep.subr.bf16.mxu1 %v12455_v25  ;;  %v12495_v25 = vld [vmem:[#allocation381_spill] sm:$0xff] }
 0xebc   : > { %5142 = vmatpush1.bf16.msra.mxu0 %v12456_v2  ;;  %5173 = vmatprep.mubr.bf16.mxu0 %v10925_v8  ;;  %v12467_v8 = vld [vmem:[#allocation251_spill] sm:$0xff]  ;;  %v12496_v2 = vld [vmem:[#allocation382_spill] sm:$0xff] }
 0xebd   : > { %5143 = vmatprep.subr.bf16.mxu0 %v12457_v17  ;;  %v12497_v17 = vld [vmem:[#allocation40_spill] sm:$0xff] }
 0xebe   : > { %5115 = vmatpush1.bf16.msra.mxu1 %v12458_v49  ;;  %v12499_v49 = vld [vmem:[#allocation384_spill] sm:$0xff] }
 0xebf   : > { %5116 = vmatprep.subr.bf16.mxu1 %v12459_v58 }
 0xec0   : > { %5144 = vmatpush1.bf16.msra.mxu0 %v12460_v44  ;;  %v12500_v44 = vld [vmem:[#allocation385_spill] sm:$0xff] }
 0xec1   : > { %5145 = vmatprep.subr.bf16.mxu0 %v12461_v31 }
 0xec2   : > { %5117 = vmatpush1.bf16.msra.mxu1 %v12462_v41  ;;  %v12501_v41 = vld [vmem:[#allocation386_spill] sm:$0xff] }
 0xec3   : > { %5118 = vmatprep.subr.bf16.mxu1 %v12463_v24 }
 0xec4   : > { %5146 = vmatpush1.bf16.msra.mxu0 %v12464_v48 }
 0xec5   : > { %5147 = vmatprep.subr.bf16.mxu0 %v12465_v62  ;;  %v12502_v62 = vld [vmem:[#allocation387_spill] sm:$0xff] }
 0xec6   : > { %5119 = vmatpush1.bf16.msra.mxu1 %v12466_v63  ;;  %v12503_v63 = vmov 0  }
 0xec7   : > { %5120 = vmatprep.subr.bf16.mxu1 %v12467_v8 }
 0xec8   : > { %5148 = vmatpush1.bf16.msra.mxu0 %v12468_v19 }
 0xec9   : > { %5149 = vmatprep.subr.bf16.mxu0 %v12469_v59 }
 0xeca   : > { %5121 = vmatpush1.bf16.msra.mxu1 %v12470_v14 }
 0xecb   : > { %5122 = vmatprep.subr.bf16.mxu1 %v12471_v55 }
 0xecc   : > { %5150 = vmatpush1.bf16.msra.mxu0 %v12472_v6 }
 0xecd   : > { %5151 = vmatprep.subr.bf16.mxu0 %v12473_v51 }
 0xece   : > { %5123 = vmatpush1.bf16.msra.mxu1 %v12474_v1 }
 0xecf   : > { %5124 = vmatprep.subr.bf16.mxu1 %v12475_v36 }
 0xed0   : > { %5152 = vmatpush1.bf16.msra.mxu0 %v12476_v60 }
 0xed1   : > { %5153 = vmatprep.subr.bf16.mxu0 %v12477_v46 }
 0xed2   : > { %5125 = vmatpush1.bf16.msra.mxu1 %v12478_v56 }
 0xed3   : > { %5126 = vmatprep.subr.bf16.mxu1 %v12479_v54 }
 0xed4   : > { %5154 = vmatpush1.bf16.msra.mxu0 %v12480_v42 }
 0xed5   : > { %5155 = vmatprep.subr.bf16.mxu0 %v12481_v52 }
 0xed6   : > { %5127 = vmatpush1.bf16.msra.mxu1 %v12482_v15 }
 0xed7   : > { %5128 = vmatprep.subr.bf16.mxu1 %v12483_v30 }
 0xed8   : > { %5156 = vmatpush1.bf16.msra.mxu0 %v12484_v47  ;;  %v12504_v47 = vld [vmem:[#allocation388_spill] sm:$0xff] }
 0xed9   : > { %5157 = vmatprep.subr.bf16.mxu0 %v12485_v23 }
 0xeda   : > { %5129 = vmatpush1.bf16.msra.mxu1 %v12486_v32  ;;  %v12505_v32 = vld [vmem:[#allocation389_spill] sm:$0xff] }
 0xedb   : > { %5130 = vmatprep.subr.bf16.mxu1 %v12487_v61 }
 0xedc   : > { %5158 = vmatpush1.bf16.msra.mxu0 %v12488_v5  ;;  %v12506_v5 = vld [vmem:[#allocation390_spill] sm:$0xff] }
 0xedd   : > { %5159 = vmatprep.subr.bf16.mxu0 %v12489_v34 }
 0xede   : > { %5131 = vmatpush1.bf16.msra.mxu1 %v12490_v50 }
 0xedf   : > { %5240 = vmatprep.subr.bf16.mxu1 %v9920_v13 }
 0xee0   : > { %5160 = vmatpush1.bf16.msra.mxu0 %v12491_v7 }
 0xee1   : > { %5133 = vmatmul.mubr.bf16.vlgmr.msra.gmra.mrb[76].mxu1 %v10686_v39  ;;  %5161 = vmatprep.subr.bf16.mxu0 %v12492_v53  ;;  %v12498_v39 = vld [vmem:[#allocation383_spill] sm:$0xff] }
 0xee4   : > { %5162 = vmatpush1.bf16.msra.mxu0 %v12493_v21 }
 0xee5   : > { %5163 = vmatprep.subr.bf16.mxu0 %v12494_v3 }
 0xee7   : > { %5241 = vmatpush1.bf16.xpose.msra.mxu1 %v9399_v4 }
 0xee8   : > { %5164 = vmatpush1.bf16.msra.mxu0 %v10593_v9  ;;  %5242 = vmatprep.subr.bf16.mxu1 %v10236_v11 }
 0xee9   : > { %5165 = vmatprep.subr.bf16.mxu0 %v10596_v45 }
 0xeec   : > { %5166 = vmatpush1.bf16.msra.mxu0 %v12495_v25 }
 0xeed   : > { %5167 = vmatprep.subr.bf16.mxu0 %v12496_v2 }
 0xeef   : > { %5243 = vmatpush1.bf16.xpose.msra.mxu1 %v12497_v17 }
 0xef0   : > { %5168 = vmatpush1.bf16.msra.mxu0 %v12498_v39 }
 0xef1   : > { %5169 = vmatprep.subr.bf16.mxu0 %v12499_v49 }
 0xef4   : > { %v4888_v58 = vpop.f32.mrb[64].mxu1  ;;  %5170 = vmatpush1.bf16.msra.mxu0 %v12500_v44 }
 0xef5   : > { %v4889_v31 = vadd.f32 %v4888_v58, %v10992_v29  ;;  %v4890_v9 = vpop.f32.mrb[65].mxu1  ;;  %5171 = vmatprep.subr.bf16.mxu0 %v12501_v41 }
 0xef6   : > { %v4891_v45 = vadd.f32 %v4890_v9, %v10995_v0  ;;  %v4892_v24 = vpop.f32.mrb[66].mxu1 }
 0xef7   : > { %v4893_v48 = vpop.f32.mrb[67].mxu1 }
 0xef8   : > { %5172 = vmatpush1.bf16.msra.mxu0 %v12502_v62 }
 0xef9   : > { %5295 = vmatprep.subr.bf16.mxu0 %v9920_v13 }
 0xefb   : > { %5174 = vmatmul.mubr.bf16.vlgmr.msra.gmra.mrb[60].mxu0 %v10927_v43 }
 0xefc   : > { %5296 = vmatpush1.bf16.msra.mxu0 %v9399_v4  ;;  %5327 = vmatprep.mubr.bf16.mxu0 %v12503_v63 }
 0xefd   : > { %5297 = vmatprep.subr.bf16.mxu0 %v10236_v11 }
 0xf00   : > { %5298 = vmatpush1.bf16.msra.mxu0 %v12497_v17 }
 0xf0e   : > { %v4929_v29 = vpop.f32.mrb[48].mxu0 }
 0xf0f   : > { %v4930_v8 = vadd.f32 %v4929_v29, %v4889_v31  ;;  %v4931_v19 = vpop.f32.mrb[49].mxu0 }
 0xf10   : > { %v4932_v0 = vadd.f32 %v4931_v19, %v4891_v45  ;;  %v4933_v59 = vpop.f32.mrb[50].mxu0 }
 0xf11   : > { %v4934_v14 = vpop.f32.mrb[51].mxu0  ;;  %v5182_v15 = vadd.f32 %v4930_v8, %v10644_v16 }
 0xf12   : > { %v5183_v23 = vadd.f32 %v4932_v0, %v12504_v47 }
 0xf13   : > { %v7332_v50 = vmul.f32 -1.442695, %v5182_v15 }
 0xf14   : > { %v7333_v7 = vmul.f32 -1.442695, %v5183_v23 }
 0xf15   : > { %8167 = vpow2.f32 %v7332_v50 }
 0xf16   : > { %8169 = vpow2.f32 %v7333_v7 }
 0xf34   : > { %v4970_v55 = vpop.f32.mrb[68].mxu1 }
 0xf35   : > { %v4971_v6 = vadd.f32 %v4970_v55, %v10798_v28  ;;  %v4972_v13 = vpop.f32.mrb[69].mxu1 }
 0xf36   : > { %v4973_v43 = vadd.f32 %v4972_v13, %v10800_v37  ;;  %v4974_v51 = vpop.f32.mrb[70].mxu1 }
 0xf37   : > { %v4975_v4 = vpop.f32.mrb[71].mxu1 }
 0xf4e   : > { %v5011_v1 = vpop.f32.mrb[52].mxu0 }
 0xf4f   : > { %v5012_v36 = vadd.f32 %v5011_v1, %v4971_v6  ;;  %v5013_v60 = vpop.f32.mrb[53].mxu0 }
 0xf50   : > { %v5014_v11 = vadd.f32 %v5013_v60, %v4973_v43  ;;  %v5015_v46 = vpop.f32.mrb[54].mxu0 }
 0xf51   : > { %v5016_v56 = vpop.f32.mrb[55].mxu0  ;;  %v5184_v61 = vadd.f32 %v5012_v36, %v12505_v32 }
 0xf52   : > { %v5185_v34 = vadd.f32 %v5014_v11, %v12506_v5 }
 0xf53   : > { %v7334_v53 = vmul.f32 -1.442695, %v5184_v61 }
 0xf54   : > { %v7335_v21 = vmul.f32 -1.442695, %v5185_v34 }
 0xf55   : > { %8171 = vpow2.f32 %v7334_v53 }
 0xf56   : > { %8173 = vpow2.f32 %v7335_v21 }
 0xf74   : > { %v5052_v54 = vpop.f32.mrb[72].mxu1 }
 0xf75   : > { %v5053_v42 = vadd.f32 %v5052_v54, %v11064_v35  ;;  %v5054_v52 = vpop.f32.mrb[73].mxu1  ;;  %v8168_v35 = vpop.eup %8167 }
 0xf76   : > { %v5055_v30 = vadd.f32 %v5054_v52, %v11067_v18  ;;  %v5056_v28 = vpop.f32.mrb[74].mxu1  ;;  %v8170_v16 = vpop.eup %8169  ;;  %v5196_v25 = vadd.f32 1.0, %v8168_v35  ;;  %v7909_v35 = vld [vmem:[#allocation22 + $0x4] ss:$8 sps:$4 sm:$0xff]  }
 0xf77   : > { %v5057_v37 = vpop.f32.mrb[75].mxu1  ;;  %v8172_v3 = vpop.eup %8171  ;;  %v5197_v2 = vadd.f32 1.0, %v8170_v16  ;;  %6138 = vmatprep.subr.bf16.mxu0 %v7909_v35  ;;  %v7990_v35 = vld [vmem:[#allocation22 + $0x1b4] ss:$8 sps:$4 sm:$0xff]  }
 0xf78   : > { %v8174_v18 = vpop.eup %8173  ;;  %v5208_v17 = vadd.f32 1.0, %v8172_v3  ;;  %8175 = vrcp.f32 %v5196_v25 }
 0xf79   : > { %v5209_v39 = vadd.f32 1.0, %v8174_v18  ;;  %8177 = vrcp.f32 %v5197_v2  ;;  %v7907_v2 = vld [vmem:[#allocation22] ss:$8 sps:$4 sm:$0xff]  }
 0xf7a   : > { %8179 = vrcp.f32 %v5208_v17 }
 0xf7b   : > { %8181 = vrcp.f32 %v5209_v39 }
 0xf82   : > { %v8176_v48 = vpop.eup %8175 }
 0xf83   : > { %v8178_v62 = vpop.eup %8177 }
 0xf84   : > { %v8180_v63 = vpop.eup %8179 }
 0xf85   : > { %v8182_v29 = vpop.eup %8181  ;;  %v5228_v0 = vmul.f32 %v8180_v63, %v10668_v12  ;;  %v7927_v63 = vld [vmem:[#allocation22 + $0x64] ss:$8 sps:$4 sm:$0xff]  }
 0xf86   : > { %v5229_v14 = vmul.f32 %v8182_v29, %v10670_v20  ;;  %v7925_v29 = vld [vmem:[#allocation22 + $0x60] ss:$8 sps:$4 sm:$0xff]  }
 0xf8e   : > { %v5093_v49 = vpop.f32.mrb[56].mxu0 }
 0xf8f   : > { %v5094_v58 = vadd.f32 %v5093_v49, %v5053_v42  ;;  %v5095_v44 = vpop.f32.mrb[57].mxu0 }
 0xf90   : > { %v5096_v31 = vadd.f32 %v5095_v44, %v5055_v30  ;;  %v5097_v9 = vpop.f32.mrb[58].mxu0  ;;  %v7910_v44 = vld [vmem:[#allocation22 + $0x10] ss:$8 sps:$4 sm:$0xff]  }
 0xf91   : > { %v5186_v41 = vadd.f32 %v5094_v58, %v10660_v33  ;;  %v5098_v45 = vpop.f32.mrb[59].mxu0  ;;  %v7912_v58 = vld [vmem:[#allocation22 + $0x14] ss:$8 sps:$4 sm:$0xff]   ;;  %v7913_v9 = vld [vmem:[#allocation22 + $0x20] ss:$8 sps:$4 sm:$0xff]  }
 0xf92   : > { %v5187_v24 = vadd.f32 %v5096_v31, %v10662_v22  ;;  %v7915_v31 = vld [vmem:[#allocation22 + $0x24] ss:$8 sps:$4 sm:$0xff]   ;;  %v7916_v45 = vld [vmem:[#allocation22 + $0x30] ss:$8 sps:$4 sm:$0xff]  }
 0xf93   : > { %8183 = vtanh.f32 %v5186_v41  ;;  %v7918_v41 = vld [vmem:[#allocation22 + $0x34] ss:$8 sps:$4 sm:$0xff]  }
 0xf94   : > { %8185 = vtanh.f32 %v5187_v24  ;;  %v7919_v24 = vld [vmem:[#allocation22 + $0x40] ss:$8 sps:$4 sm:$0xff]  }
 0xf9d   : > { %v8184_v8 = vpop.eup %8183 }
 0xf9e   : > { %v8186_v19 = vpop.eup %8185  ;;  %v5230_v59 = vmul.f32 %v8184_v8, %v8176_v48  ;;  %v7924_v48 = vld [vmem:[#allocation22 + $0x54] ss:$8 sps:$4 sm:$0xff]  }
 0xf9f   : > { %v5231_v55 = vmul.f32 %v8186_v19, %v8178_v62  ;;  %v7922_v62 = vld [vmem:[#allocation22 + $0x50] ss:$8 sps:$4 sm:$0xff]   ;;  %v7930_v8 = vld [vmem:[#allocation22 + $0x74] ss:$8 sps:$4 sm:$0xff]  }
 0xfa0   : > { %v5232_v6 = vadd.f32 %v5230_v59, %v5228_v0  ;;  %v7928_v19 = vld [vmem:[#allocation22 + $0x70] ss:$8 sps:$4 sm:$0xff]   ;;  %v7933_v0 = vld [vmem:[#allocation22 + $0x84] ss:$8 sps:$4 sm:$0xff]   ;;  %v7931_v59 = vld [vmem:[#allocation22 + $0x80] ss:$8 sps:$4 sm:$0xff]  }
 0xfa1   : > { %v5233_v33 = vadd.f32 %v5231_v55, %v5229_v14  ;;  %v7936_v14 = vld [vmem:[#allocation22 + $0x94] ss:$8 sps:$4 sm:$0xff]   ;;  %v7934_v55 = vld [vmem:[#allocation22 + $0x90] ss:$8 sps:$4 sm:$0xff]  }
 0xfb4   : > { %v5134_v13 = vpop.f32.mrb[76].mxu1 }
 0xfb5   : > { %v5135_v43 = vadd.f32 %v5134_v13, %v10802_v40  ;;  %v5136_v22 = vpop.f32.mrb[77].mxu1  ;;  %v7942_v13 = vld [vmem:[#allocation22 + $0xb4] ss:$8 sps:$4 sm:$0xff]  }
 0xfb6   : > { %v5137_v51 = vadd.f32 %v5136_v22, %v10804_v10  ;;  %v5138_v4 = vpop.f32.mrb[78].mxu1  ;;  %v7945_v22 = vld [vmem:[#allocation22 + $0xc4] ss:$8 sps:$4 sm:$0xff]  }
 0xfb7   : > { %v5139_v1 = vpop.f32.mrb[79].mxu1  ;;  %v7948_v4 = vld [vmem:[#allocation22 + $0xd4] ss:$8 sps:$4 sm:$0xff]  }
 0xfb8   : > { %v7946_v1 = vld [vmem:[#allocation22 + $0xd0] ss:$8 sps:$4 sm:$0xff]  }
 0xfce   : > { %v5175_v36 = vpop.f32.mrb[60].mxu0 }
 0xfcf   : > { %v5176_v60 = vadd.f32 %v5175_v36, %v5135_v43  ;;  %v5177_v11 = vpop.f32.mrb[61].mxu0  ;;  %v7940_v43 = vld [vmem:[#allocation22 + $0xb0] ss:$8 sps:$4 sm:$0xff]   ;;  %v7951_v36 = vld [vmem:[#allocation22 + $0xe4] ss:$8 sps:$4 sm:$0xff]  }
 0xfd0   : > { %v5178_v46 = vadd.f32 %v5177_v11, %v5137_v51  ;;  %v5179_v56 = vpop.f32.mrb[62].mxu0  ;;  %v7943_v51 = vld [vmem:[#allocation22 + $0xc0] ss:$8 sps:$4 sm:$0xff]   ;;  %v7954_v11 = vld [vmem:[#allocation22 + $0xf4] ss:$8 sps:$4 sm:$0xff]  }
 0xfd1   : > { %v5188_v12 = vadd.f32 %v5176_v60, %v10674_v27  ;;  %v5180_v54 = vpop.f32.mrb[63].mxu0  ;;  %v7949_v60 = vld [vmem:[#allocation22 + $0xe0] ss:$8 sps:$4 sm:$0xff]   ;;  %v7957_v56 = vld [vmem:[#allocation22 + $0x104] ss:$8 sps:$4 sm:$0xff]  }
 0xfd2   : > { %v5189_v20 = vadd.f32 %v5178_v46, %v10676_v26  ;;  %v7952_v46 = vld [vmem:[#allocation22 + $0xf0] ss:$8 sps:$4 sm:$0xff]   ;;  %v7960_v54 = vld [vmem:[#allocation22 + $0x114] ss:$8 sps:$4 sm:$0xff]  }
 0xfd3   : > { %v7336_v42 = vmul.f32 -1.442695, %v5188_v12  ;;  %v7955_v12 = vld [vmem:[#allocation22 + $0x100] ss:$8 sps:$4 sm:$0xff]  }
 0xfd4   : > { %v7337_v52 = vmul.f32 -1.442695, %v5189_v20  ;;  %v7958_v20 = vld [vmem:[#allocation22 + $0x110] ss:$8 sps:$4 sm:$0xff]  }
 0xfd5   : > { %8187 = vpow2.f32 %v7336_v42  ;;  %v7963_v42 = vld [vmem:[#allocation22 + $0x124] ss:$8 sps:$4 sm:$0xff]  }
 0xfd6   : > { %8189 = vpow2.f32 %v7337_v52  ;;  %v7961_v52 = vld [vmem:[#allocation22 + $0x120] ss:$8 sps:$4 sm:$0xff]  }
 0xfd7   : > { %8191 = vtanh.f32 %v5232_v6  ;;  %v7939_v6 = vld [vmem:[#allocation22 + $0xa4] ss:$8 sps:$4 sm:$0xff]  }
 0xfd8   : > { %8193 = vtanh.f32 %v5233_v33  ;;  %v7937_v33 = vld [vmem:[#allocation22 + $0xa0] ss:$8 sps:$4 sm:$0xff]  }
 0xfdf   : > { %v8188_v40 = vpop.eup %8187 }
 0xfe0   : > { %v8190_v15 = vpop.eup %8189  ;;  %v5222_v10 = vadd.f32 1.0, %v8188_v40  ;;  %v7966_v40 = vld [vmem:[#allocation22 + $0x134] ss:$8 sps:$4 sm:$0xff]  }
 0xfe1   : > { %v5223_v30 = vadd.f32 1.0, %v8190_v15  ;;  %v8192_v28 = vpop.eup %8191  ;;  %v7964_v15 = vld [vmem:[#allocation22 + $0x130] ss:$8 sps:$4 sm:$0xff]  }
 0xfe2   : > { %8195 = vrcp.f32 %v5222_v10  ;;  %v8194_v47 = vpop.eup %8193  ;;  %v7969_v10 = vld [vmem:[#allocation22 + $0x144] ss:$8 sps:$4 sm:$0xff]  }
 0xfe3   : > { %8197 = vrcp.f32 %v5223_v30  ;;  %v7967_v30 = vld [vmem:[#allocation22 + $0x140] ss:$8 sps:$4 sm:$0xff]  }
 0xfec   : > { %v8196_v23 = vpop.eup %8195 }
 0xfed   : > { %v8198_v37 = vpop.eup %8197  ;;  %v11155_v27 = vmul.f32 %v8196_v23, %v8192_v28  ;;  %v7972_v28 = vld [vmem:[#allocation22 + $0x154] ss:$8 sps:$4 sm:$0xff]   ;;  %v7975_v23 = vld [vmem:[#allocation22 + $0x164] ss:$8 sps:$4 sm:$0xff]  }
 0xfee   : > { %v11157_v32 = vmul.f32 %v8198_v37, %v8194_v47  ;;  %v7970_v47 = vld [vmem:[#allocation22 + $0x150] ss:$8 sps:$4 sm:$0xff]   ;;  %v7973_v37 = vld [vmem:[#allocation22 + $0x160] ss:$8 sps:$4 sm:$0xff]  }
 0xfef   : > { %v11163_v61 = vpack.c.bf16 %v11155_v27, %v11155_v27 }
 0xff0   : > { %v5239_v26 = vpack.c.bf16 %v11157_v32, %v11157_v32 }
 0xff2   : > { %5272 = vmatprep.mubr.bf16.mxu1 %v5239_v26 }
 0xff3   : > { %5273 = vmatmul.mubr.bf16.vlgmr.msra.gmra.mrb[80].mxu1 %v11163_v61 }
0x10c6   : > { %v5274_v5 = vpop.f32.mrb[80].mxu1 }
0x10c7   : > { %v5280_v34 = vsel %vm4626_vm5, %v5274_v5, -3e+38  ;;  %v5276_v50 = vpop.f32.mrb[81].mxu1  ;;  %v7981_v5 = vld [vmem:[#allocation22 + $0x184] ss:$8 sps:$4 sm:$0xff]  }
0x10c8   : > { %v5277_v7 = vpop.f32.mrb[82].mxu1  ;;  %v5281_v53 = vsel %vm4628_vm6, %v5280_v34, -inf  ;;  %v7984_v50 = vld [vmem:[#allocation22 + $0x194] ss:$8 sps:$4 sm:$0xff]  }
0x10c9   : > { %5282 = vmax.xlane.f32.xlu0 %v5281_v53  ;;  %v5278_v21 = vpop.f32.mrb[83].mxu1  ;;  %v7982_v7 = vld [vmem:[#allocation22 + $0x190] ss:$8 sps:$4 sm:$0xff]   ;;  %v7987_v53 = vld [vmem:[#allocation22 + $0x1a4] ss:$8 sps:$4 sm:$0xff]  }
0x10ca   : > { %v7985_v21 = vld [vmem:[#allocation22 + $0x1a0] ss:$8 sps:$4 sm:$0xff]  }
0x1156   : > { %v5283_v16 = vpop.xlane.xlu0 %5282 }
0x1157   : > { %v5284_v3 = vsub.f32 %v5280_v34, %v5283_v16  ;;  %v7979_v34 = vld [vmem:[#allocation22 + $0x180] ss:$8 sps:$4 sm:$0xff]   ;;  %v7988_v16 = vld [vmem:[#allocation22 + $0x1b0] ss:$8 sps:$4 sm:$0xff]  }
0x1159   : > { %v5285_v18 = vmul.f32 1.442695, %v5284_v3  ;;  %v7993_v3 = vld [vmem:[#allocation22 + $0x1c4] ss:$8 sps:$4 sm:$0xff]  }
0x115b   : > { %8199 = vpow2.f32 %v5285_v18  ;;  %v7991_v18 = vld [vmem:[#allocation22 + $0x1c0] ss:$8 sps:$4 sm:$0xff]  }
0x1165   : > { %v8200_v25 = vpop.eup %8199 }
0x1166   : > { %v5287_v17 = vsel %vm4626_vm5, %v8200_v25, 0.0  ;;  %v7996_v25 = vld [vmem:[#allocation22 + $0x1d4] ss:$8 sps:$4 sm:$0xff]  }
0x1167   : > { %v5288_v39 = vsel %vm4628_vm6, %v5287_v17, 0.0  ;;  %v5291_v49 = vpack.c.bf16 %v5287_v17, %v5287_v17  ;;  %v7999_v17 = vld [vmem:[#allocation22 + $0x1e4] ss:$8 sps:$4 sm:$0xff]  }
0x1168   : > { %5289 = vadd.xlane.f32.xlu1 %v5288_v39  ;;  %v7997_v39 = vld [vmem:[#allocation22 + $0x1e0] ss:$8 sps:$4 sm:$0xff]  }
0x1169   : > { %7338 = vmatmul.mubr.msk.bf16.vlgmr.msra.gmra.mrb[64].mxu0 %vm1012_vm1, %v5291_v49  ;;  %v8002_v49 = vld [vmem:[#allocation22 + $0x1f4] ss:$8 sps:$4 sm:$0xff]  }
0x116a   : > { %6139 = vmatpush1.bf16.msra.mxu0 %v7907_v2  ;;  %6170 = vmatprep.mubr.bf16.mxu0 %v5239_v26  ;;  %v7978_v26 = vld [vmem:[#allocation22 + $0x174] ss:$8 sps:$4 sm:$0xff]   ;;  %v7994_v2 = vld [vmem:[#allocation22 + $0x1d0] ss:$8 sps:$4 sm:$0xff]  }
0x116b   : > { %6140 = vmatprep.subr.bf16.mxu0 %v7912_v58  ;;  %v8000_v58 = vld [vmem:[#allocation22 + $0x1f0] ss:$8 sps:$4 sm:$0xff]  }
0x116e   : > { %6141 = vmatpush1.bf16.msra.mxu0 %v7910_v44  ;;  %v8005_v44 = vld [vmem:[#allocation22 + $0x204] ss:$8 sps:$4 sm:$0xff]  }
0x116f   : > { %6142 = vmatprep.subr.bf16.mxu0 %v7915_v31 }
0x1172   : > { %6143 = vmatpush1.bf16.msra.mxu0 %v7913_v9 }
0x1173   : > { %6144 = vmatprep.subr.bf16.mxu0 %v7918_v41 }
0x1176   : > { %6145 = vmatpush1.bf16.msra.mxu0 %v7916_v45 }
0x1177   : > { %6146 = vmatprep.subr.bf16.mxu0 %v7921_v38 }
0x117a   : > { %6147 = vmatpush1.bf16.msra.mxu0 %v7919_v24 }
0x117b   : > { %6148 = vmatprep.subr.bf16.mxu0 %v7924_v48 }
0x117e   : > { %6149 = vmatpush1.bf16.msra.mxu0 %v7922_v62 }
0x117f   : > { %6150 = vmatprep.subr.bf16.mxu0 %v7927_v63  ;;  %v5345_v63 = vrot.slane %v11157_v32, 2  ;;  %v8100_v32 = vld [vmem:[%s12507_s4] sm:$0xff]  }
0x1182   : > { %6151 = vmatpush1.bf16.msra.mxu0 %v7925_v29 }
0x1183   : > { %6152 = vmatprep.subr.bf16.mxu0 %v7930_v8 }
0x1186   : > { %6153 = vmatpush1.bf16.msra.mxu0 %v7928_v19  ;;  %v8003_v19 = vld [vmem:[#allocation22 + $0x200] ss:$8 sps:$4 sm:$0xff]  }
0x1187   : > { %6154 = vmatprep.subr.bf16.mxu0 %v7933_v0 }
0x118a   : > { %6155 = vmatpush1.bf16.msra.mxu0 %v7931_v59  ;;  %v8008_v59 = vld [vmem:[#allocation22 + $0x214] ss:$8 sps:$4 sm:$0xff]  }
0x118b   : > { %6156 = vmatprep.subr.bf16.mxu0 %v7936_v14  ;;  %v5355_v14 = vpack.c.bf16 %v5345_v63, %v5345_v63  ;;  %v8068_v63 = vld [vmem:[#allocation22 + $0x354] ss:$8 sps:$4 sm:$0xff]  }
0x118e   : > { %6157 = vmatpush1.bf16.msra.mxu0 %v7934_v55  ;;  %v8099_v55 = vld [vmem:[%s12507_s4 + $0x40] sm:$0xff]  }
0x118f   : > { %6158 = vmatprep.subr.bf16.mxu0 %v7939_v6  ;;  %v8101_v6 = vld [vmem:[%s12507_s4 + $0x48] sm:$0xff]   ;;  %7543 = vmatprep.subr.bf16.mxu1 %v8099_v55 }
0x1190   : > { %7544 = vmatpush3.bf16.msra.mxu1 %v8100_v32  ;;  %v8075_v55 = vld [vmem:[#allocation22 + $0x380] ss:$8 sps:$4 sm:$0xff]   ;;  %v8080_v32 = vld [vmem:[#allocation22 + $0x394] ss:$8 sps:$4 sm:$0xff]  }
0x1191   : > { %7545 = vmatprep.subr.bf16.mxu1 %v8101_v6  ;;  %v8078_v6 = vld [vmem:[#allocation22 + $0x390] ss:$8 sps:$4 sm:$0xff]  }
0x1192   : > { %6159 = vmatpush1.bf16.msra.mxu0 %v7937_v33  ;;  %v8006_v33 = vld [vmem:[#allocation22 + $0x210] ss:$8 sps:$4 sm:$0xff]  }
0x1193   : > { %6160 = vmatprep.subr.bf16.mxu0 %v7942_v13  ;;  %v8011_v13 = vld [vmem:[#allocation22 + $0x224] ss:$8 sps:$4 sm:$0xff]  }
0x1196   : > { %6161 = vmatpush1.bf16.msra.mxu0 %v7940_v43  ;;  %v8102_v43 = vld [vmem:[%s12507_s4 + $0x8] sm:$0xff]  }
0x1197   : > { %6162 = vmatprep.subr.bf16.mxu0 %v7945_v22  ;;  %v8103_v22 = vld [vmem:[%s12507_s4 + $0x50] sm:$0xff]   ;;  %7546 = vmatpush3.bf16.msra.mxu1 %v8102_v43  ;;  %v8086_v43 = vld [vmem:[#allocation22 + $0x3b4] ss:$8 sps:$4 sm:$0xff]  }
0x1198   : > { %7547 = vmatprep.subr.bf16.mxu1 %v8103_v22  ;;  %v8084_v22 = vld [vmem:[#allocation22 + $0x3b0] ss:$8 sps:$4 sm:$0xff]  }
0x119a   : > { %6163 = vmatpush1.bf16.msra.mxu0 %v7943_v51  ;;  %v8009_v51 = vld [vmem:[#allocation22 + $0x220] ss:$8 sps:$4 sm:$0xff]  }
0x119b   : > { %6164 = vmatprep.subr.bf16.mxu0 %v7948_v4  ;;  %v8014_v4 = vld [vmem:[#allocation22 + $0x234] ss:$8 sps:$4 sm:$0xff]  }
0x119e   : > { %6165 = vmatpush1.bf16.msra.mxu0 %v7946_v1  ;;  %v8104_v1 = vld [vmem:[%s12507_s4 + $0x10] sm:$0xff]  }
0x119f   : > { %6166 = vmatprep.subr.bf16.mxu0 %v7951_v36  ;;  %v8105_v36 = vld [vmem:[%s12507_s4 + $0x58] sm:$0xff]   ;;  %7548 = vmatpush3.bf16.msra.mxu1 %v8104_v1  ;;  %v8092_v1 = vld [vmem:[#allocation22 + $0x3d4] ss:$8 sps:$4 sm:$0xff]  }
0x11a0   : > { %7549 = vmatprep.subr.bf16.mxu1 %v8105_v36  ;;  %v8090_v36 = vld [vmem:[#allocation22 + $0x3d0] ss:$8 sps:$4 sm:$0xff]  }
0x11a2   : > { %6167 = vmatpush1.bf16.msra.mxu0 %v7949_v60  ;;  %v8012_v60 = vld [vmem:[#allocation22 + $0x230] ss:$8 sps:$4 sm:$0xff]  }
0x11a3   : > { %6168 = vmatprep.subr.bf16.mxu0 %v7954_v11  ;;  %v8017_v11 = vld [vmem:[#allocation22 + $0x244] ss:$8 sps:$4 sm:$0xff]  }
0x11a6   : > { %6169 = vmatpush1.bf16.msra.mxu0 %v7952_v46  ;;  %v8106_v46 = vld [vmem:[%s12507_s4 + $0x18] sm:$0xff]  }
0x11a7   : > { %6179 = vmatprep.subr.bf16.mxu0 %v7957_v56  ;;  %v8107_v56 = vld [vmem:[%s12507_s4 + $0x60] sm:$0xff]   ;;  %7550 = vmatpush3.bf16.msra.mxu1 %v8106_v46 }
0x11a8   : > { %7551 = vmatprep.subr.bf16.mxu1 %v8107_v56  ;;  %v8098_v46 = vld [vmem:[#allocation22 + $0x3f4] ss:$8 sps:$4 sm:$0xff]   ;;  %v8096_v56 = vld [vmem:[#allocation22 + $0x3f0] ss:$8 sps:$4 sm:$0xff]  }
0x11a9   : > { %6171 = vmatmul.mubr.bf16.vlgmr.msra.gmra.mrb[68].mxu0 %v11163_v61  ;;  %v7976_v61 = vld [vmem:[#allocation22 + $0x170] ss:$8 sps:$4 sm:$0xff]  }
0x11aa   : > { %6180 = vmatpush1.bf16.msra.mxu0 %v7955_v12  ;;  %v8015_v12 = vld [vmem:[#allocation22 + $0x240] ss:$8 sps:$4 sm:$0xff]  }
0x11ab   : > { %6181 = vmatprep.subr.bf16.mxu0 %v7960_v54  ;;  %v8020_v54 = vld [vmem:[#allocation22 + $0x254] ss:$8 sps:$4 sm:$0xff]  }
0x11ae   : > { %6182 = vmatpush1.bf16.msra.mxu0 %v7958_v20  ;;  %v8108_v20 = vld [vmem:[%s12507_s4 + $0x20] sm:$0xff]  }
0x11af   : > { %6183 = vmatprep.subr.bf16.mxu0 %v7963_v42  ;;  %v8109_v42 = vld [vmem:[%s12507_s4 + $0x68] sm:$0xff]   ;;  %7552 = vmatpush3.bf16.msra.mxu1 %v8108_v20  ;;  %v8111_v20 = vld [vmem:[%s12507_s4 + $0x70] sm:$0xff]  }
0x11b0   : > { %7553 = vmatprep.subr.bf16.mxu1 %v8109_v42  ;;  %v8112_v42 = vld [vmem:[%s12507_s4 + $0x30] sm:$0xff]  }
0x11b2   : > { %6184 = vmatpush1.bf16.msra.mxu0 %v7961_v52  ;;  %v8018_v52 = vld [vmem:[#allocation22 + $0x250] ss:$8 sps:$4 sm:$0xff]  }
0x11b3   : > { %6185 = vmatprep.subr.bf16.mxu0 %v7966_v40  ;;  %v8023_v40 = vld [vmem:[#allocation22 + $0x264] ss:$8 sps:$4 sm:$0xff]  }
0x11b6   : > { %6186 = vmatpush1.bf16.msra.mxu0 %v7964_v15  ;;  %v8110_v15 = vld [vmem:[%s12507_s4 + $0x28] sm:$0xff]  }
0x11b7   : > { %6187 = vmatprep.subr.bf16.mxu0 %v7969_v10  ;;  %v8021_v10 = vld [vmem:[#allocation22 + $0x260] ss:$8 sps:$4 sm:$0xff]   ;;  %7554 = vmatpush3.bf16.msra.mxu1 %v8110_v15 }
0x11b8   : > { %7555 = vmatprep.subr.bf16.mxu1 %v8111_v20  ;;  %v5486_v15 = vld [vmem:[#allocation23] sm:$0x3] }
0x11ba   : > { %6188 = vmatpush1.bf16.msra.mxu0 %v7967_v30  ;;  %v8026_v30 = vld [vmem:[#allocation22 + $0x274] ss:$8 sps:$4 sm:$0xff]  }
0x11bb   : > { %6189 = vmatprep.subr.bf16.mxu0 %v7972_v28  ;;  %v8024_v28 = vld [vmem:[#allocation22 + $0x270] ss:$8 sps:$4 sm:$0xff]   ;;  %7556 = vmatpush3.bf16.msra.mxu1 %v8112_v42 }
0x11be   : > { %6190 = vmatpush1.bf16.msra.mxu0 %v7970_v47  ;;  %v8029_v47 = vld [vmem:[#allocation22 + $0x284] ss:$8 sps:$4 sm:$0xff]  }
0x11bf   : > { %6191 = vmatprep.subr.bf16.mxu0 %v7975_v23  ;;  %v8027_v23 = vld [vmem:[#allocation22 + $0x280] ss:$8 sps:$4 sm:$0xff]  }
0x11c2   : > { %6192 = vmatpush1.bf16.msra.mxu0 %v7973_v37  ;;  %v8032_v37 = vld [vmem:[#allocation22 + $0x294] ss:$8 sps:$4 sm:$0xff]  }
0x11c3   : > { %6193 = vmatprep.subr.bf16.mxu0 %v7978_v26  ;;  %v8030_v26 = vld [vmem:[#allocation22 + $0x290] ss:$8 sps:$4 sm:$0xff]  }
0x11c6   : > { %6194 = vmatpush1.bf16.msra.mxu0 %v7976_v61  ;;  %v8035_v61 = vld [vmem:[#allocation22 + $0x2a4] ss:$8 sps:$4 sm:$0xff]  }
0x11c7   : > { %6195 = vmatprep.subr.bf16.mxu0 %v7981_v5  ;;  %v8033_v5 = vld [vmem:[#allocation22 + $0x2a0] ss:$8 sps:$4 sm:$0xff]  }
0x11ca   : > { %6196 = vmatpush1.bf16.msra.mxu0 %v7979_v34  ;;  %v8038_v34 = vld [vmem:[#allocation22 + $0x2b4] ss:$8 sps:$4 sm:$0xff]  }
0x11cb   : > { %6197 = vmatprep.subr.bf16.mxu0 %v7984_v50  ;;  %v8036_v50 = vld [vmem:[#allocation22 + $0x2b0] ss:$8 sps:$4 sm:$0xff]  }
0x11ce   : > { %6198 = vmatpush1.bf16.msra.mxu0 %v7982_v7  ;;  %v8041_v7 = vld [vmem:[#allocation22 + $0x2c4] ss:$8 sps:$4 sm:$0xff]  }
0x11cf   : > { %6199 = vmatprep.subr.bf16.mxu0 %v7987_v53  ;;  %v8039_v53 = vld [vmem:[#allocation22 + $0x2c0] ss:$8 sps:$4 sm:$0xff]  }
0x11d2   : > { %6200 = vmatpush1.bf16.msra.mxu0 %v7985_v21  ;;  %v8044_v21 = vld [vmem:[#allocation22 + $0x2d4] ss:$8 sps:$4 sm:$0xff]  }
0x11d3   : > { %6201 = vmatprep.subr.bf16.mxu0 %v7990_v35  ;;  %v8042_v35 = vld [vmem:[#allocation22 + $0x2d0] ss:$8 sps:$4 sm:$0xff]  }
0x11d6   : > { %6202 = vmatpush1.bf16.msra.mxu0 %v7988_v16  ;;  %v8047_v16 = vld [vmem:[#allocation22 + $0x2e4] ss:$8 sps:$4 sm:$0xff]  }
0x11d7   : > { %6203 = vmatprep.subr.bf16.mxu0 %v7993_v3  ;;  %v8045_v3 = vld [vmem:[#allocation22 + $0x2e0] ss:$8 sps:$4 sm:$0xff]  }
0x11da   : > { %6204 = vmatpush1.bf16.msra.mxu0 %v7991_v18  ;;  %v8050_v18 = vld [vmem:[#allocation22 + $0x2f4] ss:$8 sps:$4 sm:$0xff]  }
0x11db   : > { %6205 = vmatprep.subr.bf16.mxu0 %v7996_v25  ;;  %v8048_v25 = vld [vmem:[#allocation22 + $0x2f0] ss:$8 sps:$4 sm:$0xff]  }
0x11de   : > { %6206 = vmatpush1.bf16.msra.mxu0 %v7994_v2  ;;  %v5344_v2 = vrot.slane %v11155_v27, 2  ;;  %v8060_v27 = vld [vmem:[#allocation22 + $0x330] ss:$8 sps:$4 sm:$0xff]  }
0x11df   : > { %6207 = vmatprep.subr.bf16.mxu0 %v7999_v17  ;;  %v8053_v17 = vld [vmem:[#allocation22 + $0x304] ss:$8 sps:$4 sm:$0xff]  }
0x11e2   : > { %6208 = vmatpush1.bf16.msra.mxu0 %v7997_v39 }
0x11e3   : > { %6209 = vmatprep.subr.bf16.mxu0 %v8002_v49  ;;  %v8051_v49 = vld [vmem:[#allocation22 + $0x300] ss:$8 sps:$4 sm:$0xff]  }
0x11e6   : > { %6210 = vmatpush1.bf16.msra.mxu0 %v8000_v58  ;;  %v5354_v58 = vpack.c.bf16 %v5344_v2, %v5344_v2  ;;  %v8121_v2 = vld [vmem:[%s12511_s6 + $0x30] sm:$0xff]  }
0x11e7   : > { %6220 = vmatprep.subr.bf16.mxu0 %v8005_v44  ;;  %v8056_v44 = vld [vmem:[#allocation22 + $0x314] ss:$8 sps:$4 sm:$0xff]  }
0x11f5   : > { %v5290_v31 = vpop.xlane.xlu1 %5289 }
0x11f6   : > { %v5336_v9 = vadd.f32 1e-16, %v5290_v31 }
0x11f8   : > { %8201 = vrcp.f32 %v5336_v9  ;;  %v8054_v9 = vld [vmem:[#allocation22 + $0x310] ss:$8 sps:$4 sm:$0xff]  }
0x1202   : > { %v8202_v41 = vpop.eup %8201 }
0x123c   : > { %v5329_v45 = vpop.f32.mrb[64].mxu0 }
0x123d   : > { %v11174_v38 = vmul.f32 %v8202_v41, %v5329_v45  ;;  %v5331_v24 = vpop.f32.mrb[65].mxu0  ;;  %v8057_v45 = vld [vmem:[#allocation22 + $0x320] ss:$8 sps:$4 sm:$0xff]  }
0x123e   : > { %v11176_v48 = vmul.f32 %v8202_v41, %v5331_v24  ;;  %v5333_v62 = vpop.f32.mrb[66].mxu0  ;;  %v8059_v41 = vld [vmem:[#allocation22 + $0x324] ss:$8 sps:$4 sm:$0xff]   ;;  %v8062_v24 = vld [vmem:[#allocation22 + $0x334] ss:$8 sps:$4 sm:$0xff]  }
0x123f   : > { %v5334_v29 = vpop.f32.mrb[67].mxu0  ;;  %v5352_v0 = vpack.c.bf16 %v11174_v38, %v11174_v38  ;;  %v8063_v62 = vld [vmem:[#allocation22 + $0x340] ss:$8 sps:$4 sm:$0xff]  }
0x1240   : > { %v5353_v8 = vpack.c.bf16 %v11176_v48, %v11176_v48  ;;  %v5347_v39 = vrot.slane %v11176_v48, 2  ;;  %v8065_v48 = vld [vmem:[#allocation22 + $0x344] ss:$8 sps:$4 sm:$0xff]   ;;  %v8066_v29 = vld [vmem:[#allocation22 + $0x350] ss:$8 sps:$4 sm:$0xff]  }
0x1242   : > { %6211 = vmatprep.mubr.bf16.mxu0 %v5353_v8  ;;  %v5357_v31 = vpack.c.bf16 %v5347_v39, %v5347_v39  ;;  %v8071_v8 = vld [vmem:[#allocation22 + $0x364] ss:$8 sps:$4 sm:$0xff]  }
0x1243   : > { %6212 = vmatmul.mubr.bf16.vlgmr.msra.gmra.mrb[68].mxu0 %v5352_v0  ;;  %v8074_v0 = vld [vmem:[#allocation22 + $0x374] ss:$8 sps:$4 sm:$0xff]  }
0x1244   : > { %6221 = vmatpush1.bf16.msra.mxu0 %v8003_v19  ;;  %6252 = vmatprep.mubr.bf16.mxu0 %v5355_v14  ;;  %v8069_v19 = vld [vmem:[#allocation22 + $0x360] ss:$8 sps:$4 sm:$0xff]   ;;  %v8077_v14 = vld [vmem:[#allocation22 + $0x384] ss:$8 sps:$4 sm:$0xff]  }
0x1245   : > { %6222 = vmatprep.subr.bf16.mxu0 %v8008_v59  ;;  %v8072_v59 = vld [vmem:[#allocation22 + $0x370] ss:$8 sps:$4 sm:$0xff]  }
0x1248   : > { %6223 = vmatpush1.bf16.msra.mxu0 %v8006_v33  ;;  %v8083_v33 = vld [vmem:[#allocation22 + $0x3a4] ss:$8 sps:$4 sm:$0xff]  }
0x1249   : > { %6224 = vmatprep.subr.bf16.mxu0 %v8011_v13  ;;  %v8081_v13 = vld [vmem:[#allocation22 + $0x3a0] ss:$8 sps:$4 sm:$0xff]  }
0x124c   : > { %6225 = vmatpush1.bf16.msra.mxu0 %v8009_v51  ;;  %v8089_v51 = vld [vmem:[#allocation22 + $0x3c4] ss:$8 sps:$4 sm:$0xff]  }
0x124d   : > { %6226 = vmatprep.subr.bf16.mxu0 %v8014_v4  ;;  %v8087_v4 = vld [vmem:[#allocation22 + $0x3c0] ss:$8 sps:$4 sm:$0xff]  }
0x1250   : > { %6227 = vmatpush1.bf16.msra.mxu0 %v8012_v60  ;;  %v8095_v60 = vld [vmem:[#allocation22 + $0x3e4] ss:$8 sps:$4 sm:$0xff]  }
0x1251   : > { %6228 = vmatprep.subr.bf16.mxu0 %v8017_v11  ;;  %v8093_v11 = vld [vmem:[#allocation22 + $0x3e0] ss:$8 sps:$4 sm:$0xff]  }
0x1254   : > { %6229 = vmatpush1.bf16.msra.mxu0 %v8015_v12  ;;  %v5346_v12 = vrot.slane %v11174_v38, 2  ;;  %v8114_v38 = vld [vmem:[%s12507_s4 + $0x38] sm:$0xff]  }
0x1255   : > { %6230 = vmatprep.subr.bf16.mxu0 %v8020_v54 }
0x1256   : > { %v5356_v54 = vpack.c.bf16 %v5346_v12, %v5346_v12 }
0x1258   : > { %6231 = vmatpush1.bf16.msra.mxu0 %v8018_v52  ;;  %v8113_v52 = vld [vmem:[%s12507_s4 + $0x78] sm:$0xff]  }
0x1259   : > { %6232 = vmatprep.subr.bf16.mxu0 %v8023_v40  ;;  %7557 = vmatprep.subr.bf16.mxu1 %v8113_v52  ;;  %v12508_v40 = vmov 0.0  }
0x125a   : > { %7558 = vmatpush3.bf16.msra.mxu1 %v8114_v38 }
0x125b   : > { %7668 = vmatprep.subr.bf16.mxu1 %v12508_v40 }
0x125c   : > { %6233 = vmatpush1.bf16.msra.mxu0 %v8021_v10  ;;  %v12509_v10 = vsub.s32 0, %v10636_v57 }
0x125d   : > { %6234 = vmatprep.subr.bf16.mxu0 %v8026_v30 }
0x125e   : > { %v5491_v30 = vrot.slane %v5486_v15, %v12509_v10 }
0x1260   : > { %6235 = vmatpush1.bf16.msra.mxu0 %v8024_v28  ;;  %v12510_v28 = vsub.s32 1, %v10636_v57  ;;  %v8116_v57 = vld [vmem:[%s12511_s6 + $0x8] sm:$0xff]  }
0x1261   : > { %6236 = vmatprep.subr.bf16.mxu0 %v8029_v47 }
0x1262   : > { %v5495_v47 = vrot.slane %v5486_v15, %v12510_v28 }
0x1264   : > { %6237 = vmatpush1.bf16.msra.mxu0 %v8027_v23 }
0x1265   : > { %6238 = vmatprep.subr.bf16.mxu0 %v8032_v37 }
0x1268   : > { %6239 = vmatpush1.bf16.msra.mxu0 %v8030_v26 }
0x1269   : > { %6240 = vmatprep.subr.bf16.mxu0 %v8035_v61 }
0x126c   : > { %6241 = vmatpush1.bf16.msra.mxu0 %v8033_v5 }
0x126d   : > { %6242 = vmatprep.subr.bf16.mxu0 %v8038_v34 }
0x1270   : > { %6243 = vmatpush1.bf16.msra.mxu0 %v8036_v50 }
0x1271   : > { %6244 = vmatprep.subr.bf16.mxu0 %v8041_v7 }
0x1274   : > { %6245 = vmatpush1.bf16.msra.mxu0 %v8039_v53 }
0x1275   : > { %6246 = vmatprep.subr.bf16.mxu0 %v8044_v21  ;;  %v8115_v21 = vld [vmem:[%s12511_s6] sm:$0xff]  }
0x1278   : > { %6247 = vmatpush1.bf16.msra.mxu0 %v8042_v35 }
0x1279   : > { %6248 = vmatprep.subr.bf16.mxu0 %v8047_v16  ;;  %v8117_v16 = vld [vmem:[%s12511_s6 + $0x10] sm:$0xff]  }
0x127c   : > { %6249 = vmatpush1.bf16.msra.mxu0 %v8045_v3  ;;  %v8118_v3 = vld [vmem:[%s12511_s6 + $0x18] sm:$0xff]  }
0x127d   : > { %6250 = vmatprep.subr.bf16.mxu0 %v8050_v18  ;;  %v8119_v18 = vld [vmem:[%s12511_s6 + $0x20] sm:$0xff]  }
0x1280   : > { %6251 = vmatpush1.bf16.msra.mxu0 %v8048_v25  ;;  %v8120_v25 = vld [vmem:[%s12511_s6 + $0x28] sm:$0xff]  }
0x1281   : > { %6261 = vmatprep.subr.bf16.mxu0 %v8053_v17  ;;  %v8122_v17 = vld [vmem:[%s12511_s6 + $0x38] sm:$0xff]  }
0x1283   : > { %6253 = vmatmul.mubr.bf16.vlgmr.msra.gmra.mrb[68].mxu0 %v5354_v58 }
0x1284   : > { %6262 = vmatpush1.bf16.msra.mxu0 %v8051_v49  ;;  %6293 = vmatprep.mubr.bf16.mxu0 %v5357_v31  ;;  %v7467_v49 = vld [vmem:[#allocation25] ss:$0 sm:$0xff] }
0x1285   : > { %6263 = vmatprep.subr.bf16.mxu0 %v8056_v44 }
0x1288   : > { %6264 = vmatpush1.bf16.msra.mxu0 %v8054_v9 }
0x1289   : > { %6265 = vmatprep.subr.bf16.mxu0 %v8059_v41 }
0x128c   : > { %6266 = vmatpush1.bf16.msra.mxu0 %v8057_v45 }
0x128d   : > { %6267 = vmatprep.subr.bf16.mxu0 %v8062_v24 }
0x1290   : > { %6268 = vmatpush1.bf16.msra.mxu0 %v8060_v27  ;;  %v7484_v27 = vld [vmem:[%s12512_s14] ss:$0 sm:$0xff] }
0x1291   : > { %6269 = vmatprep.subr.bf16.mxu0 %v8065_v48 }
0x1294   : > { %6270 = vmatpush1.bf16.msra.mxu0 %v8063_v62 }
0x1295   : > { %6271 = vmatprep.subr.bf16.mxu0 %v8068_v63 }
0x1298   : > { %6272 = vmatpush1.bf16.msra.mxu0 %v8066_v29 }
0x1299   : > { %6273 = vmatprep.subr.bf16.mxu0 %v8071_v8 }
0x129c   : > { %6274 = vmatpush1.bf16.msra.mxu0 %v8069_v19 }
0x129d   : > { %6275 = vmatprep.subr.bf16.mxu0 %v8074_v0 }
0x12a0   : > { %6276 = vmatpush1.bf16.msra.mxu0 %v8072_v59 }
0x12a1   : > { %6277 = vmatprep.subr.bf16.mxu0 %v8077_v14 }
0x12a4   : > { %6278 = vmatpush1.bf16.msra.mxu0 %v8075_v55 }
0x12a5   : > { %6279 = vmatprep.subr.bf16.mxu0 %v8080_v32 }
0x12a8   : > { %6280 = vmatpush1.bf16.msra.mxu0 %v8078_v6 }
0x12a9   : > { %6281 = vmatprep.subr.bf16.mxu0 %v8083_v33 }
0x12ac   : > { %6282 = vmatpush1.bf16.msra.mxu0 %v8081_v13 }
0x12ad   : > { %6283 = vmatprep.subr.bf16.mxu0 %v8086_v43 }
0x12b0   : > { %6284 = vmatpush1.bf16.msra.mxu0 %v8084_v22 }
0x12b1   : > { %6285 = vmatprep.subr.bf16.mxu0 %v8089_v51 }
0x12b4   : > { %6286 = vmatpush1.bf16.msra.mxu0 %v8087_v4 }
0x12b5   : > { %6287 = vmatprep.subr.bf16.mxu0 %v8092_v1 }
0x12b8   : > { %6288 = vmatpush1.bf16.msra.mxu0 %v8090_v36 }
0x12b9   : > { %6289 = vmatprep.subr.bf16.mxu0 %v8095_v60 }
0x12bc   : > { %6290 = vmatpush1.bf16.msra.mxu0 %v8093_v11 }
0x12bd   : > { %6291 = vmatprep.subr.bf16.mxu0 %v8098_v46 }
0x12c0   : > { %6292 = vmatpush1.bf16.msra.mxu0 %v8096_v56 }
0x12c3   : > { %6294 = vmatmul.mubr.bf16.vlgmr.msra.gmra.mrb[68].mxu0 %v5356_v54 }
0x1396   : > { %v6295_v23 = vpop.f32.mrb[68].mxu0 }
0x1397   : > { %v7688_v37 = vadd.f32 %v6295_v23, %v5491_v30  ;;  %v6297_v26 = vpop.f32.mrb[69].mxu0 }
0x1398   : > { %v7689_v61 = vadd.f32 %v6297_v26, %v5495_v47  ;;  %v6299_v5 = vpop.f32.mrb[70].mxu0 }
0x1399   : > { %v6302_v34 = vmax.f32 %v7688_v37, 0.0  ;;  %v6300_v50 = vpop.f32.mrb[71].mxu0 }
0x139a   : > { %v6303_v7 = vmax.f32 %v7689_v61, 0.0 }
0x139b   : > { %v6304_v35 = vpack.c.bf16 %v6302_v34, %v6302_v34 }
0x139c   : > { %v6305_v53 = vpack.c.bf16 %v6303_v7, %v6303_v7 }
0x139e   : > { %6473 = vmatprep.mubr.bf16.mxu1 %v6305_v53 }
0x139f   : > { %6474 = vmatmul.mubr.bf16.vlgmr.msra.gmra.mrb[84].mxu1 %v6304_v35 }
0x13a0   : > { %7669 = vmatpush3.bf16.msra.mxu1 %v8115_v21  ;;  %7684 = vmatprep.mubr.msk.bf16.mxu1 %vm8751_vm3, %v12508_v40 }
0x13a1   : > { %7670 = vmatprep.subr.bf16.mxu1 %v12508_v40 }
0x13a4   : > { %7671 = vmatpush3.bf16.msra.mxu1 %v8116_v57 }
0x13a5   : > { %7672 = vmatprep.subr.bf16.mxu1 %v12508_v40 }
0x13a8   : > { %7673 = vmatpush3.bf16.msra.mxu1 %v8117_v16 }
0x13a9   : > { %7674 = vmatprep.subr.bf16.mxu1 %v12508_v40 }
0x13ac   : > { %7675 = vmatpush3.bf16.msra.mxu1 %v8118_v3 }
0x13ad   : > { %7676 = vmatprep.subr.bf16.mxu1 %v12508_v40 }
0x13b0   : > { %7677 = vmatpush3.bf16.msra.mxu1 %v8119_v18 }
0x13b1   : > { %7678 = vmatprep.subr.bf16.mxu1 %v12508_v40 }
0x13b4   : > { %7679 = vmatpush3.bf16.msra.mxu1 %v8120_v25 }
0x13b5   : > { %7680 = vmatprep.subr.bf16.mxu1 %v12508_v40 }
0x13b8   : > { %7681 = vmatpush3.bf16.msra.mxu1 %v8121_v2 }
0x13b9   : > { %7682 = vmatprep.subr.bf16.mxu1 %v12508_v40 }
0x13bc   : > { %7683 = vmatpush3.bf16.msra.mxu1 %v8122_v17 }
0x1472   : > { %v7559_v39 = vpop.f32.mrb[84].mxu1 }
0x1473   : > { %v7560_v58 = vpop.f32.mrb[85].mxu1 }
0x1474   : > { %v7561_v44 = vadd.f32 %v7560_v58, %v7559_v39  ;;  %v7562_v31 = vpop.f32.mrb[86].mxu1 }
0x1475   : > { %v7563_v9 = vpop.f32.mrb[87].mxu1 }
0x1476   : > { %v6476_v41 = vadd.f32 %v7561_v44, %v7467_v49 }
0x1478   : > { %v6481_v45 = vmax.f32 %v6476_v41, 0.0 }
0x147a   : > { %v6482_v24 = vpack.c.bf16 %v6481_v45, %v6481_v45 }
0x147c   : > { %7685 = vmatmul.mubr.bf16.vlgmr.msra.gmra.mrb[88].mxu1 %v6482_v24 }
0x154f   : > { %v6588_v48 = vpop.f32.mrb[88].mxu1 }
0x1550   : > { %v6589_v62 = vadd.f32 %v7484_v27, %v6588_v48  ;;  %v7686_v63 = vpop.f32.mrb[89].mxu1 }
0x1551   : > { %v6591_v29 = vpop.f32.mrb[90].mxu1 }
0x1552   : > { %v7493_v8 = vmul.f32 -1.442695, %v6589_v62  ;;  %v7687_v19 = vpop.f32.mrb[91].mxu1 }
0x1554   : > { %8203 = vpow2.f32 %v7493_v8 }
0x155e   : > { %v8204_v0 = vpop.eup %8203 }
0x155f   : > { %v6597_v59 = vadd.f32 1.0, %v8204_v0 }
0x1561   : > { %8205 = vrcp.f32 %v6597_v59 }
0x156b   : > { %v8206_v14 = vpop.eup %8205 }
0x156c   : > { %6600 = vst [vmem:[%s907_s21] sm:$0x3] %v8206_v14 }
0x156d   : > { %8646 = shalt.err (!%p8643_p7)
}
0x156e   : > { %s8647_s29 = scalar_lea.hbm %s11280_s17, 32  ;;  %s8651_s9 = scalar_lea.hbm %s12513_s28, 128 }
0x156f   : > { %p8648_p11 = scmp.ne.s32.totalorder %s11280_s17, %s8647_s29  ;;  %p8652_p9 = scmp.lt.u32.totalorder %s11280_s17, %s12513_s28 }
0x1570   : > { %p8653_p10 = scmp.lt.u32.totalorder %s8651_s9, %s8647_s29  ;;  %p8655_p1 = scmp.lt.u32.totalorder %s8647_s29, %s11280_s17 }
0x1571   : > { %p8649_p6 = pnand %p8648_p11, %p12514_p13 }
0x1572   : > { %p8654_p2 = por %p8653_p10, %p8652_p9 }
0x1573   : > { %p8650_p12 = pneg %p8649_p6 }
0x1574   : > { %p8656_p3 = por %p8655_p1, %p8654_p2 }
0x1576   : > { %p8657_p0 = pnand %p8656_p3, %p8650_p12 }
0x1578   : > { %8660 = shalt.err (!%p8657_p0)
}
0x1579   : > { %7756 = dma.vmem_to_hbm [thread:$0]  (%p12514_p13), %s11282_s19, 32, %s11280_s17, %s6602_s30  }
0x157a PF: > { %s12515_s8 = sld [smem:[#allocation39_spill]]  ;;  %p7834_p4 = scmp.ge.s32.totalorder %s8727_s24, 2 }
0x157b   : > { %s6627_s10 = sand.u32 1, %s8715_s1  }
0x157c   : > { %s6628_s21 = scalar_lea.sflag [#allocation4], %s6627_s10 }
0x1580   : > { %p12516_p8 = scmp.ne.s32.totalorder %s12515_s8, 0 }
0x1582   : > { %p7806_p5 = pnand %p7834_p4, %p12516_p8 }
0x1584   : > { %8710 = dma.done.wait (!%p7806_p5), %s6628_s21, 32  }
0x1585   : > { %8712 = vsyncadd (!%p7806_p5), %s6628_s21, 4294967264  ;;  %s12517_s24 = sld [smem:[#allocation37_spill]]  ;;  %s12518_s11 = sld [smem:[#allocation38_spill]] }
0x1586   : > { %s12519_s1 = smov %s8719_s22  ;;  %s12520_s22 = smov %s8723_s23 }
0x158b   : > { %p42_p7 = scmp.ge.s32.totalorder %s12517_s24, 6   ;;  %s12521_s23 = smov %s12518_s11 }
0x158d   :  { %44 = sbr.rel (!%p42_p7) target bundleno = 34 (0x22), region = 223 }
0x1594   :  { %6633 = vsyncpa [#allocation3], 1 }
0x1595   :  { %6635 = vsyncpa [#allocation3 + $0x1], 1 }
0x1596   :  { %6636 = vsyncpa [#allocation6], 1 }
0x1597   :  { %6638 = vsyncpa [#allocation6 + $0x1], 1 }
0x1598   :  { %6639 = vsyncpa [#allocation9], 1 }
0x1599   :  { %6640 = vsyncpa [#allocation12], 1 }
0x159a   :  { %6641 = vsyncpa [#allocation15], 1 }
0x159b   :  { %6642 = vsyncpa [#allocation18], 1 }
0x159c   :  { %6643 = vsyncpa [#allocation21], 1 }
0x159d   :  { %6644 = vsyncpa [#allocation24], 1 }
0x159e   :  { %6645 = vsyncpa [#allocation4], 1 }
0x159f   :  { %6647 = vsyncpa [#allocation4 + $0x1], 1 }

</bundles_post_ra>
